<compile_context>
chip_gen: v5e
topology: v5e:2x2
jax: 0.10.0
libtpu: 0.0.40
codegen_flags: <defaults>
</compile_context>

<pallas_src>
import functools

import jax
import jax.numpy as jnp
from jax.experimental import pallas as pl
from jax.experimental.pallas import tpu as pltpu


FC1_TK = 1920  # K tile for fc1 (multiple of 128; 7 steps for K=13125 -> 13440)


def _round_up(x, m):
    return (x + m - 1) // m * m


def _cdiv(a, b):
    return (a + b - 1) // b


def _num_tensorcores():
    """2 M-blocks (parallel axis) on v7x (2 TCs/chip); 1 elsewhere."""
    try:
        kind = jax.devices()[0].device_kind.lower()
        if "v7" in kind or kind.endswith("7x"):
            return 2
    except Exception:
        pass
    return 1


# ---------------------------------------------------------------------------
# Pallas kernel: matmul + bias (+ ReLU), accumulating directly into o_ref.
# Grid = (m_blocks, k_steps); k axis last ("arbitrary"), m axis "parallel".
# ---------------------------------------------------------------------------
def _matmul_bias_kernel(x_ref, w_ref, b_ref, o_ref, *, apply_relu, nsteps):
    acc = jnp.dot(
        x_ref[...].astype(w_ref.dtype), w_ref[...],
        preferred_element_type=jnp.float32,
    )
    if nsteps == 1:
        out = acc + b_ref[...]
        if apply_relu:
            out = jnp.maximum(out, 0.0)
        o_ref[...] = out
    else:
        k = pl.program_id(1)

        @pl.when(k == 0)
        def _():
            o_ref[...] = jnp.zeros_like(o_ref)

        o_ref[...] += acc

        @pl.when(k == nsteps - 1)
        def _():
            out = o_ref[...] + b_ref[...]
            if apply_relu:
                out = jnp.maximum(out, 0.0)
            o_ref[...] = out


def pallas_matmul_bias(x, w, b, *, apply_relu, tk=None, m_blocks=1):
    """relu?(x @ w + b).  x:(M, K) f32 with K already padded to w's K;
    w:(K, N_pad), b:(1, N_pad) are pre-padded at init."""
    M, K = x.shape
    Kw, N_pad = w.shape
    assert K == Kw, (K, Kw)
    if tk is None:
        tk = K  # single K step
    assert K % tk == 0 and tk % 128 == 0

    nsteps = K // tk
    block_m = _round_up(_cdiv(M, m_blocks), 8)
    M_pad = block_m * m_blocks
    if M_pad != M:
        x = jnp.pad(x, ((0, M_pad - M), (0, 0)))

    kernel = functools.partial(
        _matmul_bias_kernel, apply_relu=apply_relu, nsteps=nsteps
    )
    out = pl.pallas_call(
        kernel,
        out_shape=jax.ShapeDtypeStruct((M_pad, N_pad), jnp.float32),
        grid_spec=pltpu.PrefetchScalarGridSpec(
            num_scalar_prefetch=0,
            grid=(m_blocks, nsteps),
            in_specs=[
                pl.BlockSpec((block_m, tk), lambda i, k: (i, k)),
                pl.BlockSpec((tk, N_pad), lambda i, k: (k, 0)),
                pl.BlockSpec((1, N_pad), lambda i, k: (0, 0)),
            ],
            out_specs=pl.BlockSpec((block_m, N_pad), lambda i, k: (i, 0)),
        ),
        compiler_params=pltpu.CompilerParams(
            dimension_semantics=("parallel", "arbitrary"),
            vmem_limit_bytes=32 << 20,
        ),
    )(x, w, b)
    return out[:M]


# ---------------------------------------------------------------------------
# Pallas kernel: fused fc1 (tiled over K, bf16 weight, f32 accumulate, ReLU)
# followed by fc2 in the finalize step on the VMEM-resident activation.
# ---------------------------------------------------------------------------
def _fused_fc_kernel(x_ref, w1_ref, b1_ref, w2_ref, b2_ref, o_ref, acc_ref, *, nsteps):
    k = pl.program_id(0)

    @pl.when(k == 0)
    def _():
        acc_ref[...] = jnp.zeros_like(acc_ref)

    acc_ref[...] += jnp.dot(
        x_ref[...].astype(w1_ref.dtype), w1_ref[...],
        preferred_element_type=jnp.float32,
    )

    @pl.when(k == nsteps - 1)
    def _():
        h = jnp.maximum(acc_ref[...] + b1_ref[...], 0.0)       # relu(fc1)
        o_ref[...] = (
            jnp.dot(h.astype(w2_ref.dtype), w2_ref[...],
                    preferred_element_type=jnp.float32)
            + b2_ref[...]
        )                                                        # fc2


def pallas_fused_fc(x, w1, b1, w2, b2, *, tk):
    """fc2(relu(fc1(x))).  x:(M, K1) f32 with K1 pre-padded to a tk multiple;
    w1:(K1, N1) bf16, b1:(1, N1), w2:(N1, N2), b2:(1, N2) pre-padded."""
    M, K1 = x.shape
    K1w, N1 = w1.shape
    N1w, N2 = w2.shape
    assert K1 == K1w and N1 == N1w and K1 % tk == 0
    nsteps = K1 // tk

    M_pad = _round_up(M, 8)
    if M_pad != M:
        x = jnp.pad(x, ((0, M_pad - M), (0, 0)))

    kernel = functools.partial(_fused_fc_kernel, nsteps=nsteps)
    out = pl.pallas_call(
        kernel,
        out_shape=jax.ShapeDtypeStruct((M_pad, N2), jnp.float32),
        grid_spec=pltpu.PrefetchScalarGridSpec(
            num_scalar_prefetch=0,
            grid=(nsteps,),
            in_specs=[
                pl.BlockSpec((M_pad, tk), lambda k: (0, k)),
                pl.BlockSpec((tk, N1), lambda k: (k, 0)),
                pl.BlockSpec((1, N1), lambda k: (0, 0)),
                pl.BlockSpec((N1, N2), lambda k: (0, 0)),
                pl.BlockSpec((1, N2), lambda k: (0, 0)),
            ],
            out_specs=pl.BlockSpec((M_pad, N2), lambda k: (0, 0)),
            scratch_shapes=[pltpu.VMEM((M_pad, N1), jnp.float32)],
        ),
        compiler_params=pltpu.CompilerParams(
            dimension_semantics=("arbitrary",),
            vmem_limit_bytes=32 << 20,
        ),
    )(x, w1, b1, w2, b2)
    return out[:M]


# ---------------------------------------------------------------------------
# Glue: im2col patch extraction (K zero-padding folded into the concat).
# ---------------------------------------------------------------------------
def im2col(x_nhwc, kh, kw, stride, k_pad_to):
    N, H, W, C = x_nhwc.shape
    OH = (H - kh) // stride + 1
    OW = (W - kw) // stride + 1
    patches = []
    for i in range(kh):
        for j in range(kw):
            patches.append(
                x_nhwc[:, i: i + (OH - 1) * stride + 1: stride,
                          j: j + (OW - 1) * stride + 1: stride, :]
            )
    k = kh * kw * C
    if k_pad_to > k:
        patches.append(jnp.zeros((N, OH, OW, k_pad_to - k), x_nhwc.dtype))
    p = jnp.concatenate(patches, axis=-1)            # (N, OH, OW, k_pad_to)
    return p.reshape(N * OH * OW, k_pad_to), OH, OW


# ---------------------------------------------------------------------------
# StdNet parameters (pre-padded / pre-permuted / fc1 in bf16) and forward.
# ---------------------------------------------------------------------------
def init_params(key, f_in=3, nb_classes=10, fc1_tk=FC1_TK):
    ks = jax.random.split(key, 8)
    scale = 0.05
    k1 = 7 * 7 * f_in        # conv1 im2col K = 147
    k2 = 5 * 5 * 12          # conv2 im2col K = 300
    kf1 = 21 * 25 * 25       # fc1 K = 13125 (torch NCHW flatten order)

    w1 = scale * jax.random.normal(ks[0], (k1, 12), jnp.float32)
    b1 = scale * jax.random.normal(ks[1], (12,), jnp.float32)
    w2 = scale * jax.random.normal(ks[2], (k2, 21), jnp.float32)
    b2 = scale * jax.random.normal(ks[3], (21,), jnp.float32)
    wfc1 = scale * jax.random.normal(ks[4], (kf1, 150), jnp.float32)
    bfc1 = scale * jax.random.normal(ks[5], (150,), jnp.float32)
    wfc2 = scale * jax.random.normal(ks[6], (150, nb_classes), jnp.float32)
    bfc2 = scale * jax.random.normal(ks[7], (nb_classes,), jnp.float32)

    # Permute fc1 rows from torch's NCHW flatten order (c*625 + h*25 + w) to
    # the internal NHWC flatten order ((h*25 + w)*21 + c), so the runtime
    # transpose before flatten is eliminated.
    hh, ww, cc = jnp.meshgrid(jnp.arange(25), jnp.arange(25), jnp.arange(21),
                              indexing="ij")
    perm = (cc * (25 * 25) + hh * 25 + ww).reshape(-1)
    wfc1_nhwc = wfc1[perm]

    def pad_w(w, kp, np_):
        return jnp.pad(w, ((0, kp - w.shape[0]), (0, np_ - w.shape[1])))

    def pad_b(b, np_):
        return jnp.pad(b, (0, np_ - b.shape[0])).reshape(1, np_)

    k1p, k2p = _round_up(k1, 128), _round_up(k2, 128)       # 256, 384
    kf1p = _round_up(kf1, fc1_tk)                            # 13440
    nf1p = _round_up(150, 128)                               # 256
    nf2p = _round_up(nb_classes, 128)                        # 128

    return {
        "w1": pad_w(w1, k1p, 128), "b1": pad_b(b1, 128),
        "w2": pad_w(w2, k2p, 128), "b2": pad_b(b2, 128),
        # fc1 weight streamed from HBM in bf16 (f32 accumulation in-kernel).
        "wfc1": pad_w(wfc1_nhwc, kf1p, nf1p).astype(jnp.bfloat16),
        "bfc1": pad_b(bfc1, nf1p),
        "wfc2": pad_w(wfc2, nf1p, nf2p), "bfc2": pad_b(bfc2, nf2p),
    }


def stdnet_forward(x_nchw, params, nb_classes=10):
    N = x_nchw.shape[0]
    x = jnp.transpose(x_nchw, (0, 2, 3, 1))                  # NCHW -> NHWC
    m_blocks = _num_tensorcores()

    # conv1: 3 -> 12, kernel 7, stride 2, + ReLU
    p1, oh1, ow1 = im2col(x, 7, 7, 2, k_pad_to=params["w1"].shape[0])
    h1 = pallas_matmul_bias(p1, params["w1"], params["b1"],
                            apply_relu=True, m_blocks=m_blocks)
    h1 = h1[:, :12].reshape(N, oh1, ow1, 12)

    # conv2: 12 -> 21, kernel 5, stride 1, + ReLU
    p2, oh2, ow2 = im2col(h1, 5, 5, 1, k_pad_to=params["w2"].shape[0])
    h2 = pallas_matmul_bias(p2, params["w2"], params["b2"],
                            apply_relu=True, m_blocks=m_blocks)
    # NHWC flatten (wfc1 rows were pre-permuted to this order at init).
    flat = h2[:, :21].reshape(N, oh2 * ow2 * 21)

    # fused fc1 (+ReLU) + fc2
    kf1p = params["wfc1"].shape[0]
    flat = jnp.pad(flat, ((0, 0), (0, kf1p - flat.shape[1])))
    out = pallas_fused_fc(flat, params["wfc1"], params["bfc1"],
                          params["wfc2"], params["bfc2"], tk=FC1_TK)
    return out[:, :nb_classes]


if __name__ == "__main__":
    key = jax.random.PRNGKey(0)
    k_x, k_p = jax.random.split(key)

    # Input spatial size 63x63 is implied by the module: conv1(7, stride2) -> 29,
    # conv2(5) -> 25, matching the hard-coded 21*25*25 flatten.
    x = jax.random.normal(k_x, (2, 3, 63, 63), jnp.float32)   # NCHW (torch-style)
    params = init_params(k_p)

    fwd = jax.jit(stdnet_forward)
    out = jax.block_until_ready(fwd(x, params))
    assert out.shape == (2, 10), out.shape
    print("KERNEL_OK")
</pallas_src>

<mosaic_0001>
module attributes {stable_mosaic.version = 11 : i64} {
  func.func @_matmul_bias_kernel(%arg0: i32, %arg1: i32, %arg2: memref<1688x256xf32, #tpu.memory_space<vmem>>, %arg3: memref<256x128xf32, #tpu.memory_space<vmem>>, %arg4: memref<1x128xf32, #tpu.memory_space<vmem>>, %arg5: memref<1688x128xf32, #tpu.memory_space<vmem>>) attributes {dimension_semantics = [#tpu.dimension_semantics<parallel>, #tpu.dimension_semantics<arbitrary>], iteration_bounds = array<i64: 1, 1>, scalar_prefetch = 0 : i64, scratch_operands = 0 : i64, tpu.core_type = #tpu.core_type<tc>, window_params = [{transform_indices = @transform_0, window_bounds = array<i64: 1688, 256>}, {transform_indices = @transform_1, window_bounds = array<i64: 256, 128>}, {pipeline_mode = #tpu.pipeline_mode<synchronous>, transform_indices = @transform_2, window_bounds = array<i64: 1, 128>}, {transform_indices = @transform_3, window_bounds = array<i64: 1688, 128>}]} {
    %c0 = arith.constant 0 : index
    %c0_0 = arith.constant 0 : index
    %0 = vector.load %arg2[%c0, %c0_0] : memref<1688x256xf32, #tpu.memory_space<vmem>>, vector<1688x256xf32>
    %c0_1 = arith.constant 0 : index
    %c0_2 = arith.constant 0 : index
    %1 = vector.load %arg3[%c0_1, %c0_2] : memref<256x128xf32, #tpu.memory_space<vmem>>, vector<256x128xf32>
    %cst = arith.constant dense<0.000000e+00> : vector<1688x128xf32>
    %2 = tpu.matmul %0, %1, %cst {dimension_numbers = #tpu.dot_dimension_numbers<[1], [0], [0], [1], [0, 0, 1, 1], [], []>} : vector<1688x256xf32>, vector<256x128xf32>, vector<1688x128xf32> -> vector<1688x128xf32>
    %c0_3 = arith.constant 0 : index
    %c0_4 = arith.constant 0 : index
    %3 = vector.load %arg4[%c0_3, %c0_4] : memref<1x128xf32, #tpu.memory_space<vmem>>, vector<1x128xf32>
    %4 = vector.broadcast %3 : vector<1x128xf32> to vector<1688x128xf32>
    %5 = arith.addf %2, %4 : vector<1688x128xf32>
    %cst_5 = arith.constant 0.000000e+00 : f32
    %6 = vector.broadcast %cst_5 : f32 to vector<1688x128xf32>
    %7 = arith.maximumf %5, %6 : vector<1688x128xf32>
    %c0_6 = arith.constant 0 : index
    %c0_7 = arith.constant 0 : index
    %8 = vector.load %arg5[%c0_6, %c0_7] : memref<1688x128xf32, #tpu.memory_space<vmem>>, vector<1688x128xf32>
    tpu.vector_store %arg5[%c0_6, %c0_7], %7 {strides = array<i32>} : memref<1688x128xf32, #tpu.memory_space<vmem>>, vector<1688x128xf32>,
    return
  }
  func.func @transform_0(%arg0: i32, %arg1: i32) -> (i32, i32) {
    %c0_i32 = arith.constant 0 : i32
    return %arg0, %arg1 : i32, i32
  }
  func.func @transform_1(%arg0: i32, %arg1: i32) -> (i32, i32) {
    %c0_i32 = arith.constant 0 : i32
    %c0_i32_0 = arith.constant 0 : i32
    return %arg1, %c0_i32 : i32, i32
  }
  func.func @transform_2(%arg0: i32, %arg1: i32) -> (i32, i32) {
    %c0_i32 = arith.constant 0 : i32
    %c0_i32_0 = arith.constant 0 : i32
    %c0_i32_1 = arith.constant 0 : i32
    return %c0_i32, %c0_i32_0 : i32, i32
  }
  func.func @transform_3(%arg0: i32, %arg1: i32) -> (i32, i32) {
    %c0_i32 = arith.constant 0 : i32
    %c0_i32_0 = arith.constant 0 : i32
    return %arg0, %c0_i32 : i32, i32
  }
}

module attributes {stable_mosaic.version = 11 : i64} {
  func.func @_matmul_bias_kernel(%arg0: i32, %arg1: i32, %arg2: memref<1256x384xf32, #tpu.memory_space<vmem>>, %arg3: memref<384x128xf32, #tpu.memory_space<vmem>>, %arg4: memref<1x128xf32, #tpu.memory_space<vmem>>, %arg5: memref<1256x128xf32, #tpu.memory_space<vmem>>) attributes {dimension_semantics = [#tpu.dimension_semantics<parallel>, #tpu.dimension_semantics<arbitrary>], iteration_bounds = array<i64: 1, 1>, scalar_prefetch = 0 : i64, scratch_operands = 0 : i64, tpu.core_type = #tpu.core_type<tc>, window_params = [{transform_indices = @transform_0, window_bounds = array<i64: 1256, 384>}, {transform_indices = @transform_1, window_bounds = array<i64: 384, 128>}, {pipeline_mode = #tpu.pipeline_mode<synchronous>, transform_indices = @transform_2, window_bounds = array<i64: 1, 128>}, {transform_indices = @transform_3, window_bounds = array<i64: 1256, 128>}]} {
    %c0 = arith.constant 0 : index
    %c0_0 = arith.constant 0 : index
    %0 = vector.load %arg2[%c0, %c0_0] : memref<1256x384xf32, #tpu.memory_space<vmem>>, vector<1256x384xf32>
    %c0_1 = arith.constant 0 : index
    %c0_2 = arith.constant 0 : index
    %1 = vector.load %arg3[%c0_1, %c0_2] : memref<384x128xf32, #tpu.memory_space<vmem>>, vector<384x128xf32>
    %cst = arith.constant dense<0.000000e+00> : vector<1256x128xf32>
    %2 = tpu.matmul %0, %1, %cst {dimension_numbers = #tpu.dot_dimension_numbers<[1], [0], [0], [1], [0, 0, 1, 1], [], []>} : vector<1256x384xf32>, vector<384x128xf32>, vector<1256x128xf32> -> vector<1256x128xf32>
    %c0_3 = arith.constant 0 : index
    %c0_4 = arith.constant 0 : index
    %3 = vector.load %arg4[%c0_3, %c0_4] : memref<1x128xf32, #tpu.memory_space<vmem>>, vector<1x128xf32>
    %4 = vector.broadcast %3 : vector<1x128xf32> to vector<1256x128xf32>
    %5 = arith.addf %2, %4 : vector<1256x128xf32>
    %cst_5 = arith.constant 0.000000e+00 : f32
    %6 = vector.broadcast %cst_5 : f32 to vector<1256x128xf32>
    %7 = arith.maximumf %5, %6 : vector<1256x128xf32>
    %c0_6 = arith.constant 0 : index
    %c0_7 = arith.constant 0 : index
    %8 = vector.load %arg5[%c0_6, %c0_7] : memref<1256x128xf32, #tpu.memory_space<vmem>>, vector<1256x128xf32>
    tpu.vector_store %arg5[%c0_6, %c0_7], %7 {strides = array<i32>} : memref<1256x128xf32, #tpu.memory_space<vmem>>, vector<1256x128xf32>,
    return
  }
  func.func @transform_0(%arg0: i32, %arg1: i32) -> (i32, i32) {
    %c0_i32 = arith.constant 0 : i32
    return %arg0, %arg1 : i32, i32
  }
  func.func @transform_1(%arg0: i32, %arg1: i32) -> (i32, i32) {
    %c0_i32 = arith.constant 0 : i32
    %c0_i32_0 = arith.constant 0 : i32
    return %arg1, %c0_i32 : i32, i32
  }
  func.func @transform_2(%arg0: i32, %arg1: i32) -> (i32, i32) {
    %c0_i32 = arith.constant 0 : i32
    %c0_i32_0 = arith.constant 0 : i32
    %c0_i32_1 = arith.constant 0 : i32
    return %c0_i32, %c0_i32_0 : i32, i32
  }
  func.func @transform_3(%arg0: i32, %arg1: i32) -> (i32, i32) {
    %c0_i32 = arith.constant 0 : i32
    %c0_i32_0 = arith.constant 0 : i32
    return %arg0, %c0_i32 : i32, i32
  }
}

module attributes {stable_mosaic.version = 11 : i64} {
  func.func @_fused_fc_kernel(%arg0: i32, %arg1: memref<8x1920xf32, #tpu.memory_space<vmem>>, %arg2: memref<1920x256xbf16, #tpu.memory_space<vmem>>, %arg3: memref<1x256xf32, #tpu.memory_space<vmem>>, %arg4: memref<256x128xf32, #tpu.memory_space<vmem>>, %arg5: memref<1x128xf32, #tpu.memory_space<vmem>>, %arg6: memref<8x128xf32, #tpu.memory_space<vmem>>, %arg7: memref<8x256xf32, #tpu.memory_space<vmem>>) attributes {dimension_semantics = [#tpu.dimension_semantics<arbitrary>], iteration_bounds = array<i64: 7>, scalar_prefetch = 0 : i64, scratch_operands = 1 : i64, tpu.core_type = #tpu.core_type<tc>, window_params = [{transform_indices = @transform_0, window_bounds = array<i64: 8, 1920>}, {transform_indices = @transform_1, window_bounds = array<i64: 1920, 256>}, {pipeline_mode = #tpu.pipeline_mode<synchronous>, transform_indices = @transform_2, window_bounds = array<i64: 1, 256>}, {pipeline_mode = #tpu.pipeline_mode<synchronous>, transform_indices = @transform_3, window_bounds = array<i64: 256, 128>}, {pipeline_mode = #tpu.pipeline_mode<synchronous>, transform_indices = @transform_4, window_bounds = array<i64: 1, 128>}, {pipeline_mode = #tpu.pipeline_mode<synchronous>, transform_indices = @transform_5, window_bounds = array<i64: 8, 128>}]} {
    %c0_i32 = arith.constant 0 : i32
    %0 = arith.cmpi eq, %arg0, %c0_i32 : i32
    %1 = arith.extui %0 : i1 to i32
    %c0_i32_0 = arith.constant 0 : i32
    %2 = arith.cmpi ne, %1, %c0_i32_0 : i32
    scf.if %2 {
      %cst_9 = arith.constant 0.000000e+00 : f32
      %13 = vector.broadcast %cst_9 : f32 to vector<8x256xf32>
      %c0_10 = arith.constant 0 : index
      %c0_11 = arith.constant 0 : index
      %14 = vector.load %arg7[%c0_10, %c0_11] : memref<8x256xf32, #tpu.memory_space<vmem>>, vector<8x256xf32>
      tpu.vector_store %arg7[%c0_10, %c0_11], %13 {strides = array<i32>} : memref<8x256xf32, #tpu.memory_space<vmem>>, vector<8x256xf32>,
    } else {
    }
    %c0 = arith.constant 0 : index
    %c0_1 = arith.constant 0 : index
    %3 = vector.load %arg7[%c0, %c0_1] : memref<8x256xf32, #tpu.memory_space<vmem>>, vector<8x256xf32>
    %c0_2 = arith.constant 0 : index
    %c0_3 = arith.constant 0 : index
    %4 = vector.load %arg1[%c0_2, %c0_3] : memref<8x1920xf32, #tpu.memory_space<vmem>>, vector<8x1920xf32>
    %5 = arith.truncf %4 : vector<8x1920xf32> to vector<8x1920xbf16>
    %c0_4 = arith.constant 0 : index
    %c0_5 = arith.constant 0 : index
    %6 = vector.load %arg2[%c0_4, %c0_5] : memref<1920x256xbf16, #tpu.memory_space<vmem>>, vector<1920x256xbf16>
    %cst = arith.constant dense<0.000000e+00> : vector<8x256xf32>
    %7 = tpu.matmul %5, %6, %cst {dimension_numbers = #tpu.dot_dimension_numbers<[1], [0], [0], [1], [0, 0, 1, 1], [], []>} : vector<8x1920xbf16>, vector<1920x256xbf16>, vector<8x256xf32> -> vector<8x256xf32>
    %8 = arith.addf %3, %7 : vector<8x256xf32>
    %c0_6 = arith.constant 0 : index
    %c0_7 = arith.constant 0 : index
    %9 = vector.load %arg7[%c0_6, %c0_7] : memref<8x256xf32, #tpu.memory_space<vmem>>, vector<8x256xf32>
    tpu.vector_store %arg7[%c0_6, %c0_7], %8 {strides = array<i32>} : memref<8x256xf32, #tpu.memory_space<vmem>>, vector<8x256xf32>,
    %c6_i32 = arith.constant 6 : i32
    %10 = arith.cmpi eq, %arg0, %c6_i32 : i32
    %11 = arith.extui %10 : i1 to i32
    %c0_i32_8 = arith.constant 0 : i32
    %12 = arith.cmpi ne, %11, %c0_i32_8 : i32
    scf.if %12 {
      %c0_9 = arith.constant 0 : index
      %c0_10 = arith.constant 0 : index
      %13 = vector.load %arg7[%c0_9, %c0_10] : memref<8x256xf32, #tpu.memory_space<vmem>>, vector<8x256xf32>
      %c0_11 = arith.constant 0 : index
      %c0_12 = arith.constant 0 : index
      %14 = vector.load %arg3[%c0_11, %c0_12] : memref<1x256xf32, #tpu.memory_space<vmem>>, vector<1x256xf32>
      %15 = vector.broadcast %14 : vector<1x256xf32> to vector<8x256xf32>
      %16 = arith.addf %13, %15 : vector<8x256xf32>
      %cst_13 = arith.constant 0.000000e+00 : f32
      %17 = vector.broadcast %cst_13 : f32 to vector<8x256xf32>
      %18 = arith.maximumf %16, %17 : vector<8x256xf32>
      %c0_14 = arith.constant 0 : index
      %c0_15 = arith.constant 0 : index
      %19 = vector.load %arg4[%c0_14, %c0_15] : memref<256x128xf32, #tpu.memory_space<vmem>>, vector<256x128xf32>
      %cst_16 = arith.constant dense<0.000000e+00> : vector<8x128xf32>
      %20 = tpu.matmul %18, %19, %cst_16 {dimension_numbers = #tpu.dot_dimension_numbers<[1], [0], [0], [1], [0, 0, 1, 1], [], []>} : vector<8x256xf32>, vector<256x128xf32>, vector<8x128xf32> -> vector<8x128xf32>
      %c0_17 = arith.constant 0 : index
      %c0_18 = arith.constant 0 : index
      %21 = vector.load %arg5[%c0_17, %c0_18] : memref<1x128xf32, #tpu.memory_space<vmem>>, vector<1x128xf32>
      %22 = vector.broadcast %21 : vector<1x128xf32> to vector<8x128xf32>
      %23 = arith.addf %20, %22 : vector<8x128xf32>
      %c0_19 = arith.constant 0 : index
      %c0_20 = arith.constant 0 : index
      %24 = vector.load %arg6[%c0_19, %c0_20] : memref<8x128xf32, #tpu.memory_space<vmem>>, vector<8x128xf32>
      tpu.vector_store %arg6[%c0_19, %c0_20], %23 {strides = array<i32>} : memref<8x128xf32, #tpu.memory_space<vmem>>, vector<8x128xf32>,
    } else {
    }
    return
  }
  func.func @transform_0(%arg0: i32) -> (i32, i32) {
    %c0_i32 = arith.constant 0 : i32
    %c0_i32_0 = arith.constant 0 : i32
    return %c0_i32, %arg0 : i32, i32
  }
  func.func @transform_1(%arg0: i32) -> (i32, i32) {
    %c0_i32 = arith.constant 0 : i32
    %c0_i32_0 = arith.constant 0 : i32
    return %arg0, %c0_i32 : i32, i32
  }
  func.func @transform_2(%arg0: i32) -> (i32, i32) {
    %c0_i32 = arith.constant 0 : i32
    %c0_i32_0 = arith.constant 0 : i32
    %c0_i32_1 = arith.constant 0 : i32
    return %c0_i32, %c0_i32_0 : i32, i32
  }
  func.func @transform_3(%arg0: i32) -> (i32, i32) {
    %c0_i32 = arith.constant 0 : i32
    %c0_i32_0 = arith.constant 0 : i32
    %c0_i32_1 = arith.constant 0 : i32
    return %c0_i32, %c0_i32_0 : i32, i32
  }
  func.func @transform_4(%arg0: i32) -> (i32, i32) {
    %c0_i32 = arith.constant 0 : i32
    %c0_i32_0 = arith.constant 0 : i32
    %c0_i32_1 = arith.constant 0 : i32
    return %c0_i32, %c0_i32_0 : i32, i32
  }
  func.func @transform_5(%arg0: i32) -> (i32, i32) {
    %c0_i32 = arith.constant 0 : i32
    %c0_i32_0 = arith.constant 0 : i32
    %c0_i32_1 = arith.constant 0 : i32
    return %c0_i32, %c0_i32_0 : i32, i32
  }
}

</mosaic_0001>

<bundles_post_ra>
// kernel: stdnet_forward.3
= control target key start
LH: loop header
LB: loop body
LE: loop exit
PB: predicated region body
PF: predicated region fallthrough
CT: control target
= control target key end

     0   :  { %s4483_s1 = inlined_call_operand.vmem [shape: f32[256,128], index: 1, kind: input, shape index: {}]   ;;  %s4484_s0 = inlined_call_operand.vmem [shape: f32[1688,256], index: 0, kind: input, shape index: {}]   ;;  %s4485_s2 = inlined_call_operand.vmem [shape: f32[1,128], index: 2, kind: input, shape index: {}]   ;;  %s4486_s3 = inlined_call_operand.vmem [shape: f32[1688,128], index: 3, kind: output, shape index: {}]  }
   0x1   :  { %v451_v0 = vld [vmem:[%s4483_s1 + $0x78] sm:$0xff]  ;;  %v450_v2 = vld [vmem:[%s4483_s1 + $0x70] sm:$0xff]  ;;  %v449_v4 = vld [vmem:[%s4483_s1 + $0x68] sm:$0xff] }
   0x2   :  { %v467_v1 = vld [vmem:[%s4483_s1 + $0xf8] sm:$0xff]  ;;  %2198 = vmatpush.msra.mxu2 %v451_v0  ;;  %v466_v3 = vld [vmem:[%s4483_s1 + $0xf0] sm:$0xff]  ;;  %v465_v5 = vld [vmem:[%s4483_s1 + $0xe8] sm:$0xff]  ;;  %472 = vmatpush.msra.mxu0 %v451_v0 }
   0x3   :  { %1122 = vmatpush.msra.mxu1 %v467_v1  ;;  %2214 = vmatpush.msra.mxu3 %v467_v1  ;;  %v448_v6 = vld [vmem:[%s4483_s1 + $0x60] sm:$0xff]  ;;  %v447_v8 = vld [vmem:[%s4483_s1 + $0x58] sm:$0xff]  ;;  %v446_v10 = vld [vmem:[%s4483_s1 + $0x50] sm:$0xff] }
   0x4   :  { %2199 = vmatpush.msra.mxu2 %v450_v2  ;;  %v464_v7 = vld [vmem:[%s4483_s1 + $0xe0] sm:$0xff]  ;;  %473 = vmatpush.msra.mxu0 %v450_v2  ;;  %v463_v9 = vld [vmem:[%s4483_s1 + $0xd8] sm:$0xff]  ;;  %v462_v11 = vld [vmem:[%s4483_s1 + $0xd0] sm:$0xff] }
   0x5   :  { %1123 = vmatpush.msra.mxu1 %v466_v3  ;;  %2215 = vmatpush.msra.mxu3 %v466_v3  ;;  %v445_v12 = vld [vmem:[%s4483_s1 + $0x48] sm:$0xff]  ;;  %v444_v14 = vld [vmem:[%s4483_s1 + $0x40] sm:$0xff]  ;;  %v443_v16 = vld [vmem:[%s4483_s1 + $0x38] sm:$0xff] }
   0x6   :  { %2200 = vmatpush.msra.mxu2 %v449_v4  ;;  %474 = vmatpush.msra.mxu0 %v449_v4  ;;  %v461_v13 = vld [vmem:[%s4483_s1 + $0xc8] sm:$0xff]  ;;  %v460_v15 = vld [vmem:[%s4483_s1 + $0xc0] sm:$0xff]  ;;  %v459_v17 = vld [vmem:[%s4483_s1 + $0xb8] sm:$0xff] }
   0x7   :  { %1124 = vmatpush.msra.mxu1 %v465_v5  ;;  %2216 = vmatpush.msra.mxu3 %v465_v5  ;;  %v442_v18 = vld [vmem:[%s4483_s1 + $0x30] sm:$0xff]  ;;  %v441_v20 = vld [vmem:[%s4483_s1 + $0x28] sm:$0xff]  ;;  %v440_v22 = vld [vmem:[%s4483_s1 + $0x20] sm:$0xff] }
   0x8   :  { %2201 = vmatpush.msra.mxu2 %v448_v6  ;;  %475 = vmatpush.msra.mxu0 %v448_v6  ;;  %v458_v19 = vld [vmem:[%s4483_s1 + $0xb0] sm:$0xff]  ;;  %v457_v21 = vld [vmem:[%s4483_s1 + $0xa8] sm:$0xff]  ;;  %v456_v23 = vld [vmem:[%s4483_s1 + $0xa0] sm:$0xff] }
   0x9   :  { %1125 = vmatpush.msra.mxu1 %v464_v7  ;;  %2217 = vmatpush.msra.mxu3 %v464_v7  ;;  %v439_v24 = vld [vmem:[%s4483_s1 + $0x18] sm:$0xff]  ;;  %v438_v26 = vld [vmem:[%s4483_s1 + $0x10] sm:$0xff]  ;;  %v437_v28 = vld [vmem:[%s4483_s1 + $0x8] sm:$0xff] }
   0xa   :  { %2202 = vmatpush.msra.mxu2 %v447_v8  ;;  %476 = vmatpush.msra.mxu0 %v447_v8  ;;  %v455_v25 = vld [vmem:[%s4483_s1 + $0x98] sm:$0xff]  ;;  %v454_v27 = vld [vmem:[%s4483_s1 + $0x90] sm:$0xff]  ;;  %v453_v29 = vld [vmem:[%s4483_s1 + $0x88] sm:$0xff] }
   0xb   :  { %1126 = vmatpush.msra.mxu1 %v463_v9  ;;  %2218 = vmatpush.msra.mxu3 %v463_v9  ;;  %v436_v30 = vld [vmem:[%s4483_s1] sm:$0xff]  ;;  %v224_v32 = vld [vmem:[%s4484_s0 + $0x690] sm:$0xff]  ;;  %v15_v33 = vld [vmem:[%s4484_s0 + $0x8] sm:$0xff] }
   0xc   :  { %2203 = vmatpush.msra.mxu2 %v446_v10  ;;  %477 = vmatpush.msra.mxu0 %v446_v10  ;;  %v452_v31 = vld [vmem:[%s4483_s1 + $0x80] sm:$0xff]  ;;  %v227_v35 = vld [vmem:[%s4484_s0 + $0x6a8] sm:$0xff]  ;;  %v17_v37 = vld [vmem:[%s4484_s0 + $0x18] sm:$0xff] }
   0xd   :  { %1127 = vmatpush.msra.mxu1 %v462_v11  ;;  %2219 = vmatpush.msra.mxu3 %v462_v11  ;;  %v14_v34 = vld [vmem:[%s4484_s0] sm:$0xff]  ;;  %v16_v38 = vld [vmem:[%s4484_s0 + $0x10] sm:$0xff]  ;;  %v229_v39 = vld [vmem:[%s4484_s0 + $0x6b8] sm:$0xff] }
   0xe   :  { %2204 = vmatpush.msra.mxu2 %v445_v12  ;;  %478 = vmatpush.msra.mxu0 %v445_v12  ;;  %v226_v36 = vld [vmem:[%s4484_s0 + $0x6a0] sm:$0xff]  ;;  %v228_v40 = vld [vmem:[%s4484_s0 + $0x6b0] sm:$0xff]  ;;  %v19_v41 = vld [vmem:[%s4484_s0 + $0x28] sm:$0xff] }
   0xf   :  { %1128 = vmatpush.msra.mxu1 %v461_v13  ;;  %2220 = vmatpush.msra.mxu3 %v461_v13  ;;  %v18_v42 = vld [vmem:[%s4484_s0 + $0x20] sm:$0xff]  ;;  %v231_v43 = vld [vmem:[%s4484_s0 + $0x6c8] sm:$0xff]  ;;  %v21_v45 = vld [vmem:[%s4484_s0 + $0x38] sm:$0xff] }
  0x10   :  { %2205 = vmatpush.msra.mxu2 %v444_v14  ;;  %479 = vmatpush.msra.mxu0 %v444_v14  ;;  %v230_v44 = vld [vmem:[%s4484_s0 + $0x6c0] sm:$0xff]  ;;  %v20_v46 = vld [vmem:[%s4484_s0 + $0x30] sm:$0xff]  ;;  %v233_v47 = vld [vmem:[%s4484_s0 + $0x6d8] sm:$0xff] }
  0x11   :  { %1129 = vmatpush.msra.mxu1 %v460_v15  ;;  %2221 = vmatpush.msra.mxu3 %v460_v15  ;;  %v232_v48 = vld [vmem:[%s4484_s0 + $0x6d0] sm:$0xff]  ;;  %v23_v49 = vld [vmem:[%s4484_s0 + $0x48] sm:$0xff]  ;;  %v22_v50 = vld [vmem:[%s4484_s0 + $0x40] sm:$0xff] }
  0x12   :  { %2206 = vmatpush.msra.mxu2 %v443_v16  ;;  %480 = vmatpush.msra.mxu0 %v443_v16  ;;  %v235_v51 = vld [vmem:[%s4484_s0 + $0x6e8] sm:$0xff]  ;;  %v234_v52 = vld [vmem:[%s4484_s0 + $0x6e0] sm:$0xff]  ;;  %v25_v53 = vld [vmem:[%s4484_s0 + $0x58] sm:$0xff] }
  0x13   :  { %1130 = vmatpush.msra.mxu1 %v459_v17  ;;  %2222 = vmatpush.msra.mxu3 %v459_v17  ;;  %v24_v54 = vld [vmem:[%s4484_s0 + $0x50] sm:$0xff]  ;;  %v237_v55 = vld [vmem:[%s4484_s0 + $0x6f8] sm:$0xff]  ;;  %v27_v57 = vld [vmem:[%s4484_s0 + $0x68] sm:$0xff] }
  0x14   :  { %2207 = vmatpush.msra.mxu2 %v442_v18  ;;  %481 = vmatpush.msra.mxu0 %v442_v18  ;;  %v236_v56 = vld [vmem:[%s4484_s0 + $0x6f0] sm:$0xff]  ;;  %v26_v58 = vld [vmem:[%s4484_s0 + $0x60] sm:$0xff]  ;;  %v239_v59 = vld [vmem:[%s4484_s0 + $0x708] sm:$0xff] }
  0x15   :  { %1131 = vmatpush.msra.mxu1 %v458_v19  ;;  %2223 = vmatpush.msra.mxu3 %v458_v19  ;;  %v238_v60 = vld [vmem:[%s4484_s0 + $0x700] sm:$0xff]  ;;  %v29_v61 = vld [vmem:[%s4484_s0 + $0x78] sm:$0xff]  ;;  %v28_v62 = vld [vmem:[%s4484_s0 + $0x70] sm:$0xff] }
  0x16   :  { %2208 = vmatpush.msra.mxu2 %v441_v20  ;;  %482 = vmatpush.msra.mxu0 %v441_v20  ;;  %v241_v63 = vld [vmem:[%s4484_s0 + $0x718] sm:$0xff]  ;;  %v240_v0 = vld [vmem:[%s4484_s0 + $0x710] sm:$0xff]  ;;  %v31_v1 = vld [vmem:[%s4484_s0 + $0x88] sm:$0xff] }
  0x17   :  { %1132 = vmatpush.msra.mxu1 %v457_v21  ;;  %2224 = vmatpush.msra.mxu3 %v457_v21  ;;  %v30_v2 = vld [vmem:[%s4484_s0 + $0x80] sm:$0xff]  ;;  %v243_v3 = vld [vmem:[%s4484_s0 + $0x728] sm:$0xff]  ;;  %v33_v5 = vld [vmem:[%s4484_s0 + $0x98] sm:$0xff] }
  0x18   :  { %2209 = vmatpush.msra.mxu2 %v440_v22  ;;  %483 = vmatpush.msra.mxu0 %v440_v22  ;;  %v242_v4 = vld [vmem:[%s4484_s0 + $0x720] sm:$0xff]  ;;  %v32_v6 = vld [vmem:[%s4484_s0 + $0x90] sm:$0xff]  ;;  %v245_v7 = vld [vmem:[%s4484_s0 + $0x738] sm:$0xff] }
  0x19   :  { %1133 = vmatpush.msra.mxu1 %v456_v23  ;;  %2225 = vmatpush.msra.mxu3 %v456_v23  ;;  %v244_v8 = vld [vmem:[%s4484_s0 + $0x730] sm:$0xff]  ;;  %v35_v9 = vld [vmem:[%s4484_s0 + $0xa8] sm:$0xff]  ;;  %v34_v10 = vld [vmem:[%s4484_s0 + $0xa0] sm:$0xff] }
  0x1a   :  { %2210 = vmatpush.msra.mxu2 %v439_v24  ;;  %484 = vmatpush.msra.mxu0 %v439_v24  ;;  %v247_v11 = vld [vmem:[%s4484_s0 + $0x748] sm:$0xff]  ;;  %v246_v12 = vld [vmem:[%s4484_s0 + $0x740] sm:$0xff]  ;;  %v37_v13 = vld [vmem:[%s4484_s0 + $0xb8] sm:$0xff] }
  0x1b   :  { %1134 = vmatpush.msra.mxu1 %v455_v25  ;;  %2226 = vmatpush.msra.mxu3 %v455_v25  ;;  %v36_v14 = vld [vmem:[%s4484_s0 + $0xb0] sm:$0xff]  ;;  %v249_v15 = vld [vmem:[%s4484_s0 + $0x758] sm:$0xff]  ;;  %v39_v17 = vld [vmem:[%s4484_s0 + $0xc8] sm:$0xff] }
  0x1c   :  { %2211 = vmatpush.msra.mxu2 %v438_v26  ;;  %485 = vmatpush.msra.mxu0 %v438_v26  ;;  %v248_v16 = vld [vmem:[%s4484_s0 + $0x750] sm:$0xff]  ;;  %v38_v18 = vld [vmem:[%s4484_s0 + $0xc0] sm:$0xff]  ;;  %v251_v19 = vld [vmem:[%s4484_s0 + $0x768] sm:$0xff] }
  0x1d   :  { %1135 = vmatpush.msra.mxu1 %v454_v27  ;;  %2227 = vmatpush.msra.mxu3 %v454_v27  ;;  %v250_v20 = vld [vmem:[%s4484_s0 + $0x760] sm:$0xff]  ;;  %v41_v21 = vld [vmem:[%s4484_s0 + $0xd8] sm:$0xff]  ;;  %v40_v22 = vld [vmem:[%s4484_s0 + $0xd0] sm:$0xff] }
  0x1e   :  { %2212 = vmatpush.msra.mxu2 %v437_v28  ;;  %486 = vmatpush.msra.mxu0 %v437_v28  ;;  %v253_v23 = vld [vmem:[%s4484_s0 + $0x778] sm:$0xff]  ;;  %v252_v24 = vld [vmem:[%s4484_s0 + $0x770] sm:$0xff]  ;;  %v43_v25 = vld [vmem:[%s4484_s0 + $0xe8] sm:$0xff] }
  0x1f   :  { %1136 = vmatpush.msra.mxu1 %v453_v29  ;;  %2228 = vmatpush.msra.mxu3 %v453_v29  ;;  %v42_v26 = vld [vmem:[%s4484_s0 + $0xe0] sm:$0xff]  ;;  %v255_v27 = vld [vmem:[%s4484_s0 + $0x788] sm:$0xff]  ;;  %v45_v29 = vld [vmem:[%s4484_s0 + $0xf8] sm:$0xff] }
  0x20   :  { %2213 = vmatpush.msra.mxu2 %v436_v30  ;;  %487 = vmatpush.msra.mxu0 %v436_v30  ;;  %v254_v28 = vld [vmem:[%s4484_s0 + $0x780] sm:$0xff]  ;;  %v44_v30 = vld [vmem:[%s4484_s0 + $0xf0] sm:$0xff] }
  0x21   :  { %1137 = vmatpush.msra.mxu1 %v452_v31  ;;  %803 = vmatmul.f32.vlgmr.msra.gmra.mxu2 %v224_v32  ;;  %v2545_v32 = vld [vmem:[%s4485_s2] ss:$0 sm:$0xff] }
  0x22   :  { %1138 = vmatmul.f32.vlgmr.msra.gmra.mxu1 %v15_v33  ;;  %2229 = vmatpush.msra.mxu3 %v452_v31  ;;  %v257_v31 = vld [vmem:[%s4484_s0 + $0x798] sm:$0xff] }
  0x23   :  { %488 = vmatmul.f32.vlgmr.msra.gmra.mxu0 %v14_v34  ;;  %1456 = vmatmul.f32.vlgmr.msra.gmra.mxu3 %v227_v35  ;;  %v256_v34 = vld [vmem:[%s4484_s0 + $0x790] sm:$0xff]  ;;  %v47_v35 = vld [vmem:[%s4484_s0 + $0x108] sm:$0xff] }
  0x29   :  { %806 = vmatmul.f32.gmra.mxu2 %v226_v36 }
  0x2a   :  { %1141 = vmatmul.f32.gmra.mxu1 %v17_v37  ;;  %v46_v37 = vld [vmem:[%s4484_s0 + $0x100] sm:$0xff] }
  0x2b   :  { %491 = vmatmul.f32.gmra.mxu0 %v16_v38  ;;  %1459 = vmatmul.f32.gmra.mxu3 %v229_v39  ;;  %v259_v38 = vld [vmem:[%s4484_s0 + $0x7a8] sm:$0xff] }
  0x31   :  { %809 = vmatmul.f32.gmra.mxu2 %v228_v40 }
  0x32   :  { %1144 = vmatmul.f32.gmra.mxu1 %v19_v41 }
  0x33   :  { %494 = vmatmul.f32.gmra.mxu0 %v18_v42  ;;  %1462 = vmatmul.f32.gmra.mxu3 %v231_v43 }
  0x39   :  { %812 = vmatmul.f32.gmra.mxu2 %v230_v44  ;;  %v258_v44 = vld [vmem:[%s4484_s0 + $0x7a0] sm:$0xff] }
  0x3a   :  { %1147 = vmatmul.f32.gmra.mxu1 %v21_v45  ;;  %v49_v45 = vld [vmem:[%s4484_s0 + $0x118] sm:$0xff] }
  0x3b   :  { %497 = vmatmul.f32.gmra.mxu0 %v20_v46  ;;  %1465 = vmatmul.f32.gmra.mxu3 %v233_v47 }
  0x41   :  { %815 = vmatmul.f32.gmra.mxu2 %v232_v48  ;;  %v48_v48 = vld [vmem:[%s4484_s0 + $0x110] sm:$0xff] }
  0x42   :  { %1150 = vmatmul.f32.gmra.mxu1 %v23_v49  ;;  %v261_v49 = vld [vmem:[%s4484_s0 + $0x7b8] sm:$0xff] }
  0x43   :  { %500 = vmatmul.f32.gmra.mxu0 %v22_v50  ;;  %1468 = vmatmul.f32.gmra.mxu3 %v235_v51 }
  0x49   :  { %818 = vmatmul.f32.gmra.mxu2 %v234_v52 }
  0x4a   :  { %1153 = vmatmul.f32.gmra.mxu1 %v25_v53 }
  0x4b   :  { %503 = vmatmul.f32.gmra.mxu0 %v24_v54  ;;  %1471 = vmatmul.f32.gmra.mxu3 %v237_v55 }
  0x51   :  { %821 = vmatmul.f32.gmra.mxu2 %v236_v56  ;;  %v260_v56 = vld [vmem:[%s4484_s0 + $0x7b0] sm:$0xff] }
  0x52   :  { %1156 = vmatmul.f32.gmra.mxu1 %v27_v57  ;;  %v51_v57 = vld [vmem:[%s4484_s0 + $0x128] sm:$0xff] }
  0x53   :  { %506 = vmatmul.f32.gmra.mxu0 %v26_v58  ;;  %1474 = vmatmul.f32.gmra.mxu3 %v239_v59 }
  0x59   :  { %824 = vmatmul.f32.gmra.mxu2 %v238_v60 }
  0x5a   :  { %1159 = vmatmul.f32.gmra.mxu1 %v29_v61  ;;  %v50_v61 = vld [vmem:[%s4484_s0 + $0x120] sm:$0xff] }
  0x5b   :  { %509 = vmatmul.f32.gmra.mxu0 %v28_v62  ;;  %1477 = vmatmul.f32.gmra.mxu3 %v241_v63  ;;  %v263_v62 = vld [vmem:[%s4484_s0 + $0x7c8] sm:$0xff] }
  0x61   :  { %827 = vmatmul.f32.gmra.mxu2 %v240_v0 }
  0x62   :  { %1162 = vmatmul.f32.gmra.mxu1 %v31_v1 }
  0x63   :  { %512 = vmatmul.f32.gmra.mxu0 %v30_v2  ;;  %1480 = vmatmul.f32.gmra.mxu3 %v243_v3 }
  0x69   :  { %830 = vmatmul.f32.gmra.mxu2 %v242_v4 }
  0x6a   :  { %1165 = vmatmul.f32.gmra.mxu1 %v33_v5 }
  0x6b   :  { %515 = vmatmul.f32.gmra.mxu0 %v32_v6  ;;  %1483 = vmatmul.f32.gmra.mxu3 %v245_v7  ;;  %v262_v6 = vld [vmem:[%s4484_s0 + $0x7c0] sm:$0xff]  ;;  %v53_v7 = vld [vmem:[%s4484_s0 + $0x138] sm:$0xff] }
  0x71   :  { %833 = vmatmul.f32.gmra.mxu2 %v244_v8 }
  0x72   :  { %1168 = vmatmul.f32.gmra.mxu1 %v35_v9 }
  0x73   :  { %518 = vmatmul.f32.gmra.mxu0 %v34_v10  ;;  %1486 = vmatmul.f32.gmra.mxu3 %v247_v11  ;;  %v52_v11 = vld [vmem:[%s4484_s0 + $0x130] sm:$0xff] }
  0x79   :  { %836 = vmatmul.f32.gmra.mxu2 %v246_v12  ;;  %v265_v12 = vld [vmem:[%s4484_s0 + $0x7d8] sm:$0xff] }
  0x7a   :  { %1171 = vmatmul.f32.gmra.mxu1 %v37_v13 }
  0x7b   :  { %521 = vmatmul.f32.gmra.mxu0 %v36_v14  ;;  %1489 = vmatmul.f32.gmra.mxu3 %v249_v15 }
  0x81   :  { %839 = vmatmul.f32.gmra.mxu2 %v248_v16 }
  0x82   :  { %1174 = vmatmul.f32.gmra.mxu1 %v39_v17 }
  0x83   :  { %524 = vmatmul.f32.gmra.mxu0 %v38_v18  ;;  %1492 = vmatmul.f32.gmra.mxu3 %v251_v19 }
  0x89   :  { %842 = vmatmul.f32.gmra.mxu2 %v250_v20  ;;  %v264_v20 = vld [vmem:[%s4484_s0 + $0x7d0] sm:$0xff] }
  0x8a   :  { %1177 = vmatmul.f32.gmra.mxu1 %v41_v21  ;;  %v55_v21 = vld [vmem:[%s4484_s0 + $0x148] sm:$0xff] }
  0x8b   :  { %527 = vmatmul.f32.gmra.mxu0 %v40_v22  ;;  %1495 = vmatmul.f32.gmra.mxu3 %v253_v23 }
  0x91   :  { %845 = vmatmul.f32.gmra.mxu2 %v252_v24 }
  0x92   :  { %1180 = vmatmul.f32.gmra.mxu1 %v43_v25  ;;  %v54_v25 = vld [vmem:[%s4484_s0 + $0x140] sm:$0xff] }
  0x93   :  { %530 = vmatmul.f32.gmra.mxu0 %v42_v26  ;;  %1498 = vmatmul.f32.gmra.mxu3 %v255_v27  ;;  %v267_v26 = vld [vmem:[%s4484_s0 + $0x7e8] sm:$0xff] }
  0x99   :  { %848 = vmatmul.f32.gmra.mxu2 %v254_v28 }
  0x9a   :  { %1183 = vmatmul.f32.gmra.mxu1 %v45_v29 }
  0x9b   :  { %533 = vmatmul.f32.gmra.mxu0 %v44_v30  ;;  %1501 = vmatmul.f32.gmra.mxu3 %v257_v31 }
  0x9f   :  { %v1139_v33 = vpop.f32.mrf.mxu1 }
  0xa0   :  { %v489_v36 = vpop.f32.mrf.mxu0 }
  0xa1   :  { %851 = vmatmul.f32.gmra.mxu2 %v256_v34  ;;  %v490_v39 = vadd.f32 %v2545_v32, %v489_v36  ;;  %v57_v36 = vld [vmem:[%s4484_s0 + $0x158] sm:$0xff] }
  0xa2   :  { %1186 = vmatmul.f32.gmra.mxu1 %v47_v35  ;;  %v266_v35 = vld [vmem:[%s4484_s0 + $0x7e0] sm:$0xff] }
  0xa3   :  { %v1140_v40 = vadd.f32 %v1139_v33, %v490_v39  ;;  %536 = vmatmul.f32.gmra.mxu0 %v46_v37  ;;  %1504 = vmatmul.f32.gmra.mxu3 %v259_v38 }
  0xa4   :  { %v2560_v41 = vpop.f32.mrf.mxu2 }
  0xa5   :  { %v1772_v42 = vmax.f32 %v1140_v40, 0.0  ;;  %v56_v40 = vld [vmem:[%s4484_s0 + $0x150] sm:$0xff] }
  0xa6   :  { %v1457_v46 = vpop.f32.mrf.mxu3 }
  0xa7   :  { %v1142_v43 = vpop.f32.mrf.mxu1  ;;  %1983 = vst [vmem:[%s4486_s3] sm:$0xff] %v1772_v42  ;;  %v269_v42 = vld [vmem:[%s4484_s0 + $0x7f8] sm:$0xff] }
  0xa8   :  { %v492_v47 = vpop.f32.mrf.mxu0 }
  0xa9   :  { %854 = vmatmul.f32.gmra.mxu2 %v258_v44  ;;  %v493_v50 = vadd.f32 %v2545_v32, %v492_v47 }
  0xaa   :  { %1189 = vmatmul.f32.gmra.mxu1 %v49_v45 }
  0xab   :  { %v1143_v51 = vadd.f32 %v1142_v43, %v493_v50  ;;  %539 = vmatmul.f32.gmra.mxu0 %v48_v48  ;;  %1507 = vmatmul.f32.gmra.mxu3 %v261_v49  ;;  %v268_v50 = vld [vmem:[%s4484_s0 + $0x7f0] sm:$0xff] }
  0xac   :  { %v807_v52 = vpop.f32.mrf.mxu2 }
  0xad   :  { %v1773_v53 = vmax.f32 %v1143_v51, 0.0  ;;  %v808_v54 = vadd.f32 %v2545_v32, %v807_v52  ;;  %v59_v51 = vld [vmem:[%s4484_s0 + $0x168] sm:$0xff] }
  0xae   :  { %v1460_v58 = vpop.f32.mrf.mxu3 }
  0xaf   :  { %v1145_v55 = vpop.f32.mrf.mxu1  ;;  %1984 = vst [vmem:[%s4486_s3 + $0x8] sm:$0xff] %v1773_v53  ;;  %v1458_v59 = vadd.f32 %v1457_v46, %v808_v54 }
  0xb0   :  { %v495_v60 = vpop.f32.mrf.mxu0 }
  0xb1   :  { %v1878_v63 = vmax.f32 %v1458_v59, 0.0  ;;  %857 = vmatmul.f32.gmra.mxu2 %v260_v56  ;;  %v496_v0 = vadd.f32 %v2545_v32, %v495_v60  ;;  %v271_v56 = vld [vmem:[%s4484_s0 + $0x808] sm:$0xff] }
  0xb2   :  { %1192 = vmatmul.f32.gmra.mxu1 %v51_v57 }
  0xb3   :  { %2089 = vst [vmem:[%s4486_s3 + $0x350] sm:$0xff] %v1878_v63  ;;  %v1146_v1 = vadd.f32 %v1145_v55, %v496_v0  ;;  %542 = vmatmul.f32.gmra.mxu0 %v50_v61  ;;  %1510 = vmatmul.f32.gmra.mxu3 %v263_v62  ;;  %v58_v55 = vld [vmem:[%s4484_s0 + $0x160] sm:$0xff] }
  0xb4   :  { %v810_v2 = vpop.f32.mrf.mxu2  ;;  %v270_v0 = vld [vmem:[%s4484_s0 + $0x800] sm:$0xff] }
  0xb5   :  { %v1774_v3 = vmax.f32 %v1146_v1, 0.0  ;;  %v811_v4 = vadd.f32 %v2545_v32, %v810_v2  ;;  %v61_v1 = vld [vmem:[%s4484_s0 + $0x178] sm:$0xff] }
  0xb6   :  { %v1463_v8 = vpop.f32.mrf.mxu3 }
  0xb7   :  { %v1148_v5 = vpop.f32.mrf.mxu1  ;;  %1985 = vst [vmem:[%s4486_s3 + $0x10] sm:$0xff] %v1774_v3  ;;  %v1461_v9 = vadd.f32 %v1460_v58, %v811_v4 }
  0xb8   :  { %v498_v10 = vpop.f32.mrf.mxu0 }
  0xb9   :  { %v1879_v13 = vmax.f32 %v1461_v9, 0.0  ;;  %860 = vmatmul.f32.gmra.mxu2 %v262_v6  ;;  %v499_v14 = vadd.f32 %v2545_v32, %v498_v10  ;;  %v273_v6 = vld [vmem:[%s4484_s0 + $0x818] sm:$0xff] }
  0xba   :  { %1195 = vmatmul.f32.gmra.mxu1 %v53_v7 }
  0xbb   :  { %2090 = vst [vmem:[%s4486_s3 + $0x358] sm:$0xff] %v1879_v13  ;;  %v1149_v15 = vadd.f32 %v1148_v5, %v499_v14  ;;  %545 = vmatmul.f32.gmra.mxu0 %v52_v11  ;;  %1513 = vmatmul.f32.gmra.mxu3 %v265_v12  ;;  %v60_v5 = vld [vmem:[%s4484_s0 + $0x170] sm:$0xff] }
  0xbc   :  { %v813_v16 = vpop.f32.mrf.mxu2  ;;  %v272_v14 = vld [vmem:[%s4484_s0 + $0x810] sm:$0xff] }
  0xbd   :  { %v1775_v17 = vmax.f32 %v1149_v15, 0.0  ;;  %v814_v18 = vadd.f32 %v2545_v32, %v813_v16  ;;  %v63_v15 = vld [vmem:[%s4484_s0 + $0x188] sm:$0xff] }
  0xbe   :  { %v1466_v22 = vpop.f32.mrf.mxu3 }
  0xbf   :  { %v1151_v19 = vpop.f32.mrf.mxu1  ;;  %1986 = vst [vmem:[%s4486_s3 + $0x18] sm:$0xff] %v1775_v17  ;;  %v1464_v23 = vadd.f32 %v1463_v8, %v814_v18 }
  0xc0   :  { %v501_v24 = vpop.f32.mrf.mxu0 }
  0xc1   :  { %v1880_v27 = vmax.f32 %v1464_v23, 0.0  ;;  %863 = vmatmul.f32.gmra.mxu2 %v264_v20  ;;  %v502_v28 = vadd.f32 %v2545_v32, %v501_v24  ;;  %v275_v20 = vld [vmem:[%s4484_s0 + $0x828] sm:$0xff] }
  0xc2   :  { %1198 = vmatmul.f32.gmra.mxu1 %v55_v21 }
  0xc3   :  { %2091 = vst [vmem:[%s4486_s3 + $0x360] sm:$0xff] %v1880_v27  ;;  %v1152_v29 = vadd.f32 %v1151_v19, %v502_v28  ;;  %548 = vmatmul.f32.gmra.mxu0 %v54_v25  ;;  %1516 = vmatmul.f32.gmra.mxu3 %v267_v26  ;;  %v62_v19 = vld [vmem:[%s4484_s0 + $0x180] sm:$0xff] }
  0xc4   :  { %v816_v30 = vpop.f32.mrf.mxu2  ;;  %v274_v28 = vld [vmem:[%s4484_s0 + $0x820] sm:$0xff] }
  0xc5   :  { %v1776_v31 = vmax.f32 %v1152_v29, 0.0  ;;  %v817_v33 = vadd.f32 %v2545_v32, %v816_v30  ;;  %v65_v29 = vld [vmem:[%s4484_s0 + $0x198] sm:$0xff] }
  0xc6   :  { %v1469_v37 = vpop.f32.mrf.mxu3 }
  0xc7   :  { %v1154_v34 = vpop.f32.mrf.mxu1  ;;  %1987 = vst [vmem:[%s4486_s3 + $0x20] sm:$0xff] %v1776_v31  ;;  %v1467_v38 = vadd.f32 %v1466_v22, %v817_v33 }
  0xc8   :  { %v504_v39 = vpop.f32.mrf.mxu0 }
  0xc9   :  { %v1881_v43 = vmax.f32 %v1467_v38, 0.0  ;;  %866 = vmatmul.f32.gmra.mxu2 %v266_v35  ;;  %v505_v44 = vadd.f32 %v2545_v32, %v504_v39  ;;  %v277_v35 = vld [vmem:[%s4484_s0 + $0x838] sm:$0xff] }
  0xca   :  { %1201 = vmatmul.f32.gmra.mxu1 %v57_v36 }
  0xcb   :  { %2092 = vst [vmem:[%s4486_s3 + $0x368] sm:$0xff] %v1881_v43  ;;  %v1155_v45 = vadd.f32 %v1154_v34, %v505_v44  ;;  %551 = vmatmul.f32.gmra.mxu0 %v56_v40  ;;  %1519 = vmatmul.f32.gmra.mxu3 %v269_v42  ;;  %v64_v34 = vld [vmem:[%s4484_s0 + $0x190] sm:$0xff] }
  0xcc   :  { %v819_v46 = vpop.f32.mrf.mxu2  ;;  %v276_v44 = vld [vmem:[%s4484_s0 + $0x830] sm:$0xff] }
  0xcd   :  { %v1777_v47 = vmax.f32 %v1155_v45, 0.0  ;;  %v820_v48 = vadd.f32 %v2545_v32, %v819_v46  ;;  %v67_v45 = vld [vmem:[%s4484_s0 + $0x1a8] sm:$0xff] }
  0xce   :  { %v1472_v52 = vpop.f32.mrf.mxu3 }
  0xcf   :  { %v1157_v49 = vpop.f32.mrf.mxu1  ;;  %1988 = vst [vmem:[%s4486_s3 + $0x28] sm:$0xff] %v1777_v47  ;;  %v1470_v53 = vadd.f32 %v1469_v37, %v820_v48 }
  0xd0   :  { %v507_v54 = vpop.f32.mrf.mxu0 }
  0xd1   :  { %v1882_v57 = vmax.f32 %v1470_v53, 0.0  ;;  %869 = vmatmul.f32.gmra.mxu2 %v268_v50  ;;  %v508_v58 = vadd.f32 %v2545_v32, %v507_v54  ;;  %v279_v50 = vld [vmem:[%s4484_s0 + $0x848] sm:$0xff] }
  0xd2   :  { %1204 = vmatmul.f32.gmra.mxu1 %v59_v51 }
  0xd3   :  { %2093 = vst [vmem:[%s4486_s3 + $0x370] sm:$0xff] %v1882_v57  ;;  %v1158_v59 = vadd.f32 %v1157_v49, %v508_v58  ;;  %554 = vmatmul.f32.gmra.mxu0 %v58_v55  ;;  %1522 = vmatmul.f32.gmra.mxu3 %v271_v56  ;;  %v66_v49 = vld [vmem:[%s4484_s0 + $0x1a0] sm:$0xff] }
  0xd4   :  { %v822_v60 = vpop.f32.mrf.mxu2  ;;  %v278_v58 = vld [vmem:[%s4484_s0 + $0x840] sm:$0xff] }
  0xd5   :  { %v1778_v61 = vmax.f32 %v1158_v59, 0.0  ;;  %v823_v62 = vadd.f32 %v2545_v32, %v822_v60  ;;  %v69_v59 = vld [vmem:[%s4484_s0 + $0x1b8] sm:$0xff] }
  0xd6   :  { %v1475_v2 = vpop.f32.mrf.mxu3 }
  0xd7   :  { %v1160_v63 = vpop.f32.mrf.mxu1  ;;  %1989 = vst [vmem:[%s4486_s3 + $0x30] sm:$0xff] %v1778_v61  ;;  %v1473_v3 = vadd.f32 %v1472_v52, %v823_v62 }
  0xd8   :  { %v510_v4 = vpop.f32.mrf.mxu0 }
  0xd9   :  { %v1883_v7 = vmax.f32 %v1473_v3, 0.0  ;;  %872 = vmatmul.f32.gmra.mxu2 %v270_v0  ;;  %v511_v8 = vadd.f32 %v2545_v32, %v510_v4  ;;  %v281_v0 = vld [vmem:[%s4484_s0 + $0x858] sm:$0xff] }
  0xda   :  { %1207 = vmatmul.f32.gmra.mxu1 %v61_v1 }
  0xdb   :  { %2094 = vst [vmem:[%s4486_s3 + $0x378] sm:$0xff] %v1883_v7  ;;  %v1161_v9 = vadd.f32 %v1160_v63, %v511_v8  ;;  %557 = vmatmul.f32.gmra.mxu0 %v60_v5  ;;  %1525 = vmatmul.f32.gmra.mxu3 %v273_v6  ;;  %v68_v63 = vld [vmem:[%s4484_s0 + $0x1b0] sm:$0xff] }
  0xdc   :  { %v825_v10 = vpop.f32.mrf.mxu2  ;;  %v280_v8 = vld [vmem:[%s4484_s0 + $0x850] sm:$0xff] }
  0xdd   :  { %v1779_v11 = vmax.f32 %v1161_v9, 0.0  ;;  %v826_v12 = vadd.f32 %v2545_v32, %v825_v10  ;;  %v71_v9 = vld [vmem:[%s4484_s0 + $0x1c8] sm:$0xff] }
  0xde   :  { %v1478_v16 = vpop.f32.mrf.mxu3 }
  0xdf   :  { %v1163_v13 = vpop.f32.mrf.mxu1  ;;  %1990 = vst [vmem:[%s4486_s3 + $0x38] sm:$0xff] %v1779_v11  ;;  %v1476_v17 = vadd.f32 %v1475_v2, %v826_v12 }
  0xe0   :  { %v513_v18 = vpop.f32.mrf.mxu0 }
  0xe1   :  { %v1884_v21 = vmax.f32 %v1476_v17, 0.0  ;;  %875 = vmatmul.f32.gmra.mxu2 %v272_v14  ;;  %v514_v22 = vadd.f32 %v2545_v32, %v513_v18  ;;  %v283_v14 = vld [vmem:[%s4484_s0 + $0x868] sm:$0xff] }
  0xe2   :  { %1210 = vmatmul.f32.gmra.mxu1 %v63_v15 }
  0xe3   :  { %2095 = vst [vmem:[%s4486_s3 + $0x380] sm:$0xff] %v1884_v21  ;;  %v1164_v23 = vadd.f32 %v1163_v13, %v514_v22  ;;  %560 = vmatmul.f32.gmra.mxu0 %v62_v19  ;;  %1528 = vmatmul.f32.gmra.mxu3 %v275_v20  ;;  %v70_v13 = vld [vmem:[%s4484_s0 + $0x1c0] sm:$0xff] }
  0xe4   :  { %v828_v24 = vpop.f32.mrf.mxu2  ;;  %v282_v22 = vld [vmem:[%s4484_s0 + $0x860] sm:$0xff] }
  0xe5   :  { %v1780_v25 = vmax.f32 %v1164_v23, 0.0  ;;  %v829_v26 = vadd.f32 %v2545_v32, %v828_v24  ;;  %v73_v23 = vld [vmem:[%s4484_s0 + $0x1d8] sm:$0xff] }
  0xe6   :  { %v1481_v30 = vpop.f32.mrf.mxu3 }
  0xe7   :  { %v1166_v27 = vpop.f32.mrf.mxu1  ;;  %1991 = vst [vmem:[%s4486_s3 + $0x40] sm:$0xff] %v1780_v25  ;;  %v1479_v31 = vadd.f32 %v1478_v16, %v829_v26 }
  0xe8   :  { %v516_v33 = vpop.f32.mrf.mxu0 }
  0xe9   :  { %v1885_v36 = vmax.f32 %v1479_v31, 0.0  ;;  %878 = vmatmul.f32.gmra.mxu2 %v274_v28  ;;  %v517_v37 = vadd.f32 %v2545_v32, %v516_v33  ;;  %v285_v28 = vld [vmem:[%s4484_s0 + $0x878] sm:$0xff] }
  0xea   :  { %1213 = vmatmul.f32.gmra.mxu1 %v65_v29 }
  0xeb   :  { %2096 = vst [vmem:[%s4486_s3 + $0x388] sm:$0xff] %v1885_v36  ;;  %v1167_v38 = vadd.f32 %v1166_v27, %v517_v37  ;;  %563 = vmatmul.f32.gmra.mxu0 %v64_v34  ;;  %1531 = vmatmul.f32.gmra.mxu3 %v277_v35  ;;  %v72_v27 = vld [vmem:[%s4484_s0 + $0x1d0] sm:$0xff] }
  0xec   :  { %v831_v39 = vpop.f32.mrf.mxu2  ;;  %v284_v37 = vld [vmem:[%s4484_s0 + $0x870] sm:$0xff] }
  0xed   :  { %v1781_v40 = vmax.f32 %v1167_v38, 0.0  ;;  %v832_v42 = vadd.f32 %v2545_v32, %v831_v39  ;;  %v75_v38 = vld [vmem:[%s4484_s0 + $0x1e8] sm:$0xff] }
  0xee   :  { %v1484_v46 = vpop.f32.mrf.mxu3 }
  0xef   :  { %v1169_v43 = vpop.f32.mrf.mxu1  ;;  %1992 = vst [vmem:[%s4486_s3 + $0x48] sm:$0xff] %v1781_v40  ;;  %v1482_v47 = vadd.f32 %v1481_v30, %v832_v42 }
  0xf0   :  { %v519_v48 = vpop.f32.mrf.mxu0 }
  0xf1   :  { %v1886_v51 = vmax.f32 %v1482_v47, 0.0  ;;  %881 = vmatmul.f32.gmra.mxu2 %v276_v44  ;;  %v520_v52 = vadd.f32 %v2545_v32, %v519_v48  ;;  %v287_v44 = vld [vmem:[%s4484_s0 + $0x888] sm:$0xff] }
  0xf2   :  { %1216 = vmatmul.f32.gmra.mxu1 %v67_v45 }
  0xf3   :  { %2097 = vst [vmem:[%s4486_s3 + $0x390] sm:$0xff] %v1886_v51  ;;  %v1170_v53 = vadd.f32 %v1169_v43, %v520_v52  ;;  %566 = vmatmul.f32.gmra.mxu0 %v66_v49  ;;  %1534 = vmatmul.f32.gmra.mxu3 %v279_v50  ;;  %v74_v43 = vld [vmem:[%s4484_s0 + $0x1e0] sm:$0xff] }
  0xf4   :  { %v834_v54 = vpop.f32.mrf.mxu2  ;;  %v286_v52 = vld [vmem:[%s4484_s0 + $0x880] sm:$0xff] }
  0xf5   :  { %v1782_v55 = vmax.f32 %v1170_v53, 0.0  ;;  %v835_v56 = vadd.f32 %v2545_v32, %v834_v54  ;;  %v77_v53 = vld [vmem:[%s4484_s0 + $0x1f8] sm:$0xff] }
  0xf6   :  { %v1487_v60 = vpop.f32.mrf.mxu3 }
  0xf7   :  { %v1172_v57 = vpop.f32.mrf.mxu1  ;;  %1993 = vst [vmem:[%s4486_s3 + $0x50] sm:$0xff] %v1782_v55  ;;  %v1485_v61 = vadd.f32 %v1484_v46, %v835_v56 }
  0xf8   :  { %v522_v62 = vpop.f32.mrf.mxu0 }
  0xf9   :  { %v1887_v1 = vmax.f32 %v1485_v61, 0.0  ;;  %884 = vmatmul.f32.gmra.mxu2 %v278_v58  ;;  %v523_v2 = vadd.f32 %v2545_v32, %v522_v62  ;;  %v289_v58 = vld [vmem:[%s4484_s0 + $0x898] sm:$0xff] }
  0xfa   :  { %1219 = vmatmul.f32.gmra.mxu1 %v69_v59 }
  0xfb   :  { %2098 = vst [vmem:[%s4486_s3 + $0x398] sm:$0xff] %v1887_v1  ;;  %v1173_v3 = vadd.f32 %v1172_v57, %v523_v2  ;;  %569 = vmatmul.f32.gmra.mxu0 %v68_v63  ;;  %1537 = vmatmul.f32.gmra.mxu3 %v281_v0  ;;  %v76_v57 = vld [vmem:[%s4484_s0 + $0x1f0] sm:$0xff] }
  0xfc   :  { %v837_v4 = vpop.f32.mrf.mxu2  ;;  %v288_v2 = vld [vmem:[%s4484_s0 + $0x890] sm:$0xff] }
  0xfd   :  { %v1783_v5 = vmax.f32 %v1173_v3, 0.0  ;;  %v838_v6 = vadd.f32 %v2545_v32, %v837_v4  ;;  %v79_v3 = vld [vmem:[%s4484_s0 + $0x208] sm:$0xff] }
  0xfe   :  { %v1490_v10 = vpop.f32.mrf.mxu3 }
  0xff   :  { %v1175_v7 = vpop.f32.mrf.mxu1  ;;  %1994 = vst [vmem:[%s4486_s3 + $0x58] sm:$0xff] %v1783_v5  ;;  %v1488_v11 = vadd.f32 %v1487_v60, %v838_v6 }
 0x100   :  { %v525_v12 = vpop.f32.mrf.mxu0 }
 0x101   :  { %v1888_v15 = vmax.f32 %v1488_v11, 0.0  ;;  %887 = vmatmul.f32.gmra.mxu2 %v280_v8  ;;  %v526_v16 = vadd.f32 %v2545_v32, %v525_v12  ;;  %v291_v8 = vld [vmem:[%s4484_s0 + $0x8a8] sm:$0xff] }
 0x102   :  { %1222 = vmatmul.f32.gmra.mxu1 %v71_v9 }
 0x103   :  { %2099 = vst [vmem:[%s4486_s3 + $0x3a0] sm:$0xff] %v1888_v15  ;;  %v1176_v17 = vadd.f32 %v1175_v7, %v526_v16  ;;  %572 = vmatmul.f32.gmra.mxu0 %v70_v13  ;;  %1540 = vmatmul.f32.gmra.mxu3 %v283_v14  ;;  %v78_v7 = vld [vmem:[%s4484_s0 + $0x200] sm:$0xff] }
 0x104   :  { %v840_v18 = vpop.f32.mrf.mxu2  ;;  %v290_v16 = vld [vmem:[%s4484_s0 + $0x8a0] sm:$0xff] }
 0x105   :  { %v1784_v19 = vmax.f32 %v1176_v17, 0.0  ;;  %v841_v20 = vadd.f32 %v2545_v32, %v840_v18  ;;  %v81_v17 = vld [vmem:[%s4484_s0 + $0x218] sm:$0xff] }
 0x106   :  { %v1493_v24 = vpop.f32.mrf.mxu3 }
 0x107   :  { %v1178_v21 = vpop.f32.mrf.mxu1  ;;  %1995 = vst [vmem:[%s4486_s3 + $0x60] sm:$0xff] %v1784_v19  ;;  %v1491_v25 = vadd.f32 %v1490_v10, %v841_v20 }
 0x108   :  { %v528_v26 = vpop.f32.mrf.mxu0 }
 0x109   :  { %v1889_v29 = vmax.f32 %v1491_v25, 0.0  ;;  %890 = vmatmul.f32.gmra.mxu2 %v282_v22  ;;  %v529_v30 = vadd.f32 %v2545_v32, %v528_v26  ;;  %v293_v22 = vld [vmem:[%s4484_s0 + $0x8b8] sm:$0xff] }
 0x10a   :  { %1225 = vmatmul.f32.gmra.mxu1 %v73_v23 }
 0x10b   :  { %2100 = vst [vmem:[%s4486_s3 + $0x3a8] sm:$0xff] %v1889_v29  ;;  %v1179_v31 = vadd.f32 %v1178_v21, %v529_v30  ;;  %575 = vmatmul.f32.gmra.mxu0 %v72_v27  ;;  %1543 = vmatmul.f32.gmra.mxu3 %v285_v28  ;;  %v80_v21 = vld [vmem:[%s4484_s0 + $0x210] sm:$0xff] }
 0x10c   :  { %v843_v33 = vpop.f32.mrf.mxu2  ;;  %v292_v30 = vld [vmem:[%s4484_s0 + $0x8b0] sm:$0xff] }
 0x10d   :  { %v1785_v34 = vmax.f32 %v1179_v31, 0.0  ;;  %v844_v35 = vadd.f32 %v2545_v32, %v843_v33  ;;  %v83_v31 = vld [vmem:[%s4484_s0 + $0x228] sm:$0xff] }
 0x10e   :  { %v1496_v39 = vpop.f32.mrf.mxu3 }
 0x10f   :  { %v1181_v36 = vpop.f32.mrf.mxu1  ;;  %1996 = vst [vmem:[%s4486_s3 + $0x68] sm:$0xff] %v1785_v34  ;;  %v1494_v40 = vadd.f32 %v1493_v24, %v844_v35 }
 0x110   :  { %v531_v42 = vpop.f32.mrf.mxu0 }
 0x111   :  { %v1890_v45 = vmax.f32 %v1494_v40, 0.0  ;;  %893 = vmatmul.f32.gmra.mxu2 %v284_v37  ;;  %v532_v46 = vadd.f32 %v2545_v32, %v531_v42  ;;  %v295_v37 = vld [vmem:[%s4484_s0 + $0x8c8] sm:$0xff] }
 0x112   :  { %1228 = vmatmul.f32.gmra.mxu1 %v75_v38 }
 0x113   :  { %2101 = vst [vmem:[%s4486_s3 + $0x3b0] sm:$0xff] %v1890_v45  ;;  %v1182_v47 = vadd.f32 %v1181_v36, %v532_v46  ;;  %578 = vmatmul.f32.gmra.mxu0 %v74_v43  ;;  %1546 = vmatmul.f32.gmra.mxu3 %v287_v44  ;;  %v82_v36 = vld [vmem:[%s4484_s0 + $0x220] sm:$0xff] }
 0x114   :  { %v846_v48 = vpop.f32.mrf.mxu2  ;;  %v294_v46 = vld [vmem:[%s4484_s0 + $0x8c0] sm:$0xff] }
 0x115   :  { %v1786_v49 = vmax.f32 %v1182_v47, 0.0  ;;  %v847_v50 = vadd.f32 %v2545_v32, %v846_v48  ;;  %v85_v47 = vld [vmem:[%s4484_s0 + $0x238] sm:$0xff] }
 0x116   :  { %v1499_v54 = vpop.f32.mrf.mxu3 }
 0x117   :  { %v1184_v51 = vpop.f32.mrf.mxu1  ;;  %1997 = vst [vmem:[%s4486_s3 + $0x70] sm:$0xff] %v1786_v49  ;;  %v1497_v55 = vadd.f32 %v1496_v39, %v847_v50 }
 0x118   :  { %v534_v56 = vpop.f32.mrf.mxu0 }
 0x119   :  { %v1891_v59 = vmax.f32 %v1497_v55, 0.0  ;;  %896 = vmatmul.f32.gmra.mxu2 %v286_v52  ;;  %v535_v60 = vadd.f32 %v2545_v32, %v534_v56  ;;  %v297_v52 = vld [vmem:[%s4484_s0 + $0x8d8] sm:$0xff] }
 0x11a   :  { %1231 = vmatmul.f32.gmra.mxu1 %v77_v53 }
 0x11b   :  { %2102 = vst [vmem:[%s4486_s3 + $0x3b8] sm:$0xff] %v1891_v59  ;;  %v1185_v61 = vadd.f32 %v1184_v51, %v535_v60  ;;  %581 = vmatmul.f32.gmra.mxu0 %v76_v57  ;;  %1549 = vmatmul.f32.gmra.mxu3 %v289_v58  ;;  %v84_v51 = vld [vmem:[%s4484_s0 + $0x230] sm:$0xff] }
 0x11c   :  { %v849_v62 = vpop.f32.mrf.mxu2  ;;  %v296_v60 = vld [vmem:[%s4484_s0 + $0x8d0] sm:$0xff] }
 0x11d   :  { %v1787_v63 = vmax.f32 %v1185_v61, 0.0  ;;  %v850_v0 = vadd.f32 %v2545_v32, %v849_v62  ;;  %v87_v61 = vld [vmem:[%s4484_s0 + $0x248] sm:$0xff] }
 0x11e   :  { %v1502_v4 = vpop.f32.mrf.mxu3 }
 0x11f   :  { %v1187_v1 = vpop.f32.mrf.mxu1  ;;  %1998 = vst [vmem:[%s4486_s3 + $0x78] sm:$0xff] %v1787_v63  ;;  %v1500_v5 = vadd.f32 %v1499_v54, %v850_v0 }
 0x120   :  { %v537_v6 = vpop.f32.mrf.mxu0 }
 0x121   :  { %v1892_v9 = vmax.f32 %v1500_v5, 0.0  ;;  %899 = vmatmul.f32.gmra.mxu2 %v288_v2  ;;  %v538_v10 = vadd.f32 %v2545_v32, %v537_v6  ;;  %v299_v2 = vld [vmem:[%s4484_s0 + $0x8e8] sm:$0xff] }
 0x122   :  { %1234 = vmatmul.f32.gmra.mxu1 %v79_v3 }
 0x123   :  { %2103 = vst [vmem:[%s4486_s3 + $0x3c0] sm:$0xff] %v1892_v9  ;;  %v1188_v11 = vadd.f32 %v1187_v1, %v538_v10  ;;  %584 = vmatmul.f32.gmra.mxu0 %v78_v7  ;;  %1552 = vmatmul.f32.gmra.mxu3 %v291_v8  ;;  %v86_v1 = vld [vmem:[%s4484_s0 + $0x240] sm:$0xff] }
 0x124   :  { %v852_v12 = vpop.f32.mrf.mxu2  ;;  %v298_v10 = vld [vmem:[%s4484_s0 + $0x8e0] sm:$0xff] }
 0x125   :  { %v1788_v13 = vmax.f32 %v1188_v11, 0.0  ;;  %v853_v14 = vadd.f32 %v2545_v32, %v852_v12  ;;  %v89_v11 = vld [vmem:[%s4484_s0 + $0x258] sm:$0xff] }
 0x126   :  { %v1505_v18 = vpop.f32.mrf.mxu3 }
 0x127   :  { %v1190_v15 = vpop.f32.mrf.mxu1  ;;  %1999 = vst [vmem:[%s4486_s3 + $0x80] sm:$0xff] %v1788_v13  ;;  %v1503_v19 = vadd.f32 %v1502_v4, %v853_v14 }
 0x128   :  { %v540_v20 = vpop.f32.mrf.mxu0 }
 0x129   :  { %v1893_v23 = vmax.f32 %v1503_v19, 0.0  ;;  %902 = vmatmul.f32.gmra.mxu2 %v290_v16  ;;  %v541_v24 = vadd.f32 %v2545_v32, %v540_v20  ;;  %v301_v16 = vld [vmem:[%s4484_s0 + $0x8f8] sm:$0xff] }
 0x12a   :  { %1237 = vmatmul.f32.gmra.mxu1 %v81_v17 }
 0x12b   :  { %2104 = vst [vmem:[%s4486_s3 + $0x3c8] sm:$0xff] %v1893_v23  ;;  %v1191_v25 = vadd.f32 %v1190_v15, %v541_v24  ;;  %587 = vmatmul.f32.gmra.mxu0 %v80_v21  ;;  %1555 = vmatmul.f32.gmra.mxu3 %v293_v22  ;;  %v88_v15 = vld [vmem:[%s4484_s0 + $0x250] sm:$0xff] }
 0x12c   :  { %v855_v26 = vpop.f32.mrf.mxu2  ;;  %v300_v24 = vld [vmem:[%s4484_s0 + $0x8f0] sm:$0xff] }
 0x12d   :  { %v1789_v27 = vmax.f32 %v1191_v25, 0.0  ;;  %v856_v28 = vadd.f32 %v2545_v32, %v855_v26  ;;  %v91_v25 = vld [vmem:[%s4484_s0 + $0x268] sm:$0xff] }
 0x12e   :  { %v1508_v33 = vpop.f32.mrf.mxu3 }
 0x12f   :  { %v1193_v29 = vpop.f32.mrf.mxu1  ;;  %2000 = vst [vmem:[%s4486_s3 + $0x88] sm:$0xff] %v1789_v27  ;;  %v1506_v34 = vadd.f32 %v1505_v18, %v856_v28 }
 0x130   :  { %v543_v35 = vpop.f32.mrf.mxu0 }
 0x131   :  { %v1894_v38 = vmax.f32 %v1506_v34, 0.0  ;;  %905 = vmatmul.f32.gmra.mxu2 %v292_v30  ;;  %v544_v39 = vadd.f32 %v2545_v32, %v543_v35  ;;  %v303_v30 = vld [vmem:[%s4484_s0 + $0x908] sm:$0xff] }
 0x132   :  { %1240 = vmatmul.f32.gmra.mxu1 %v83_v31 }
 0x133   :  { %2105 = vst [vmem:[%s4486_s3 + $0x3d0] sm:$0xff] %v1894_v38  ;;  %v1194_v40 = vadd.f32 %v1193_v29, %v544_v39  ;;  %590 = vmatmul.f32.gmra.mxu0 %v82_v36  ;;  %1558 = vmatmul.f32.gmra.mxu3 %v295_v37  ;;  %v90_v29 = vld [vmem:[%s4484_s0 + $0x260] sm:$0xff] }
 0x134   :  { %v858_v42 = vpop.f32.mrf.mxu2  ;;  %v302_v39 = vld [vmem:[%s4484_s0 + $0x900] sm:$0xff] }
 0x135   :  { %v1790_v43 = vmax.f32 %v1194_v40, 0.0  ;;  %v859_v44 = vadd.f32 %v2545_v32, %v858_v42  ;;  %v93_v40 = vld [vmem:[%s4484_s0 + $0x278] sm:$0xff] }
 0x136   :  { %v1511_v48 = vpop.f32.mrf.mxu3 }
 0x137   :  { %v1196_v45 = vpop.f32.mrf.mxu1  ;;  %2001 = vst [vmem:[%s4486_s3 + $0x90] sm:$0xff] %v1790_v43  ;;  %v1509_v49 = vadd.f32 %v1508_v33, %v859_v44 }
 0x138   :  { %v546_v50 = vpop.f32.mrf.mxu0 }
 0x139   :  { %v1895_v53 = vmax.f32 %v1509_v49, 0.0  ;;  %908 = vmatmul.f32.gmra.mxu2 %v294_v46  ;;  %v547_v54 = vadd.f32 %v2545_v32, %v546_v50  ;;  %v305_v46 = vld [vmem:[%s4484_s0 + $0x918] sm:$0xff] }
 0x13a   :  { %1243 = vmatmul.f32.gmra.mxu1 %v85_v47 }
 0x13b   :  { %2106 = vst [vmem:[%s4486_s3 + $0x3d8] sm:$0xff] %v1895_v53  ;;  %v1197_v55 = vadd.f32 %v1196_v45, %v547_v54  ;;  %593 = vmatmul.f32.gmra.mxu0 %v84_v51  ;;  %1561 = vmatmul.f32.gmra.mxu3 %v297_v52  ;;  %v92_v45 = vld [vmem:[%s4484_s0 + $0x270] sm:$0xff] }
 0x13c   :  { %v861_v56 = vpop.f32.mrf.mxu2  ;;  %v304_v54 = vld [vmem:[%s4484_s0 + $0x910] sm:$0xff] }
 0x13d   :  { %v1791_v57 = vmax.f32 %v1197_v55, 0.0  ;;  %v862_v58 = vadd.f32 %v2545_v32, %v861_v56  ;;  %v95_v55 = vld [vmem:[%s4484_s0 + $0x288] sm:$0xff] }
 0x13e   :  { %v1514_v62 = vpop.f32.mrf.mxu3 }
 0x13f   :  { %v1199_v59 = vpop.f32.mrf.mxu1  ;;  %2002 = vst [vmem:[%s4486_s3 + $0x98] sm:$0xff] %v1791_v57  ;;  %v1512_v63 = vadd.f32 %v1511_v48, %v862_v58 }
 0x140   :  { %v549_v0 = vpop.f32.mrf.mxu0 }
 0x141   :  { %v1896_v3 = vmax.f32 %v1512_v63, 0.0  ;;  %911 = vmatmul.f32.gmra.mxu2 %v296_v60  ;;  %v550_v4 = vadd.f32 %v2545_v32, %v549_v0  ;;  %v307_v60 = vld [vmem:[%s4484_s0 + $0x928] sm:$0xff] }
 0x142   :  { %1246 = vmatmul.f32.gmra.mxu1 %v87_v61 }
 0x143   :  { %2107 = vst [vmem:[%s4486_s3 + $0x3e0] sm:$0xff] %v1896_v3  ;;  %v1200_v5 = vadd.f32 %v1199_v59, %v550_v4  ;;  %596 = vmatmul.f32.gmra.mxu0 %v86_v1  ;;  %1564 = vmatmul.f32.gmra.mxu3 %v299_v2  ;;  %v94_v59 = vld [vmem:[%s4484_s0 + $0x280] sm:$0xff] }
 0x144   :  { %v864_v6 = vpop.f32.mrf.mxu2  ;;  %v306_v4 = vld [vmem:[%s4484_s0 + $0x920] sm:$0xff] }
 0x145   :  { %v1792_v7 = vmax.f32 %v1200_v5, 0.0  ;;  %v865_v8 = vadd.f32 %v2545_v32, %v864_v6  ;;  %v97_v5 = vld [vmem:[%s4484_s0 + $0x298] sm:$0xff] }
 0x146   :  { %v1517_v12 = vpop.f32.mrf.mxu3 }
 0x147   :  { %v1202_v9 = vpop.f32.mrf.mxu1  ;;  %2003 = vst [vmem:[%s4486_s3 + $0xa0] sm:$0xff] %v1792_v7  ;;  %v1515_v13 = vadd.f32 %v1514_v62, %v865_v8 }
 0x148   :  { %v552_v14 = vpop.f32.mrf.mxu0 }
 0x149   :  { %v1897_v17 = vmax.f32 %v1515_v13, 0.0  ;;  %914 = vmatmul.f32.gmra.mxu2 %v298_v10  ;;  %v553_v18 = vadd.f32 %v2545_v32, %v552_v14  ;;  %v309_v10 = vld [vmem:[%s4484_s0 + $0x938] sm:$0xff] }
 0x14a   :  { %1249 = vmatmul.f32.gmra.mxu1 %v89_v11 }
 0x14b   :  { %2108 = vst [vmem:[%s4486_s3 + $0x3e8] sm:$0xff] %v1897_v17  ;;  %v1203_v19 = vadd.f32 %v1202_v9, %v553_v18  ;;  %599 = vmatmul.f32.gmra.mxu0 %v88_v15  ;;  %1567 = vmatmul.f32.gmra.mxu3 %v301_v16  ;;  %v96_v9 = vld [vmem:[%s4484_s0 + $0x290] sm:$0xff]  ;;  %v3061_v16 = vld [vmem:[%s4485_s2] ss:$0 sm:$0xff] }
 0x14c   :  { %v867_v20 = vpop.f32.mrf.mxu2 }
 0x14d   :  { %v1793_v21 = vmax.f32 %v1203_v19, 0.0  ;;  %v868_v22 = vadd.f32 %v2545_v32, %v867_v20  ;;  %v99_v19 = vld [vmem:[%s4484_s0 + $0x2a8] sm:$0xff] }
 0x14e   :  { %v1520_v26 = vpop.f32.mrf.mxu3 }
 0x14f   :  { %v1205_v23 = vpop.f32.mrf.mxu1  ;;  %2004 = vst [vmem:[%s4486_s3 + $0xa8] sm:$0xff] %v1793_v21  ;;  %v1518_v27 = vadd.f32 %v1517_v12, %v868_v22 }
 0x150   :  { %v555_v28 = vpop.f32.mrf.mxu0 }
 0x151   :  { %v1898_v31 = vmax.f32 %v1518_v27, 0.0  ;;  %917 = vmatmul.f32.gmra.mxu2 %v300_v24  ;;  %v556_v33 = vadd.f32 %v2545_v32, %v555_v28  ;;  %v311_v24 = vld [vmem:[%s4484_s0 + $0x948] sm:$0xff] }
 0x152   :  { %1252 = vmatmul.f32.gmra.mxu1 %v91_v25 }
 0x153   :  { %2109 = vst [vmem:[%s4486_s3 + $0x3f0] sm:$0xff] %v1898_v31  ;;  %v1206_v34 = vadd.f32 %v1205_v23, %v556_v33  ;;  %602 = vmatmul.f32.gmra.mxu0 %v90_v29  ;;  %1570 = vmatmul.f32.gmra.mxu3 %v303_v30  ;;  %v98_v23 = vld [vmem:[%s4484_s0 + $0x2a0] sm:$0xff] }
 0x154   :  { %v870_v35 = vpop.f32.mrf.mxu2  ;;  %v310_v33 = vld [vmem:[%s4484_s0 + $0x940] sm:$0xff] }
 0x155   :  { %v1794_v36 = vmax.f32 %v1206_v34, 0.0  ;;  %v871_v37 = vadd.f32 %v2545_v32, %v870_v35  ;;  %v101_v34 = vld [vmem:[%s4484_s0 + $0x2b8] sm:$0xff] }
 0x156   :  { %v1523_v42 = vpop.f32.mrf.mxu3 }
 0x157   :  { %v1208_v38 = vpop.f32.mrf.mxu1  ;;  %2005 = vst [vmem:[%s4486_s3 + $0xb0] sm:$0xff] %v1794_v36  ;;  %v1521_v43 = vadd.f32 %v1520_v26, %v871_v37 }
 0x158   :  { %v558_v44 = vpop.f32.mrf.mxu0 }
 0x159   :  { %v1899_v47 = vmax.f32 %v1521_v43, 0.0  ;;  %920 = vmatmul.f32.gmra.mxu2 %v302_v39  ;;  %v559_v48 = vadd.f32 %v2545_v32, %v558_v44  ;;  %v313_v39 = vld [vmem:[%s4484_s0 + $0x958] sm:$0xff] }
 0x15a   :  { %1255 = vmatmul.f32.gmra.mxu1 %v93_v40 }
 0x15b   :  { %2110 = vst [vmem:[%s4486_s3 + $0x3f8] sm:$0xff] %v1899_v47  ;;  %v1209_v49 = vadd.f32 %v1208_v38, %v559_v48  ;;  %605 = vmatmul.f32.gmra.mxu0 %v92_v45  ;;  %1573 = vmatmul.f32.gmra.mxu3 %v305_v46  ;;  %v100_v38 = vld [vmem:[%s4484_s0 + $0x2b0] sm:$0xff] }
 0x15c   :  { %v873_v50 = vpop.f32.mrf.mxu2  ;;  %v312_v48 = vld [vmem:[%s4484_s0 + $0x950] sm:$0xff] }
 0x15d   :  { %v1795_v51 = vmax.f32 %v1209_v49, 0.0  ;;  %v874_v52 = vadd.f32 %v2545_v32, %v873_v50  ;;  %v103_v49 = vld [vmem:[%s4484_s0 + $0x2c8] sm:$0xff] }
 0x15e   :  { %v1526_v56 = vpop.f32.mrf.mxu3 }
 0x15f   :  { %v1211_v53 = vpop.f32.mrf.mxu1  ;;  %2006 = vst [vmem:[%s4486_s3 + $0xb8] sm:$0xff] %v1795_v51  ;;  %v1524_v57 = vadd.f32 %v1523_v42, %v874_v52 }
 0x160   :  { %v561_v58 = vpop.f32.mrf.mxu0 }
 0x161   :  { %v1900_v61 = vmax.f32 %v1524_v57, 0.0  ;;  %923 = vmatmul.f32.gmra.mxu2 %v304_v54  ;;  %v562_v62 = vadd.f32 %v2545_v32, %v561_v58  ;;  %v315_v54 = vld [vmem:[%s4484_s0 + $0x968] sm:$0xff] }
 0x162   :  { %1258 = vmatmul.f32.gmra.mxu1 %v95_v55 }
 0x163   :  { %2111 = vst [vmem:[%s4486_s3 + $0x400] sm:$0xff] %v1900_v61  ;;  %v1212_v63 = vadd.f32 %v1211_v53, %v562_v62  ;;  %608 = vmatmul.f32.gmra.mxu0 %v94_v59  ;;  %1576 = vmatmul.f32.gmra.mxu3 %v307_v60  ;;  %v102_v53 = vld [vmem:[%s4484_s0 + $0x2c0] sm:$0xff] }
 0x164   :  { %v876_v0 = vpop.f32.mrf.mxu2  ;;  %v314_v62 = vld [vmem:[%s4484_s0 + $0x960] sm:$0xff] }
 0x165   :  { %v1796_v1 = vmax.f32 %v1212_v63, 0.0  ;;  %v877_v2 = vadd.f32 %v2545_v32, %v876_v0  ;;  %v105_v63 = vld [vmem:[%s4484_s0 + $0x2d8] sm:$0xff] }
 0x166   :  { %v1529_v6 = vpop.f32.mrf.mxu3 }
 0x167   :  { %v1214_v3 = vpop.f32.mrf.mxu1  ;;  %2007 = vst [vmem:[%s4486_s3 + $0xc0] sm:$0xff] %v1796_v1  ;;  %v1527_v7 = vadd.f32 %v1526_v56, %v877_v2 }
 0x168   :  { %v564_v8 = vpop.f32.mrf.mxu0 }
 0x169   :  { %v1901_v11 = vmax.f32 %v1527_v7, 0.0  ;;  %926 = vmatmul.f32.gmra.mxu2 %v306_v4  ;;  %v565_v12 = vadd.f32 %v2545_v32, %v564_v8  ;;  %v308_v32 = vld [vmem:[%s4484_s0 + $0x930] sm:$0xff]  ;;  %v317_v4 = vld [vmem:[%s4484_s0 + $0x978] sm:$0xff] }
 0x16a   :  { %1261 = vmatmul.f32.gmra.mxu1 %v97_v5 }
 0x16b   :  { %2112 = vst [vmem:[%s4486_s3 + $0x408] sm:$0xff] %v1901_v11  ;;  %v1215_v13 = vadd.f32 %v1214_v3, %v565_v12  ;;  %611 = vmatmul.f32.gmra.mxu0 %v96_v9  ;;  %1579 = vmatmul.f32.gmra.mxu3 %v309_v10  ;;  %v104_v3 = vld [vmem:[%s4484_s0 + $0x2d0] sm:$0xff] }
 0x16c   :  { %v879_v14 = vpop.f32.mrf.mxu2  ;;  %v316_v12 = vld [vmem:[%s4484_s0 + $0x970] sm:$0xff] }
 0x16d   :  { %v1797_v15 = vmax.f32 %v1215_v13, 0.0  ;;  %v880_v17 = vadd.f32 %v3061_v16, %v879_v14  ;;  %v107_v13 = vld [vmem:[%s4484_s0 + $0x2e8] sm:$0xff] }
 0x16e   :  { %v1532_v20 = vpop.f32.mrf.mxu3 }
 0x16f   :  { %v1217_v18 = vpop.f32.mrf.mxu1  ;;  %2008 = vst [vmem:[%s4486_s3 + $0xc8] sm:$0xff] %v1797_v15  ;;  %v1530_v21 = vadd.f32 %v1529_v6, %v880_v17 }
 0x170   :  { %v567_v22 = vpop.f32.mrf.mxu0 }
 0x171   :  { %v1902_v25 = vmax.f32 %v1530_v21, 0.0  ;;  %929 = vmatmul.f32.gmra.mxu2 %v308_v32  ;;  %v568_v26 = vadd.f32 %v3061_v16, %v567_v22  ;;  %v319_v32 = vld [vmem:[%s4484_s0 + $0x988] sm:$0xff] }
 0x172   :  { %1264 = vmatmul.f32.gmra.mxu1 %v99_v19 }
 0x173   :  { %2113 = vst [vmem:[%s4486_s3 + $0x410] sm:$0xff] %v1902_v25  ;;  %v1218_v27 = vadd.f32 %v1217_v18, %v568_v26  ;;  %614 = vmatmul.f32.gmra.mxu0 %v98_v23  ;;  %1582 = vmatmul.f32.gmra.mxu3 %v311_v24  ;;  %v106_v18 = vld [vmem:[%s4484_s0 + $0x2e0] sm:$0xff] }
 0x174   :  { %v882_v28 = vpop.f32.mrf.mxu2  ;;  %v318_v26 = vld [vmem:[%s4484_s0 + $0x980] sm:$0xff] }
 0x175   :  { %v1798_v29 = vmax.f32 %v1218_v27, 0.0  ;;  %v883_v30 = vadd.f32 %v3061_v16, %v882_v28  ;;  %v109_v27 = vld [vmem:[%s4484_s0 + $0x2f8] sm:$0xff] }
 0x176   :  { %v1535_v35 = vpop.f32.mrf.mxu3 }
 0x177   :  { %v1220_v31 = vpop.f32.mrf.mxu1  ;;  %2009 = vst [vmem:[%s4486_s3 + $0xd0] sm:$0xff] %v1798_v29  ;;  %v1533_v36 = vadd.f32 %v1532_v20, %v883_v30 }
 0x178   :  { %v570_v37 = vpop.f32.mrf.mxu0 }
 0x179   :  { %v1903_v40 = vmax.f32 %v1533_v36, 0.0  ;;  %932 = vmatmul.f32.gmra.mxu2 %v310_v33  ;;  %v571_v42 = vadd.f32 %v3061_v16, %v570_v37  ;;  %v321_v33 = vld [vmem:[%s4484_s0 + $0x998] sm:$0xff] }
 0x17a   :  { %1267 = vmatmul.f32.gmra.mxu1 %v101_v34 }
 0x17b   :  { %2114 = vst [vmem:[%s4486_s3 + $0x418] sm:$0xff] %v1903_v40  ;;  %v1221_v43 = vadd.f32 %v1220_v31, %v571_v42  ;;  %617 = vmatmul.f32.gmra.mxu0 %v100_v38  ;;  %1585 = vmatmul.f32.gmra.mxu3 %v313_v39  ;;  %v108_v31 = vld [vmem:[%s4484_s0 + $0x2f0] sm:$0xff] }
 0x17c   :  { %v885_v44 = vpop.f32.mrf.mxu2  ;;  %v320_v42 = vld [vmem:[%s4484_s0 + $0x990] sm:$0xff] }
 0x17d   :  { %v1799_v45 = vmax.f32 %v1221_v43, 0.0  ;;  %v886_v46 = vadd.f32 %v3061_v16, %v885_v44  ;;  %v111_v43 = vld [vmem:[%s4484_s0 + $0x308] sm:$0xff] }
 0x17e   :  { %v1538_v50 = vpop.f32.mrf.mxu3 }
 0x17f   :  { %v1223_v47 = vpop.f32.mrf.mxu1  ;;  %2010 = vst [vmem:[%s4486_s3 + $0xd8] sm:$0xff] %v1799_v45  ;;  %v1536_v51 = vadd.f32 %v1535_v35, %v886_v46 }
 0x180   :  { %v573_v52 = vpop.f32.mrf.mxu0 }
 0x181   :  { %v1904_v55 = vmax.f32 %v1536_v51, 0.0  ;;  %935 = vmatmul.f32.gmra.mxu2 %v312_v48  ;;  %v574_v56 = vadd.f32 %v3061_v16, %v573_v52  ;;  %v323_v48 = vld [vmem:[%s4484_s0 + $0x9a8] sm:$0xff] }
 0x182   :  { %1270 = vmatmul.f32.gmra.mxu1 %v103_v49 }
 0x183   :  { %2115 = vst [vmem:[%s4486_s3 + $0x420] sm:$0xff] %v1904_v55  ;;  %v1224_v57 = vadd.f32 %v1223_v47, %v574_v56  ;;  %620 = vmatmul.f32.gmra.mxu0 %v102_v53  ;;  %1588 = vmatmul.f32.gmra.mxu3 %v315_v54  ;;  %v110_v47 = vld [vmem:[%s4484_s0 + $0x300] sm:$0xff] }
 0x184   :  { %v888_v58 = vpop.f32.mrf.mxu2  ;;  %v322_v56 = vld [vmem:[%s4484_s0 + $0x9a0] sm:$0xff] }
 0x185   :  { %v1800_v59 = vmax.f32 %v1224_v57, 0.0  ;;  %v889_v60 = vadd.f32 %v3061_v16, %v888_v58  ;;  %v113_v57 = vld [vmem:[%s4484_s0 + $0x318] sm:$0xff] }
 0x186   :  { %v1541_v0 = vpop.f32.mrf.mxu3 }
 0x187   :  { %v1226_v61 = vpop.f32.mrf.mxu1  ;;  %2011 = vst [vmem:[%s4486_s3 + $0xe0] sm:$0xff] %v1800_v59  ;;  %v1539_v1 = vadd.f32 %v1538_v50, %v889_v60 }
 0x188   :  { %v576_v2 = vpop.f32.mrf.mxu0 }
 0x189   :  { %v1905_v5 = vmax.f32 %v1539_v1, 0.0  ;;  %938 = vmatmul.f32.gmra.mxu2 %v314_v62  ;;  %v577_v6 = vadd.f32 %v3061_v16, %v576_v2  ;;  %v325_v62 = vld [vmem:[%s4484_s0 + $0x9b8] sm:$0xff] }
 0x18a   :  { %1273 = vmatmul.f32.gmra.mxu1 %v105_v63 }
 0x18b   :  { %2116 = vst [vmem:[%s4486_s3 + $0x428] sm:$0xff] %v1905_v5  ;;  %v1227_v7 = vadd.f32 %v1226_v61, %v577_v6  ;;  %623 = vmatmul.f32.gmra.mxu0 %v104_v3  ;;  %1591 = vmatmul.f32.gmra.mxu3 %v317_v4  ;;  %v112_v61 = vld [vmem:[%s4484_s0 + $0x310] sm:$0xff] }
 0x18c   :  { %v891_v8 = vpop.f32.mrf.mxu2  ;;  %v324_v6 = vld [vmem:[%s4484_s0 + $0x9b0] sm:$0xff] }
 0x18d   :  { %v1801_v9 = vmax.f32 %v1227_v7, 0.0  ;;  %v892_v10 = vadd.f32 %v3061_v16, %v891_v8  ;;  %v115_v7 = vld [vmem:[%s4484_s0 + $0x328] sm:$0xff] }
 0x18e   :  { %v1544_v14 = vpop.f32.mrf.mxu3 }
 0x18f   :  { %v1229_v11 = vpop.f32.mrf.mxu1  ;;  %2012 = vst [vmem:[%s4486_s3 + $0xe8] sm:$0xff] %v1801_v9  ;;  %v1542_v15 = vadd.f32 %v1541_v0, %v892_v10 }
 0x190   :  { %v579_v17 = vpop.f32.mrf.mxu0 }
 0x191   :  { %v1906_v19 = vmax.f32 %v1542_v15, 0.0  ;;  %941 = vmatmul.f32.gmra.mxu2 %v316_v12  ;;  %v580_v20 = vadd.f32 %v3061_v16, %v579_v17  ;;  %v327_v12 = vld [vmem:[%s4484_s0 + $0x9c8] sm:$0xff] }
 0x192   :  { %1276 = vmatmul.f32.gmra.mxu1 %v107_v13 }
 0x193   :  { %2117 = vst [vmem:[%s4486_s3 + $0x430] sm:$0xff] %v1906_v19  ;;  %v1230_v21 = vadd.f32 %v1229_v11, %v580_v20  ;;  %626 = vmatmul.f32.gmra.mxu0 %v106_v18  ;;  %1594 = vmatmul.f32.gmra.mxu3 %v319_v32  ;;  %v114_v11 = vld [vmem:[%s4484_s0 + $0x320] sm:$0xff] }
 0x194   :  { %v894_v22 = vpop.f32.mrf.mxu2  ;;  %v326_v20 = vld [vmem:[%s4484_s0 + $0x9c0] sm:$0xff] }
 0x195   :  { %v1802_v23 = vmax.f32 %v1230_v21, 0.0  ;;  %v895_v24 = vadd.f32 %v3061_v16, %v894_v22  ;;  %v117_v21 = vld [vmem:[%s4484_s0 + $0x338] sm:$0xff] }
 0x196   :  { %v1547_v28 = vpop.f32.mrf.mxu3 }
 0x197   :  { %v1232_v25 = vpop.f32.mrf.mxu1  ;;  %2013 = vst [vmem:[%s4486_s3 + $0xf0] sm:$0xff] %v1802_v23  ;;  %v1545_v29 = vadd.f32 %v1544_v14, %v895_v24 }
 0x198   :  { %v582_v30 = vpop.f32.mrf.mxu0 }
 0x199   :  { %v1907_v34 = vmax.f32 %v1545_v29, 0.0  ;;  %944 = vmatmul.f32.gmra.mxu2 %v318_v26  ;;  %v583_v35 = vadd.f32 %v3061_v16, %v582_v30  ;;  %v329_v26 = vld [vmem:[%s4484_s0 + $0x9d8] sm:$0xff] }
 0x19a   :  { %1279 = vmatmul.f32.gmra.mxu1 %v109_v27 }
 0x19b   :  { %2118 = vst [vmem:[%s4486_s3 + $0x438] sm:$0xff] %v1907_v34  ;;  %v1233_v36 = vadd.f32 %v1232_v25, %v583_v35  ;;  %629 = vmatmul.f32.gmra.mxu0 %v108_v31  ;;  %1597 = vmatmul.f32.gmra.mxu3 %v321_v33  ;;  %v116_v25 = vld [vmem:[%s4484_s0 + $0x330] sm:$0xff] }
 0x19c   :  { %v897_v37 = vpop.f32.mrf.mxu2  ;;  %v328_v35 = vld [vmem:[%s4484_s0 + $0x9d0] sm:$0xff] }
 0x19d   :  { %v1803_v38 = vmax.f32 %v1233_v36, 0.0  ;;  %v898_v39 = vadd.f32 %v3061_v16, %v897_v37  ;;  %v119_v36 = vld [vmem:[%s4484_s0 + $0x348] sm:$0xff] }
 0x19e   :  { %v1550_v44 = vpop.f32.mrf.mxu3 }
 0x19f   :  { %v1235_v40 = vpop.f32.mrf.mxu1  ;;  %2014 = vst [vmem:[%s4486_s3 + $0xf8] sm:$0xff] %v1803_v38  ;;  %v1548_v45 = vadd.f32 %v1547_v28, %v898_v39 }
 0x1a0   :  { %v585_v46 = vpop.f32.mrf.mxu0 }
 0x1a1   :  { %v1908_v49 = vmax.f32 %v1548_v45, 0.0  ;;  %947 = vmatmul.f32.gmra.mxu2 %v320_v42  ;;  %v586_v50 = vadd.f32 %v3061_v16, %v585_v46  ;;  %v331_v42 = vld [vmem:[%s4484_s0 + $0x9e8] sm:$0xff] }
 0x1a2   :  { %1282 = vmatmul.f32.gmra.mxu1 %v111_v43 }
 0x1a3   :  { %2119 = vst [vmem:[%s4486_s3 + $0x440] sm:$0xff] %v1908_v49  ;;  %v1236_v51 = vadd.f32 %v1235_v40, %v586_v50  ;;  %632 = vmatmul.f32.gmra.mxu0 %v110_v47  ;;  %1600 = vmatmul.f32.gmra.mxu3 %v323_v48  ;;  %v118_v40 = vld [vmem:[%s4484_s0 + $0x340] sm:$0xff] }
 0x1a4   :  { %v900_v52 = vpop.f32.mrf.mxu2  ;;  %v330_v50 = vld [vmem:[%s4484_s0 + $0x9e0] sm:$0xff] }
 0x1a5   :  { %v1804_v53 = vmax.f32 %v1236_v51, 0.0  ;;  %v901_v54 = vadd.f32 %v3061_v16, %v900_v52  ;;  %v121_v51 = vld [vmem:[%s4484_s0 + $0x358] sm:$0xff] }
 0x1a6   :  { %v1553_v58 = vpop.f32.mrf.mxu3 }
 0x1a7   :  { %v1238_v55 = vpop.f32.mrf.mxu1  ;;  %2015 = vst [vmem:[%s4486_s3 + $0x100] sm:$0xff] %v1804_v53  ;;  %v1551_v59 = vadd.f32 %v1550_v44, %v901_v54 }
 0x1a8   :  { %v588_v60 = vpop.f32.mrf.mxu0 }
 0x1a9   :  { %v1909_v63 = vmax.f32 %v1551_v59, 0.0  ;;  %950 = vmatmul.f32.gmra.mxu2 %v322_v56  ;;  %v589_v0 = vadd.f32 %v3061_v16, %v588_v60  ;;  %v333_v56 = vld [vmem:[%s4484_s0 + $0x9f8] sm:$0xff] }
 0x1aa   :  { %1285 = vmatmul.f32.gmra.mxu1 %v113_v57 }
 0x1ab   :  { %2120 = vst [vmem:[%s4486_s3 + $0x448] sm:$0xff] %v1909_v63  ;;  %v1239_v1 = vadd.f32 %v1238_v55, %v589_v0  ;;  %635 = vmatmul.f32.gmra.mxu0 %v112_v61  ;;  %1603 = vmatmul.f32.gmra.mxu3 %v325_v62  ;;  %v120_v55 = vld [vmem:[%s4484_s0 + $0x350] sm:$0xff] }
 0x1ac   :  { %v903_v2 = vpop.f32.mrf.mxu2  ;;  %v332_v0 = vld [vmem:[%s4484_s0 + $0x9f0] sm:$0xff] }
 0x1ad   :  { %v1805_v3 = vmax.f32 %v1239_v1, 0.0  ;;  %v904_v4 = vadd.f32 %v3061_v16, %v903_v2  ;;  %v123_v1 = vld [vmem:[%s4484_s0 + $0x368] sm:$0xff] }
 0x1ae   :  { %v1556_v8 = vpop.f32.mrf.mxu3 }
 0x1af   :  { %v1241_v5 = vpop.f32.mrf.mxu1  ;;  %2016 = vst [vmem:[%s4486_s3 + $0x108] sm:$0xff] %v1805_v3  ;;  %v1554_v9 = vadd.f32 %v1553_v58, %v904_v4 }
 0x1b0   :  { %v591_v10 = vpop.f32.mrf.mxu0 }
 0x1b1   :  { %v1910_v13 = vmax.f32 %v1554_v9, 0.0  ;;  %953 = vmatmul.f32.gmra.mxu2 %v324_v6  ;;  %v592_v14 = vadd.f32 %v3061_v16, %v591_v10  ;;  %v335_v6 = vld [vmem:[%s4484_s0 + $0xa08] sm:$0xff] }
 0x1b2   :  { %1288 = vmatmul.f32.gmra.mxu1 %v115_v7 }
 0x1b3   :  { %2121 = vst [vmem:[%s4486_s3 + $0x450] sm:$0xff] %v1910_v13  ;;  %v1242_v15 = vadd.f32 %v1241_v5, %v592_v14  ;;  %638 = vmatmul.f32.gmra.mxu0 %v114_v11  ;;  %1606 = vmatmul.f32.gmra.mxu3 %v327_v12  ;;  %v122_v5 = vld [vmem:[%s4484_s0 + $0x360] sm:$0xff] }
 0x1b4   :  { %v906_v17 = vpop.f32.mrf.mxu2  ;;  %v334_v14 = vld [vmem:[%s4484_s0 + $0xa00] sm:$0xff] }
 0x1b5   :  { %v1806_v18 = vmax.f32 %v1242_v15, 0.0  ;;  %v907_v32 = vadd.f32 %v3061_v16, %v906_v17  ;;  %v125_v15 = vld [vmem:[%s4484_s0 + $0x378] sm:$0xff] }
 0x1b6   :  { %v1559_v22 = vpop.f32.mrf.mxu3 }
 0x1b7   :  { %v1244_v19 = vpop.f32.mrf.mxu1  ;;  %2017 = vst [vmem:[%s4486_s3 + $0x110] sm:$0xff] %v1806_v18  ;;  %v1557_v23 = vadd.f32 %v1556_v8, %v907_v32 }
 0x1b8   :  { %v594_v24 = vpop.f32.mrf.mxu0 }
 0x1b9   :  { %v1911_v27 = vmax.f32 %v1557_v23, 0.0  ;;  %956 = vmatmul.f32.gmra.mxu2 %v326_v20  ;;  %v595_v28 = vadd.f32 %v3061_v16, %v594_v24  ;;  %v337_v20 = vld [vmem:[%s4484_s0 + $0xa18] sm:$0xff] }
 0x1ba   :  { %1291 = vmatmul.f32.gmra.mxu1 %v117_v21 }
 0x1bb   :  { %2122 = vst [vmem:[%s4486_s3 + $0x458] sm:$0xff] %v1911_v27  ;;  %v1245_v29 = vadd.f32 %v1244_v19, %v595_v28  ;;  %641 = vmatmul.f32.gmra.mxu0 %v116_v25  ;;  %1609 = vmatmul.f32.gmra.mxu3 %v329_v26  ;;  %v124_v19 = vld [vmem:[%s4484_s0 + $0x370] sm:$0xff] }
 0x1bc   :  { %v909_v30 = vpop.f32.mrf.mxu2  ;;  %v336_v28 = vld [vmem:[%s4484_s0 + $0xa10] sm:$0xff] }
 0x1bd   :  { %v1807_v31 = vmax.f32 %v1245_v29, 0.0  ;;  %v910_v33 = vadd.f32 %v3061_v16, %v909_v30  ;;  %v127_v29 = vld [vmem:[%s4484_s0 + $0x388] sm:$0xff] }
 0x1be   :  { %v1562_v37 = vpop.f32.mrf.mxu3 }
 0x1bf   :  { %v1247_v34 = vpop.f32.mrf.mxu1  ;;  %2018 = vst [vmem:[%s4486_s3 + $0x118] sm:$0xff] %v1807_v31  ;;  %v1560_v38 = vadd.f32 %v1559_v22, %v910_v33 }
 0x1c0   :  { %v597_v39 = vpop.f32.mrf.mxu0 }
 0x1c1   :  { %v1912_v43 = vmax.f32 %v1560_v38, 0.0  ;;  %959 = vmatmul.f32.gmra.mxu2 %v328_v35  ;;  %v598_v44 = vadd.f32 %v3061_v16, %v597_v39  ;;  %v339_v35 = vld [vmem:[%s4484_s0 + $0xa28] sm:$0xff] }
 0x1c2   :  { %1294 = vmatmul.f32.gmra.mxu1 %v119_v36 }
 0x1c3   :  { %2123 = vst [vmem:[%s4486_s3 + $0x460] sm:$0xff] %v1912_v43  ;;  %v1248_v45 = vadd.f32 %v1247_v34, %v598_v44  ;;  %644 = vmatmul.f32.gmra.mxu0 %v118_v40  ;;  %1612 = vmatmul.f32.gmra.mxu3 %v331_v42  ;;  %v126_v34 = vld [vmem:[%s4484_s0 + $0x380] sm:$0xff] }
 0x1c4   :  { %v912_v46 = vpop.f32.mrf.mxu2  ;;  %v338_v44 = vld [vmem:[%s4484_s0 + $0xa20] sm:$0xff] }
 0x1c5   :  { %v1808_v47 = vmax.f32 %v1248_v45, 0.0  ;;  %v913_v48 = vadd.f32 %v3061_v16, %v912_v46  ;;  %v129_v45 = vld [vmem:[%s4484_s0 + $0x398] sm:$0xff] }
 0x1c6   :  { %v1565_v52 = vpop.f32.mrf.mxu3 }
 0x1c7   :  { %v1250_v49 = vpop.f32.mrf.mxu1  ;;  %2019 = vst [vmem:[%s4486_s3 + $0x120] sm:$0xff] %v1808_v47  ;;  %v1563_v53 = vadd.f32 %v1562_v37, %v913_v48 }
 0x1c8   :  { %v600_v54 = vpop.f32.mrf.mxu0 }
 0x1c9   :  { %v1913_v57 = vmax.f32 %v1563_v53, 0.0  ;;  %962 = vmatmul.f32.gmra.mxu2 %v330_v50  ;;  %v601_v58 = vadd.f32 %v3061_v16, %v600_v54  ;;  %v341_v50 = vld [vmem:[%s4484_s0 + $0xa38] sm:$0xff] }
 0x1ca   :  { %1297 = vmatmul.f32.gmra.mxu1 %v121_v51 }
 0x1cb   :  { %2124 = vst [vmem:[%s4486_s3 + $0x468] sm:$0xff] %v1913_v57  ;;  %v1251_v59 = vadd.f32 %v1250_v49, %v601_v58  ;;  %647 = vmatmul.f32.gmra.mxu0 %v120_v55  ;;  %1615 = vmatmul.f32.gmra.mxu3 %v333_v56  ;;  %v128_v49 = vld [vmem:[%s4484_s0 + $0x390] sm:$0xff] }
 0x1cc   :  { %v915_v60 = vpop.f32.mrf.mxu2  ;;  %v340_v58 = vld [vmem:[%s4484_s0 + $0xa30] sm:$0xff] }
 0x1cd   :  { %v1809_v61 = vmax.f32 %v1251_v59, 0.0  ;;  %v916_v62 = vadd.f32 %v3061_v16, %v915_v60  ;;  %v131_v59 = vld [vmem:[%s4484_s0 + $0x3a8] sm:$0xff] }
 0x1ce   :  { %v1568_v2 = vpop.f32.mrf.mxu3 }
 0x1cf   :  { %v1253_v63 = vpop.f32.mrf.mxu1  ;;  %2020 = vst [vmem:[%s4486_s3 + $0x128] sm:$0xff] %v1809_v61  ;;  %v1566_v3 = vadd.f32 %v1565_v52, %v916_v62 }
 0x1d0   :  { %v603_v4 = vpop.f32.mrf.mxu0 }
 0x1d1   :  { %v1914_v7 = vmax.f32 %v1566_v3, 0.0  ;;  %965 = vmatmul.f32.gmra.mxu2 %v332_v0  ;;  %v604_v8 = vadd.f32 %v3061_v16, %v603_v4  ;;  %v343_v0 = vld [vmem:[%s4484_s0 + $0xa48] sm:$0xff] }
 0x1d2   :  { %1300 = vmatmul.f32.gmra.mxu1 %v123_v1 }
 0x1d3   :  { %2125 = vst [vmem:[%s4486_s3 + $0x470] sm:$0xff] %v1914_v7  ;;  %v1254_v9 = vadd.f32 %v1253_v63, %v604_v8  ;;  %650 = vmatmul.f32.gmra.mxu0 %v122_v5  ;;  %1618 = vmatmul.f32.gmra.mxu3 %v335_v6  ;;  %v130_v63 = vld [vmem:[%s4484_s0 + $0x3a0] sm:$0xff] }
 0x1d4   :  { %v918_v10 = vpop.f32.mrf.mxu2  ;;  %v342_v8 = vld [vmem:[%s4484_s0 + $0xa40] sm:$0xff] }
 0x1d5   :  { %v1810_v11 = vmax.f32 %v1254_v9, 0.0  ;;  %v919_v12 = vadd.f32 %v3061_v16, %v918_v10  ;;  %v133_v9 = vld [vmem:[%s4484_s0 + $0x3b8] sm:$0xff] }
 0x1d6   :  { %v1571_v17 = vpop.f32.mrf.mxu3 }
 0x1d7   :  { %v1256_v13 = vpop.f32.mrf.mxu1  ;;  %2021 = vst [vmem:[%s4486_s3 + $0x130] sm:$0xff] %v1810_v11  ;;  %v1569_v18 = vadd.f32 %v1568_v2, %v919_v12 }
 0x1d8   :  { %v606_v32 = vpop.f32.mrf.mxu0 }
 0x1d9   :  { %v1915_v21 = vmax.f32 %v1569_v18, 0.0  ;;  %968 = vmatmul.f32.gmra.mxu2 %v334_v14  ;;  %v607_v22 = vadd.f32 %v3061_v16, %v606_v32  ;;  %v345_v14 = vld [vmem:[%s4484_s0 + $0xa58] sm:$0xff] }
 0x1da   :  { %1303 = vmatmul.f32.gmra.mxu1 %v125_v15 }
 0x1db   :  { %2126 = vst [vmem:[%s4486_s3 + $0x478] sm:$0xff] %v1915_v21  ;;  %v1257_v23 = vadd.f32 %v1256_v13, %v607_v22  ;;  %653 = vmatmul.f32.gmra.mxu0 %v124_v19  ;;  %1621 = vmatmul.f32.gmra.mxu3 %v337_v20  ;;  %v132_v13 = vld [vmem:[%s4484_s0 + $0x3b0] sm:$0xff] }
 0x1dc   :  { %v921_v24 = vpop.f32.mrf.mxu2  ;;  %v344_v22 = vld [vmem:[%s4484_s0 + $0xa50] sm:$0xff] }
 0x1dd   :  { %v1811_v25 = vmax.f32 %v1257_v23, 0.0  ;;  %v922_v26 = vadd.f32 %v3061_v16, %v921_v24  ;;  %v135_v23 = vld [vmem:[%s4484_s0 + $0x3c8] sm:$0xff] }
 0x1de   :  { %v1574_v30 = vpop.f32.mrf.mxu3 }
 0x1df   :  { %v1259_v27 = vpop.f32.mrf.mxu1  ;;  %2022 = vst [vmem:[%s4486_s3 + $0x138] sm:$0xff] %v1811_v25  ;;  %v1572_v31 = vadd.f32 %v1571_v17, %v922_v26 }
 0x1e0   :  { %v609_v33 = vpop.f32.mrf.mxu0 }
 0x1e1   :  { %v1916_v36 = vmax.f32 %v1572_v31, 0.0  ;;  %971 = vmatmul.f32.gmra.mxu2 %v336_v28  ;;  %v610_v37 = vadd.f32 %v3061_v16, %v609_v33  ;;  %v347_v28 = vld [vmem:[%s4484_s0 + $0xa68] sm:$0xff] }
 0x1e2   :  { %1306 = vmatmul.f32.gmra.mxu1 %v127_v29 }
 0x1e3   :  { %2127 = vst [vmem:[%s4486_s3 + $0x480] sm:$0xff] %v1916_v36  ;;  %v1260_v38 = vadd.f32 %v1259_v27, %v610_v37  ;;  %656 = vmatmul.f32.gmra.mxu0 %v126_v34  ;;  %1624 = vmatmul.f32.gmra.mxu3 %v339_v35  ;;  %v134_v27 = vld [vmem:[%s4484_s0 + $0x3c0] sm:$0xff] }
 0x1e4   :  { %v924_v39 = vpop.f32.mrf.mxu2  ;;  %v346_v37 = vld [vmem:[%s4484_s0 + $0xa60] sm:$0xff] }
 0x1e5   :  { %v1812_v40 = vmax.f32 %v1260_v38, 0.0  ;;  %v925_v42 = vadd.f32 %v3061_v16, %v924_v39  ;;  %v137_v38 = vld [vmem:[%s4484_s0 + $0x3d8] sm:$0xff] }
 0x1e6   :  { %v1577_v46 = vpop.f32.mrf.mxu3 }
 0x1e7   :  { %v1262_v43 = vpop.f32.mrf.mxu1  ;;  %2023 = vst [vmem:[%s4486_s3 + $0x140] sm:$0xff] %v1812_v40  ;;  %v1575_v47 = vadd.f32 %v1574_v30, %v925_v42 }
 0x1e8   :  { %v612_v48 = vpop.f32.mrf.mxu0 }
 0x1e9   :  { %v1917_v51 = vmax.f32 %v1575_v47, 0.0  ;;  %974 = vmatmul.f32.gmra.mxu2 %v338_v44  ;;  %v613_v52 = vadd.f32 %v3061_v16, %v612_v48  ;;  %v349_v44 = vld [vmem:[%s4484_s0 + $0xa78] sm:$0xff] }
 0x1ea   :  { %1309 = vmatmul.f32.gmra.mxu1 %v129_v45 }
 0x1eb   :  { %2128 = vst [vmem:[%s4486_s3 + $0x488] sm:$0xff] %v1917_v51  ;;  %v1263_v53 = vadd.f32 %v1262_v43, %v613_v52  ;;  %659 = vmatmul.f32.gmra.mxu0 %v128_v49  ;;  %1627 = vmatmul.f32.gmra.mxu3 %v341_v50  ;;  %v136_v43 = vld [vmem:[%s4484_s0 + $0x3d0] sm:$0xff] }
 0x1ec   :  { %v927_v54 = vpop.f32.mrf.mxu2  ;;  %v348_v52 = vld [vmem:[%s4484_s0 + $0xa70] sm:$0xff] }
 0x1ed   :  { %v1813_v55 = vmax.f32 %v1263_v53, 0.0  ;;  %v928_v56 = vadd.f32 %v3061_v16, %v927_v54  ;;  %v139_v53 = vld [vmem:[%s4484_s0 + $0x3e8] sm:$0xff] }
 0x1ee   :  { %v1580_v60 = vpop.f32.mrf.mxu3 }
 0x1ef   :  { %v1265_v57 = vpop.f32.mrf.mxu1  ;;  %2024 = vst [vmem:[%s4486_s3 + $0x148] sm:$0xff] %v1813_v55  ;;  %v1578_v61 = vadd.f32 %v1577_v46, %v928_v56 }
 0x1f0   :  { %v615_v62 = vpop.f32.mrf.mxu0 }
 0x1f1   :  { %v1918_v1 = vmax.f32 %v1578_v61, 0.0  ;;  %977 = vmatmul.f32.gmra.mxu2 %v340_v58  ;;  %v616_v2 = vadd.f32 %v3061_v16, %v615_v62  ;;  %v351_v58 = vld [vmem:[%s4484_s0 + $0xa88] sm:$0xff] }
 0x1f2   :  { %1312 = vmatmul.f32.gmra.mxu1 %v131_v59 }
 0x1f3   :  { %2129 = vst [vmem:[%s4486_s3 + $0x490] sm:$0xff] %v1918_v1  ;;  %v1266_v3 = vadd.f32 %v1265_v57, %v616_v2  ;;  %662 = vmatmul.f32.gmra.mxu0 %v130_v63  ;;  %1630 = vmatmul.f32.gmra.mxu3 %v343_v0  ;;  %v138_v57 = vld [vmem:[%s4484_s0 + $0x3e0] sm:$0xff] }
 0x1f4   :  { %v930_v4 = vpop.f32.mrf.mxu2  ;;  %v350_v2 = vld [vmem:[%s4484_s0 + $0xa80] sm:$0xff] }
 0x1f5   :  { %v1814_v5 = vmax.f32 %v1266_v3, 0.0  ;;  %v931_v6 = vadd.f32 %v3061_v16, %v930_v4  ;;  %v141_v3 = vld [vmem:[%s4484_s0 + $0x3f8] sm:$0xff] }
 0x1f6   :  { %v1583_v10 = vpop.f32.mrf.mxu3 }
 0x1f7   :  { %v1268_v7 = vpop.f32.mrf.mxu1  ;;  %2025 = vst [vmem:[%s4486_s3 + $0x150] sm:$0xff] %v1814_v5  ;;  %v1581_v11 = vadd.f32 %v1580_v60, %v931_v6 }
 0x1f8   :  { %v618_v12 = vpop.f32.mrf.mxu0 }
 0x1f9   :  { %v1919_v15 = vmax.f32 %v1581_v11, 0.0  ;;  %980 = vmatmul.f32.gmra.mxu2 %v342_v8  ;;  %v619_v17 = vadd.f32 %v3061_v16, %v618_v12  ;;  %v353_v8 = vld [vmem:[%s4484_s0 + $0xa98] sm:$0xff] }
 0x1fa   :  { %1315 = vmatmul.f32.gmra.mxu1 %v133_v9 }
 0x1fb   :  { %2130 = vst [vmem:[%s4486_s3 + $0x498] sm:$0xff] %v1919_v15  ;;  %v1269_v18 = vadd.f32 %v1268_v7, %v619_v17  ;;  %665 = vmatmul.f32.gmra.mxu0 %v132_v13  ;;  %1633 = vmatmul.f32.gmra.mxu3 %v345_v14  ;;  %v140_v7 = vld [vmem:[%s4484_s0 + $0x3f0] sm:$0xff] }
 0x1fc   :  { %v933_v32 = vpop.f32.mrf.mxu2  ;;  %v352_v17 = vld [vmem:[%s4484_s0 + $0xa90] sm:$0xff] }
 0x1fd   :  { %v1815_v19 = vmax.f32 %v1269_v18, 0.0  ;;  %v934_v20 = vadd.f32 %v3061_v16, %v933_v32  ;;  %v143_v18 = vld [vmem:[%s4484_s0 + $0x408] sm:$0xff] }
 0x1fe   :  { %v1586_v24 = vpop.f32.mrf.mxu3 }
 0x1ff   :  { %v1271_v21 = vpop.f32.mrf.mxu1  ;;  %2026 = vst [vmem:[%s4486_s3 + $0x158] sm:$0xff] %v1815_v19  ;;  %v1584_v25 = vadd.f32 %v1583_v10, %v934_v20 }
 0x200   :  { %v621_v26 = vpop.f32.mrf.mxu0 }
 0x201   :  { %v1920_v29 = vmax.f32 %v1584_v25, 0.0  ;;  %983 = vmatmul.f32.gmra.mxu2 %v344_v22  ;;  %v622_v30 = vadd.f32 %v3061_v16, %v621_v26  ;;  %v355_v22 = vld [vmem:[%s4484_s0 + $0xaa8] sm:$0xff] }
 0x202   :  { %1318 = vmatmul.f32.gmra.mxu1 %v135_v23 }
 0x203   :  { %2131 = vst [vmem:[%s4486_s3 + $0x4a0] sm:$0xff] %v1920_v29  ;;  %v1272_v31 = vadd.f32 %v1271_v21, %v622_v30  ;;  %668 = vmatmul.f32.gmra.mxu0 %v134_v27  ;;  %1636 = vmatmul.f32.gmra.mxu3 %v347_v28  ;;  %v142_v21 = vld [vmem:[%s4484_s0 + $0x400] sm:$0xff] }
 0x204   :  { %v936_v33 = vpop.f32.mrf.mxu2  ;;  %v354_v30 = vld [vmem:[%s4484_s0 + $0xaa0] sm:$0xff] }
 0x205   :  { %v1816_v34 = vmax.f32 %v1272_v31, 0.0  ;;  %v937_v35 = vadd.f32 %v3061_v16, %v936_v33  ;;  %v145_v31 = vld [vmem:[%s4484_s0 + $0x418] sm:$0xff] }
 0x206   :  { %v1589_v39 = vpop.f32.mrf.mxu3 }
 0x207   :  { %v1274_v36 = vpop.f32.mrf.mxu1  ;;  %2027 = vst [vmem:[%s4486_s3 + $0x160] sm:$0xff] %v1816_v34  ;;  %v1587_v40 = vadd.f32 %v1586_v24, %v937_v35 }
 0x208   :  { %v624_v42 = vpop.f32.mrf.mxu0 }
 0x209   :  { %v1921_v45 = vmax.f32 %v1587_v40, 0.0  ;;  %986 = vmatmul.f32.gmra.mxu2 %v346_v37  ;;  %v625_v46 = vadd.f32 %v3061_v16, %v624_v42  ;;  %v357_v37 = vld [vmem:[%s4484_s0 + $0xab8] sm:$0xff] }
 0x20a   :  { %1321 = vmatmul.f32.gmra.mxu1 %v137_v38 }
 0x20b   :  { %2132 = vst [vmem:[%s4486_s3 + $0x4a8] sm:$0xff] %v1921_v45  ;;  %v1275_v47 = vadd.f32 %v1274_v36, %v625_v46  ;;  %671 = vmatmul.f32.gmra.mxu0 %v136_v43  ;;  %1639 = vmatmul.f32.gmra.mxu3 %v349_v44  ;;  %v144_v36 = vld [vmem:[%s4484_s0 + $0x410] sm:$0xff] }
 0x20c   :  { %v939_v48 = vpop.f32.mrf.mxu2  ;;  %v356_v46 = vld [vmem:[%s4484_s0 + $0xab0] sm:$0xff] }
 0x20d   :  { %v1817_v49 = vmax.f32 %v1275_v47, 0.0  ;;  %v940_v50 = vadd.f32 %v3061_v16, %v939_v48  ;;  %v147_v47 = vld [vmem:[%s4484_s0 + $0x428] sm:$0xff] }
 0x20e   :  { %v1592_v54 = vpop.f32.mrf.mxu3 }
 0x20f   :  { %v1277_v51 = vpop.f32.mrf.mxu1  ;;  %2028 = vst [vmem:[%s4486_s3 + $0x168] sm:$0xff] %v1817_v49  ;;  %v1590_v55 = vadd.f32 %v1589_v39, %v940_v50 }
 0x210   :  { %v627_v56 = vpop.f32.mrf.mxu0 }
 0x211   :  { %v1922_v59 = vmax.f32 %v1590_v55, 0.0  ;;  %989 = vmatmul.f32.gmra.mxu2 %v348_v52  ;;  %v628_v60 = vadd.f32 %v3061_v16, %v627_v56  ;;  %v359_v52 = vld [vmem:[%s4484_s0 + $0xac8] sm:$0xff] }
 0x212   :  { %1324 = vmatmul.f32.gmra.mxu1 %v139_v53 }
 0x213   :  { %2133 = vst [vmem:[%s4486_s3 + $0x4b0] sm:$0xff] %v1922_v59  ;;  %v1278_v61 = vadd.f32 %v1277_v51, %v628_v60  ;;  %674 = vmatmul.f32.gmra.mxu0 %v138_v57  ;;  %1642 = vmatmul.f32.gmra.mxu3 %v351_v58  ;;  %v146_v51 = vld [vmem:[%s4484_s0 + $0x420] sm:$0xff] }
 0x214   :  { %v942_v62 = vpop.f32.mrf.mxu2  ;;  %v358_v60 = vld [vmem:[%s4484_s0 + $0xac0] sm:$0xff] }
 0x215   :  { %v1818_v63 = vmax.f32 %v1278_v61, 0.0  ;;  %v943_v0 = vadd.f32 %v3061_v16, %v942_v62  ;;  %v149_v61 = vld [vmem:[%s4484_s0 + $0x438] sm:$0xff] }
 0x216   :  { %v1595_v4 = vpop.f32.mrf.mxu3 }
 0x217   :  { %v1280_v1 = vpop.f32.mrf.mxu1  ;;  %2029 = vst [vmem:[%s4486_s3 + $0x170] sm:$0xff] %v1818_v63  ;;  %v1593_v5 = vadd.f32 %v1592_v54, %v943_v0 }
 0x218   :  { %v630_v6 = vpop.f32.mrf.mxu0 }
 0x219   :  { %v1923_v9 = vmax.f32 %v1593_v5, 0.0  ;;  %992 = vmatmul.f32.gmra.mxu2 %v350_v2  ;;  %v631_v10 = vadd.f32 %v3061_v16, %v630_v6 }
 0x21a   :  { %1327 = vmatmul.f32.gmra.mxu1 %v141_v3  ;;  %v3582_v3 = vld [vmem:[%s4485_s2] ss:$0 sm:$0xff] }
 0x21b   :  { %2134 = vst [vmem:[%s4486_s3 + $0x4b8] sm:$0xff] %v1923_v9  ;;  %v1281_v11 = vadd.f32 %v1280_v1, %v631_v10  ;;  %677 = vmatmul.f32.gmra.mxu0 %v140_v7  ;;  %1645 = vmatmul.f32.gmra.mxu3 %v353_v8  ;;  %v361_v1 = vld [vmem:[%s4484_s0 + $0xad8] sm:$0xff]  ;;  %v360_v10 = vld [vmem:[%s4484_s0 + $0xad0] sm:$0xff] }
 0x21c   :  { %v945_v12 = vpop.f32.mrf.mxu2 }
 0x21d   :  { %v1819_v13 = vmax.f32 %v1281_v11, 0.0  ;;  %v946_v14 = vadd.f32 %v3061_v16, %v945_v12  ;;  %v151_v11 = vld [vmem:[%s4484_s0 + $0x448] sm:$0xff] }
 0x21e   :  { %v1598_v32 = vpop.f32.mrf.mxu3 }
 0x21f   :  { %v1283_v15 = vpop.f32.mrf.mxu1  ;;  %2030 = vst [vmem:[%s4486_s3 + $0x178] sm:$0xff] %v1819_v13  ;;  %v1596_v19 = vadd.f32 %v1595_v4, %v946_v14 }
 0x220   :  { %v633_v20 = vpop.f32.mrf.mxu0 }
 0x221   :  { %v1924_v23 = vmax.f32 %v1596_v19, 0.0  ;;  %995 = vmatmul.f32.gmra.mxu2 %v352_v17  ;;  %v634_v24 = vadd.f32 %v3061_v16, %v633_v20  ;;  %v363_v17 = vld [vmem:[%s4484_s0 + $0xae8] sm:$0xff] }
 0x222   :  { %1330 = vmatmul.f32.gmra.mxu1 %v143_v18 }
 0x223   :  { %2135 = vst [vmem:[%s4486_s3 + $0x4c0] sm:$0xff] %v1924_v23  ;;  %v1284_v25 = vadd.f32 %v1283_v15, %v634_v24  ;;  %680 = vmatmul.f32.gmra.mxu0 %v142_v21  ;;  %1648 = vmatmul.f32.gmra.mxu3 %v355_v22  ;;  %v150_v15 = vld [vmem:[%s4484_s0 + $0x440] sm:$0xff] }
 0x224   :  { %v948_v26 = vpop.f32.mrf.mxu2  ;;  %v362_v24 = vld [vmem:[%s4484_s0 + $0xae0] sm:$0xff] }
 0x225   :  { %v1820_v27 = vmax.f32 %v1284_v25, 0.0  ;;  %v949_v28 = vadd.f32 %v3061_v16, %v948_v26  ;;  %v153_v25 = vld [vmem:[%s4484_s0 + $0x458] sm:$0xff] }
 0x226   :  { %v1601_v33 = vpop.f32.mrf.mxu3 }
 0x227   :  { %v1286_v29 = vpop.f32.mrf.mxu1  ;;  %2031 = vst [vmem:[%s4486_s3 + $0x180] sm:$0xff] %v1820_v27  ;;  %v1599_v34 = vadd.f32 %v1598_v32, %v949_v28 }
 0x228   :  { %v636_v35 = vpop.f32.mrf.mxu0 }
 0x229   :  { %v1925_v38 = vmax.f32 %v1599_v34, 0.0  ;;  %998 = vmatmul.f32.gmra.mxu2 %v354_v30  ;;  %v637_v39 = vadd.f32 %v3061_v16, %v636_v35  ;;  %v365_v30 = vld [vmem:[%s4484_s0 + $0xaf8] sm:$0xff] }
 0x22a   :  { %1333 = vmatmul.f32.gmra.mxu1 %v145_v31 }
 0x22b   :  { %2136 = vst [vmem:[%s4486_s3 + $0x4c8] sm:$0xff] %v1925_v38  ;;  %v1287_v40 = vadd.f32 %v1286_v29, %v637_v39  ;;  %683 = vmatmul.f32.gmra.mxu0 %v144_v36  ;;  %1651 = vmatmul.f32.gmra.mxu3 %v357_v37  ;;  %v152_v29 = vld [vmem:[%s4484_s0 + $0x450] sm:$0xff] }
 0x22c   :  { %v951_v42 = vpop.f32.mrf.mxu2  ;;  %v364_v39 = vld [vmem:[%s4484_s0 + $0xaf0] sm:$0xff] }
 0x22d   :  { %v1821_v43 = vmax.f32 %v1287_v40, 0.0  ;;  %v952_v44 = vadd.f32 %v3061_v16, %v951_v42  ;;  %v155_v40 = vld [vmem:[%s4484_s0 + $0x468] sm:$0xff] }
 0x22e   :  { %v1604_v48 = vpop.f32.mrf.mxu3 }
 0x22f   :  { %v1289_v45 = vpop.f32.mrf.mxu1  ;;  %2032 = vst [vmem:[%s4486_s3 + $0x188] sm:$0xff] %v1821_v43  ;;  %v1602_v49 = vadd.f32 %v1601_v33, %v952_v44 }
 0x230   :  { %v639_v50 = vpop.f32.mrf.mxu0 }
 0x231   :  { %v1926_v53 = vmax.f32 %v1602_v49, 0.0  ;;  %1001 = vmatmul.f32.gmra.mxu2 %v356_v46  ;;  %v640_v54 = vadd.f32 %v3061_v16, %v639_v50  ;;  %v367_v46 = vld [vmem:[%s4484_s0 + $0xb08] sm:$0xff] }
 0x232   :  { %1336 = vmatmul.f32.gmra.mxu1 %v147_v47 }
 0x233   :  { %2137 = vst [vmem:[%s4486_s3 + $0x4d0] sm:$0xff] %v1926_v53  ;;  %v1290_v55 = vadd.f32 %v1289_v45, %v640_v54  ;;  %686 = vmatmul.f32.gmra.mxu0 %v146_v51  ;;  %1654 = vmatmul.f32.gmra.mxu3 %v359_v52  ;;  %v154_v45 = vld [vmem:[%s4484_s0 + $0x460] sm:$0xff] }
 0x234   :  { %v954_v56 = vpop.f32.mrf.mxu2  ;;  %v366_v54 = vld [vmem:[%s4484_s0 + $0xb00] sm:$0xff] }
 0x235   :  { %v1822_v57 = vmax.f32 %v1290_v55, 0.0  ;;  %v955_v58 = vadd.f32 %v3061_v16, %v954_v56  ;;  %v148_v16 = vld [vmem:[%s4484_s0 + $0x430] sm:$0xff]  ;;  %v157_v55 = vld [vmem:[%s4484_s0 + $0x478] sm:$0xff] }
 0x236   :  { %v1607_v62 = vpop.f32.mrf.mxu3 }
 0x237   :  { %v1292_v59 = vpop.f32.mrf.mxu1  ;;  %2033 = vst [vmem:[%s4486_s3 + $0x190] sm:$0xff] %v1822_v57  ;;  %v1605_v63 = vadd.f32 %v1604_v48, %v955_v58 }
 0x238   :  { %v642_v0 = vpop.f32.mrf.mxu0 }
 0x239   :  { %v1927_v2 = vmax.f32 %v1605_v63, 0.0  ;;  %1004 = vmatmul.f32.gmra.mxu2 %v358_v60  ;;  %v643_v4 = vadd.f32 %v3582_v3, %v642_v0  ;;  %v369_v60 = vld [vmem:[%s4484_s0 + $0xb18] sm:$0xff] }
 0x23a   :  { %1339 = vmatmul.f32.gmra.mxu1 %v149_v61 }
 0x23b   :  { %2138 = vst [vmem:[%s4486_s3 + $0x4d8] sm:$0xff] %v1927_v2  ;;  %v1293_v5 = vadd.f32 %v1292_v59, %v643_v4  ;;  %689 = vmatmul.f32.gmra.mxu0 %v148_v16  ;;  %1657 = vmatmul.f32.gmra.mxu3 %v361_v1  ;;  %v156_v59 = vld [vmem:[%s4484_s0 + $0x470] sm:$0xff] }
 0x23c   :  { %v957_v6 = vpop.f32.mrf.mxu2  ;;  %v368_v4 = vld [vmem:[%s4484_s0 + $0xb10] sm:$0xff] }
 0x23d   :  { %v1823_v7 = vmax.f32 %v1293_v5, 0.0  ;;  %v958_v8 = vadd.f32 %v3582_v3, %v957_v6  ;;  %v159_v5 = vld [vmem:[%s4484_s0 + $0x488] sm:$0xff] }
 0x23e   :  { %v1610_v12 = vpop.f32.mrf.mxu3 }
 0x23f   :  { %v1295_v9 = vpop.f32.mrf.mxu1  ;;  %2034 = vst [vmem:[%s4486_s3 + $0x198] sm:$0xff] %v1823_v7  ;;  %v1608_v13 = vadd.f32 %v1607_v62, %v958_v8 }
 0x240   :  { %v645_v14 = vpop.f32.mrf.mxu0 }
 0x241   :  { %v1928_v18 = vmax.f32 %v1608_v13, 0.0  ;;  %1007 = vmatmul.f32.gmra.mxu2 %v360_v10  ;;  %v646_v32 = vadd.f32 %v3582_v3, %v645_v14  ;;  %v371_v10 = vld [vmem:[%s4484_s0 + $0xb28] sm:$0xff] }
 0x242   :  { %1342 = vmatmul.f32.gmra.mxu1 %v151_v11 }
 0x243   :  { %2139 = vst [vmem:[%s4486_s3 + $0x4e0] sm:$0xff] %v1928_v18  ;;  %v1296_v19 = vadd.f32 %v1295_v9, %v646_v32  ;;  %692 = vmatmul.f32.gmra.mxu0 %v150_v15  ;;  %1660 = vmatmul.f32.gmra.mxu3 %v363_v17  ;;  %v158_v9 = vld [vmem:[%s4484_s0 + $0x480] sm:$0xff] }
 0x244   :  { %v960_v20 = vpop.f32.mrf.mxu2  ;;  %v370_v32 = vld [vmem:[%s4484_s0 + $0xb20] sm:$0xff] }
 0x245   :  { %v1824_v21 = vmax.f32 %v1296_v19, 0.0  ;;  %v961_v22 = vadd.f32 %v3582_v3, %v960_v20  ;;  %v161_v19 = vld [vmem:[%s4484_s0 + $0x498] sm:$0xff] }
 0x246   :  { %v1613_v26 = vpop.f32.mrf.mxu3 }
 0x247   :  { %v1298_v23 = vpop.f32.mrf.mxu1  ;;  %2035 = vst [vmem:[%s4486_s3 + $0x1a0] sm:$0xff] %v1824_v21  ;;  %v1611_v27 = vadd.f32 %v1610_v12, %v961_v22 }
 0x248   :  { %v648_v28 = vpop.f32.mrf.mxu0 }
 0x249   :  { %v1929_v31 = vmax.f32 %v1611_v27, 0.0  ;;  %1010 = vmatmul.f32.gmra.mxu2 %v362_v24  ;;  %v649_v33 = vadd.f32 %v3582_v3, %v648_v28  ;;  %v373_v24 = vld [vmem:[%s4484_s0 + $0xb38] sm:$0xff] }
 0x24a   :  { %1345 = vmatmul.f32.gmra.mxu1 %v153_v25 }
 0x24b   :  { %2140 = vst [vmem:[%s4486_s3 + $0x4e8] sm:$0xff] %v1929_v31  ;;  %v1299_v34 = vadd.f32 %v1298_v23, %v649_v33  ;;  %695 = vmatmul.f32.gmra.mxu0 %v152_v29  ;;  %1663 = vmatmul.f32.gmra.mxu3 %v365_v30  ;;  %v160_v23 = vld [vmem:[%s4484_s0 + $0x490] sm:$0xff] }
 0x24c   :  { %v963_v35 = vpop.f32.mrf.mxu2  ;;  %v372_v33 = vld [vmem:[%s4484_s0 + $0xb30] sm:$0xff] }
 0x24d   :  { %v1825_v36 = vmax.f32 %v1299_v34, 0.0  ;;  %v964_v37 = vadd.f32 %v3582_v3, %v963_v35  ;;  %v163_v34 = vld [vmem:[%s4484_s0 + $0x4a8] sm:$0xff] }
 0x24e   :  { %v1616_v42 = vpop.f32.mrf.mxu3 }
 0x24f   :  { %v1301_v38 = vpop.f32.mrf.mxu1  ;;  %2036 = vst [vmem:[%s4486_s3 + $0x1a8] sm:$0xff] %v1825_v36  ;;  %v1614_v43 = vadd.f32 %v1613_v26, %v964_v37 }
 0x250   :  { %v651_v44 = vpop.f32.mrf.mxu0 }
 0x251   :  { %v1930_v47 = vmax.f32 %v1614_v43, 0.0  ;;  %1013 = vmatmul.f32.gmra.mxu2 %v364_v39  ;;  %v652_v48 = vadd.f32 %v3582_v3, %v651_v44  ;;  %v375_v39 = vld [vmem:[%s4484_s0 + $0xb48] sm:$0xff] }
 0x252   :  { %1348 = vmatmul.f32.gmra.mxu1 %v155_v40 }
 0x253   :  { %2141 = vst [vmem:[%s4486_s3 + $0x4f0] sm:$0xff] %v1930_v47  ;;  %v1302_v49 = vadd.f32 %v1301_v38, %v652_v48  ;;  %698 = vmatmul.f32.gmra.mxu0 %v154_v45  ;;  %1666 = vmatmul.f32.gmra.mxu3 %v367_v46  ;;  %v162_v38 = vld [vmem:[%s4484_s0 + $0x4a0] sm:$0xff] }
 0x254   :  { %v966_v50 = vpop.f32.mrf.mxu2  ;;  %v374_v48 = vld [vmem:[%s4484_s0 + $0xb40] sm:$0xff] }
 0x255   :  { %v1826_v51 = vmax.f32 %v1302_v49, 0.0  ;;  %v967_v52 = vadd.f32 %v3582_v3, %v966_v50  ;;  %v165_v49 = vld [vmem:[%s4484_s0 + $0x4b8] sm:$0xff] }
 0x256   :  { %v1619_v56 = vpop.f32.mrf.mxu3 }
 0x257   :  { %v1304_v53 = vpop.f32.mrf.mxu1  ;;  %2037 = vst [vmem:[%s4486_s3 + $0x1b0] sm:$0xff] %v1826_v51  ;;  %v1617_v57 = vadd.f32 %v1616_v42, %v967_v52 }
 0x258   :  { %v654_v58 = vpop.f32.mrf.mxu0 }
 0x259   :  { %v1931_v61 = vmax.f32 %v1617_v57, 0.0  ;;  %1016 = vmatmul.f32.gmra.mxu2 %v366_v54  ;;  %v655_v62 = vadd.f32 %v3582_v3, %v654_v58  ;;  %v377_v54 = vld [vmem:[%s4484_s0 + $0xb58] sm:$0xff] }
 0x25a   :  { %1351 = vmatmul.f32.gmra.mxu1 %v157_v55 }
 0x25b   :  { %2142 = vst [vmem:[%s4486_s3 + $0x4f8] sm:$0xff] %v1931_v61  ;;  %v1305_v63 = vadd.f32 %v1304_v53, %v655_v62  ;;  %701 = vmatmul.f32.gmra.mxu0 %v156_v59  ;;  %1669 = vmatmul.f32.gmra.mxu3 %v369_v60  ;;  %v164_v53 = vld [vmem:[%s4484_s0 + $0x4b0] sm:$0xff] }
 0x25c   :  { %v969_v0 = vpop.f32.mrf.mxu2  ;;  %v376_v62 = vld [vmem:[%s4484_s0 + $0xb50] sm:$0xff] }
 0x25d   :  { %v1827_v16 = vmax.f32 %v1305_v63, 0.0  ;;  %v970_v1 = vadd.f32 %v3582_v3, %v969_v0  ;;  %v167_v63 = vld [vmem:[%s4484_s0 + $0x4c8] sm:$0xff] }
 0x25e   :  { %v1622_v6 = vpop.f32.mrf.mxu3 }
 0x25f   :  { %v1307_v2 = vpop.f32.mrf.mxu1  ;;  %2038 = vst [vmem:[%s4486_s3 + $0x1b8] sm:$0xff] %v1827_v16  ;;  %v1620_v7 = vadd.f32 %v1619_v56, %v970_v1 }
 0x260   :  { %v657_v8 = vpop.f32.mrf.mxu0 }
 0x261   :  { %v1932_v11 = vmax.f32 %v1620_v7, 0.0  ;;  %1019 = vmatmul.f32.gmra.mxu2 %v368_v4  ;;  %v658_v12 = vadd.f32 %v3582_v3, %v657_v8  ;;  %v379_v4 = vld [vmem:[%s4484_s0 + $0xb68] sm:$0xff] }
 0x262   :  { %1354 = vmatmul.f32.gmra.mxu1 %v159_v5 }
 0x263   :  { %2143 = vst [vmem:[%s4486_s3 + $0x500] sm:$0xff] %v1932_v11  ;;  %v1308_v13 = vadd.f32 %v1307_v2, %v658_v12  ;;  %704 = vmatmul.f32.gmra.mxu0 %v158_v9  ;;  %1672 = vmatmul.f32.gmra.mxu3 %v371_v10  ;;  %v166_v2 = vld [vmem:[%s4484_s0 + $0x4c0] sm:$0xff] }
 0x264   :  { %v972_v14 = vpop.f32.mrf.mxu2  ;;  %v378_v12 = vld [vmem:[%s4484_s0 + $0xb60] sm:$0xff] }
 0x265   :  { %v1828_v15 = vmax.f32 %v1308_v13, 0.0  ;;  %v973_v17 = vadd.f32 %v3582_v3, %v972_v14  ;;  %v169_v13 = vld [vmem:[%s4484_s0 + $0x4d8] sm:$0xff] }
 0x266   :  { %v1625_v20 = vpop.f32.mrf.mxu3 }
 0x267   :  { %v1310_v18 = vpop.f32.mrf.mxu1  ;;  %2039 = vst [vmem:[%s4486_s3 + $0x1c0] sm:$0xff] %v1828_v15  ;;  %v1623_v21 = vadd.f32 %v1622_v6, %v973_v17 }
 0x268   :  { %v660_v22 = vpop.f32.mrf.mxu0 }
 0x269   :  { %v1933_v25 = vmax.f32 %v1623_v21, 0.0  ;;  %1022 = vmatmul.f32.gmra.mxu2 %v370_v32  ;;  %v661_v26 = vadd.f32 %v3582_v3, %v660_v22  ;;  %v381_v32 = vld [vmem:[%s4484_s0 + $0xb78] sm:$0xff] }
 0x26a   :  { %1357 = vmatmul.f32.gmra.mxu1 %v161_v19 }
 0x26b   :  { %2144 = vst [vmem:[%s4486_s3 + $0x508] sm:$0xff] %v1933_v25  ;;  %v1311_v27 = vadd.f32 %v1310_v18, %v661_v26  ;;  %707 = vmatmul.f32.gmra.mxu0 %v160_v23  ;;  %1675 = vmatmul.f32.gmra.mxu3 %v373_v24  ;;  %v168_v18 = vld [vmem:[%s4484_s0 + $0x4d0] sm:$0xff] }
 0x26c   :  { %v975_v28 = vpop.f32.mrf.mxu2  ;;  %v380_v26 = vld [vmem:[%s4484_s0 + $0xb70] sm:$0xff] }
 0x26d   :  { %v1829_v29 = vmax.f32 %v1311_v27, 0.0  ;;  %v976_v30 = vadd.f32 %v3582_v3, %v975_v28  ;;  %v171_v27 = vld [vmem:[%s4484_s0 + $0x4e8] sm:$0xff] }
 0x26e   :  { %v1628_v35 = vpop.f32.mrf.mxu3 }
 0x26f   :  { %v1313_v31 = vpop.f32.mrf.mxu1  ;;  %2040 = vst [vmem:[%s4486_s3 + $0x1c8] sm:$0xff] %v1829_v29  ;;  %v1626_v36 = vadd.f32 %v1625_v20, %v976_v30 }
 0x270   :  { %v663_v37 = vpop.f32.mrf.mxu0 }
 0x271   :  { %v1934_v40 = vmax.f32 %v1626_v36, 0.0  ;;  %1025 = vmatmul.f32.gmra.mxu2 %v372_v33  ;;  %v664_v42 = vadd.f32 %v3582_v3, %v663_v37  ;;  %v383_v33 = vld [vmem:[%s4484_s0 + $0xb88] sm:$0xff] }
 0x272   :  { %1360 = vmatmul.f32.gmra.mxu1 %v163_v34 }
 0x273   :  { %2145 = vst [vmem:[%s4486_s3 + $0x510] sm:$0xff] %v1934_v40  ;;  %v1314_v43 = vadd.f32 %v1313_v31, %v664_v42  ;;  %710 = vmatmul.f32.gmra.mxu0 %v162_v38  ;;  %1678 = vmatmul.f32.gmra.mxu3 %v375_v39  ;;  %v170_v31 = vld [vmem:[%s4484_s0 + $0x4e0] sm:$0xff] }
 0x274   :  { %v978_v44 = vpop.f32.mrf.mxu2  ;;  %v382_v42 = vld [vmem:[%s4484_s0 + $0xb80] sm:$0xff] }
 0x275   :  { %v1830_v45 = vmax.f32 %v1314_v43, 0.0  ;;  %v979_v46 = vadd.f32 %v3582_v3, %v978_v44  ;;  %v173_v43 = vld [vmem:[%s4484_s0 + $0x4f8] sm:$0xff] }
 0x276   :  { %v1631_v50 = vpop.f32.mrf.mxu3 }
 0x277   :  { %v1316_v47 = vpop.f32.mrf.mxu1  ;;  %2041 = vst [vmem:[%s4486_s3 + $0x1d0] sm:$0xff] %v1830_v45  ;;  %v1629_v51 = vadd.f32 %v1628_v35, %v979_v46 }
 0x278   :  { %v666_v52 = vpop.f32.mrf.mxu0 }
 0x279   :  { %v1935_v55 = vmax.f32 %v1629_v51, 0.0  ;;  %1028 = vmatmul.f32.gmra.mxu2 %v374_v48  ;;  %v667_v56 = vadd.f32 %v3582_v3, %v666_v52  ;;  %v385_v48 = vld [vmem:[%s4484_s0 + $0xb98] sm:$0xff] }
 0x27a   :  { %1363 = vmatmul.f32.gmra.mxu1 %v165_v49 }
 0x27b   :  { %2146 = vst [vmem:[%s4486_s3 + $0x518] sm:$0xff] %v1935_v55  ;;  %v1317_v57 = vadd.f32 %v1316_v47, %v667_v56  ;;  %713 = vmatmul.f32.gmra.mxu0 %v164_v53  ;;  %1681 = vmatmul.f32.gmra.mxu3 %v377_v54  ;;  %v172_v47 = vld [vmem:[%s4484_s0 + $0x4f0] sm:$0xff] }
 0x27c   :  { %v981_v58 = vpop.f32.mrf.mxu2  ;;  %v384_v56 = vld [vmem:[%s4484_s0 + $0xb90] sm:$0xff] }
 0x27d   :  { %v1831_v59 = vmax.f32 %v1317_v57, 0.0  ;;  %v982_v60 = vadd.f32 %v3582_v3, %v981_v58  ;;  %v175_v57 = vld [vmem:[%s4484_s0 + $0x508] sm:$0xff] }
 0x27e   :  { %v1634_v0 = vpop.f32.mrf.mxu3 }
 0x27f   :  { %v1319_v61 = vpop.f32.mrf.mxu1  ;;  %2042 = vst [vmem:[%s4486_s3 + $0x1d8] sm:$0xff] %v1831_v59  ;;  %v1632_v16 = vadd.f32 %v1631_v50, %v982_v60 }
 0x280   :  { %v669_v1 = vpop.f32.mrf.mxu0 }
 0x281   :  { %v1936_v5 = vmax.f32 %v1632_v16, 0.0  ;;  %1031 = vmatmul.f32.gmra.mxu2 %v376_v62  ;;  %v670_v6 = vadd.f32 %v3582_v3, %v669_v1  ;;  %v387_v62 = vld [vmem:[%s4484_s0 + $0xba8] sm:$0xff] }
 0x282   :  { %1366 = vmatmul.f32.gmra.mxu1 %v167_v63 }
 0x283   :  { %2147 = vst [vmem:[%s4486_s3 + $0x520] sm:$0xff] %v1936_v5  ;;  %v1320_v7 = vadd.f32 %v1319_v61, %v670_v6  ;;  %716 = vmatmul.f32.gmra.mxu0 %v166_v2  ;;  %1684 = vmatmul.f32.gmra.mxu3 %v379_v4  ;;  %v174_v61 = vld [vmem:[%s4484_s0 + $0x500] sm:$0xff] }
 0x284   :  { %v984_v8 = vpop.f32.mrf.mxu2  ;;  %v386_v6 = vld [vmem:[%s4484_s0 + $0xba0] sm:$0xff] }
 0x285   :  { %v1832_v9 = vmax.f32 %v1320_v7, 0.0  ;;  %v985_v10 = vadd.f32 %v3582_v3, %v984_v8  ;;  %v177_v7 = vld [vmem:[%s4484_s0 + $0x518] sm:$0xff] }
 0x286   :  { %v1637_v14 = vpop.f32.mrf.mxu3 }
 0x287   :  { %v1322_v11 = vpop.f32.mrf.mxu1  ;;  %2043 = vst [vmem:[%s4486_s3 + $0x1e0] sm:$0xff] %v1832_v9  ;;  %v1635_v15 = vadd.f32 %v1634_v0, %v985_v10 }
 0x288   :  { %v672_v17 = vpop.f32.mrf.mxu0 }
 0x289   :  { %v1937_v19 = vmax.f32 %v1635_v15, 0.0  ;;  %1034 = vmatmul.f32.gmra.mxu2 %v378_v12  ;;  %v673_v20 = vadd.f32 %v3582_v3, %v672_v17  ;;  %v389_v12 = vld [vmem:[%s4484_s0 + $0xbb8] sm:$0xff] }
 0x28a   :  { %1369 = vmatmul.f32.gmra.mxu1 %v169_v13 }
 0x28b   :  { %2148 = vst [vmem:[%s4486_s3 + $0x528] sm:$0xff] %v1937_v19  ;;  %v1323_v21 = vadd.f32 %v1322_v11, %v673_v20  ;;  %719 = vmatmul.f32.gmra.mxu0 %v168_v18  ;;  %1687 = vmatmul.f32.gmra.mxu3 %v381_v32  ;;  %v176_v11 = vld [vmem:[%s4484_s0 + $0x510] sm:$0xff] }
 0x28c   :  { %v987_v22 = vpop.f32.mrf.mxu2  ;;  %v388_v20 = vld [vmem:[%s4484_s0 + $0xbb0] sm:$0xff] }
 0x28d   :  { %v1833_v23 = vmax.f32 %v1323_v21, 0.0  ;;  %v988_v24 = vadd.f32 %v3582_v3, %v987_v22  ;;  %v179_v21 = vld [vmem:[%s4484_s0 + $0x528] sm:$0xff] }
 0x28e   :  { %v1640_v28 = vpop.f32.mrf.mxu3 }
 0x28f   :  { %v1325_v25 = vpop.f32.mrf.mxu1  ;;  %2044 = vst [vmem:[%s4486_s3 + $0x1e8] sm:$0xff] %v1833_v23  ;;  %v1638_v29 = vadd.f32 %v1637_v14, %v988_v24 }
 0x290   :  { %v675_v30 = vpop.f32.mrf.mxu0 }
 0x291   :  { %v1938_v34 = vmax.f32 %v1638_v29, 0.0  ;;  %1037 = vmatmul.f32.gmra.mxu2 %v380_v26  ;;  %v676_v35 = vadd.f32 %v3582_v3, %v675_v30  ;;  %v391_v26 = vld [vmem:[%s4484_s0 + $0xbc8] sm:$0xff] }
 0x292   :  { %1372 = vmatmul.f32.gmra.mxu1 %v171_v27 }
 0x293   :  { %2149 = vst [vmem:[%s4486_s3 + $0x530] sm:$0xff] %v1938_v34  ;;  %v1326_v36 = vadd.f32 %v1325_v25, %v676_v35  ;;  %722 = vmatmul.f32.gmra.mxu0 %v170_v31  ;;  %1690 = vmatmul.f32.gmra.mxu3 %v383_v33  ;;  %v178_v25 = vld [vmem:[%s4484_s0 + $0x520] sm:$0xff] }
 0x294   :  { %v990_v37 = vpop.f32.mrf.mxu2  ;;  %v390_v35 = vld [vmem:[%s4484_s0 + $0xbc0] sm:$0xff] }
 0x295   :  { %v1834_v38 = vmax.f32 %v1326_v36, 0.0  ;;  %v991_v39 = vadd.f32 %v3582_v3, %v990_v37  ;;  %v181_v36 = vld [vmem:[%s4484_s0 + $0x538] sm:$0xff] }
 0x296   :  { %v1643_v44 = vpop.f32.mrf.mxu3 }
 0x297   :  { %v1328_v40 = vpop.f32.mrf.mxu1  ;;  %2045 = vst [vmem:[%s4486_s3 + $0x1f0] sm:$0xff] %v1834_v38  ;;  %v1641_v45 = vadd.f32 %v1640_v28, %v991_v39 }
 0x298   :  { %v678_v46 = vpop.f32.mrf.mxu0 }
 0x299   :  { %v1939_v49 = vmax.f32 %v1641_v45, 0.0  ;;  %1040 = vmatmul.f32.gmra.mxu2 %v382_v42  ;;  %v679_v50 = vadd.f32 %v3582_v3, %v678_v46  ;;  %v393_v42 = vld [vmem:[%s4484_s0 + $0xbd8] sm:$0xff] }
 0x29a   :  { %1375 = vmatmul.f32.gmra.mxu1 %v173_v43 }
 0x29b   :  { %2150 = vst [vmem:[%s4486_s3 + $0x538] sm:$0xff] %v1939_v49  ;;  %v1329_v51 = vadd.f32 %v1328_v40, %v679_v50  ;;  %725 = vmatmul.f32.gmra.mxu0 %v172_v47  ;;  %1693 = vmatmul.f32.gmra.mxu3 %v385_v48  ;;  %v180_v40 = vld [vmem:[%s4484_s0 + $0x530] sm:$0xff] }
 0x29c   :  { %v993_v52 = vpop.f32.mrf.mxu2  ;;  %v392_v50 = vld [vmem:[%s4484_s0 + $0xbd0] sm:$0xff] }
 0x29d   :  { %v1835_v53 = vmax.f32 %v1329_v51, 0.0  ;;  %v994_v54 = vadd.f32 %v3582_v3, %v993_v52  ;;  %v183_v51 = vld [vmem:[%s4484_s0 + $0x548] sm:$0xff] }
 0x29e   :  { %v1646_v58 = vpop.f32.mrf.mxu3 }
 0x29f   :  { %v1331_v55 = vpop.f32.mrf.mxu1  ;;  %2046 = vst [vmem:[%s4486_s3 + $0x1f8] sm:$0xff] %v1835_v53  ;;  %v1644_v59 = vadd.f32 %v1643_v44, %v994_v54 }
 0x2a0   :  { %v681_v60 = vpop.f32.mrf.mxu0 }
 0x2a1   :  { %v1940_v63 = vmax.f32 %v1644_v59, 0.0  ;;  %1043 = vmatmul.f32.gmra.mxu2 %v384_v56  ;;  %v682_v0 = vadd.f32 %v3582_v3, %v681_v60  ;;  %v395_v56 = vld [vmem:[%s4484_s0 + $0xbe8] sm:$0xff] }
 0x2a2   :  { %1378 = vmatmul.f32.gmra.mxu1 %v175_v57 }
 0x2a3   :  { %2151 = vst [vmem:[%s4486_s3 + $0x540] sm:$0xff] %v1940_v63  ;;  %v1332_v16 = vadd.f32 %v1331_v55, %v682_v0  ;;  %728 = vmatmul.f32.gmra.mxu0 %v174_v61  ;;  %1696 = vmatmul.f32.gmra.mxu3 %v387_v62  ;;  %v182_v55 = vld [vmem:[%s4484_s0 + $0x540] sm:$0xff] }
 0x2a4   :  { %v996_v1 = vpop.f32.mrf.mxu2  ;;  %v394_v0 = vld [vmem:[%s4484_s0 + $0xbe0] sm:$0xff] }
 0x2a5   :  { %v1836_v2 = vmax.f32 %v1332_v16, 0.0  ;;  %v997_v4 = vadd.f32 %v3582_v3, %v996_v1  ;;  %v185_v16 = vld [vmem:[%s4484_s0 + $0x558] sm:$0xff] }
 0x2a6   :  { %v1649_v8 = vpop.f32.mrf.mxu3 }
 0x2a7   :  { %v1334_v5 = vpop.f32.mrf.mxu1  ;;  %2047 = vst [vmem:[%s4486_s3 + $0x200] sm:$0xff] %v1836_v2  ;;  %v1647_v9 = vadd.f32 %v1646_v58, %v997_v4 }
 0x2a8   :  { %v684_v10 = vpop.f32.mrf.mxu0 }
 0x2a9   :  { %v1941_v13 = vmax.f32 %v1647_v9, 0.0  ;;  %1046 = vmatmul.f32.gmra.mxu2 %v386_v6  ;;  %v685_v14 = vadd.f32 %v3582_v3, %v684_v10  ;;  %v397_v6 = vld [vmem:[%s4484_s0 + $0xbf8] sm:$0xff] }
 0x2aa   :  { %1381 = vmatmul.f32.gmra.mxu1 %v177_v7 }
 0x2ab   :  { %2152 = vst [vmem:[%s4486_s3 + $0x548] sm:$0xff] %v1941_v13  ;;  %v1335_v15 = vadd.f32 %v1334_v5, %v685_v14  ;;  %731 = vmatmul.f32.gmra.mxu0 %v176_v11  ;;  %1699 = vmatmul.f32.gmra.mxu3 %v389_v12  ;;  %v184_v5 = vld [vmem:[%s4484_s0 + $0x550] sm:$0xff] }
 0x2ac   :  { %v999_v17 = vpop.f32.mrf.mxu2  ;;  %v396_v14 = vld [vmem:[%s4484_s0 + $0xbf0] sm:$0xff] }
 0x2ad   :  { %v1837_v18 = vmax.f32 %v1335_v15, 0.0  ;;  %v1000_v32 = vadd.f32 %v3582_v3, %v999_v17  ;;  %v187_v15 = vld [vmem:[%s4484_s0 + $0x568] sm:$0xff] }
 0x2ae   :  { %v1652_v22 = vpop.f32.mrf.mxu3 }
 0x2af   :  { %v1337_v19 = vpop.f32.mrf.mxu1  ;;  %2048 = vst [vmem:[%s4486_s3 + $0x208] sm:$0xff] %v1837_v18  ;;  %v1650_v23 = vadd.f32 %v1649_v8, %v1000_v32 }
 0x2b0   :  { %v687_v24 = vpop.f32.mrf.mxu0 }
 0x2b1   :  { %v1942_v27 = vmax.f32 %v1650_v23, 0.0  ;;  %1049 = vmatmul.f32.gmra.mxu2 %v388_v20  ;;  %v688_v28 = vadd.f32 %v3582_v3, %v687_v24  ;;  %v399_v20 = vld [vmem:[%s4484_s0 + $0xc08] sm:$0xff] }
 0x2b2   :  { %1384 = vmatmul.f32.gmra.mxu1 %v179_v21 }
 0x2b3   :  { %2153 = vst [vmem:[%s4486_s3 + $0x550] sm:$0xff] %v1942_v27  ;;  %v1338_v29 = vadd.f32 %v1337_v19, %v688_v28  ;;  %734 = vmatmul.f32.gmra.mxu0 %v178_v25  ;;  %1702 = vmatmul.f32.gmra.mxu3 %v391_v26  ;;  %v186_v19 = vld [vmem:[%s4484_s0 + $0x560] sm:$0xff] }
 0x2b4   :  { %v1002_v30 = vpop.f32.mrf.mxu2  ;;  %v398_v28 = vld [vmem:[%s4484_s0 + $0xc00] sm:$0xff] }
 0x2b5   :  { %v1838_v31 = vmax.f32 %v1338_v29, 0.0  ;;  %v1003_v33 = vadd.f32 %v3582_v3, %v1002_v30  ;;  %v189_v29 = vld [vmem:[%s4484_s0 + $0x578] sm:$0xff] }
 0x2b6   :  { %v1655_v37 = vpop.f32.mrf.mxu3 }
 0x2b7   :  { %v1340_v34 = vpop.f32.mrf.mxu1  ;;  %2049 = vst [vmem:[%s4486_s3 + $0x210] sm:$0xff] %v1838_v31  ;;  %v1653_v38 = vadd.f32 %v1652_v22, %v1003_v33 }
 0x2b8   :  { %v690_v39 = vpop.f32.mrf.mxu0 }
 0x2b9   :  { %v1943_v43 = vmax.f32 %v1653_v38, 0.0  ;;  %1052 = vmatmul.f32.gmra.mxu2 %v390_v35  ;;  %v691_v44 = vadd.f32 %v3582_v3, %v690_v39  ;;  %v401_v35 = vld [vmem:[%s4484_s0 + $0xc18] sm:$0xff] }
 0x2ba   :  { %1387 = vmatmul.f32.gmra.mxu1 %v181_v36 }
 0x2bb   :  { %2154 = vst [vmem:[%s4486_s3 + $0x558] sm:$0xff] %v1943_v43  ;;  %v1341_v45 = vadd.f32 %v1340_v34, %v691_v44  ;;  %737 = vmatmul.f32.gmra.mxu0 %v180_v40  ;;  %1705 = vmatmul.f32.gmra.mxu3 %v393_v42  ;;  %v188_v34 = vld [vmem:[%s4484_s0 + $0x570] sm:$0xff] }
 0x2bc   :  { %v1005_v46 = vpop.f32.mrf.mxu2  ;;  %v400_v44 = vld [vmem:[%s4484_s0 + $0xc10] sm:$0xff] }
 0x2bd   :  { %v1839_v47 = vmax.f32 %v1341_v45, 0.0  ;;  %v1006_v48 = vadd.f32 %v3582_v3, %v1005_v46  ;;  %v191_v45 = vld [vmem:[%s4484_s0 + $0x588] sm:$0xff] }
 0x2be   :  { %v1658_v52 = vpop.f32.mrf.mxu3 }
 0x2bf   :  { %v1343_v49 = vpop.f32.mrf.mxu1  ;;  %2050 = vst [vmem:[%s4486_s3 + $0x218] sm:$0xff] %v1839_v47  ;;  %v1656_v53 = vadd.f32 %v1655_v37, %v1006_v48 }
 0x2c0   :  { %v693_v54 = vpop.f32.mrf.mxu0 }
 0x2c1   :  { %v1944_v57 = vmax.f32 %v1656_v53, 0.0  ;;  %1055 = vmatmul.f32.gmra.mxu2 %v392_v50  ;;  %v694_v58 = vadd.f32 %v3582_v3, %v693_v54  ;;  %v403_v50 = vld [vmem:[%s4484_s0 + $0xc28] sm:$0xff] }
 0x2c2   :  { %1390 = vmatmul.f32.gmra.mxu1 %v183_v51 }
 0x2c3   :  { %2155 = vst [vmem:[%s4486_s3 + $0x560] sm:$0xff] %v1944_v57  ;;  %v1344_v59 = vadd.f32 %v1343_v49, %v694_v58  ;;  %740 = vmatmul.f32.gmra.mxu0 %v182_v55  ;;  %1708 = vmatmul.f32.gmra.mxu3 %v395_v56  ;;  %v190_v49 = vld [vmem:[%s4484_s0 + $0x580] sm:$0xff] }
 0x2c4   :  { %v1008_v60 = vpop.f32.mrf.mxu2  ;;  %v402_v58 = vld [vmem:[%s4484_s0 + $0xc20] sm:$0xff] }
 0x2c5   :  { %v1840_v61 = vmax.f32 %v1344_v59, 0.0  ;;  %v1009_v62 = vadd.f32 %v3582_v3, %v1008_v60  ;;  %v193_v59 = vld [vmem:[%s4484_s0 + $0x598] sm:$0xff] }
 0x2c6   :  { %v1661_v1 = vpop.f32.mrf.mxu3 }
 0x2c7   :  { %v1346_v63 = vpop.f32.mrf.mxu1  ;;  %2051 = vst [vmem:[%s4486_s3 + $0x220] sm:$0xff] %v1840_v61  ;;  %v1659_v2 = vadd.f32 %v1658_v52, %v1009_v62 }
 0x2c8   :  { %v696_v4 = vpop.f32.mrf.mxu0 }
 0x2c9   :  { %v1945_v7 = vmax.f32 %v1659_v2, 0.0  ;;  %1058 = vmatmul.f32.gmra.mxu2 %v394_v0  ;;  %v697_v8 = vadd.f32 %v3582_v3, %v696_v4  ;;  %v405_v0 = vld [vmem:[%s4484_s0 + $0xc38] sm:$0xff] }
 0x2ca   :  { %1393 = vmatmul.f32.gmra.mxu1 %v185_v16 }
 0x2cb   :  { %2156 = vst [vmem:[%s4486_s3 + $0x568] sm:$0xff] %v1945_v7  ;;  %v1347_v9 = vadd.f32 %v1346_v63, %v697_v8  ;;  %743 = vmatmul.f32.gmra.mxu0 %v184_v5  ;;  %1711 = vmatmul.f32.gmra.mxu3 %v397_v6  ;;  %v192_v63 = vld [vmem:[%s4484_s0 + $0x590] sm:$0xff] }
 0x2cc   :  { %v1011_v10 = vpop.f32.mrf.mxu2  ;;  %v404_v8 = vld [vmem:[%s4484_s0 + $0xc30] sm:$0xff] }
 0x2cd   :  { %v1841_v11 = vmax.f32 %v1347_v9, 0.0  ;;  %v1012_v12 = vadd.f32 %v3582_v3, %v1011_v10  ;;  %v195_v9 = vld [vmem:[%s4484_s0 + $0x5a8] sm:$0xff] }
 0x2ce   :  { %v1664_v17 = vpop.f32.mrf.mxu3 }
 0x2cf   :  { %v1349_v13 = vpop.f32.mrf.mxu1  ;;  %2052 = vst [vmem:[%s4486_s3 + $0x228] sm:$0xff] %v1841_v11  ;;  %v1662_v18 = vadd.f32 %v1661_v1, %v1012_v12 }
 0x2d0   :  { %v699_v32 = vpop.f32.mrf.mxu0 }
 0x2d1   :  { %v1946_v21 = vmax.f32 %v1662_v18, 0.0  ;;  %1061 = vmatmul.f32.gmra.mxu2 %v396_v14  ;;  %v700_v22 = vadd.f32 %v3582_v3, %v699_v32  ;;  %v407_v14 = vld [vmem:[%s4484_s0 + $0xc48] sm:$0xff] }
 0x2d2   :  { %1396 = vmatmul.f32.gmra.mxu1 %v187_v15 }
 0x2d3   :  { %2157 = vst [vmem:[%s4486_s3 + $0x570] sm:$0xff] %v1946_v21  ;;  %v1350_v23 = vadd.f32 %v1349_v13, %v700_v22  ;;  %746 = vmatmul.f32.gmra.mxu0 %v186_v19  ;;  %1714 = vmatmul.f32.gmra.mxu3 %v399_v20  ;;  %v194_v13 = vld [vmem:[%s4484_s0 + $0x5a0] sm:$0xff] }
 0x2d4   :  { %v1014_v24 = vpop.f32.mrf.mxu2  ;;  %v406_v22 = vld [vmem:[%s4484_s0 + $0xc40] sm:$0xff] }
 0x2d5   :  { %v1842_v25 = vmax.f32 %v1350_v23, 0.0  ;;  %v1015_v26 = vadd.f32 %v3582_v3, %v1014_v24  ;;  %v197_v23 = vld [vmem:[%s4484_s0 + $0x5b8] sm:$0xff] }
 0x2d6   :  { %v1667_v30 = vpop.f32.mrf.mxu3 }
 0x2d7   :  { %v1352_v27 = vpop.f32.mrf.mxu1  ;;  %2053 = vst [vmem:[%s4486_s3 + $0x230] sm:$0xff] %v1842_v25  ;;  %v1665_v31 = vadd.f32 %v1664_v17, %v1015_v26 }
 0x2d8   :  { %v702_v33 = vpop.f32.mrf.mxu0 }
 0x2d9   :  { %v1947_v36 = vmax.f32 %v1665_v31, 0.0  ;;  %1064 = vmatmul.f32.gmra.mxu2 %v398_v28  ;;  %v703_v37 = vadd.f32 %v3582_v3, %v702_v33  ;;  %v409_v28 = vld [vmem:[%s4484_s0 + $0xc58] sm:$0xff] }
 0x2da   :  { %1399 = vmatmul.f32.gmra.mxu1 %v189_v29 }
 0x2db   :  { %2158 = vst [vmem:[%s4486_s3 + $0x578] sm:$0xff] %v1947_v36  ;;  %v1353_v38 = vadd.f32 %v1352_v27, %v703_v37  ;;  %749 = vmatmul.f32.gmra.mxu0 %v188_v34  ;;  %1717 = vmatmul.f32.gmra.mxu3 %v401_v35  ;;  %v196_v27 = vld [vmem:[%s4484_s0 + $0x5b0] sm:$0xff] }
 0x2dc   :  { %v1017_v39 = vpop.f32.mrf.mxu2  ;;  %v408_v37 = vld [vmem:[%s4484_s0 + $0xc50] sm:$0xff] }
 0x2dd   :  { %v1843_v40 = vmax.f32 %v1353_v38, 0.0  ;;  %v1018_v42 = vadd.f32 %v3582_v3, %v1017_v39  ;;  %v199_v38 = vld [vmem:[%s4484_s0 + $0x5c8] sm:$0xff] }
 0x2de   :  { %v1670_v46 = vpop.f32.mrf.mxu3 }
 0x2df   :  { %v1355_v43 = vpop.f32.mrf.mxu1  ;;  %2054 = vst [vmem:[%s4486_s3 + $0x238] sm:$0xff] %v1843_v40  ;;  %v1668_v47 = vadd.f32 %v1667_v30, %v1018_v42 }
 0x2e0   :  { %v705_v48 = vpop.f32.mrf.mxu0 }
 0x2e1   :  { %v1948_v51 = vmax.f32 %v1668_v47, 0.0  ;;  %1067 = vmatmul.f32.gmra.mxu2 %v400_v44  ;;  %v706_v52 = vadd.f32 %v3582_v3, %v705_v48  ;;  %v411_v44 = vld [vmem:[%s4484_s0 + $0xc68] sm:$0xff] }
 0x2e2   :  { %1402 = vmatmul.f32.gmra.mxu1 %v191_v45 }
 0x2e3   :  { %2159 = vst [vmem:[%s4486_s3 + $0x580] sm:$0xff] %v1948_v51  ;;  %v1356_v53 = vadd.f32 %v1355_v43, %v706_v52  ;;  %752 = vmatmul.f32.gmra.mxu0 %v190_v49  ;;  %1720 = vmatmul.f32.gmra.mxu3 %v403_v50  ;;  %v198_v43 = vld [vmem:[%s4484_s0 + $0x5c0] sm:$0xff] }
 0x2e4   :  { %v1020_v54 = vpop.f32.mrf.mxu2  ;;  %v410_v52 = vld [vmem:[%s4484_s0 + $0xc60] sm:$0xff] }
 0x2e5   :  { %v1844_v55 = vmax.f32 %v1356_v53, 0.0  ;;  %v1021_v56 = vadd.f32 %v3582_v3, %v1020_v54  ;;  %v201_v53 = vld [vmem:[%s4484_s0 + $0x5d8] sm:$0xff] }
 0x2e6   :  { %v1673_v60 = vpop.f32.mrf.mxu3 }
 0x2e7   :  { %v1358_v57 = vpop.f32.mrf.mxu1  ;;  %2055 = vst [vmem:[%s4486_s3 + $0x240] sm:$0xff] %v1844_v55  ;;  %v1671_v61 = vadd.f32 %v1670_v46, %v1021_v56 }
 0x2e8   :  { %v708_v62 = vpop.f32.mrf.mxu0 }
 0x2e9   :  { %v1949_v16 = vmax.f32 %v1671_v61, 0.0  ;;  %1070 = vmatmul.f32.gmra.mxu2 %v402_v58  ;;  %v709_v1 = vadd.f32 %v3582_v3, %v708_v62 }
 0x2ea   :  { %1405 = vmatmul.f32.gmra.mxu1 %v193_v59  ;;  %v4107_v59 = vld [vmem:[%s4485_s2] ss:$0 sm:$0xff] }
 0x2eb   :  { %2160 = vst [vmem:[%s4486_s3 + $0x588] sm:$0xff] %v1949_v16  ;;  %v1359_v2 = vadd.f32 %v1358_v57, %v709_v1  ;;  %755 = vmatmul.f32.gmra.mxu0 %v192_v63  ;;  %1723 = vmatmul.f32.gmra.mxu3 %v405_v0  ;;  %v413_v57 = vld [vmem:[%s4484_s0 + $0xc78] sm:$0xff]  ;;  %v412_v1 = vld [vmem:[%s4484_s0 + $0xc70] sm:$0xff] }
 0x2ec   :  { %v1023_v4 = vpop.f32.mrf.mxu2 }
 0x2ed   :  { %v1845_v5 = vmax.f32 %v1359_v2, 0.0  ;;  %v1024_v6 = vadd.f32 %v3582_v3, %v1023_v4  ;;  %v203_v2 = vld [vmem:[%s4484_s0 + $0x5e8] sm:$0xff] }
 0x2ee   :  { %v1676_v10 = vpop.f32.mrf.mxu3 }
 0x2ef   :  { %v1361_v7 = vpop.f32.mrf.mxu1  ;;  %2056 = vst [vmem:[%s4486_s3 + $0x248] sm:$0xff] %v1845_v5  ;;  %v1674_v11 = vadd.f32 %v1673_v60, %v1024_v6 }
 0x2f0   :  { %v711_v12 = vpop.f32.mrf.mxu0 }
 0x2f1   :  { %v1950_v15 = vmax.f32 %v1674_v11, 0.0  ;;  %1073 = vmatmul.f32.gmra.mxu2 %v404_v8  ;;  %v712_v17 = vadd.f32 %v3582_v3, %v711_v12  ;;  %v415_v8 = vld [vmem:[%s4484_s0 + $0xc88] sm:$0xff] }
 0x2f2   :  { %1408 = vmatmul.f32.gmra.mxu1 %v195_v9 }
 0x2f3   :  { %2161 = vst [vmem:[%s4486_s3 + $0x590] sm:$0xff] %v1950_v15  ;;  %v1362_v18 = vadd.f32 %v1361_v7, %v712_v17  ;;  %758 = vmatmul.f32.gmra.mxu0 %v194_v13  ;;  %1726 = vmatmul.f32.gmra.mxu3 %v407_v14  ;;  %v202_v7 = vld [vmem:[%s4484_s0 + $0x5e0] sm:$0xff] }
 0x2f4   :  { %v1026_v32 = vpop.f32.mrf.mxu2  ;;  %v414_v17 = vld [vmem:[%s4484_s0 + $0xc80] sm:$0xff] }
 0x2f5   :  { %v1846_v19 = vmax.f32 %v1362_v18, 0.0  ;;  %v1027_v20 = vadd.f32 %v3582_v3, %v1026_v32  ;;  %v205_v18 = vld [vmem:[%s4484_s0 + $0x5f8] sm:$0xff] }
 0x2f6   :  { %v1679_v24 = vpop.f32.mrf.mxu3 }
 0x2f7   :  { %v1364_v21 = vpop.f32.mrf.mxu1  ;;  %2057 = vst [vmem:[%s4486_s3 + $0x250] sm:$0xff] %v1846_v19  ;;  %v1677_v25 = vadd.f32 %v1676_v10, %v1027_v20 }
 0x2f8   :  { %v714_v26 = vpop.f32.mrf.mxu0 }
 0x2f9   :  { %v1951_v29 = vmax.f32 %v1677_v25, 0.0  ;;  %1076 = vmatmul.f32.gmra.mxu2 %v406_v22  ;;  %v715_v30 = vadd.f32 %v3582_v3, %v714_v26  ;;  %v417_v22 = vld [vmem:[%s4484_s0 + $0xc98] sm:$0xff] }
 0x2fa   :  { %1411 = vmatmul.f32.gmra.mxu1 %v197_v23 }
 0x2fb   :  { %2162 = vst [vmem:[%s4486_s3 + $0x598] sm:$0xff] %v1951_v29  ;;  %v1365_v31 = vadd.f32 %v1364_v21, %v715_v30  ;;  %761 = vmatmul.f32.gmra.mxu0 %v196_v27  ;;  %1729 = vmatmul.f32.gmra.mxu3 %v409_v28  ;;  %v204_v21 = vld [vmem:[%s4484_s0 + $0x5f0] sm:$0xff] }
 0x2fc   :  { %v1029_v33 = vpop.f32.mrf.mxu2  ;;  %v416_v30 = vld [vmem:[%s4484_s0 + $0xc90] sm:$0xff] }
 0x2fd   :  { %v1847_v34 = vmax.f32 %v1365_v31, 0.0  ;;  %v1030_v35 = vadd.f32 %v3582_v3, %v1029_v33  ;;  %v207_v31 = vld [vmem:[%s4484_s0 + $0x608] sm:$0xff] }
 0x2fe   :  { %v1682_v39 = vpop.f32.mrf.mxu3 }
 0x2ff   :  { %v1367_v36 = vpop.f32.mrf.mxu1  ;;  %2058 = vst [vmem:[%s4486_s3 + $0x258] sm:$0xff] %v1847_v34  ;;  %v1680_v40 = vadd.f32 %v1679_v24, %v1030_v35 }
 0x300   :  { %v717_v42 = vpop.f32.mrf.mxu0 }
 0x301   :  { %v1952_v45 = vmax.f32 %v1680_v40, 0.0  ;;  %1079 = vmatmul.f32.gmra.mxu2 %v408_v37  ;;  %v718_v46 = vadd.f32 %v3582_v3, %v717_v42  ;;  %v419_v37 = vld [vmem:[%s4484_s0 + $0xca8] sm:$0xff] }
 0x302   :  { %1414 = vmatmul.f32.gmra.mxu1 %v199_v38 }
 0x303   :  { %2163 = vst [vmem:[%s4486_s3 + $0x5a0] sm:$0xff] %v1952_v45  ;;  %v1368_v47 = vadd.f32 %v1367_v36, %v718_v46  ;;  %764 = vmatmul.f32.gmra.mxu0 %v198_v43  ;;  %1732 = vmatmul.f32.gmra.mxu3 %v411_v44  ;;  %v206_v36 = vld [vmem:[%s4484_s0 + $0x600] sm:$0xff] }
 0x304   :  { %v1032_v48 = vpop.f32.mrf.mxu2  ;;  %v418_v46 = vld [vmem:[%s4484_s0 + $0xca0] sm:$0xff] }
 0x305   :  { %v1848_v49 = vmax.f32 %v1368_v47, 0.0  ;;  %v1033_v50 = vadd.f32 %v3582_v3, %v1032_v48  ;;  %v200_v3 = vld [vmem:[%s4484_s0 + $0x5d0] sm:$0xff]  ;;  %v209_v47 = vld [vmem:[%s4484_s0 + $0x618] sm:$0xff] }
 0x306   :  { %v1685_v54 = vpop.f32.mrf.mxu3 }
 0x307   :  { %v1370_v51 = vpop.f32.mrf.mxu1  ;;  %2059 = vst [vmem:[%s4486_s3 + $0x260] sm:$0xff] %v1848_v49  ;;  %v1683_v55 = vadd.f32 %v1682_v39, %v1033_v50 }
 0x308   :  { %v720_v56 = vpop.f32.mrf.mxu0 }
 0x309   :  { %v1953_v58 = vmax.f32 %v1683_v55, 0.0  ;;  %1082 = vmatmul.f32.gmra.mxu2 %v410_v52  ;;  %v721_v60 = vadd.f32 %v4107_v59, %v720_v56  ;;  %v421_v52 = vld [vmem:[%s4484_s0 + $0xcb8] sm:$0xff] }
 0x30a   :  { %1417 = vmatmul.f32.gmra.mxu1 %v201_v53 }
 0x30b   :  { %2164 = vst [vmem:[%s4486_s3 + $0x5a8] sm:$0xff] %v1953_v58  ;;  %v1371_v61 = vadd.f32 %v1370_v51, %v721_v60  ;;  %767 = vmatmul.f32.gmra.mxu0 %v200_v3  ;;  %1735 = vmatmul.f32.gmra.mxu3 %v413_v57  ;;  %v208_v51 = vld [vmem:[%s4484_s0 + $0x610] sm:$0xff] }
 0x30c   :  { %v1035_v62 = vpop.f32.mrf.mxu2  ;;  %v420_v60 = vld [vmem:[%s4484_s0 + $0xcb0] sm:$0xff] }
 0x30d   :  { %v1849_v63 = vmax.f32 %v1371_v61, 0.0  ;;  %v1036_v0 = vadd.f32 %v4107_v59, %v1035_v62  ;;  %v211_v61 = vld [vmem:[%s4484_s0 + $0x628] sm:$0xff] }
 0x30e   :  { %v1688_v4 = vpop.f32.mrf.mxu3 }
 0x30f   :  { %v1373_v16 = vpop.f32.mrf.mxu1  ;;  %2060 = vst [vmem:[%s4486_s3 + $0x268] sm:$0xff] %v1849_v63  ;;  %v1686_v5 = vadd.f32 %v1685_v54, %v1036_v0 }
 0x310   :  { %v723_v6 = vpop.f32.mrf.mxu0 }
 0x311   :  { %v1954_v9 = vmax.f32 %v1686_v5, 0.0  ;;  %1085 = vmatmul.f32.gmra.mxu2 %v412_v1  ;;  %v724_v10 = vadd.f32 %v4107_v59, %v723_v6  ;;  %v423_v1 = vld [vmem:[%s4484_s0 + $0xcc8] sm:$0xff] }
 0x312   :  { %1420 = vmatmul.f32.gmra.mxu1 %v203_v2 }
 0x313   :  { %2165 = vst [vmem:[%s4486_s3 + $0x5b0] sm:$0xff] %v1954_v9  ;;  %v1374_v11 = vadd.f32 %v1373_v16, %v724_v10  ;;  %770 = vmatmul.f32.gmra.mxu0 %v202_v7  ;;  %1738 = vmatmul.f32.gmra.mxu3 %v415_v8  ;;  %v210_v16 = vld [vmem:[%s4484_s0 + $0x620] sm:$0xff] }
 0x314   :  { %v1038_v12 = vpop.f32.mrf.mxu2  ;;  %v422_v10 = vld [vmem:[%s4484_s0 + $0xcc0] sm:$0xff] }
 0x315   :  { %v1850_v13 = vmax.f32 %v1374_v11, 0.0  ;;  %v1039_v14 = vadd.f32 %v4107_v59, %v1038_v12  ;;  %v213_v11 = vld [vmem:[%s4484_s0 + $0x638] sm:$0xff] }
 0x316   :  { %v1691_v32 = vpop.f32.mrf.mxu3 }
 0x317   :  { %v1376_v15 = vpop.f32.mrf.mxu1  ;;  %2061 = vst [vmem:[%s4486_s3 + $0x270] sm:$0xff] %v1850_v13  ;;  %v1689_v19 = vadd.f32 %v1688_v4, %v1039_v14 }
 0x318   :  { %v726_v20 = vpop.f32.mrf.mxu0 }
 0x319   :  { %v1955_v23 = vmax.f32 %v1689_v19, 0.0  ;;  %1088 = vmatmul.f32.gmra.mxu2 %v414_v17  ;;  %v727_v24 = vadd.f32 %v4107_v59, %v726_v20  ;;  %v425_v17 = vld [vmem:[%s4484_s0 + $0xcd8] sm:$0xff] }
 0x31a   :  { %1423 = vmatmul.f32.gmra.mxu1 %v205_v18 }
 0x31b   :  { %2166 = vst [vmem:[%s4486_s3 + $0x5b8] sm:$0xff] %v1955_v23  ;;  %v1377_v25 = vadd.f32 %v1376_v15, %v727_v24  ;;  %773 = vmatmul.f32.gmra.mxu0 %v204_v21  ;;  %1741 = vmatmul.f32.gmra.mxu3 %v417_v22  ;;  %v212_v15 = vld [vmem:[%s4484_s0 + $0x630] sm:$0xff] }
 0x31c   :  { %v1041_v26 = vpop.f32.mrf.mxu2  ;;  %v424_v24 = vld [vmem:[%s4484_s0 + $0xcd0] sm:$0xff] }
 0x31d   :  { %v1851_v27 = vmax.f32 %v1377_v25, 0.0  ;;  %v1042_v28 = vadd.f32 %v4107_v59, %v1041_v26  ;;  %v215_v25 = vld [vmem:[%s4484_s0 + $0x648] sm:$0xff] }
 0x31e   :  { %v1694_v33 = vpop.f32.mrf.mxu3 }
 0x31f   :  { %v1379_v29 = vpop.f32.mrf.mxu1  ;;  %2062 = vst [vmem:[%s4486_s3 + $0x278] sm:$0xff] %v1851_v27  ;;  %v1692_v34 = vadd.f32 %v1691_v32, %v1042_v28 }
 0x320   :  { %v729_v35 = vpop.f32.mrf.mxu0 }
 0x321   :  { %v1956_v38 = vmax.f32 %v1692_v34, 0.0  ;;  %1091 = vmatmul.f32.gmra.mxu2 %v416_v30  ;;  %v730_v39 = vadd.f32 %v4107_v59, %v729_v35  ;;  %v427_v30 = vld [vmem:[%s4484_s0 + $0xce8] sm:$0xff] }
 0x322   :  { %1426 = vmatmul.f32.gmra.mxu1 %v207_v31 }
 0x323   :  { %2167 = vst [vmem:[%s4486_s3 + $0x5c0] sm:$0xff] %v1956_v38  ;;  %v1380_v40 = vadd.f32 %v1379_v29, %v730_v39  ;;  %776 = vmatmul.f32.gmra.mxu0 %v206_v36  ;;  %1744 = vmatmul.f32.gmra.mxu3 %v419_v37  ;;  %v214_v29 = vld [vmem:[%s4484_s0 + $0x640] sm:$0xff] }
 0x324   :  { %v1044_v42 = vpop.f32.mrf.mxu2  ;;  %v426_v39 = vld [vmem:[%s4484_s0 + $0xce0] sm:$0xff] }
 0x325   :  { %v1852_v43 = vmax.f32 %v1380_v40, 0.0  ;;  %v1045_v44 = vadd.f32 %v4107_v59, %v1044_v42  ;;  %v217_v40 = vld [vmem:[%s4484_s0 + $0x658] sm:$0xff] }
 0x326   :  { %v1697_v48 = vpop.f32.mrf.mxu3 }
 0x327   :  { %v1382_v45 = vpop.f32.mrf.mxu1  ;;  %2063 = vst [vmem:[%s4486_s3 + $0x280] sm:$0xff] %v1852_v43  ;;  %v1695_v49 = vadd.f32 %v1694_v33, %v1045_v44 }
 0x328   :  { %v732_v50 = vpop.f32.mrf.mxu0 }
 0x329   :  { %v1957_v53 = vmax.f32 %v1695_v49, 0.0  ;;  %1094 = vmatmul.f32.gmra.mxu2 %v418_v46  ;;  %v733_v54 = vadd.f32 %v4107_v59, %v732_v50  ;;  %v429_v46 = vld [vmem:[%s4484_s0 + $0xcf8] sm:$0xff] }
 0x32a   :  { %1429 = vmatmul.f32.gmra.mxu1 %v209_v47 }
 0x32b   :  { %2168 = vst [vmem:[%s4486_s3 + $0x5c8] sm:$0xff] %v1957_v53  ;;  %v1383_v55 = vadd.f32 %v1382_v45, %v733_v54  ;;  %779 = vmatmul.f32.gmra.mxu0 %v208_v51  ;;  %1747 = vmatmul.f32.gmra.mxu3 %v421_v52  ;;  %v216_v45 = vld [vmem:[%s4484_s0 + $0x650] sm:$0xff] }
 0x32c   :  { %v1047_v56 = vpop.f32.mrf.mxu2  ;;  %v428_v54 = vld [vmem:[%s4484_s0 + $0xcf0] sm:$0xff] }
 0x32d   :  { %v1853_v3 = vmax.f32 %v1383_v55, 0.0  ;;  %v1048_v57 = vadd.f32 %v4107_v59, %v1047_v56  ;;  %v219_v55 = vld [vmem:[%s4484_s0 + $0x668] sm:$0xff] }
 0x32e   :  { %v1700_v62 = vpop.f32.mrf.mxu3 }
 0x32f   :  { %v1385_v58 = vpop.f32.mrf.mxu1  ;;  %2064 = vst [vmem:[%s4486_s3 + $0x288] sm:$0xff] %v1853_v3  ;;  %v1698_v63 = vadd.f32 %v1697_v48, %v1048_v57 }
 0x330   :  { %v735_v0 = vpop.f32.mrf.mxu0 }
 0x331   :  { %v1958_v2 = vmax.f32 %v1698_v63, 0.0  ;;  %1097 = vmatmul.f32.gmra.mxu2 %v420_v60  ;;  %v736_v4 = vadd.f32 %v4107_v59, %v735_v0  ;;  %v431_v60 = vld [vmem:[%s4484_s0 + $0xd08] sm:$0xff] }
 0x332   :  { %1432 = vmatmul.f32.gmra.mxu1 %v211_v61 }
 0x333   :  { %2169 = vst [vmem:[%s4486_s3 + $0x5d0] sm:$0xff] %v1958_v2  ;;  %v1386_v5 = vadd.f32 %v1385_v58, %v736_v4  ;;  %782 = vmatmul.f32.gmra.mxu0 %v210_v16  ;;  %1750 = vmatmul.f32.gmra.mxu3 %v423_v1  ;;  %v218_v58 = vld [vmem:[%s4484_s0 + $0x660] sm:$0xff] }
 0x334   :  { %v1050_v6 = vpop.f32.mrf.mxu2  ;;  %v430_v4 = vld [vmem:[%s4484_s0 + $0xd00] sm:$0xff] }
 0x335   :  { %v1854_v7 = vmax.f32 %v1386_v5, 0.0  ;;  %v1051_v8 = vadd.f32 %v4107_v59, %v1050_v6  ;;  %v221_v5 = vld [vmem:[%s4484_s0 + $0x678] sm:$0xff] }
 0x336   :  { %v1703_v12 = vpop.f32.mrf.mxu3 }
 0x337   :  { %v1388_v9 = vpop.f32.mrf.mxu1  ;;  %2065 = vst [vmem:[%s4486_s3 + $0x290] sm:$0xff] %v1854_v7  ;;  %v1701_v13 = vadd.f32 %v1700_v62, %v1051_v8 }
 0x338   :  { %v738_v14 = vpop.f32.mrf.mxu0 }
 0x339   :  { %v1959_v18 = vmax.f32 %v1701_v13, 0.0  ;;  %1100 = vmatmul.f32.gmra.mxu2 %v422_v10  ;;  %v739_v32 = vadd.f32 %v4107_v59, %v738_v14  ;;  %v433_v10 = vld [vmem:[%s4484_s0 + $0xd18] sm:$0xff] }
 0x33a   :  { %1435 = vmatmul.f32.gmra.mxu1 %v213_v11 }
 0x33b   :  { %2170 = vst [vmem:[%s4486_s3 + $0x5d8] sm:$0xff] %v1959_v18  ;;  %v1389_v19 = vadd.f32 %v1388_v9, %v739_v32  ;;  %785 = vmatmul.f32.gmra.mxu0 %v212_v15  ;;  %1753 = vmatmul.f32.gmra.mxu3 %v425_v17  ;;  %v220_v9 = vld [vmem:[%s4484_s0 + $0x670] sm:$0xff] }
 0x33c   :  { %v1053_v20 = vpop.f32.mrf.mxu2  ;;  %v432_v32 = vld [vmem:[%s4484_s0 + $0xd10] sm:$0xff] }
 0x33d   :  { %v1855_v21 = vmax.f32 %v1389_v19, 0.0  ;;  %v1054_v22 = vadd.f32 %v4107_v59, %v1053_v20  ;;  %v223_v19 = vld [vmem:[%s4484_s0 + $0x688] sm:$0xff] }
 0x33e   :  { %v1706_v26 = vpop.f32.mrf.mxu3 }
 0x33f   :  { %v1391_v23 = vpop.f32.mrf.mxu1  ;;  %2066 = vst [vmem:[%s4486_s3 + $0x298] sm:$0xff] %v1855_v21  ;;  %v1704_v27 = vadd.f32 %v1703_v12, %v1054_v22 }
 0x340   :  { %v741_v28 = vpop.f32.mrf.mxu0 }
 0x341   :  { %v1960_v31 = vmax.f32 %v1704_v27, 0.0  ;;  %1103 = vmatmul.f32.gmra.mxu2 %v424_v24  ;;  %v742_v33 = vadd.f32 %v4107_v59, %v741_v28  ;;  %v435_v24 = vld [vmem:[%s4484_s0 + $0xd28] sm:$0xff] }
 0x342   :  { %1438 = vmatmul.f32.gmra.mxu1 %v215_v25 }
 0x343   :  { %2171 = vst [vmem:[%s4486_s3 + $0x5e0] sm:$0xff] %v1960_v31  ;;  %v1392_v34 = vadd.f32 %v1391_v23, %v742_v33  ;;  %788 = vmatmul.f32.gmra.mxu0 %v214_v29  ;;  %1756 = vmatmul.f32.gmra.mxu3 %v427_v30  ;;  %v222_v23 = vld [vmem:[%s4484_s0 + $0x680] sm:$0xff] }
 0x344   :  { %v1056_v35 = vpop.f32.mrf.mxu2  ;;  %v434_v33 = vld [vmem:[%s4484_s0 + $0xd20] sm:$0xff] }
 0x345   :  { %v1856_v36 = vmax.f32 %v1392_v34, 0.0  ;;  %v1057_v37 = vadd.f32 %v4107_v59, %v1056_v35  ;;  %v225_v34 = vld [vmem:[%s4484_s0 + $0x698] sm:$0xff] }
 0x346   :  { %v1709_v42 = vpop.f32.mrf.mxu3 }
 0x347   :  { %v1394_v38 = vpop.f32.mrf.mxu1  ;;  %2067 = vst [vmem:[%s4486_s3 + $0x2a0] sm:$0xff] %v1856_v36  ;;  %v1707_v43 = vadd.f32 %v1706_v26, %v1057_v37 }
 0x348   :  { %v744_v44 = vpop.f32.mrf.mxu0 }
 0x349   :  { %v1961_v47 = vmax.f32 %v1707_v43, 0.0  ;;  %1106 = vmatmul.f32.gmra.mxu2 %v426_v39  ;;  %v745_v48 = vadd.f32 %v4107_v59, %v744_v44 }
 0x34a   :  { %1441 = vmatmul.f32.gmra.mxu1 %v217_v40 }
 0x34b   :  { %2172 = vst [vmem:[%s4486_s3 + $0x5e8] sm:$0xff] %v1961_v47  ;;  %v1395_v49 = vadd.f32 %v1394_v38, %v745_v48  ;;  %791 = vmatmul.f32.gmra.mxu0 %v216_v45  ;;  %1759 = vmatmul.f32.gmra.mxu3 %v429_v46 }
 0x34c   :  { %v1059_v50 = vpop.f32.mrf.mxu2 }
 0x34d   :  { %v1857_v51 = vmax.f32 %v1395_v49, 0.0  ;;  %v1060_v52 = vadd.f32 %v4107_v59, %v1059_v50 }
 0x34e   :  { %v1712_v56 = vpop.f32.mrf.mxu3 }
 0x34f   :  { %v1397_v53 = vpop.f32.mrf.mxu1  ;;  %2068 = vst [vmem:[%s4486_s3 + $0x2a8] sm:$0xff] %v1857_v51  ;;  %v1710_v3 = vadd.f32 %v1709_v42, %v1060_v52 }
 0x350   :  { %v747_v57 = vpop.f32.mrf.mxu0 }
 0x351   :  { %v1962_v61 = vmax.f32 %v1710_v3, 0.0  ;;  %1109 = vmatmul.f32.gmra.mxu2 %v428_v54  ;;  %v748_v62 = vadd.f32 %v4107_v59, %v747_v57 }
 0x352   :  { %1444 = vmatmul.f32.gmra.mxu1 %v219_v55 }
 0x353   :  { %2173 = vst [vmem:[%s4486_s3 + $0x5f0] sm:$0xff] %v1962_v61  ;;  %v1398_v63 = vadd.f32 %v1397_v53, %v748_v62  ;;  %794 = vmatmul.f32.gmra.mxu0 %v218_v58  ;;  %1762 = vmatmul.f32.gmra.mxu3 %v431_v60 }
 0x354   :  { %v1062_v0 = vpop.f32.mrf.mxu2 }
 0x355   :  { %v1858_v16 = vmax.f32 %v1398_v63, 0.0  ;;  %v1063_v1 = vadd.f32 %v4107_v59, %v1062_v0 }
 0x356   :  { %v1715_v6 = vpop.f32.mrf.mxu3 }
 0x357   :  { %v1400_v2 = vpop.f32.mrf.mxu1  ;;  %2069 = vst [vmem:[%s4486_s3 + $0x2b0] sm:$0xff] %v1858_v16  ;;  %v1713_v7 = vadd.f32 %v1712_v56, %v1063_v1 }
 0x358   :  { %v750_v8 = vpop.f32.mrf.mxu0 }
 0x359   :  { %v1963_v11 = vmax.f32 %v1713_v7, 0.0  ;;  %1112 = vmatmul.f32.gmra.mxu2 %v430_v4  ;;  %v751_v12 = vadd.f32 %v4107_v59, %v750_v8 }
 0x35a   :  { %1447 = vmatmul.f32.gmra.mxu1 %v221_v5 }
 0x35b   :  { %2174 = vst [vmem:[%s4486_s3 + $0x5f8] sm:$0xff] %v1963_v11  ;;  %v1401_v13 = vadd.f32 %v1400_v2, %v751_v12  ;;  %797 = vmatmul.f32.gmra.mxu0 %v220_v9  ;;  %1765 = vmatmul.f32.gmra.mxu3 %v433_v10 }
 0x35c   :  { %v1065_v14 = vpop.f32.mrf.mxu2 }
 0x35d   :  { %v1859_v15 = vmax.f32 %v1401_v13, 0.0  ;;  %v1066_v17 = vadd.f32 %v4107_v59, %v1065_v14 }
 0x35e   :  { %v1718_v20 = vpop.f32.mrf.mxu3 }
 0x35f   :  { %v1403_v18 = vpop.f32.mrf.mxu1  ;;  %2070 = vst [vmem:[%s4486_s3 + $0x2b8] sm:$0xff] %v1859_v15  ;;  %v1716_v21 = vadd.f32 %v1715_v6, %v1066_v17 }
 0x360   :  { %v753_v22 = vpop.f32.mrf.mxu0 }
 0x361   :  { %v1964_v25 = vmax.f32 %v1716_v21, 0.0  ;;  %1115 = vmatmul.f32.gmra.mxu2 %v432_v32  ;;  %v754_v26 = vadd.f32 %v4107_v59, %v753_v22 }
 0x362   :  { %1450 = vmatmul.f32.gmra.mxu1 %v223_v19 }
 0x363   :  { %2175 = vst [vmem:[%s4486_s3 + $0x600] sm:$0xff] %v1964_v25  ;;  %v1404_v27 = vadd.f32 %v1403_v18, %v754_v26  ;;  %800 = vmatmul.f32.gmra.mxu0 %v222_v23  ;;  %1768 = vmatmul.f32.gmra.mxu3 %v435_v24 }
 0x364   :  { %v1068_v28 = vpop.f32.mrf.mxu2 }
 0x365   :  { %v1860_v29 = vmax.f32 %v1404_v27, 0.0  ;;  %v1069_v30 = vadd.f32 %v4107_v59, %v1068_v28 }
 0x366   :  { %v1721_v35 = vpop.f32.mrf.mxu3 }
 0x367   :  { %v1406_v31 = vpop.f32.mrf.mxu1  ;;  %2071 = vst [vmem:[%s4486_s3 + $0x2c0] sm:$0xff] %v1860_v29  ;;  %v1719_v36 = vadd.f32 %v1718_v20, %v1069_v30 }
 0x368   :  { %v756_v37 = vpop.f32.mrf.mxu0 }
 0x369   :  { %v1965_v38 = vmax.f32 %v1719_v36, 0.0  ;;  %1118 = vmatmul.f32.gmra.mxu2 %v434_v33  ;;  %v757_v39 = vadd.f32 %v4107_v59, %v756_v37 }
 0x36a   :  { %1453 = vmatmul.f32.gmra.mxu1 %v225_v34 }
 0x36b   :  { %2176 = vst [vmem:[%s4486_s3 + $0x608] sm:$0xff] %v1965_v38  ;;  %v1407_v40 = vadd.f32 %v1406_v31, %v757_v39 }
 0x36c   :  { %v1071_v42 = vpop.f32.mrf.mxu2 }
 0x36d   :  { %v1861_v43 = vmax.f32 %v1407_v40, 0.0  ;;  %v1072_v44 = vadd.f32 %v4107_v59, %v1071_v42 }
 0x36e   :  { %v1724_v46 = vpop.f32.mrf.mxu3 }
 0x36f   :  { %v1409_v45 = vpop.f32.mrf.mxu1  ;;  %2072 = vst [vmem:[%s4486_s3 + $0x2c8] sm:$0xff] %v1861_v43  ;;  %v1722_v47 = vadd.f32 %v1721_v35, %v1072_v44 }
 0x370   :  { %v759_v48 = vpop.f32.mrf.mxu0 }
 0x371   :  { %v1966_v49 = vmax.f32 %v1722_v47, 0.0  ;;  %v760_v50 = vadd.f32 %v4107_v59, %v759_v48 }
 0x373   :  { %2177 = vst [vmem:[%s4486_s3 + $0x610] sm:$0xff] %v1966_v49  ;;  %v1410_v51 = vadd.f32 %v1409_v45, %v760_v50 }
 0x374   :  { %v1074_v52 = vpop.f32.mrf.mxu2 }
 0x375   :  { %v1862_v53 = vmax.f32 %v1410_v51, 0.0  ;;  %v1075_v54 = vadd.f32 %v4107_v59, %v1074_v52 }
 0x376   :  { %v1727_v56 = vpop.f32.mrf.mxu3 }
 0x377   :  { %v1412_v55 = vpop.f32.mrf.mxu1  ;;  %2073 = vst [vmem:[%s4486_s3 + $0x2d0] sm:$0xff] %v1862_v53  ;;  %v1725_v3 = vadd.f32 %v1724_v46, %v1075_v54 }
 0x378   :  { %v762_v57 = vpop.f32.mrf.mxu0 }
 0x379   :  { %v1967_v58 = vmax.f32 %v1725_v3, 0.0  ;;  %v763_v60 = vadd.f32 %v4107_v59, %v762_v57 }
 0x37b   :  { %2178 = vst [vmem:[%s4486_s3 + $0x618] sm:$0xff] %v1967_v58  ;;  %v1413_v61 = vadd.f32 %v1412_v55, %v763_v60 }
 0x37c   :  { %v1077_v62 = vpop.f32.mrf.mxu2 }
 0x37d   :  { %v1863_v63 = vmax.f32 %v1413_v61, 0.0  ;;  %v1078_v0 = vadd.f32 %v4107_v59, %v1077_v62 }
 0x37e   :  { %v1730_v1 = vpop.f32.mrf.mxu3 }
 0x37f   :  { %v1415_v16 = vpop.f32.mrf.mxu1  ;;  %2074 = vst [vmem:[%s4486_s3 + $0x2d8] sm:$0xff] %v1863_v63  ;;  %v1728_v2 = vadd.f32 %v1727_v56, %v1078_v0 }
 0x380   :  { %v765_v4 = vpop.f32.mrf.mxu0 }
 0x381   :  { %v1968_v5 = vmax.f32 %v1728_v2, 0.0  ;;  %v766_v6 = vadd.f32 %v4107_v59, %v765_v4 }
 0x383   :  { %2179 = vst [vmem:[%s4486_s3 + $0x620] sm:$0xff] %v1968_v5  ;;  %v1416_v7 = vadd.f32 %v1415_v16, %v766_v6 }
 0x384   :  { %v1080_v8 = vpop.f32.mrf.mxu2 }
 0x385   :  { %v1864_v9 = vmax.f32 %v1416_v7, 0.0  ;;  %v1081_v10 = vadd.f32 %v4107_v59, %v1080_v8 }
 0x386   :  { %v1733_v12 = vpop.f32.mrf.mxu3 }
 0x387   :  { %v1418_v11 = vpop.f32.mrf.mxu1  ;;  %2075 = vst [vmem:[%s4486_s3 + $0x2e0] sm:$0xff] %v1864_v9  ;;  %v1731_v13 = vadd.f32 %v1730_v1, %v1081_v10 }
 0x388   :  { %v768_v14 = vpop.f32.mrf.mxu0 }
 0x389   :  { %v1969_v15 = vmax.f32 %v1731_v13, 0.0  ;;  %v769_v17 = vadd.f32 %v4107_v59, %v768_v14 }
 0x38b   :  { %2180 = vst [vmem:[%s4486_s3 + $0x628] sm:$0xff] %v1969_v15  ;;  %v1419_v18 = vadd.f32 %v1418_v11, %v769_v17 }
 0x38c   :  { %v1083_v32 = vpop.f32.mrf.mxu2 }
 0x38d   :  { %v1865_v19 = vmax.f32 %v1419_v18, 0.0  ;;  %v1084_v20 = vadd.f32 %v4107_v59, %v1083_v32 }
 0x38e   :  { %v1736_v22 = vpop.f32.mrf.mxu3 }
 0x38f   :  { %v1421_v21 = vpop.f32.mrf.mxu1  ;;  %2076 = vst [vmem:[%s4486_s3 + $0x2e8] sm:$0xff] %v1865_v19  ;;  %v1734_v23 = vadd.f32 %v1733_v12, %v1084_v20 }
 0x390   :  { %v771_v24 = vpop.f32.mrf.mxu0 }
 0x391   :  { %v1970_v25 = vmax.f32 %v1734_v23, 0.0  ;;  %v772_v26 = vadd.f32 %v4107_v59, %v771_v24 }
 0x393   :  { %2181 = vst [vmem:[%s4486_s3 + $0x630] sm:$0xff] %v1970_v25  ;;  %v1422_v27 = vadd.f32 %v1421_v21, %v772_v26 }
 0x394   :  { %v1086_v28 = vpop.f32.mrf.mxu2 }
 0x395   :  { %v1866_v29 = vmax.f32 %v1422_v27, 0.0  ;;  %v1087_v30 = vadd.f32 %v4107_v59, %v1086_v28 }
 0x396   :  { %v1739_v33 = vpop.f32.mrf.mxu3 }
 0x397   :  { %v1424_v31 = vpop.f32.mrf.mxu1  ;;  %2077 = vst [vmem:[%s4486_s3 + $0x2f0] sm:$0xff] %v1866_v29  ;;  %v1737_v34 = vadd.f32 %v1736_v22, %v1087_v30 }
 0x398   :  { %v774_v35 = vpop.f32.mrf.mxu0 }
 0x399   :  { %v1971_v36 = vmax.f32 %v1737_v34, 0.0  ;;  %v775_v37 = vadd.f32 %v4107_v59, %v774_v35 }
 0x39b   :  { %2182 = vst [vmem:[%s4486_s3 + $0x638] sm:$0xff] %v1971_v36  ;;  %v1425_v38 = vadd.f32 %v1424_v31, %v775_v37 }
 0x39c   :  { %v1089_v39 = vpop.f32.mrf.mxu2 }
 0x39d   :  { %v1867_v40 = vmax.f32 %v1425_v38, 0.0  ;;  %v1090_v42 = vadd.f32 %v4107_v59, %v1089_v39 }
 0x39e   :  { %v1742_v44 = vpop.f32.mrf.mxu3 }
 0x39f   :  { %v1427_v43 = vpop.f32.mrf.mxu1  ;;  %2078 = vst [vmem:[%s4486_s3 + $0x2f8] sm:$0xff] %v1867_v40  ;;  %v1740_v45 = vadd.f32 %v1739_v33, %v1090_v42 }
 0x3a0   :  { %v777_v46 = vpop.f32.mrf.mxu0 }
 0x3a1   :  { %v1972_v47 = vmax.f32 %v1740_v45, 0.0  ;;  %v778_v48 = vadd.f32 %v4107_v59, %v777_v46 }
 0x3a3   :  { %2183 = vst [vmem:[%s4486_s3 + $0x640] sm:$0xff] %v1972_v47  ;;  %v1428_v49 = vadd.f32 %v1427_v43, %v778_v48 }
 0x3a4   :  { %v1092_v50 = vpop.f32.mrf.mxu2 }
 0x3a5   :  { %v1868_v51 = vmax.f32 %v1428_v49, 0.0  ;;  %v1093_v52 = vadd.f32 %v4107_v59, %v1092_v50 }
 0x3a6   :  { %v1745_v54 = vpop.f32.mrf.mxu3 }
 0x3a7   :  { %v1430_v53 = vpop.f32.mrf.mxu1  ;;  %2079 = vst [vmem:[%s4486_s3 + $0x300] sm:$0xff] %v1868_v51  ;;  %v1743_v55 = vadd.f32 %v1742_v44, %v1093_v52 }
 0x3a8   :  { %v780_v56 = vpop.f32.mrf.mxu0 }
 0x3a9   :  { %v1973_v3 = vmax.f32 %v1743_v55, 0.0  ;;  %v781_v57 = vadd.f32 %v4107_v59, %v780_v56 }
 0x3ab   :  { %2184 = vst [vmem:[%s4486_s3 + $0x648] sm:$0xff] %v1973_v3  ;;  %v1431_v58 = vadd.f32 %v1430_v53, %v781_v57 }
 0x3ac   :  { %v1095_v60 = vpop.f32.mrf.mxu2 }
 0x3ad   :  { %v1869_v61 = vmax.f32 %v1431_v58, 0.0  ;;  %v1096_v62 = vadd.f32 %v4107_v59, %v1095_v60 }
 0x3ae   :  { %v1748_v0 = vpop.f32.mrf.mxu3 }
 0x3af   :  { %v1433_v63 = vpop.f32.mrf.mxu1  ;;  %2080 = vst [vmem:[%s4486_s3 + $0x308] sm:$0xff] %v1869_v61  ;;  %v1746_v16 = vadd.f32 %v1745_v54, %v1096_v62 }
 0x3b0   :  { %v783_v1 = vpop.f32.mrf.mxu0 }
 0x3b1   :  { %v1974_v2 = vmax.f32 %v1746_v16, 0.0  ;;  %v784_v4 = vadd.f32 %v4107_v59, %v783_v1 }
 0x3b3   :  { %2185 = vst [vmem:[%s4486_s3 + $0x650] sm:$0xff] %v1974_v2  ;;  %v1434_v5 = vadd.f32 %v1433_v63, %v784_v4 }
 0x3b4   :  { %v1098_v6 = vpop.f32.mrf.mxu2 }
 0x3b5   :  { %v1870_v7 = vmax.f32 %v1434_v5, 0.0  ;;  %v1099_v8 = vadd.f32 %v4107_v59, %v1098_v6  ;;  %v805_v5 = vadd.f32 %v4107_v59, %v2560_v41 }
 0x3b6   :  { %v1751_v10 = vpop.f32.mrf.mxu3 }
 0x3b7   :  { %v1436_v9 = vpop.f32.mrf.mxu1  ;;  %2081 = vst [vmem:[%s4486_s3 + $0x310] sm:$0xff] %v1870_v7  ;;  %v1749_v11 = vadd.f32 %v1748_v0, %v1099_v8 }
 0x3b8   :  { %v786_v12 = vpop.f32.mrf.mxu0 }
 0x3b9   :  { %v1975_v13 = vmax.f32 %v1749_v11, 0.0  ;;  %v787_v14 = vadd.f32 %v4107_v59, %v786_v12 }
 0x3bb   :  { %2186 = vst [vmem:[%s4486_s3 + $0x658] sm:$0xff] %v1975_v13  ;;  %v1437_v15 = vadd.f32 %v1436_v9, %v787_v14 }
 0x3bc   :  { %v1101_v17 = vpop.f32.mrf.mxu2 }
 0x3bd   :  { %v1871_v18 = vmax.f32 %v1437_v15, 0.0  ;;  %v1102_v32 = vadd.f32 %v4107_v59, %v1101_v17 }
 0x3be   :  { %v1754_v20 = vpop.f32.mrf.mxu3 }
 0x3bf   :  { %v1439_v19 = vpop.f32.mrf.mxu1  ;;  %2082 = vst [vmem:[%s4486_s3 + $0x318] sm:$0xff] %v1871_v18  ;;  %v1752_v21 = vadd.f32 %v1751_v10, %v1102_v32 }
 0x3c0   :  { %v789_v22 = vpop.f32.mrf.mxu0 }
 0x3c1   :  { %v1976_v23 = vmax.f32 %v1752_v21, 0.0  ;;  %v790_v24 = vadd.f32 %v4107_v59, %v789_v22 }
 0x3c3   :  { %2187 = vst [vmem:[%s4486_s3 + $0x660] sm:$0xff] %v1976_v23  ;;  %v1440_v25 = vadd.f32 %v1439_v19, %v790_v24 }
 0x3c4   :  { %v1104_v26 = vpop.f32.mrf.mxu2 }
 0x3c5   :  { %v1872_v27 = vmax.f32 %v1440_v25, 0.0  ;;  %v1105_v28 = vadd.f32 %v4107_v59, %v1104_v26 }
 0x3c6   :  { %v1757_v30 = vpop.f32.mrf.mxu3 }
 0x3c7   :  { %v1442_v29 = vpop.f32.mrf.mxu1  ;;  %2083 = vst [vmem:[%s4486_s3 + $0x320] sm:$0xff] %v1872_v27  ;;  %v1755_v31 = vadd.f32 %v1754_v20, %v1105_v28 }
 0x3c8   :  { %v792_v33 = vpop.f32.mrf.mxu0 }
 0x3c9   :  { %v1977_v34 = vmax.f32 %v1755_v31, 0.0  ;;  %v793_v35 = vadd.f32 %v4107_v59, %v792_v33 }
 0x3cb   :  { %2188 = vst [vmem:[%s4486_s3 + $0x668] sm:$0xff] %v1977_v34  ;;  %v1443_v36 = vadd.f32 %v1442_v29, %v793_v35 }
 0x3cc   :  { %v1107_v37 = vpop.f32.mrf.mxu2 }
 0x3cd   :  { %v1873_v38 = vmax.f32 %v1443_v36, 0.0  ;;  %v1108_v39 = vadd.f32 %v4107_v59, %v1107_v37 }
 0x3ce   :  { %v1760_v42 = vpop.f32.mrf.mxu3 }
 0x3cf   :  { %v1445_v40 = vpop.f32.mrf.mxu1  ;;  %2084 = vst [vmem:[%s4486_s3 + $0x328] sm:$0xff] %v1873_v38  ;;  %v1758_v43 = vadd.f32 %v1757_v30, %v1108_v39 }
 0x3d0   :  { %v795_v44 = vpop.f32.mrf.mxu0 }
 0x3d1   :  { %v1978_v45 = vmax.f32 %v1758_v43, 0.0  ;;  %v796_v46 = vadd.f32 %v4107_v59, %v795_v44 }
 0x3d3   :  { %2189 = vst [vmem:[%s4486_s3 + $0x670] sm:$0xff] %v1978_v45  ;;  %v1446_v47 = vadd.f32 %v1445_v40, %v796_v46 }
 0x3d4   :  { %v1110_v48 = vpop.f32.mrf.mxu2 }
 0x3d5   :  { %v1874_v49 = vmax.f32 %v1446_v47, 0.0  ;;  %v1111_v50 = vadd.f32 %v4107_v59, %v1110_v48 }
 0x3d6   :  { %v1763_v54 = vpop.f32.mrf.mxu3 }
 0x3d7   :  { %v1448_v51 = vpop.f32.mrf.mxu1  ;;  %2085 = vst [vmem:[%s4486_s3 + $0x330] sm:$0xff] %v1874_v49  ;;  %v1761_v52 = vadd.f32 %v1760_v42, %v1111_v50 }
 0x3d8   :  { %v798_v53 = vpop.f32.mrf.mxu0 }
 0x3d9   :  { %v1979_v55 = vmax.f32 %v1761_v52, 0.0  ;;  %v799_v56 = vadd.f32 %v4107_v59, %v798_v53 }
 0x3db   :  { %2190 = vst [vmem:[%s4486_s3 + $0x678] sm:$0xff] %v1979_v55  ;;  %v1449_v3 = vadd.f32 %v1448_v51, %v799_v56 }
 0x3dc   :  { %v1113_v57 = vpop.f32.mrf.mxu2 }
 0x3dd   :  { %v1875_v58 = vmax.f32 %v1449_v3, 0.0  ;;  %v1114_v60 = vadd.f32 %v4107_v59, %v1113_v57 }
 0x3de   :  { %v1766_v1 = vpop.f32.mrf.mxu3 }
 0x3df   :  { %v1451_v61 = vpop.f32.mrf.mxu1  ;;  %2086 = vst [vmem:[%s4486_s3 + $0x338] sm:$0xff] %v1875_v58  ;;  %v1764_v62 = vadd.f32 %v1763_v54, %v1114_v60 }
 0x3e0   :  { %v801_v63 = vpop.f32.mrf.mxu0 }
 0x3e1   :  { %v1980_v0 = vmax.f32 %v1764_v62, 0.0  ;;  %v802_v16 = vadd.f32 %v4107_v59, %v801_v63 }
 0x3e3   :  { %2191 = vst [vmem:[%s4486_s3 + $0x680] sm:$0xff] %v1980_v0  ;;  %v1452_v2 = vadd.f32 %v1451_v61, %v802_v16 }
 0x3e4   :  { %v1116_v4 = vpop.f32.mrf.mxu2 }
 0x3e5   :  { %v1876_v6 = vmax.f32 %v1452_v2, 0.0  ;;  %v1117_v7 = vadd.f32 %v4107_v59, %v1116_v4 }
 0x3e6   :  { %v1769_v13 = vpop.f32.mrf.mxu3 }
 0x3e7   :  { %v1454_v8 = vpop.f32.mrf.mxu1  ;;  %2087 = vst [vmem:[%s4486_s3 + $0x340] sm:$0xff] %v1876_v6  ;;  %v1767_v10 = vadd.f32 %v1766_v1, %v1117_v7 }
 0x3e8   :  { %v1455_v9 = vadd.f32 %v1454_v8, %v805_v5 }
 0x3e9   :  { %v1981_v12 = vmax.f32 %v1767_v10, 0.0 }
 0x3ea   :  { %v1877_v11 = vmax.f32 %v1455_v9, 0.0 }
 0x3eb   :  { %2192 = vst [vmem:[%s4486_s3 + $0x688] sm:$0xff] %v1981_v12 }
 0x3ec   :  { %2088 = vst [vmem:[%s4486_s3 + $0x348] sm:$0xff] %v1877_v11  ;;  %v1119_v41 = vpop.f32.mrf.mxu2 }
 0x3ed   :  { %v1120_v14 = vadd.f32 %v4107_v59, %v1119_v41 }
 0x3ef   :  { %v1770_v15 = vadd.f32 %v1769_v13, %v1120_v14 }
 0x3f1   :  { %v1982_v17 = vmax.f32 %v1770_v15, 0.0 }
 0x3f3   :  { %2193 = vst [vmem:[%s4486_s3 + $0x690] sm:$0xff] %v1982_v17 }

// kernel: stdnet_forward.4
= control target key start
LH: loop header
LB: loop body
LE: loop exit
PB: predicated region body
PF: predicated region fallthrough
CT: control target
= control target key end

     0   :  { %s4957_s1 = inlined_call_operand.vmem [shape: f32[384,128], index: 1, kind: input, shape index: {}]   ;;  %s4958_s0 = inlined_call_operand.vmem [shape: f32[1256,384], index: 0, kind: input, shape index: {}]   ;;  %s4959_s2 = inlined_call_operand.vmem [shape: f32[1,128], index: 2, kind: input, shape index: {}]   ;;  %s4960_s3 = inlined_call_operand.vmem [shape: f32[1256,128], index: 3, kind: output, shape index: {}]  }
   0x1   :  { %v500_v0 = vld [vmem:[%s4957_s1 + $0x78] sm:$0xff]  ;;  %v499_v2 = vld [vmem:[%s4957_s1 + $0x70] sm:$0xff]  ;;  %v498_v5 = vld [vmem:[%s4957_s1 + $0x68] sm:$0xff] }
   0x2   :  { %v2398_v1 = vld [vmem:[%s4957_s1 + $0x178] sm:$0xff]  ;;  %2319 = vmatpush.msra.mxu3 %v500_v0  ;;  %v2407_v3 = vld [vmem:[%s4957_s1 + $0x170] sm:$0xff]  ;;  %537 = vmatpush.msra.mxu0 %v500_v0  ;;  %v2421_v6 = vld [vmem:[%s4957_s1 + $0x168] sm:$0xff] }
   0x3   :  { %1513 = vmatpush.msra.mxu2 %v2398_v1  ;;  %v2412_v4 = vld [vmem:[%s4957_s1 + $0xf8] sm:$0xff]  ;;  %v2426_v7 = vld [vmem:[%s4957_s1 + $0xf0] sm:$0xff]  ;;  %v2432_v8 = vld [vmem:[%s4957_s1 + $0xe8] sm:$0xff] }
   0x4   :  { %1025 = vmatpush.msra.mxu1 %v2412_v4  ;;  %2320 = vmatpush.msra.mxu3 %v499_v2  ;;  %v497_v9 = vld [vmem:[%s4957_s1 + $0x60] sm:$0xff]  ;;  %v496_v12 = vld [vmem:[%s4957_s1 + $0x58] sm:$0xff]  ;;  %v495_v15 = vld [vmem:[%s4957_s1 + $0x50] sm:$0xff] }
   0x5   :  { %1514 = vmatpush.msra.mxu2 %v2407_v3  ;;  %538 = vmatpush.msra.mxu0 %v499_v2  ;;  %v2441_v10 = vld [vmem:[%s4957_s1 + $0x160] sm:$0xff]  ;;  %v2456_v13 = vld [vmem:[%s4957_s1 + $0x158] sm:$0xff]  ;;  %v2471_v16 = vld [vmem:[%s4957_s1 + $0x150] sm:$0xff] }
   0x6   :  { %1026 = vmatpush.msra.mxu1 %v2426_v7  ;;  %2321 = vmatpush.msra.mxu3 %v498_v5  ;;  %v2447_v11 = vld [vmem:[%s4957_s1 + $0xe0] sm:$0xff]  ;;  %v2462_v14 = vld [vmem:[%s4957_s1 + $0xd8] sm:$0xff]  ;;  %v2477_v17 = vld [vmem:[%s4957_s1 + $0xd0] sm:$0xff] }
   0x7   :  { %1515 = vmatpush.msra.mxu2 %v2421_v6  ;;  %539 = vmatpush.msra.mxu0 %v498_v5  ;;  %v494_v18 = vld [vmem:[%s4957_s1 + $0x48] sm:$0xff]  ;;  %v493_v21 = vld [vmem:[%s4957_s1 + $0x40] sm:$0xff]  ;;  %v492_v24 = vld [vmem:[%s4957_s1 + $0x38] sm:$0xff] }
   0x8   :  { %1027 = vmatpush.msra.mxu1 %v2432_v8  ;;  %2322 = vmatpush.msra.mxu3 %v497_v9  ;;  %v2486_v19 = vld [vmem:[%s4957_s1 + $0x148] sm:$0xff]  ;;  %v2501_v22 = vld [vmem:[%s4957_s1 + $0x140] sm:$0xff]  ;;  %v2516_v25 = vld [vmem:[%s4957_s1 + $0x138] sm:$0xff] }
   0x9   :  { %1516 = vmatpush.msra.mxu2 %v2441_v10  ;;  %540 = vmatpush.msra.mxu0 %v497_v9  ;;  %v2492_v20 = vld [vmem:[%s4957_s1 + $0xc8] sm:$0xff]  ;;  %v2507_v23 = vld [vmem:[%s4957_s1 + $0xc0] sm:$0xff]  ;;  %v2522_v26 = vld [vmem:[%s4957_s1 + $0xb8] sm:$0xff] }
   0xa   :  { %1028 = vmatpush.msra.mxu1 %v2447_v11  ;;  %2323 = vmatpush.msra.mxu3 %v496_v12  ;;  %v491_v27 = vld [vmem:[%s4957_s1 + $0x30] sm:$0xff]  ;;  %v490_v30 = vld [vmem:[%s4957_s1 + $0x28] sm:$0xff]  ;;  %v489_v33 = vld [vmem:[%s4957_s1 + $0x20] sm:$0xff] }
   0xb   :  { %1517 = vmatpush.msra.mxu2 %v2456_v13  ;;  %541 = vmatpush.msra.mxu0 %v496_v12  ;;  %v2531_v28 = vld [vmem:[%s4957_s1 + $0x130] sm:$0xff]  ;;  %v2546_v31 = vld [vmem:[%s4957_s1 + $0x128] sm:$0xff]  ;;  %v2561_v34 = vld [vmem:[%s4957_s1 + $0x120] sm:$0xff] }
   0xc   :  { %1029 = vmatpush.msra.mxu1 %v2462_v14  ;;  %2324 = vmatpush.msra.mxu3 %v495_v15  ;;  %v2537_v29 = vld [vmem:[%s4957_s1 + $0xb0] sm:$0xff]  ;;  %v2552_v32 = vld [vmem:[%s4957_s1 + $0xa8] sm:$0xff]  ;;  %v2567_v35 = vld [vmem:[%s4957_s1 + $0xa0] sm:$0xff] }
   0xd   :  { %1518 = vmatpush.msra.mxu2 %v2471_v16  ;;  %542 = vmatpush.msra.mxu0 %v495_v15  ;;  %v488_v36 = vld [vmem:[%s4957_s1 + $0x18] sm:$0xff]  ;;  %v487_v39 = vld [vmem:[%s4957_s1 + $0x10] sm:$0xff]  ;;  %v486_v42 = vld [vmem:[%s4957_s1 + $0x8] sm:$0xff] }
   0xe   :  { %1030 = vmatpush.msra.mxu1 %v2477_v17  ;;  %2325 = vmatpush.msra.mxu3 %v494_v18  ;;  %v2576_v37 = vld [vmem:[%s4957_s1 + $0x118] sm:$0xff]  ;;  %v2591_v40 = vld [vmem:[%s4957_s1 + $0x110] sm:$0xff]  ;;  %v2606_v43 = vld [vmem:[%s4957_s1 + $0x108] sm:$0xff] }
   0xf   :  { %1519 = vmatpush.msra.mxu2 %v2486_v19  ;;  %543 = vmatpush.msra.mxu0 %v494_v18  ;;  %v2582_v38 = vld [vmem:[%s4957_s1 + $0x98] sm:$0xff]  ;;  %v2597_v41 = vld [vmem:[%s4957_s1 + $0x90] sm:$0xff]  ;;  %v2612_v44 = vld [vmem:[%s4957_s1 + $0x88] sm:$0xff] }
  0x10   :  { %1031 = vmatpush.msra.mxu1 %v2492_v20  ;;  %2326 = vmatpush.msra.mxu3 %v493_v21  ;;  %v485_v45 = vld [vmem:[%s4957_s1] sm:$0xff]  ;;  %v368_v47 = vld [vmem:[%s4958_s0 + $0xb10] sm:$0xff]  ;;  %v15_v51 = vld [vmem:[%s4958_s0 + $0x8] sm:$0xff] }
  0x11   :  { %1520 = vmatpush.msra.mxu2 %v2501_v22  ;;  %544 = vmatpush.msra.mxu0 %v493_v21  ;;  %v2621_v46 = vld [vmem:[%s4957_s1 + $0x100] sm:$0xff]  ;;  %v16_v48 = vld [vmem:[%s4958_s0 + $0x10] sm:$0xff]  ;;  %v371_v52 = vld [vmem:[%s4958_s0 + $0xb28] sm:$0xff] }
  0x12   :  { %1032 = vmatpush.msra.mxu1 %v2507_v23  ;;  %2327 = vmatpush.msra.mxu3 %v492_v24  ;;  %v501_v49 = vld [vmem:[%s4957_s1 + $0x80] sm:$0xff]  ;;  %v19_v53 = vld [vmem:[%s4958_s0 + $0x28] sm:$0xff]  ;;  %v17_v54 = vld [vmem:[%s4958_s0 + $0x18] sm:$0xff] }
  0x13   :  { %1521 = vmatpush.msra.mxu2 %v2516_v25  ;;  %545 = vmatpush.msra.mxu0 %v492_v24  ;;  %v14_v50 = vld [vmem:[%s4958_s0] sm:$0xff]  ;;  %v20_v58 = vld [vmem:[%s4958_s0 + $0x30] sm:$0xff]  ;;  %v21_v59 = vld [vmem:[%s4958_s0 + $0x38] sm:$0xff] }
  0x14   :  { %1033 = vmatpush.msra.mxu1 %v2522_v26  ;;  %2328 = vmatpush.msra.mxu3 %v491_v27  ;;  %v18_v55 = vld [vmem:[%s4958_s0 + $0x20] sm:$0xff]  ;;  %v377_v60 = vld [vmem:[%s4958_s0 + $0xb58] sm:$0xff]  ;;  %v23_v62 = vld [vmem:[%s4958_s0 + $0x48] sm:$0xff] }
  0x15   :  { %1522 = vmatpush.msra.mxu2 %v2531_v28  ;;  %546 = vmatpush.msra.mxu0 %v491_v27  ;;  %v374_v56 = vld [vmem:[%s4958_s0 + $0xb40] sm:$0xff]  ;;  %v25_v61 = vld [vmem:[%s4958_s0 + $0x58] sm:$0xff]  ;;  %v24_v63 = vld [vmem:[%s4958_s0 + $0x50] sm:$0xff] }
  0x16   :  { %1034 = vmatpush.msra.mxu1 %v2537_v29  ;;  %2329 = vmatpush.msra.mxu3 %v490_v30  ;;  %v22_v57 = vld [vmem:[%s4958_s0 + $0x40] sm:$0xff]  ;;  %v380_v0 = vld [vmem:[%s4958_s0 + $0xb70] sm:$0xff]  ;;  %v27_v5 = vld [vmem:[%s4958_s0 + $0x68] sm:$0xff] }
  0x17   :  { %1523 = vmatpush.msra.mxu2 %v2546_v31  ;;  %547 = vmatpush.msra.mxu0 %v490_v30  ;;  %v28_v2 = vld [vmem:[%s4958_s0 + $0x70] sm:$0xff]  ;;  %v29_v9 = vld [vmem:[%s4958_s0 + $0x78] sm:$0xff]  ;;  %v38_v18 = vld [vmem:[%s4958_s0 + $0xc0] sm:$0xff] }
  0x18   :  { %1035 = vmatpush.msra.mxu1 %v2552_v32  ;;  %2330 = vmatpush.msra.mxu3 %v489_v33  ;;  %v389_v12 = vld [vmem:[%s4958_s0 + $0xbb8] sm:$0xff]  ;;  %v36_v15 = vld [vmem:[%s4958_s0 + $0xb0] sm:$0xff]  ;;  %v43_v21 = vld [vmem:[%s4958_s0 + $0xe8] sm:$0xff] }
  0x19   :  { %1524 = vmatpush.msra.mxu2 %v2561_v34  ;;  %548 = vmatpush.msra.mxu0 %v489_v33  ;;  %v398_v24 = vld [vmem:[%s4958_s0 + $0xc00] sm:$0xff]  ;;  %v45_v27 = vld [vmem:[%s4958_s0 + $0xf8] sm:$0xff]  ;;  %v47_v30 = vld [vmem:[%s4958_s0 + $0x108] sm:$0xff] }
  0x1a   :  { %1036 = vmatpush.msra.mxu1 %v2567_v35  ;;  %2331 = vmatpush.msra.mxu3 %v488_v36  ;;  %v52_v33 = vld [vmem:[%s4958_s0 + $0x130] sm:$0xff] }
  0x1b   :  { %1525 = vmatpush.msra.mxu2 %v2576_v37  ;;  %549 = vmatpush.msra.mxu0 %v488_v36  ;;  %v407_v36 = vld [vmem:[%s4958_s0 + $0xc48] sm:$0xff] }
  0x1c   :  { %1037 = vmatpush.msra.mxu1 %v2582_v38  ;;  %2332 = vmatpush.msra.mxu3 %v487_v39 }
  0x1d   :  { %1526 = vmatpush.msra.mxu2 %v2591_v40  ;;  %550 = vmatpush.msra.mxu0 %v487_v39  ;;  %v54_v39 = vld [vmem:[%s4958_s0 + $0x140] sm:$0xff] }
  0x1e   :  { %1038 = vmatpush.msra.mxu1 %v2597_v41  ;;  %2333 = vmatpush.msra.mxu3 %v486_v42 }
  0x1f   :  { %1527 = vmatpush.msra.mxu2 %v2606_v43  ;;  %551 = vmatpush.msra.mxu0 %v486_v42  ;;  %v56_v42 = vld [vmem:[%s4958_s0 + $0x150] sm:$0xff] }
  0x20   :  { %1039 = vmatpush.msra.mxu1 %v2612_v44  ;;  %2334 = vmatpush.msra.mxu3 %v485_v45 }
  0x21   :  { %1528 = vmatpush.msra.mxu2 %v2621_v46  ;;  %907 = vmatmul.f32.vlgmr.msra.gmra.mxu3 %v368_v47  ;;  %v60_v47 = vld [vmem:[%s4958_s0 + $0x170] sm:$0xff] }
  0x22   :  { %1529 = vmatmul.f32.vlgmr.msra.gmra.mxu2 %v16_v48  ;;  %552 = vmatpush.msra.mxu0 %v485_v45  ;;  %v61_v45 = vld [vmem:[%s4958_s0 + $0x178] sm:$0xff]  ;;  %v2855_v48 = vld [vmem:[%s4959_s2] ss:$0 sm:$0xff] }
  0x23   :  { %1040 = vmatpush.msra.mxu1 %v501_v49  ;;  %553 = vmatmul.f32.vlgmr.msra.gmra.mxu0 %v14_v50  ;;  %v64_v50 = vld [vmem:[%s4958_s0 + $0x190] sm:$0xff] }
  0x24   :  { %1041 = vmatmul.f32.vlgmr.msra.gmra.mxu1 %v15_v51  ;;  %2335 = vmatpush.msrb.mxu3 %v2412_v4  ;;  %v26_v4 = vld [vmem:[%s4958_s0 + $0x60] sm:$0xff] }
  0x26   :  { %2336 = vmatpush.msrb.mxu3 %v2426_v7  ;;  %v383_v7 = vld [vmem:[%s4958_s0 + $0xb88] sm:$0xff] }
  0x28   :  { %2337 = vmatpush.msrb.mxu3 %v2432_v8  ;;  %v31_v8 = vld [vmem:[%s4958_s0 + $0x88] sm:$0xff] }
  0x29   :  { %910 = vmatmul.f32.gmra.mxu3 %v371_v52 }
  0x2a   :  { %1532 = vmatmul.f32.gmra.mxu2 %v19_v53  ;;  %2338 = vmatpush.msrb.mxu3 %v2447_v11  ;;  %v30_v11 = vld [vmem:[%s4958_s0 + $0x80] sm:$0xff] }
  0x2b   :  { %556 = vmatmul.f32.gmra.mxu0 %v17_v54  ;;  %v62_v53 = vld [vmem:[%s4958_s0 + $0x180] sm:$0xff]  ;;  %v63_v54 = vld [vmem:[%s4958_s0 + $0x188] sm:$0xff] }
  0x2c   :  { %1044 = vmatmul.f32.gmra.mxu1 %v18_v55  ;;  %2339 = vmatpush.msrb.mxu3 %v2462_v14  ;;  %v35_v14 = vld [vmem:[%s4958_s0 + $0xa8] sm:$0xff] }
  0x2e   :  { %2340 = vmatpush.msrb.mxu3 %v2477_v17  ;;  %v40_v17 = vld [vmem:[%s4958_s0 + $0xd0] sm:$0xff] }
  0x30   :  { %2341 = vmatpush.msrb.mxu3 %v2492_v20  ;;  %v395_v20 = vld [vmem:[%s4958_s0 + $0xbe8] sm:$0xff] }
  0x31   :  { %913 = vmatmul.f32.gmra.mxu3 %v374_v56 }
  0x32   :  { %1535 = vmatmul.f32.gmra.mxu2 %v22_v57  ;;  %2342 = vmatpush.msrb.mxu3 %v2507_v23  ;;  %v42_v23 = vld [vmem:[%s4958_s0 + $0xe0] sm:$0xff] }
  0x33   :  { %559 = vmatmul.f32.gmra.mxu0 %v20_v58 }
  0x34   :  { %1047 = vmatmul.f32.gmra.mxu1 %v21_v59  ;;  %2343 = vmatpush.msrb.mxu3 %v2522_v26  ;;  %v44_v26 = vld [vmem:[%s4958_s0 + $0xf0] sm:$0xff] }
  0x36   :  { %2344 = vmatpush.msrb.mxu3 %v2537_v29  ;;  %v49_v29 = vld [vmem:[%s4958_s0 + $0x118] sm:$0xff] }
  0x38   :  { %2345 = vmatpush.msrb.mxu3 %v2552_v32  ;;  %v404_v32 = vld [vmem:[%s4958_s0 + $0xc30] sm:$0xff] }
  0x39   :  { %916 = vmatmul.f32.gmra.mxu3 %v377_v60  ;;  %v419_v60 = vld [vmem:[%s4958_s0 + $0xca8] sm:$0xff] }
  0x3a   :  { %1538 = vmatmul.f32.gmra.mxu2 %v25_v61  ;;  %2346 = vmatpush.msrb.mxu3 %v2567_v35  ;;  %v51_v35 = vld [vmem:[%s4958_s0 + $0x128] sm:$0xff] }
  0x3b   :  { %562 = vmatmul.f32.gmra.mxu0 %v23_v62  ;;  %v67_v61 = vld [vmem:[%s4958_s0 + $0x1a8] sm:$0xff] }
  0x3c   :  { %1050 = vmatmul.f32.gmra.mxu1 %v24_v63  ;;  %2347 = vmatpush.msrb.mxu3 %v2582_v38  ;;  %v53_v38 = vld [vmem:[%s4958_s0 + $0x138] sm:$0xff] }
  0x3e   :  { %2348 = vmatpush.msrb.mxu3 %v2597_v41  ;;  %v58_v41 = vld [vmem:[%s4958_s0 + $0x160] sm:$0xff] }
  0x40   :  { %2349 = vmatpush.msrb.mxu3 %v2612_v44  ;;  %v413_v44 = vld [vmem:[%s4958_s0 + $0xc78] sm:$0xff] }
  0x41   :  { %919 = vmatmul.f32.gmra.mxu3 %v380_v0 }
  0x42   :  { %1541 = vmatmul.f32.gmra.mxu2 %v28_v2  ;;  %2350 = vmatpush.msrb.mxu3 %v501_v49  ;;  %v416_v49 = vld [vmem:[%s4958_s0 + $0xc90] sm:$0xff]  ;;  %v65_v2 = vld [vmem:[%s4958_s0 + $0x198] sm:$0xff] }
  0x43   :  { %565 = vmatmul.f32.gmra.mxu0 %v26_v4  ;;  %v66_v4 = vld [vmem:[%s4958_s0 + $0x1a0] sm:$0xff] }
  0x44   :  { %1053 = vmatmul.f32.gmra.mxu1 %v27_v5  ;;  %2351 = vmatpush.msra.mxu3 %v2398_v1  ;;  %v386_v1 = vld [vmem:[%s4958_s0 + $0xba0] sm:$0xff] }
  0x46   :  { %2352 = vmatpush.msra.mxu3 %v2407_v3  ;;  %v34_v3 = vld [vmem:[%s4958_s0 + $0xa0] sm:$0xff] }
  0x48   :  { %2353 = vmatpush.msra.mxu3 %v2421_v6  ;;  %v32_v6 = vld [vmem:[%s4958_s0 + $0x90] sm:$0xff] }
  0x49   :  { %922 = vmatmul.f32.gmra.mxu3 %v383_v7 }
  0x4a   :  { %1544 = vmatmul.f32.gmra.mxu2 %v31_v8  ;;  %2354 = vmatpush.msra.mxu3 %v2441_v10  ;;  %v33_v10 = vld [vmem:[%s4958_s0 + $0x98] sm:$0xff] }
  0x4b   :  { %568 = vmatmul.f32.gmra.mxu0 %v29_v9 }
  0x4c   :  { %1056 = vmatmul.f32.gmra.mxu1 %v30_v11  ;;  %2355 = vmatpush.msra.mxu3 %v2456_v13  ;;  %v37_v13 = vld [vmem:[%s4958_s0 + $0xb8] sm:$0xff] }
  0x4e   :  { %2356 = vmatpush.msra.mxu3 %v2471_v16  ;;  %v392_v16 = vld [vmem:[%s4958_s0 + $0xbd0] sm:$0xff] }
  0x50   :  { %2357 = vmatpush.msra.mxu3 %v2486_v19  ;;  %v39_v19 = vld [vmem:[%s4958_s0 + $0xc8] sm:$0xff] }
  0x51   :  { %925 = vmatmul.f32.gmra.mxu3 %v386_v1  ;;  %v422_v1 = vld [vmem:[%s4958_s0 + $0xcc0] sm:$0xff] }
  0x52   :  { %1547 = vmatmul.f32.gmra.mxu2 %v34_v3  ;;  %2358 = vmatpush.msra.mxu3 %v2501_v22  ;;  %v41_v22 = vld [vmem:[%s4958_s0 + $0xd8] sm:$0xff]  ;;  %v70_v3 = vld [vmem:[%s4958_s0 + $0x1c0] sm:$0xff] }
  0x53   :  { %571 = vmatmul.f32.gmra.mxu0 %v32_v6 }
  0x54   :  { %1059 = vmatmul.f32.gmra.mxu1 %v33_v10  ;;  %2359 = vmatpush.msra.mxu3 %v2516_v25  ;;  %v46_v25 = vld [vmem:[%s4958_s0 + $0x100] sm:$0xff] }
  0x56   :  { %2360 = vmatpush.msra.mxu3 %v2531_v28  ;;  %v401_v28 = vld [vmem:[%s4958_s0 + $0xc18] sm:$0xff] }
  0x58   :  { %2361 = vmatpush.msra.mxu3 %v2546_v31  ;;  %v48_v31 = vld [vmem:[%s4958_s0 + $0x110] sm:$0xff] }
  0x59   :  { %928 = vmatmul.f32.gmra.mxu3 %v389_v12 }
  0x5a   :  { %1550 = vmatmul.f32.gmra.mxu2 %v37_v13  ;;  %2362 = vmatpush.msra.mxu3 %v2561_v34  ;;  %v50_v34 = vld [vmem:[%s4958_s0 + $0x120] sm:$0xff]  ;;  %v68_v13 = vld [vmem:[%s4958_s0 + $0x1b0] sm:$0xff] }
  0x5b   :  { %574 = vmatmul.f32.gmra.mxu0 %v35_v14  ;;  %v69_v14 = vld [vmem:[%s4958_s0 + $0x1b8] sm:$0xff] }
  0x5c   :  { %1062 = vmatmul.f32.gmra.mxu1 %v36_v15  ;;  %2363 = vmatpush.msra.mxu3 %v2576_v37  ;;  %v55_v37 = vld [vmem:[%s4958_s0 + $0x148] sm:$0xff] }
  0x5e   :  { %2364 = vmatpush.msra.mxu3 %v2591_v40  ;;  %v410_v40 = vld [vmem:[%s4958_s0 + $0xc60] sm:$0xff] }
  0x60   :  { %2365 = vmatpush.msra.mxu3 %v2606_v43  ;;  %v57_v43 = vld [vmem:[%s4958_s0 + $0x158] sm:$0xff] }
  0x61   :  { %931 = vmatmul.f32.gmra.mxu3 %v392_v16 }
  0x62   :  { %1553 = vmatmul.f32.gmra.mxu2 %v40_v17  ;;  %2366 = vmatpush.msra.mxu3 %v2621_v46  ;;  %v59_v46 = vld [vmem:[%s4958_s0 + $0x168] sm:$0xff] }
  0x63   :  { %577 = vmatmul.f32.gmra.mxu0 %v38_v18 }
  0x64   :  { %1065 = vmatmul.f32.gmra.mxu1 %v39_v19 }
  0x69   :  { %934 = vmatmul.f32.gmra.mxu3 %v395_v20  ;;  %v425_v20 = vld [vmem:[%s4958_s0 + $0xcd8] sm:$0xff] }
  0x6a   :  { %1556 = vmatmul.f32.gmra.mxu2 %v43_v21  ;;  %v73_v21 = vld [vmem:[%s4958_s0 + $0x1d8] sm:$0xff] }
  0x6b   :  { %580 = vmatmul.f32.gmra.mxu0 %v41_v22 }
  0x6c   :  { %1068 = vmatmul.f32.gmra.mxu1 %v42_v23 }
  0x71   :  { %937 = vmatmul.f32.gmra.mxu3 %v398_v24 }
  0x72   :  { %1559 = vmatmul.f32.gmra.mxu2 %v46_v25  ;;  %v71_v25 = vld [vmem:[%s4958_s0 + $0x1c8] sm:$0xff] }
  0x73   :  { %583 = vmatmul.f32.gmra.mxu0 %v44_v26  ;;  %v72_v26 = vld [vmem:[%s4958_s0 + $0x1d0] sm:$0xff] }
  0x74   :  { %1071 = vmatmul.f32.gmra.mxu1 %v45_v27 }
  0x79   :  { %940 = vmatmul.f32.gmra.mxu3 %v401_v28 }
  0x7a   :  { %1562 = vmatmul.f32.gmra.mxu2 %v49_v29 }
  0x7b   :  { %586 = vmatmul.f32.gmra.mxu0 %v47_v30 }
  0x7c   :  { %1074 = vmatmul.f32.gmra.mxu1 %v48_v31 }
  0x81   :  { %943 = vmatmul.f32.gmra.mxu3 %v404_v32  ;;  %v428_v32 = vld [vmem:[%s4958_s0 + $0xcf0] sm:$0xff] }
  0x82   :  { %1565 = vmatmul.f32.gmra.mxu2 %v52_v33  ;;  %v76_v33 = vld [vmem:[%s4958_s0 + $0x1f0] sm:$0xff] }
  0x83   :  { %589 = vmatmul.f32.gmra.mxu0 %v50_v34 }
  0x84   :  { %1077 = vmatmul.f32.gmra.mxu1 %v51_v35 }
  0x89   :  { %946 = vmatmul.f32.gmra.mxu3 %v407_v36 }
  0x8a   :  { %1568 = vmatmul.f32.gmra.mxu2 %v55_v37  ;;  %v74_v37 = vld [vmem:[%s4958_s0 + $0x1e0] sm:$0xff] }
  0x8b   :  { %592 = vmatmul.f32.gmra.mxu0 %v53_v38  ;;  %v75_v38 = vld [vmem:[%s4958_s0 + $0x1e8] sm:$0xff] }
  0x8c   :  { %1080 = vmatmul.f32.gmra.mxu1 %v54_v39 }
  0x91   :  { %949 = vmatmul.f32.gmra.mxu3 %v410_v40 }
  0x92   :  { %1571 = vmatmul.f32.gmra.mxu2 %v58_v41 }
  0x93   :  { %595 = vmatmul.f32.gmra.mxu0 %v56_v42 }
  0x94   :  { %1083 = vmatmul.f32.gmra.mxu1 %v57_v43 }
  0x99   :  { %952 = vmatmul.f32.gmra.mxu3 %v413_v44  ;;  %v431_v44 = vld [vmem:[%s4958_s0 + $0xd08] sm:$0xff] }
  0x9a   :  { %1574 = vmatmul.f32.gmra.mxu2 %v61_v45  ;;  %v79_v45 = vld [vmem:[%s4958_s0 + $0x208] sm:$0xff] }
  0x9b   :  { %598 = vmatmul.f32.gmra.mxu0 %v59_v46 }
  0x9c   :  { %1086 = vmatmul.f32.gmra.mxu1 %v60_v47 }
  0xa0   :  { %v554_v51 = vpop.f32.mrf.mxu0 }
  0xa1   :  { %v1042_v52 = vpop.f32.mrf.mxu1  ;;  %v555_v55 = vadd.f32 %v2855_v48, %v554_v51  ;;  %955 = vmatmul.f32.gmra.mxu3 %v416_v49  ;;  %v78_v51 = vld [vmem:[%s4958_s0 + $0x200] sm:$0xff] }
  0xa2   :  { %1577 = vmatmul.f32.gmra.mxu2 %v64_v50  ;;  %v77_v50 = vld [vmem:[%s4958_s0 + $0x1f8] sm:$0xff] }
  0xa3   :  { %v1043_v56 = vadd.f32 %v1042_v52, %v555_v55  ;;  %601 = vmatmul.f32.gmra.mxu0 %v62_v53 }
  0xa4   :  { %1089 = vmatmul.f32.gmra.mxu1 %v63_v54  ;;  %v2870_v57 = vpop.f32.mrf.mxu3 }
  0xa5   :  { %v1530_v58 = vpop.f32.mrf.mxu2 }
  0xa6   :  { %v1531_v59 = vadd.f32 %v1530_v58, %v1043_v56  ;;  %v434_v58 = vld [vmem:[%s4958_s0 + $0xd20] sm:$0xff] }
  0xa8   :  { %v2001_v62 = vmax.f32 %v1531_v59, 0.0  ;;  %v557_v63 = vpop.f32.mrf.mxu0  ;;  %v82_v59 = vld [vmem:[%s4958_s0 + $0x220] sm:$0xff] }
  0xa9   :  { %v1045_v0 = vpop.f32.mrf.mxu1  ;;  %v558_v5 = vadd.f32 %v2855_v48, %v557_v63  ;;  %958 = vmatmul.f32.gmra.mxu3 %v419_v60  ;;  %v80_v63 = vld [vmem:[%s4958_s0 + $0x210] sm:$0xff] }
  0xaa   :  { %2158 = vst [vmem:[%s4960_s3] sm:$0xff] %v2001_v62  ;;  %1580 = vmatmul.f32.gmra.mxu2 %v67_v61 }
  0xab   :  { %v1046_v7 = vadd.f32 %v1045_v0, %v558_v5  ;;  %604 = vmatmul.f32.gmra.mxu0 %v65_v2  ;;  %v81_v0 = vld [vmem:[%s4958_s0 + $0x218] sm:$0xff] }
  0xac   :  { %1092 = vmatmul.f32.gmra.mxu1 %v66_v4  ;;  %v2888_v8 = vpop.f32.mrf.mxu3 }
  0xad   :  { %v1533_v9 = vpop.f32.mrf.mxu2 }
  0xae   :  { %v1534_v11 = vadd.f32 %v1533_v9, %v1046_v7 }
  0xb0   :  { %v2002_v6 = vmax.f32 %v1534_v11, 0.0  ;;  %v560_v10 = vpop.f32.mrf.mxu0  ;;  %v437_v11 = vld [vmem:[%s4958_s0 + $0xd38] sm:$0xff] }
  0xb1   :  { %v1048_v12 = vpop.f32.mrf.mxu1  ;;  %v561_v15 = vadd.f32 %v2855_v48, %v560_v10  ;;  %961 = vmatmul.f32.gmra.mxu3 %v422_v1  ;;  %v85_v1 = vld [vmem:[%s4958_s0 + $0x238] sm:$0xff] }
  0xb2   :  { %2159 = vst [vmem:[%s4960_s3 + $0x8] sm:$0xff] %v2002_v6  ;;  %1583 = vmatmul.f32.gmra.mxu2 %v70_v3 }
  0xb3   :  { %v1049_v16 = vadd.f32 %v1048_v12, %v561_v15  ;;  %607 = vmatmul.f32.gmra.mxu0 %v68_v13  ;;  %v83_v12 = vld [vmem:[%s4958_s0 + $0x228] sm:$0xff]  ;;  %v84_v13 = vld [vmem:[%s4958_s0 + $0x230] sm:$0xff] }
  0xb4   :  { %1095 = vmatmul.f32.gmra.mxu1 %v69_v14  ;;  %v2906_v17 = vpop.f32.mrf.mxu3 }
  0xb5   :  { %v1536_v18 = vpop.f32.mrf.mxu2 }
  0xb6   :  { %v1537_v19 = vadd.f32 %v1536_v18, %v1049_v16 }
  0xb8   :  { %v2003_v22 = vmax.f32 %v1537_v19, 0.0  ;;  %v563_v23 = vpop.f32.mrf.mxu0 }
  0xb9   :  { %v1051_v24 = vpop.f32.mrf.mxu1  ;;  %v564_v27 = vadd.f32 %v2855_v48, %v563_v23  ;;  %964 = vmatmul.f32.gmra.mxu3 %v425_v20  ;;  %v440_v20 = vld [vmem:[%s4958_s0 + $0xd50] sm:$0xff] }
  0xba   :  { %2160 = vst [vmem:[%s4960_s3 + $0x10] sm:$0xff] %v2003_v22  ;;  %1586 = vmatmul.f32.gmra.mxu2 %v73_v21  ;;  %v88_v21 = vld [vmem:[%s4958_s0 + $0x250] sm:$0xff] }
  0xbb   :  { %v1052_v28 = vadd.f32 %v1051_v24, %v564_v27  ;;  %610 = vmatmul.f32.gmra.mxu0 %v71_v25  ;;  %v86_v25 = vld [vmem:[%s4958_s0 + $0x240] sm:$0xff] }
  0xbc   :  { %1098 = vmatmul.f32.gmra.mxu1 %v72_v26  ;;  %v2924_v29 = vpop.f32.mrf.mxu3  ;;  %v87_v26 = vld [vmem:[%s4958_s0 + $0x248] sm:$0xff] }
  0xbd   :  { %v1539_v30 = vpop.f32.mrf.mxu2 }
  0xbe   :  { %v1540_v31 = vadd.f32 %v1539_v30, %v1052_v28 }
  0xc0   :  { %v2004_v34 = vmax.f32 %v1540_v31, 0.0  ;;  %v566_v35 = vpop.f32.mrf.mxu0 }
  0xc1   :  { %v1054_v36 = vpop.f32.mrf.mxu1  ;;  %v567_v39 = vadd.f32 %v2855_v48, %v566_v35  ;;  %967 = vmatmul.f32.gmra.mxu3 %v428_v32 }
  0xc2   :  { %2161 = vst [vmem:[%s4960_s3 + $0x18] sm:$0xff] %v2004_v34  ;;  %1589 = vmatmul.f32.gmra.mxu2 %v76_v33  ;;  %v443_v33 = vld [vmem:[%s4958_s0 + $0xd68] sm:$0xff] }
  0xc3   :  { %v1055_v40 = vadd.f32 %v1054_v36, %v567_v39  ;;  %613 = vmatmul.f32.gmra.mxu0 %v74_v37  ;;  %v91_v34 = vld [vmem:[%s4958_s0 + $0x268] sm:$0xff]  ;;  %v90_v39 = vld [vmem:[%s4958_s0 + $0x260] sm:$0xff] }
  0xc4   :  { %1101 = vmatmul.f32.gmra.mxu1 %v75_v38  ;;  %v2942_v41 = vpop.f32.mrf.mxu3  ;;  %v89_v38 = vld [vmem:[%s4958_s0 + $0x258] sm:$0xff] }
  0xc5   :  { %v1542_v42 = vpop.f32.mrf.mxu2 }
  0xc6   :  { %v1543_v43 = vadd.f32 %v1542_v42, %v1055_v40 }
  0xc8   :  { %v2005_v46 = vmax.f32 %v1543_v43, 0.0  ;;  %v569_v47 = vpop.f32.mrf.mxu0 }
  0xc9   :  { %v1057_v49 = vpop.f32.mrf.mxu1  ;;  %v570_v52 = vadd.f32 %v2855_v48, %v569_v47  ;;  %970 = vmatmul.f32.gmra.mxu3 %v431_v44  ;;  %v94_v47 = vld [vmem:[%s4958_s0 + $0x280] sm:$0xff] }
  0xca   :  { %2162 = vst [vmem:[%s4960_s3 + $0x20] sm:$0xff] %v2005_v46  ;;  %1592 = vmatmul.f32.gmra.mxu2 %v79_v45  ;;  %v446_v46 = vld [vmem:[%s4958_s0 + $0xd80] sm:$0xff] }
  0xcb   :  { %v1058_v53 = vadd.f32 %v1057_v49, %v570_v52  ;;  %616 = vmatmul.f32.gmra.mxu0 %v77_v50  ;;  %v92_v52 = vld [vmem:[%s4958_s0 + $0x270] sm:$0xff] }
  0xcc   :  { %1104 = vmatmul.f32.gmra.mxu1 %v78_v51  ;;  %v2960_v54 = vpop.f32.mrf.mxu3 }
  0xcd   :  { %v1545_v55 = vpop.f32.mrf.mxu2 }
  0xce   :  { %v1546_v56 = vadd.f32 %v1545_v55, %v1058_v53  ;;  %v93_v53 = vld [vmem:[%s4958_s0 + $0x278] sm:$0xff] }
  0xd0   :  { %v2006_v60 = vmax.f32 %v1546_v56, 0.0  ;;  %v572_v61 = vpop.f32.mrf.mxu0 }
  0xd1   :  { %v1060_v62 = vpop.f32.mrf.mxu1  ;;  %v573_v2 = vadd.f32 %v2855_v48, %v572_v61  ;;  %973 = vmatmul.f32.gmra.mxu3 %v434_v58  ;;  %v449_v61 = vld [vmem:[%s4958_s0 + $0xd98] sm:$0xff] }
  0xd2   :  { %2163 = vst [vmem:[%s4960_s3 + $0x28] sm:$0xff] %v2006_v60  ;;  %1595 = vmatmul.f32.gmra.mxu2 %v82_v59 }
  0xd3   :  { %v1061_v4 = vadd.f32 %v1060_v62, %v573_v2  ;;  %619 = vmatmul.f32.gmra.mxu0 %v80_v63  ;;  %v97_v62 = vld [vmem:[%s4958_s0 + $0x298] sm:$0xff] }
  0xd4   :  { %1107 = vmatmul.f32.gmra.mxu1 %v81_v0  ;;  %v2978_v5 = vpop.f32.mrf.mxu3 }
  0xd5   :  { %v1548_v7 = vpop.f32.mrf.mxu2 }
  0xd6   :  { %v1549_v9 = vadd.f32 %v1548_v7, %v1061_v4  ;;  %v95_v4 = vld [vmem:[%s4958_s0 + $0x288] sm:$0xff]  ;;  %v96_v7 = vld [vmem:[%s4958_s0 + $0x290] sm:$0xff] }
  0xd8   :  { %v2007_v3 = vmax.f32 %v1549_v9, 0.0  ;;  %v575_v6 = vpop.f32.mrf.mxu0 }
  0xd9   :  { %v1063_v10 = vpop.f32.mrf.mxu1  ;;  %v576_v14 = vadd.f32 %v2855_v48, %v575_v6  ;;  %976 = vmatmul.f32.gmra.mxu3 %v437_v11 }
  0xda   :  { %2164 = vst [vmem:[%s4960_s3 + $0x30] sm:$0xff] %v2007_v3  ;;  %1598 = vmatmul.f32.gmra.mxu2 %v85_v1 }
  0xdb   :  { %v1064_v15 = vadd.f32 %v1063_v10, %v576_v14  ;;  %622 = vmatmul.f32.gmra.mxu0 %v83_v12  ;;  %v452_v10 = vld [vmem:[%s4958_s0 + $0xdb0] sm:$0xff] }
  0xdc   :  { %1110 = vmatmul.f32.gmra.mxu1 %v84_v13  ;;  %v2996_v16 = vpop.f32.mrf.mxu3  ;;  %v100_v12 = vld [vmem:[%s4958_s0 + $0x2b0] sm:$0xff] }
  0xdd   :  { %v1551_v18 = vpop.f32.mrf.mxu2 }
  0xde   :  { %v1552_v19 = vadd.f32 %v1551_v18, %v1064_v15  ;;  %v98_v18 = vld [vmem:[%s4958_s0 + $0x2a0] sm:$0xff] }
  0xe0   :  { %v2008_v22 = vmax.f32 %v1552_v19, 0.0  ;;  %v578_v23 = vpop.f32.mrf.mxu0  ;;  %v99_v19 = vld [vmem:[%s4958_s0 + $0x2a8] sm:$0xff] }
  0xe1   :  { %v1066_v24 = vpop.f32.mrf.mxu1  ;;  %v579_v27 = vadd.f32 %v2855_v48, %v578_v23  ;;  %979 = vmatmul.f32.gmra.mxu3 %v440_v20 }
  0xe2   :  { %2165 = vst [vmem:[%s4960_s3 + $0x38] sm:$0xff] %v2008_v22  ;;  %1601 = vmatmul.f32.gmra.mxu2 %v88_v21 }
  0xe3   :  { %v1067_v28 = vadd.f32 %v1066_v24, %v579_v27  ;;  %625 = vmatmul.f32.gmra.mxu0 %v86_v25  ;;  %v455_v25 = vld [vmem:[%s4958_s0 + $0xdc8] sm:$0xff] }
  0xe4   :  { %1113 = vmatmul.f32.gmra.mxu1 %v87_v26  ;;  %v3014_v30 = vpop.f32.mrf.mxu3  ;;  %v103_v26 = vld [vmem:[%s4958_s0 + $0x2c8] sm:$0xff] }
  0xe5   :  { %v1554_v31 = vpop.f32.mrf.mxu2 }
  0xe6   :  { %v1555_v32 = vadd.f32 %v1554_v31, %v1067_v28 }
  0xe8   :  { %v2009_v35 = vmax.f32 %v1555_v32, 0.0  ;;  %v581_v36 = vpop.f32.mrf.mxu0  ;;  %v101_v32 = vld [vmem:[%s4958_s0 + $0x2b8] sm:$0xff] }
  0xe9   :  { %v1069_v37 = vpop.f32.mrf.mxu1  ;;  %v582_v40 = vadd.f32 %v2855_v48, %v581_v36  ;;  %982 = vmatmul.f32.gmra.mxu3 %v443_v33  ;;  %v102_v33 = vld [vmem:[%s4958_s0 + $0x2c0] sm:$0xff] }
  0xea   :  { %2166 = vst [vmem:[%s4960_s3 + $0x40] sm:$0xff] %v2009_v35  ;;  %1604 = vmatmul.f32.gmra.mxu2 %v91_v34 }
  0xeb   :  { %v1070_v42 = vadd.f32 %v1069_v37, %v582_v40  ;;  %628 = vmatmul.f32.gmra.mxu0 %v89_v38  ;;  %v106_v40 = vld [vmem:[%s4958_s0 + $0x2e0] sm:$0xff] }
  0xec   :  { %1116 = vmatmul.f32.gmra.mxu1 %v90_v39  ;;  %v3032_v43 = vpop.f32.mrf.mxu3  ;;  %v458_v39 = vld [vmem:[%s4958_s0 + $0xde0] sm:$0xff] }
  0xed   :  { %v1557_v44 = vpop.f32.mrf.mxu2 }
  0xee   :  { %v1558_v45 = vadd.f32 %v1557_v44, %v1070_v42 }
  0xf0   :  { %v2010_v49 = vmax.f32 %v1558_v45, 0.0  ;;  %v584_v50 = vpop.f32.mrf.mxu0 }
  0xf1   :  { %v1072_v51 = vpop.f32.mrf.mxu1  ;;  %v585_v55 = vadd.f32 %v2855_v48, %v584_v50  ;;  %985 = vmatmul.f32.gmra.mxu3 %v446_v46  ;;  %v104_v46 = vld [vmem:[%s4958_s0 + $0x2d0] sm:$0xff] }
  0xf2   :  { %2167 = vst [vmem:[%s4960_s3 + $0x48] sm:$0xff] %v2010_v49  ;;  %1607 = vmatmul.f32.gmra.mxu2 %v94_v47  ;;  %v105_v47 = vld [vmem:[%s4958_s0 + $0x2d8] sm:$0xff] }
  0xf3   :  { %v1073_v56 = vadd.f32 %v1072_v51, %v585_v55  ;;  %631 = vmatmul.f32.gmra.mxu0 %v92_v52  ;;  %v461_v55 = vld [vmem:[%s4958_s0 + $0xdf8] sm:$0xff] }
  0xf4   :  { %1119 = vmatmul.f32.gmra.mxu1 %v93_v53  ;;  %v3050_v58 = vpop.f32.mrf.mxu3 }
  0xf5   :  { %v1560_v59 = vpop.f32.mrf.mxu2 }
  0xf6   :  { %v1561_v60 = vadd.f32 %v1560_v59, %v1073_v56  ;;  %v109_v56 = vld [vmem:[%s4958_s0 + $0x2f8] sm:$0xff] }
  0xf8   :  { %v2011_v63 = vmax.f32 %v1561_v60, 0.0  ;;  %v587_v0 = vpop.f32.mrf.mxu0 }
  0xf9   :  { %v1075_v2 = vpop.f32.mrf.mxu1  ;;  %v588_v9 = vadd.f32 %v2855_v48, %v587_v0  ;;  %988 = vmatmul.f32.gmra.mxu3 %v449_v61 }
  0xfa   :  { %2168 = vst [vmem:[%s4960_s3 + $0x50] sm:$0xff] %v2011_v63  ;;  %1610 = vmatmul.f32.gmra.mxu2 %v97_v62  ;;  %v107_v62 = vld [vmem:[%s4958_s0 + $0x2e8] sm:$0xff]  ;;  %v108_v63 = vld [vmem:[%s4958_s0 + $0x2f0] sm:$0xff] }
  0xfb   :  { %v1076_v11 = vadd.f32 %v1075_v2, %v588_v9  ;;  %634 = vmatmul.f32.gmra.mxu0 %v95_v4 }
  0xfc   :  { %1122 = vmatmul.f32.gmra.mxu1 %v96_v7  ;;  %v3068_v1 = vpop.f32.mrf.mxu3 }
  0xfd   :  { %v1563_v3 = vpop.f32.mrf.mxu2 }
  0xfe   :  { %v1564_v6 = vadd.f32 %v1563_v3, %v1076_v11  ;;  %v464_v11 = vld [vmem:[%s4958_s0 + $0xe10] sm:$0xff] }
  0xff   :  { %v112_v3 = vld [vmem:[%s4958_s0 + $0x310] sm:$0xff] }
 0x100   :  { %v2012_v13 = vmax.f32 %v1564_v6, 0.0  ;;  %v590_v14 = vpop.f32.mrf.mxu0 }
 0x101   :  { %v1078_v15 = vpop.f32.mrf.mxu1  ;;  %v591_v20 = vadd.f32 %v2855_v48, %v590_v14  ;;  %991 = vmatmul.f32.gmra.mxu3 %v452_v10  ;;  %v111_v14 = vld [vmem:[%s4958_s0 + $0x308] sm:$0xff] }
 0x102   :  { %2169 = vst [vmem:[%s4960_s3 + $0x58] sm:$0xff] %v2012_v13  ;;  %1613 = vmatmul.f32.gmra.mxu2 %v100_v12  ;;  %v110_v13 = vld [vmem:[%s4958_s0 + $0x300] sm:$0xff] }
 0x103   :  { %v1079_v21 = vadd.f32 %v1078_v15, %v591_v20  ;;  %637 = vmatmul.f32.gmra.mxu0 %v98_v18 }
 0x104   :  { %1125 = vmatmul.f32.gmra.mxu1 %v99_v19  ;;  %v3086_v22 = vpop.f32.mrf.mxu3 }
 0x105   :  { %v1566_v23 = vpop.f32.mrf.mxu2 }
 0x106   :  { %v1567_v24 = vadd.f32 %v1566_v23, %v1079_v21  ;;  %v467_v23 = vld [vmem:[%s4958_s0 + $0xe28] sm:$0xff] }
 0x108   :  { %v2013_v27 = vmax.f32 %v1567_v24, 0.0  ;;  %v593_v28 = vpop.f32.mrf.mxu0  ;;  %v115_v24 = vld [vmem:[%s4958_s0 + $0x328] sm:$0xff] }
 0x109   :  { %v1081_v31 = vpop.f32.mrf.mxu1  ;;  %v594_v34 = vadd.f32 %v2855_v48, %v593_v28  ;;  %994 = vmatmul.f32.gmra.mxu3 %v455_v25  ;;  %v113_v28 = vld [vmem:[%s4958_s0 + $0x318] sm:$0xff] }
 0x10a   :  { %2170 = vst [vmem:[%s4960_s3 + $0x60] sm:$0xff] %v2013_v27  ;;  %1616 = vmatmul.f32.gmra.mxu2 %v103_v26 }
 0x10b   :  { %v1082_v35 = vadd.f32 %v1081_v31, %v594_v34  ;;  %640 = vmatmul.f32.gmra.mxu0 %v101_v32  ;;  %v114_v31 = vld [vmem:[%s4958_s0 + $0x320] sm:$0xff] }
 0x10c   :  { %1128 = vmatmul.f32.gmra.mxu1 %v102_v33  ;;  %v3104_v36 = vpop.f32.mrf.mxu3 }
 0x10d   :  { %v1569_v37 = vpop.f32.mrf.mxu2 }
 0x10e   :  { %v1570_v38 = vadd.f32 %v1569_v37, %v1082_v35 }
 0x110   :  { %v2014_v42 = vmax.f32 %v1570_v38, 0.0  ;;  %v596_v44 = vpop.f32.mrf.mxu0  ;;  %v470_v38 = vld [vmem:[%s4958_s0 + $0xe40] sm:$0xff] }
 0x111   :  { %v1084_v45 = vpop.f32.mrf.mxu1  ;;  %v597_v49 = vadd.f32 %v2855_v48, %v596_v44  ;;  %997 = vmatmul.f32.gmra.mxu3 %v458_v39  ;;  %v118_v39 = vld [vmem:[%s4958_s0 + $0x340] sm:$0xff] }
 0x112   :  { %2171 = vst [vmem:[%s4960_s3 + $0x68] sm:$0xff] %v2014_v42  ;;  %1619 = vmatmul.f32.gmra.mxu2 %v106_v40 }
 0x113   :  { %v1085_v50 = vadd.f32 %v1084_v45, %v597_v49  ;;  %643 = vmatmul.f32.gmra.mxu0 %v104_v46  ;;  %v116_v45 = vld [vmem:[%s4958_s0 + $0x330] sm:$0xff]  ;;  %v117_v46 = vld [vmem:[%s4958_s0 + $0x338] sm:$0xff] }
 0x114   :  { %1131 = vmatmul.f32.gmra.mxu1 %v105_v47  ;;  %v3122_v51 = vpop.f32.mrf.mxu3 }
 0x115   :  { %v1572_v52 = vpop.f32.mrf.mxu2 }
 0x116   :  { %v1573_v53 = vadd.f32 %v1572_v52, %v1085_v50 }
 0x118   :  { %v2015_v59 = vmax.f32 %v1573_v53, 0.0  ;;  %v599_v60 = vpop.f32.mrf.mxu0 }
 0x119   :  { %v1087_v61 = vpop.f32.mrf.mxu1  ;;  %v600_v0 = vadd.f32 %v2855_v48, %v599_v60  ;;  %1000 = vmatmul.f32.gmra.mxu3 %v461_v55  ;;  %v473_v55 = vld [vmem:[%s4958_s0 + $0xe58] sm:$0xff] }
 0x11a   :  { %2172 = vst [vmem:[%s4960_s3 + $0x70] sm:$0xff] %v2015_v59  ;;  %1622 = vmatmul.f32.gmra.mxu2 %v109_v56  ;;  %v121_v56 = vld [vmem:[%s4958_s0 + $0x358] sm:$0xff] }
 0x11b   :  { %v1088_v2 = vadd.f32 %v1087_v61, %v600_v0  ;;  %646 = vmatmul.f32.gmra.mxu0 %v107_v62  ;;  %v119_v62 = vld [vmem:[%s4958_s0 + $0x348] sm:$0xff] }
 0x11c   :  { %1134 = vmatmul.f32.gmra.mxu1 %v108_v63  ;;  %v3140_v4 = vpop.f32.mrf.mxu3  ;;  %v120_v63 = vld [vmem:[%s4958_s0 + $0x350] sm:$0xff] }
 0x11d   :  { %v1575_v7 = vpop.f32.mrf.mxu2 }
 0x11e   :  { %v1576_v9 = vadd.f32 %v1575_v7, %v1088_v2 }
 0x120   :  { %v2016_v6 = vmax.f32 %v1576_v9, 0.0  ;;  %v602_v10 = vpop.f32.mrf.mxu0 }
 0x121   :  { %v1090_v12 = vpop.f32.mrf.mxu1  ;;  %v603_v15 = vadd.f32 %v2855_v48, %v602_v10  ;;  %1003 = vmatmul.f32.gmra.mxu3 %v464_v11 }
 0x122   :  { %2173 = vst [vmem:[%s4960_s3 + $0x78] sm:$0xff] %v2016_v6  ;;  %1625 = vmatmul.f32.gmra.mxu2 %v112_v3  ;;  %v476_v3 = vld [vmem:[%s4958_s0 + $0xe70] sm:$0xff] }
 0x123   :  { %v1091_v18 = vadd.f32 %v1090_v12, %v603_v15  ;;  %649 = vmatmul.f32.gmra.mxu0 %v110_v13  ;;  %v124_v6 = vld [vmem:[%s4958_s0 + $0x370] sm:$0xff]  ;;  %v123_v15 = vld [vmem:[%s4958_s0 + $0x368] sm:$0xff] }
 0x124   :  { %1137 = vmatmul.f32.gmra.mxu1 %v111_v14  ;;  %v3158_v19 = vpop.f32.mrf.mxu3  ;;  %v122_v14 = vld [vmem:[%s4958_s0 + $0x360] sm:$0xff] }
 0x125   :  { %v1578_v20 = vpop.f32.mrf.mxu2 }
 0x126   :  { %v1579_v21 = vadd.f32 %v1578_v20, %v1091_v18 }
 0x128   :  { %v2017_v25 = vmax.f32 %v1579_v21, 0.0  ;;  %v605_v26 = vpop.f32.mrf.mxu0 }
 0x129   :  { %v1093_v27 = vpop.f32.mrf.mxu1  ;;  %v606_v32 = vadd.f32 %v2855_v48, %v605_v26  ;;  %1006 = vmatmul.f32.gmra.mxu3 %v467_v23  ;;  %v127_v26 = vld [vmem:[%s4958_s0 + $0x388] sm:$0xff] }
 0x12a   :  { %2174 = vst [vmem:[%s4960_s3 + $0x80] sm:$0xff] %v2017_v25  ;;  %1628 = vmatmul.f32.gmra.mxu2 %v115_v24  ;;  %v479_v25 = vld [vmem:[%s4958_s0 + $0xe88] sm:$0xff] }
 0x12b   :  { %v1094_v33 = vadd.f32 %v1093_v27, %v606_v32  ;;  %652 = vmatmul.f32.gmra.mxu0 %v113_v28  ;;  %v125_v32 = vld [vmem:[%s4958_s0 + $0x378] sm:$0xff] }
 0x12c   :  { %1140 = vmatmul.f32.gmra.mxu1 %v114_v31  ;;  %v3176_v34 = vpop.f32.mrf.mxu3 }
 0x12d   :  { %v1581_v35 = vpop.f32.mrf.mxu2 }
 0x12e   :  { %v1582_v37 = vadd.f32 %v1581_v35, %v1094_v33  ;;  %v126_v33 = vld [vmem:[%s4958_s0 + $0x380] sm:$0xff] }
 0x130   :  { %v2018_v40 = vmax.f32 %v1582_v37, 0.0  ;;  %v608_v42 = vpop.f32.mrf.mxu0 }
 0x131   :  { %v1096_v44 = vpop.f32.mrf.mxu1  ;;  %v609_v47 = vadd.f32 %v2855_v48, %v608_v42  ;;  %1009 = vmatmul.f32.gmra.mxu3 %v470_v38  ;;  %v482_v42 = vld [vmem:[%s4958_s0 + $0xea0] sm:$0xff] }
 0x132   :  { %2175 = vst [vmem:[%s4960_s3 + $0x88] sm:$0xff] %v2018_v40  ;;  %1631 = vmatmul.f32.gmra.mxu2 %v118_v39 }
 0x133   :  { %v1097_v49 = vadd.f32 %v1096_v44, %v609_v47  ;;  %655 = vmatmul.f32.gmra.mxu0 %v116_v45  ;;  %v130_v44 = vld [vmem:[%s4958_s0 + $0x3a0] sm:$0xff] }
 0x134   :  { %1143 = vmatmul.f32.gmra.mxu1 %v117_v46  ;;  %v3194_v50 = vpop.f32.mrf.mxu3 }
 0x135   :  { %v1584_v52 = vpop.f32.mrf.mxu2 }
 0x136   :  { %v1585_v53 = vadd.f32 %v1584_v52, %v1097_v49  ;;  %v128_v49 = vld [vmem:[%s4958_s0 + $0x390] sm:$0xff]  ;;  %v129_v52 = vld [vmem:[%s4958_s0 + $0x398] sm:$0xff] }
 0x138   :  { %v2019_v59 = vmax.f32 %v1585_v53, 0.0  ;;  %v611_v60 = vpop.f32.mrf.mxu0 }
 0x139   :  { %v1099_v61 = vpop.f32.mrf.mxu1  ;;  %v612_v0 = vadd.f32 %v2855_v48, %v611_v60  ;;  %1012 = vmatmul.f32.gmra.mxu3 %v473_v55 }
 0x13a   :  { %2176 = vst [vmem:[%s4960_s3 + $0x90] sm:$0xff] %v2019_v59  ;;  %1634 = vmatmul.f32.gmra.mxu2 %v121_v56 }
 0x13b   :  { %v1100_v2 = vadd.f32 %v1099_v61, %v612_v0  ;;  %658 = vmatmul.f32.gmra.mxu0 %v119_v62  ;;  %v369_v61 = vld [vmem:[%s4958_s0 + $0xb18] sm:$0xff] }
 0x13c   :  { %1146 = vmatmul.f32.gmra.mxu1 %v120_v63  ;;  %v3212_v7 = vpop.f32.mrf.mxu3  ;;  %v133_v62 = vld [vmem:[%s4958_s0 + $0x3b8] sm:$0xff] }
 0x13d   :  { %v1587_v9 = vpop.f32.mrf.mxu2 }
 0x13e   :  { %v1588_v11 = vadd.f32 %v1587_v9, %v1100_v2  ;;  %v131_v9 = vld [vmem:[%s4958_s0 + $0x3a8] sm:$0xff] }
 0x140   :  { %v2020_v10 = vmax.f32 %v1588_v11, 0.0  ;;  %v614_v12 = vpop.f32.mrf.mxu0  ;;  %v132_v11 = vld [vmem:[%s4958_s0 + $0x3b0] sm:$0xff] }
 0x141   :  { %v1102_v13 = vpop.f32.mrf.mxu1  ;;  %v615_v18 = vadd.f32 %v2855_v48, %v614_v12  ;;  %1015 = vmatmul.f32.gmra.mxu3 %v476_v3 }
 0x142   :  { %2177 = vst [vmem:[%s4960_s3 + $0x98] sm:$0xff] %v2020_v10  ;;  %1637 = vmatmul.f32.gmra.mxu2 %v124_v6 }
 0x143   :  { %v1103_v20 = vadd.f32 %v1102_v13, %v615_v18  ;;  %661 = vmatmul.f32.gmra.mxu0 %v122_v14  ;;  %v372_v14 = vld [vmem:[%s4958_s0 + $0xb30] sm:$0xff] }
 0x144   :  { %1149 = vmatmul.f32.gmra.mxu1 %v123_v15  ;;  %v3230_v21 = vpop.f32.mrf.mxu3  ;;  %v136_v15 = vld [vmem:[%s4958_s0 + $0x3d0] sm:$0xff] }
 0x145   :  { %v1590_v23 = vpop.f32.mrf.mxu2 }
 0x146   :  { %v1591_v24 = vadd.f32 %v1590_v23, %v1103_v20 }
 0x148   :  { %v2021_v27 = vmax.f32 %v1591_v24, 0.0  ;;  %v617_v28 = vpop.f32.mrf.mxu0  ;;  %v134_v24 = vld [vmem:[%s4958_s0 + $0x3c0] sm:$0xff] }
 0x149   :  { %v1105_v31 = vpop.f32.mrf.mxu1  ;;  %v618_v35 = vadd.f32 %v2855_v48, %v617_v28  ;;  %1018 = vmatmul.f32.gmra.mxu3 %v479_v25  ;;  %v135_v25 = vld [vmem:[%s4958_s0 + $0x3c8] sm:$0xff] }
 0x14a   :  { %2178 = vst [vmem:[%s4960_s3 + $0xa0] sm:$0xff] %v2021_v27  ;;  %1640 = vmatmul.f32.gmra.mxu2 %v127_v26 }
 0x14b   :  { %v1106_v37 = vadd.f32 %v1105_v31, %v618_v35  ;;  %664 = vmatmul.f32.gmra.mxu0 %v125_v32  ;;  %v139_v35 = vld [vmem:[%s4958_s0 + $0x3e8] sm:$0xff] }
 0x14c   :  { %1152 = vmatmul.f32.gmra.mxu1 %v126_v33  ;;  %v3248_v38 = vpop.f32.mrf.mxu3  ;;  %v375_v33 = vld [vmem:[%s4958_s0 + $0xb48] sm:$0xff] }
 0x14d   :  { %v1593_v39 = vpop.f32.mrf.mxu2 }
 0x14e   :  { %v1594_v40 = vadd.f32 %v1593_v39, %v1106_v37 }
 0x150   :  { %v2022_v45 = vmax.f32 %v1594_v40, 0.0  ;;  %v620_v46 = vpop.f32.mrf.mxu0 }
 0x151   :  { %v1108_v47 = vpop.f32.mrf.mxu1  ;;  %v621_v53 = vadd.f32 %v2855_v48, %v620_v46  ;;  %1021 = vmatmul.f32.gmra.mxu3 %v482_v42  ;;  %v137_v42 = vld [vmem:[%s4958_s0 + $0x3d8] sm:$0xff] }
 0x152   :  { %2179 = vst [vmem:[%s4960_s3 + $0xa8] sm:$0xff] %v2022_v45  ;;  %1643 = vmatmul.f32.gmra.mxu2 %v130_v44  ;;  %v138_v44 = vld [vmem:[%s4958_s0 + $0x3e0] sm:$0xff] }
 0x153   :  { %v1109_v55 = vadd.f32 %v1108_v47, %v621_v53  ;;  %667 = vmatmul.f32.gmra.mxu0 %v128_v49  ;;  %v378_v53 = vld [vmem:[%s4958_s0 + $0xb60] sm:$0xff] }
 0x154   :  { %1155 = vmatmul.f32.gmra.mxu1 %v129_v52  ;;  %v3266_v56 = vpop.f32.mrf.mxu3 }
 0x155   :  { %v1596_v59 = vpop.f32.mrf.mxu2 }
 0x156   :  { %v1597_v60 = vadd.f32 %v1596_v59, %v1109_v55  ;;  %v142_v55 = vld [vmem:[%s4958_s0 + $0x400] sm:$0xff] }
 0x158   :  { %v2023_v63 = vmax.f32 %v1597_v60, 0.0  ;;  %v623_v0 = vpop.f32.mrf.mxu0 }
 0x159   :  { %v1111_v2 = vpop.f32.mrf.mxu1  ;;  %v624_v3 = vadd.f32 %v2855_v48, %v623_v0  ;;  %1395 = vmatmul.f32.vlgmr.msrb.gmra.mxu3 %v369_v61 }
 0x15a   :  { %2180 = vst [vmem:[%s4960_s3 + $0xb0] sm:$0xff] %v2023_v63  ;;  %1646 = vmatmul.f32.gmra.mxu2 %v133_v62  ;;  %v140_v62 = vld [vmem:[%s4958_s0 + $0x3f0] sm:$0xff]  ;;  %v141_v63 = vld [vmem:[%s4958_s0 + $0x3f8] sm:$0xff] }
 0x15b   :  { %v1112_v6 = vadd.f32 %v1111_v2, %v624_v3  ;;  %670 = vmatmul.f32.gmra.mxu0 %v131_v9 }
 0x15c   :  { %1158 = vmatmul.f32.gmra.mxu1 %v132_v11  ;;  %v3284_v10 = vpop.f32.mrf.mxu3 }
 0x15d   :  { %v1599_v12 = vpop.f32.mrf.mxu2 }
 0x15e   :  { %v1600_v13 = vadd.f32 %v1599_v12, %v1112_v6  ;;  %v381_v6 = vld [vmem:[%s4958_s0 + $0xb78] sm:$0xff] }
 0x15f   :  { %v145_v12 = vld [vmem:[%s4958_s0 + $0x418] sm:$0xff] }
 0x160   :  { %v2024_v18 = vmax.f32 %v1600_v13, 0.0  ;;  %v626_v20 = vpop.f32.mrf.mxu0 }
 0x161   :  { %v1114_v23 = vpop.f32.mrf.mxu1  ;;  %v627_v26 = vadd.f32 %v2855_v48, %v626_v20  ;;  %1398 = vmatmul.f32.gmra.mxu3 %v372_v14  ;;  %v144_v20 = vld [vmem:[%s4958_s0 + $0x410] sm:$0xff] }
 0x162   :  { %2181 = vst [vmem:[%s4960_s3 + $0xb8] sm:$0xff] %v2024_v18  ;;  %1649 = vmatmul.f32.gmra.mxu2 %v136_v15  ;;  %v143_v18 = vld [vmem:[%s4958_s0 + $0x408] sm:$0xff] }
 0x163   :  { %v1115_v27 = vadd.f32 %v1114_v23, %v627_v26  ;;  %673 = vmatmul.f32.gmra.mxu0 %v134_v24 }
 0x164   :  { %1161 = vmatmul.f32.gmra.mxu1 %v135_v25  ;;  %v3302_v28 = vpop.f32.mrf.mxu3 }
 0x165   :  { %v1602_v31 = vpop.f32.mrf.mxu2 }
 0x166   :  { %v1603_v32 = vadd.f32 %v1602_v31, %v1115_v27  ;;  %v384_v31 = vld [vmem:[%s4958_s0 + $0xb90] sm:$0xff] }
 0x168   :  { %v2025_v37 = vmax.f32 %v1603_v32, 0.0  ;;  %v629_v39 = vpop.f32.mrf.mxu0  ;;  %v148_v32 = vld [vmem:[%s4958_s0 + $0x430] sm:$0xff] }
 0x169   :  { %v1117_v40 = vpop.f32.mrf.mxu1  ;;  %v630_v45 = vadd.f32 %v2855_v48, %v629_v39  ;;  %1401 = vmatmul.f32.gmra.mxu3 %v375_v33  ;;  %v146_v39 = vld [vmem:[%s4958_s0 + $0x420] sm:$0xff] }
 0x16a   :  { %2182 = vst [vmem:[%s4960_s3 + $0xc0] sm:$0xff] %v2025_v37  ;;  %1652 = vmatmul.f32.gmra.mxu2 %v139_v35 }
 0x16b   :  { %v1118_v46 = vadd.f32 %v1117_v40, %v630_v45  ;;  %676 = vmatmul.f32.gmra.mxu0 %v137_v42  ;;  %v147_v40 = vld [vmem:[%s4958_s0 + $0x428] sm:$0xff] }
 0x16c   :  { %1164 = vmatmul.f32.gmra.mxu1 %v138_v44  ;;  %v3320_v47 = vpop.f32.mrf.mxu3 }
 0x16d   :  { %v1605_v49 = vpop.f32.mrf.mxu2 }
 0x16e   :  { %v1606_v52 = vadd.f32 %v1605_v49, %v1118_v46 }
 0x170   :  { %v2026_v59 = vmax.f32 %v1606_v52, 0.0  ;;  %v632_v60 = vpop.f32.mrf.mxu0  ;;  %v387_v52 = vld [vmem:[%s4958_s0 + $0xba8] sm:$0xff] }
 0x171   :  { %v1120_v61 = vpop.f32.mrf.mxu1  ;;  %v633_v0 = vadd.f32 %v2855_v48, %v632_v60  ;;  %1404 = vmatmul.f32.gmra.mxu3 %v378_v53  ;;  %v151_v53 = vld [vmem:[%s4958_s0 + $0x448] sm:$0xff] }
 0x172   :  { %2183 = vst [vmem:[%s4960_s3 + $0xc8] sm:$0xff] %v2026_v59  ;;  %1655 = vmatmul.f32.gmra.mxu2 %v142_v55 }
 0x173   :  { %v1121_v2 = vadd.f32 %v1120_v61, %v633_v0  ;;  %679 = vmatmul.f32.gmra.mxu0 %v140_v62  ;;  %v149_v61 = vld [vmem:[%s4958_s0 + $0x438] sm:$0xff]  ;;  %v150_v62 = vld [vmem:[%s4958_s0 + $0x440] sm:$0xff] }
 0x174   :  { %1167 = vmatmul.f32.gmra.mxu1 %v141_v63  ;;  %v3338_v9 = vpop.f32.mrf.mxu3 }
 0x175   :  { %v1608_v11 = vpop.f32.mrf.mxu2 }
 0x176   :  { %v1609_v3 = vadd.f32 %v1608_v11, %v1121_v2 }
 0x178   :  { %v2027_v13 = vmax.f32 %v1609_v3, 0.0  ;;  %v635_v14 = vpop.f32.mrf.mxu0 }
 0x179   :  { %v1123_v15 = vpop.f32.mrf.mxu1  ;;  %v636_v23 = vadd.f32 %v2855_v48, %v635_v14  ;;  %1407 = vmatmul.f32.gmra.mxu3 %v381_v6  ;;  %v390_v6 = vld [vmem:[%s4958_s0 + $0xbc0] sm:$0xff] }
 0x17a   :  { %2184 = vst [vmem:[%s4960_s3 + $0xd0] sm:$0xff] %v2027_v13  ;;  %1658 = vmatmul.f32.gmra.mxu2 %v145_v12  ;;  %v154_v12 = vld [vmem:[%s4958_s0 + $0x460] sm:$0xff] }
 0x17b   :  { %v1124_v24 = vadd.f32 %v1123_v15, %v636_v23  ;;  %682 = vmatmul.f32.gmra.mxu0 %v143_v18  ;;  %v152_v15 = vld [vmem:[%s4958_s0 + $0x450] sm:$0xff]  ;;  %v153_v18 = vld [vmem:[%s4958_s0 + $0x458] sm:$0xff] }
 0x17c   :  { %1170 = vmatmul.f32.gmra.mxu1 %v144_v20  ;;  %v3356_v25 = vpop.f32.mrf.mxu3  ;;  %v3412_v20 = vld [vmem:[%s4959_s2] ss:$0 sm:$0xff] }
 0x17d   :  { %v1611_v26 = vpop.f32.mrf.mxu2 }
 0x17e   :  { %v1612_v27 = vadd.f32 %v1611_v26, %v1124_v24 }
 0x180   :  { %v2028_v33 = vmax.f32 %v1612_v27, 0.0  ;;  %v638_v35 = vpop.f32.mrf.mxu0 }
 0x181   :  { %v1126_v37 = vpop.f32.mrf.mxu1  ;;  %v639_v42 = vadd.f32 %v2855_v48, %v638_v35  ;;  %1410 = vmatmul.f32.gmra.mxu3 %v384_v31 }
 0x182   :  { %2185 = vst [vmem:[%s4960_s3 + $0xd8] sm:$0xff] %v2028_v33  ;;  %1661 = vmatmul.f32.gmra.mxu2 %v148_v32  ;;  %v393_v32 = vld [vmem:[%s4958_s0 + $0xbd8] sm:$0xff] }
 0x183   :  { %v1127_v44 = vadd.f32 %v1126_v37, %v639_v42  ;;  %685 = vmatmul.f32.gmra.mxu0 %v146_v39  ;;  %v157_v33 = vld [vmem:[%s4958_s0 + $0x478] sm:$0xff]  ;;  %v156_v42 = vld [vmem:[%s4958_s0 + $0x470] sm:$0xff] }
 0x184   :  { %1173 = vmatmul.f32.gmra.mxu1 %v147_v40  ;;  %v3374_v45 = vpop.f32.mrf.mxu3  ;;  %v155_v40 = vld [vmem:[%s4958_s0 + $0x468] sm:$0xff] }
 0x185   :  { %v1614_v46 = vpop.f32.mrf.mxu2 }
 0x186   :  { %v1615_v49 = vadd.f32 %v1614_v46, %v1127_v44 }
 0x188   :  { %v2029_v55 = vmax.f32 %v1615_v49, 0.0  ;;  %v641_v59 = vpop.f32.mrf.mxu0 }
 0x189   :  { %v1129_v60 = vpop.f32.mrf.mxu1  ;;  %v642_v63 = vadd.f32 %v2855_v48, %v641_v59  ;;  %1413 = vmatmul.f32.gmra.mxu3 %v387_v52  ;;  %v160_v59 = vld [vmem:[%s4958_s0 + $0x490] sm:$0xff] }
 0x18a   :  { %2186 = vst [vmem:[%s4960_s3 + $0xe0] sm:$0xff] %v2029_v55  ;;  %1664 = vmatmul.f32.gmra.mxu2 %v151_v53  ;;  %v396_v55 = vld [vmem:[%s4958_s0 + $0xbf0] sm:$0xff] }
 0x18b   :  { %v1130_v0 = vadd.f32 %v1129_v60, %v642_v63  ;;  %688 = vmatmul.f32.gmra.mxu0 %v149_v61  ;;  %v158_v63 = vld [vmem:[%s4958_s0 + $0x480] sm:$0xff] }
 0x18c   :  { %1176 = vmatmul.f32.gmra.mxu1 %v150_v62  ;;  %v3392_v2 = vpop.f32.mrf.mxu3 }
 0x18d   :  { %v1617_v11 = vpop.f32.mrf.mxu2 }
 0x18e   :  { %v1618_v3 = vadd.f32 %v1617_v11, %v1130_v0  ;;  %v159_v0 = vld [vmem:[%s4958_s0 + $0x488] sm:$0xff] }
 0x190   :  { %v2030_v13 = vmax.f32 %v1618_v3, 0.0  ;;  %v644_v14 = vpop.f32.mrf.mxu0 }
 0x191   :  { %v1132_v48 = vpop.f32.mrf.mxu1  ;;  %v645_v23 = vadd.f32 %v3412_v20, %v644_v14  ;;  %1416 = vmatmul.f32.gmra.mxu3 %v390_v6  ;;  %v399_v14 = vld [vmem:[%s4958_s0 + $0xc08] sm:$0xff] }
 0x192   :  { %2187 = vst [vmem:[%s4960_s3 + $0xe8] sm:$0xff] %v2030_v13  ;;  %1667 = vmatmul.f32.gmra.mxu2 %v154_v12 }
 0x193   :  { %v1133_v24 = vadd.f32 %v1132_v48, %v645_v23  ;;  %691 = vmatmul.f32.gmra.mxu0 %v152_v15  ;;  %v163_v48 = vld [vmem:[%s4958_s0 + $0x4a8] sm:$0xff] }
 0x194   :  { %1179 = vmatmul.f32.gmra.mxu1 %v153_v18  ;;  %v3415_v26 = vpop.f32.mrf.mxu3 }
 0x195   :  { %v1620_v27 = vpop.f32.mrf.mxu2 }
 0x196   :  { %v1621_v31 = vadd.f32 %v1620_v27, %v1133_v24  ;;  %v161_v24 = vld [vmem:[%s4958_s0 + $0x498] sm:$0xff]  ;;  %v162_v27 = vld [vmem:[%s4958_s0 + $0x4a0] sm:$0xff] }
 0x198   :  { %v2031_v35 = vmax.f32 %v1621_v31, 0.0  ;;  %v647_v37 = vpop.f32.mrf.mxu0 }
 0x199   :  { %v1135_v39 = vpop.f32.mrf.mxu1  ;;  %v648_v44 = vadd.f32 %v3412_v20, %v647_v37  ;;  %1419 = vmatmul.f32.gmra.mxu3 %v393_v32 }
 0x19a   :  { %2188 = vst [vmem:[%s4960_s3 + $0xf0] sm:$0xff] %v2031_v35  ;;  %1670 = vmatmul.f32.gmra.mxu2 %v157_v33 }
 0x19b   :  { %v1136_v46 = vadd.f32 %v1135_v39, %v648_v44  ;;  %694 = vmatmul.f32.gmra.mxu0 %v155_v40  ;;  %v402_v39 = vld [vmem:[%s4958_s0 + $0xc20] sm:$0xff] }
 0x19c   :  { %1182 = vmatmul.f32.gmra.mxu1 %v156_v42  ;;  %v3433_v49 = vpop.f32.mrf.mxu3  ;;  %v166_v40 = vld [vmem:[%s4958_s0 + $0x4c0] sm:$0xff] }
 0x19d   :  { %v1623_v52 = vpop.f32.mrf.mxu2 }
 0x19e   :  { %v1624_v53 = vadd.f32 %v1623_v52, %v1136_v46  ;;  %v164_v52 = vld [vmem:[%s4958_s0 + $0x4b0] sm:$0xff] }
 0x1a0   :  { %v2032_v60 = vmax.f32 %v1624_v53, 0.0  ;;  %v650_v61 = vpop.f32.mrf.mxu0  ;;  %v165_v53 = vld [vmem:[%s4958_s0 + $0x4b8] sm:$0xff] }
 0x1a1   :  { %v1138_v62 = vpop.f32.mrf.mxu1  ;;  %v651_v11 = vadd.f32 %v3412_v20, %v650_v61  ;;  %1422 = vmatmul.f32.gmra.mxu3 %v396_v55 }
 0x1a2   :  { %2189 = vst [vmem:[%s4960_s3 + $0xf8] sm:$0xff] %v2032_v60  ;;  %1673 = vmatmul.f32.gmra.mxu2 %v160_v59 }
 0x1a3   :  { %v1139_v3 = vadd.f32 %v1138_v62, %v651_v11  ;;  %697 = vmatmul.f32.gmra.mxu0 %v158_v63  ;;  %v405_v63 = vld [vmem:[%s4958_s0 + $0xc38] sm:$0xff] }
 0x1a4   :  { %1185 = vmatmul.f32.gmra.mxu1 %v159_v0  ;;  %v3451_v6 = vpop.f32.mrf.mxu3  ;;  %v169_v0 = vld [vmem:[%s4958_s0 + $0x4d8] sm:$0xff] }
 0x1a5   :  { %v1626_v12 = vpop.f32.mrf.mxu2 }
 0x1a6   :  { %v1627_v13 = vadd.f32 %v1626_v12, %v1139_v3 }
 0x1a8   :  { %v2033_v15 = vmax.f32 %v1627_v13, 0.0  ;;  %v653_v18 = vpop.f32.mrf.mxu0  ;;  %v167_v13 = vld [vmem:[%s4958_s0 + $0x4c8] sm:$0xff] }
 0x1a9   :  { %v1141_v23 = vpop.f32.mrf.mxu1  ;;  %v654_v31 = vadd.f32 %v3412_v20, %v653_v18  ;;  %1425 = vmatmul.f32.gmra.mxu3 %v399_v14  ;;  %v168_v14 = vld [vmem:[%s4958_s0 + $0x4d0] sm:$0xff] }
 0x1aa   :  { %2190 = vst [vmem:[%s4960_s3 + $0x100] sm:$0xff] %v2033_v15  ;;  %1676 = vmatmul.f32.gmra.mxu2 %v163_v48 }
 0x1ab   :  { %v1142_v32 = vadd.f32 %v1141_v23, %v654_v31  ;;  %700 = vmatmul.f32.gmra.mxu0 %v161_v24  ;;  %v172_v31 = vld [vmem:[%s4958_s0 + $0x4f0] sm:$0xff] }
 0x1ac   :  { %1188 = vmatmul.f32.gmra.mxu1 %v162_v27  ;;  %v3469_v33 = vpop.f32.mrf.mxu3  ;;  %v408_v27 = vld [vmem:[%s4958_s0 + $0xc50] sm:$0xff] }
 0x1ad   :  { %v1629_v35 = vpop.f32.mrf.mxu2 }
 0x1ae   :  { %v1630_v37 = vadd.f32 %v1629_v35, %v1142_v32 }
 0x1b0   :  { %v2034_v42 = vmax.f32 %v1630_v37, 0.0  ;;  %v656_v44 = vpop.f32.mrf.mxu0 }
 0x1b1   :  { %v1144_v46 = vpop.f32.mrf.mxu1  ;;  %v657_v55 = vadd.f32 %v3412_v20, %v656_v44  ;;  %1428 = vmatmul.f32.gmra.mxu3 %v402_v39  ;;  %v170_v39 = vld [vmem:[%s4958_s0 + $0x4e0] sm:$0xff] }
 0x1b2   :  { %2191 = vst [vmem:[%s4960_s3 + $0x108] sm:$0xff] %v2034_v42  ;;  %1679 = vmatmul.f32.gmra.mxu2 %v166_v40  ;;  %v171_v40 = vld [vmem:[%s4958_s0 + $0x4e8] sm:$0xff] }
 0x1b3   :  { %v1145_v59 = vadd.f32 %v1144_v46, %v657_v55  ;;  %703 = vmatmul.f32.gmra.mxu0 %v164_v52  ;;  %v411_v55 = vld [vmem:[%s4958_s0 + $0xc68] sm:$0xff] }
 0x1b4   :  { %1191 = vmatmul.f32.gmra.mxu1 %v165_v53  ;;  %v3487_v60 = vpop.f32.mrf.mxu3 }
 0x1b5   :  { %v1632_v61 = vpop.f32.mrf.mxu2 }
 0x1b6   :  { %v1633_v62 = vadd.f32 %v1632_v61, %v1145_v59  ;;  %v175_v59 = vld [vmem:[%s4958_s0 + $0x508] sm:$0xff] }
 0x1b8   :  { %v2035_v11 = vmax.f32 %v1633_v62, 0.0  ;;  %v659_v3 = vpop.f32.mrf.mxu0 }
 0x1b9   :  { %v1147_v12 = vpop.f32.mrf.mxu1  ;;  %v660_v48 = vadd.f32 %v3412_v20, %v659_v3  ;;  %1431 = vmatmul.f32.gmra.mxu3 %v405_v63 }
 0x1ba   :  { %2192 = vst [vmem:[%s4960_s3 + $0x110] sm:$0xff] %v2035_v11  ;;  %1682 = vmatmul.f32.gmra.mxu2 %v169_v0  ;;  %v173_v0 = vld [vmem:[%s4958_s0 + $0x4f8] sm:$0xff]  ;;  %v174_v11 = vld [vmem:[%s4958_s0 + $0x500] sm:$0xff] }
 0x1bb   :  { %v1148_v15 = vadd.f32 %v1147_v12, %v660_v48  ;;  %706 = vmatmul.f32.gmra.mxu0 %v167_v13 }
 0x1bc   :  { %1194 = vmatmul.f32.gmra.mxu1 %v168_v14  ;;  %v3505_v18 = vpop.f32.mrf.mxu3 }
 0x1bd   :  { %v1635_v23 = vpop.f32.mrf.mxu2 }
 0x1be   :  { %v1636_v24 = vadd.f32 %v1635_v23, %v1148_v15  ;;  %v414_v15 = vld [vmem:[%s4958_s0 + $0xc80] sm:$0xff] }
 0x1bf   :  { %v178_v23 = vld [vmem:[%s4958_s0 + $0x520] sm:$0xff] }
 0x1c0   :  { %v2036_v32 = vmax.f32 %v1636_v24, 0.0  ;;  %v662_v35 = vpop.f32.mrf.mxu0 }
 0x1c1   :  { %v1150_v37 = vpop.f32.mrf.mxu1  ;;  %v663_v42 = vadd.f32 %v3412_v20, %v662_v35  ;;  %1434 = vmatmul.f32.gmra.mxu3 %v408_v27  ;;  %v177_v35 = vld [vmem:[%s4958_s0 + $0x518] sm:$0xff] }
 0x1c2   :  { %2193 = vst [vmem:[%s4960_s3 + $0x118] sm:$0xff] %v2036_v32  ;;  %1685 = vmatmul.f32.gmra.mxu2 %v172_v31  ;;  %v176_v32 = vld [vmem:[%s4958_s0 + $0x510] sm:$0xff] }
 0x1c3   :  { %v1151_v44 = vadd.f32 %v1150_v37, %v663_v42  ;;  %709 = vmatmul.f32.gmra.mxu0 %v170_v39 }
 0x1c4   :  { %1197 = vmatmul.f32.gmra.mxu1 %v171_v40  ;;  %v3523_v46 = vpop.f32.mrf.mxu3 }
 0x1c5   :  { %v1638_v52 = vpop.f32.mrf.mxu2 }
 0x1c6   :  { %v1639_v53 = vadd.f32 %v1638_v52, %v1151_v44  ;;  %v417_v52 = vld [vmem:[%s4958_s0 + $0xc98] sm:$0xff] }
 0x1c8   :  { %v2037_v61 = vmax.f32 %v1639_v53, 0.0  ;;  %v665_v62 = vpop.f32.mrf.mxu0  ;;  %v181_v53 = vld [vmem:[%s4958_s0 + $0x538] sm:$0xff] }
 0x1c9   :  { %v1153_v63 = vpop.f32.mrf.mxu1  ;;  %v666_v3 = vadd.f32 %v3412_v20, %v665_v62  ;;  %1437 = vmatmul.f32.gmra.mxu3 %v411_v55  ;;  %v179_v62 = vld [vmem:[%s4958_s0 + $0x528] sm:$0xff] }
 0x1ca   :  { %2194 = vst [vmem:[%s4960_s3 + $0x120] sm:$0xff] %v2037_v61  ;;  %1688 = vmatmul.f32.gmra.mxu2 %v175_v59 }
 0x1cb   :  { %v1154_v12 = vadd.f32 %v1153_v63, %v666_v3  ;;  %712 = vmatmul.f32.gmra.mxu0 %v173_v0  ;;  %v180_v63 = vld [vmem:[%s4958_s0 + $0x530] sm:$0xff] }
 0x1cc   :  { %1200 = vmatmul.f32.gmra.mxu1 %v174_v11  ;;  %v3541_v13 = vpop.f32.mrf.mxu3  ;;  %v909_v11 = vadd.f32 %v3412_v20, %v2870_v57  ;;  %v182_v57 = vld [vmem:[%s4958_s0 + $0x540] sm:$0xff] }
 0x1cd   :  { %v1641_v14 = vpop.f32.mrf.mxu2 }
 0x1ce   :  { %v1642_v48 = vadd.f32 %v1641_v14, %v1154_v12 }
 0x1d0   :  { %v2038_v24 = vmax.f32 %v1642_v48, 0.0  ;;  %v668_v27 = vpop.f32.mrf.mxu0 }
 0x1d1   :  { %v1156_v31 = vpop.f32.mrf.mxu1  ;;  %v669_v37 = vadd.f32 %v3412_v20, %v668_v27  ;;  %1440 = vmatmul.f32.gmra.mxu3 %v414_v15 }
 0x1d2   :  { %2195 = vst [vmem:[%s4960_s3 + $0x128] sm:$0xff] %v2038_v24  ;;  %1691 = vmatmul.f32.gmra.mxu2 %v178_v23  ;;  %v420_v23 = vld [vmem:[%s4958_s0 + $0xcb0] sm:$0xff] }
 0x1d3   :  { %v1157_v39 = vadd.f32 %v1156_v31, %v669_v37  ;;  %715 = vmatmul.f32.gmra.mxu0 %v176_v32  ;;  %v184_v24 = vld [vmem:[%s4958_s0 + $0x550] sm:$0xff] }
 0x1d4   :  { %1203 = vmatmul.f32.gmra.mxu1 %v177_v35  ;;  %v3559_v40 = vpop.f32.mrf.mxu3  ;;  %v183_v35 = vld [vmem:[%s4958_s0 + $0x548] sm:$0xff] }
 0x1d5   :  { %v1644_v42 = vpop.f32.mrf.mxu2 }
 0x1d6   :  { %v1645_v44 = vadd.f32 %v1644_v42, %v1157_v39  ;;  %v912_v39 = vadd.f32 %v3412_v20, %v2888_v8  ;;  %v185_v8 = vld [vmem:[%s4958_s0 + $0x558] sm:$0xff] }
 0x1d8   :  { %v2039_v55 = vmax.f32 %v1645_v44, 0.0  ;;  %v671_v59 = vpop.f32.mrf.mxu0 }
 0x1d9   :  { %v1159_v61 = vpop.f32.mrf.mxu1  ;;  %v672_v0 = vadd.f32 %v3412_v20, %v671_v59  ;;  %1443 = vmatmul.f32.gmra.mxu3 %v417_v52  ;;  %v423_v59 = vld [vmem:[%s4958_s0 + $0xcc8] sm:$0xff] }
 0x1da   :  { %2196 = vst [vmem:[%s4960_s3 + $0x130] sm:$0xff] %v2039_v55  ;;  %1694 = vmatmul.f32.gmra.mxu2 %v181_v53 }
 0x1db   :  { %v1160_v3 = vadd.f32 %v1159_v61, %v672_v0  ;;  %718 = vmatmul.f32.gmra.mxu0 %v179_v62  ;;  %v187_v61 = vld [vmem:[%s4958_s0 + $0x568] sm:$0xff] }
 0x1dc   :  { %1206 = vmatmul.f32.gmra.mxu1 %v180_v63  ;;  %v1396_v12 = vpop.f32.mrf.mxu3 }
 0x1dd   :  { %v1647_v14 = vpop.f32.mrf.mxu2  ;;  %v3579_v48 = vadd.f32 %v1396_v12, %v909_v11  ;;  %v186_v11 = vld [vmem:[%s4958_s0 + $0x560] sm:$0xff]  ;;  %v915_v12 = vadd.f32 %v3412_v20, %v2906_v17  ;;  %v188_v17 = vld [vmem:[%s4958_s0 + $0x570] sm:$0xff] }
 0x1de   :  { %v1648_v15 = vadd.f32 %v1647_v14, %v1160_v3 }
 0x1e0   :  { %v2040_v27 = vmax.f32 %v1648_v15, 0.0  ;;  %v674_v31 = vpop.f32.mrf.mxu0 }
 0x1e1   :  { %v1162_v32 = vpop.f32.mrf.mxu1  ;;  %v675_v37 = vadd.f32 %v3412_v20, %v674_v31  ;;  %1446 = vmatmul.f32.gmra.mxu3 %v420_v23  ;;  %v426_v31 = vld [vmem:[%s4958_s0 + $0xce0] sm:$0xff] }
 0x1e2   :  { %2197 = vst [vmem:[%s4960_s3 + $0x138] sm:$0xff] %v2040_v27  ;;  %1697 = vmatmul.f32.gmra.mxu2 %v184_v24 }
 0x1e3   :  { %v1163_v42 = vadd.f32 %v1162_v32, %v675_v37  ;;  %721 = vmatmul.f32.gmra.mxu0 %v182_v57  ;;  %v190_v32 = vld [vmem:[%s4958_s0 + $0x580] sm:$0xff] }
 0x1e4   :  { %1209 = vmatmul.f32.gmra.mxu1 %v183_v35  ;;  %v1399_v44 = vpop.f32.mrf.mxu3 }
 0x1e5   :  { %v1650_v52 = vpop.f32.mrf.mxu2  ;;  %v3599_v53 = vadd.f32 %v1399_v44, %v912_v39  ;;  %v189_v39 = vld [vmem:[%s4958_s0 + $0x578] sm:$0xff]  ;;  %v918_v44 = vadd.f32 %v3412_v20, %v2924_v29  ;;  %v191_v29 = vld [vmem:[%s4958_s0 + $0x588] sm:$0xff] }
 0x1e6   :  { %v1651_v55 = vadd.f32 %v1650_v52, %v1163_v42 }
 0x1e8   :  { %v2041_v62 = vmax.f32 %v1651_v55, 0.0  ;;  %v677_v63 = vpop.f32.mrf.mxu0 }
 0x1e9   :  { %v1165_v0 = vpop.f32.mrf.mxu1  ;;  %v678_v3 = vadd.f32 %v3412_v20, %v677_v63  ;;  %1449 = vmatmul.f32.gmra.mxu3 %v423_v59  ;;  %v429_v63 = vld [vmem:[%s4958_s0 + $0xcf8] sm:$0xff] }
 0x1ea   :  { %2198 = vst [vmem:[%s4960_s3 + $0x140] sm:$0xff] %v2041_v62  ;;  %1700 = vmatmul.f32.gmra.mxu2 %v187_v61 }
 0x1eb   :  { %v1166_v14 = vadd.f32 %v1165_v0, %v678_v3  ;;  %724 = vmatmul.f32.gmra.mxu0 %v185_v8  ;;  %v193_v0 = vld [vmem:[%s4958_s0 + $0x598] sm:$0xff] }
 0x1ec   :  { %1212 = vmatmul.f32.gmra.mxu1 %v186_v11  ;;  %v1402_v15 = vpop.f32.mrf.mxu3 }
 0x1ed   :  { %v1653_v23 = vpop.f32.mrf.mxu2  ;;  %v3619_v24 = vadd.f32 %v1402_v15, %v915_v12  ;;  %v192_v12 = vld [vmem:[%s4958_s0 + $0x590] sm:$0xff]  ;;  %v921_v15 = vadd.f32 %v3412_v20, %v2942_v41  ;;  %v194_v41 = vld [vmem:[%s4958_s0 + $0x5a0] sm:$0xff] }
 0x1ee   :  { %v1654_v27 = vadd.f32 %v1653_v23, %v1166_v14 }
 0x1f0   :  { %v2042_v57 = vmax.f32 %v1654_v27, 0.0  ;;  %v680_v35 = vpop.f32.mrf.mxu0 }
 0x1f1   :  { %v1168_v37 = vpop.f32.mrf.mxu1  ;;  %v681_v42 = vadd.f32 %v3412_v20, %v680_v35  ;;  %1452 = vmatmul.f32.gmra.mxu3 %v426_v31  ;;  %v432_v35 = vld [vmem:[%s4958_s0 + $0xd10] sm:$0xff] }
 0x1f2   :  { %2199 = vst [vmem:[%s4960_s3 + $0x148] sm:$0xff] %v2042_v57  ;;  %1703 = vmatmul.f32.gmra.mxu2 %v190_v32 }
 0x1f3   :  { %v1169_v52 = vadd.f32 %v1168_v37, %v681_v42  ;;  %727 = vmatmul.f32.gmra.mxu0 %v188_v17  ;;  %v196_v37 = vld [vmem:[%s4958_s0 + $0x5b0] sm:$0xff] }
 0x1f4   :  { %1215 = vmatmul.f32.gmra.mxu1 %v189_v39  ;;  %v1405_v55 = vpop.f32.mrf.mxu3 }
 0x1f5   :  { %v1656_v59 = vpop.f32.mrf.mxu2  ;;  %v3639_v61 = vadd.f32 %v1405_v55, %v918_v44  ;;  %v195_v44 = vld [vmem:[%s4958_s0 + $0x5a8] sm:$0xff]  ;;  %v924_v55 = vadd.f32 %v3412_v20, %v2960_v54  ;;  %v197_v54 = vld [vmem:[%s4958_s0 + $0x5b8] sm:$0xff] }
 0x1f6   :  { %v1657_v62 = vadd.f32 %v1656_v59, %v1169_v52 }
 0x1f8   :  { %v2043_v8 = vmax.f32 %v1657_v62, 0.0  ;;  %v683_v11 = vpop.f32.mrf.mxu0 }
 0x1f9   :  { %v1171_v3 = vpop.f32.mrf.mxu1  ;;  %v684_v14 = vadd.f32 %v3412_v20, %v683_v11  ;;  %1455 = vmatmul.f32.gmra.mxu3 %v429_v63  ;;  %v435_v11 = vld [vmem:[%s4958_s0 + $0xd28] sm:$0xff] }
 0x1fa   :  { %2200 = vst [vmem:[%s4960_s3 + $0x150] sm:$0xff] %v2043_v8  ;;  %1706 = vmatmul.f32.gmra.mxu2 %v193_v0 }
 0x1fb   :  { %v1172_v23 = vadd.f32 %v1171_v3, %v684_v14  ;;  %730 = vmatmul.f32.gmra.mxu0 %v191_v29  ;;  %v199_v3 = vld [vmem:[%s4958_s0 + $0x5c8] sm:$0xff] }
 0x1fc   :  { %1218 = vmatmul.f32.gmra.mxu1 %v192_v12  ;;  %v1408_v27 = vpop.f32.mrf.mxu3 }
 0x1fd   :  { %v1659_v31 = vpop.f32.mrf.mxu2  ;;  %v3659_v32 = vadd.f32 %v1408_v27, %v921_v15  ;;  %v198_v15 = vld [vmem:[%s4958_s0 + $0x5c0] sm:$0xff]  ;;  %v927_v27 = vadd.f32 %v3412_v20, %v2978_v5  ;;  %v200_v5 = vld [vmem:[%s4958_s0 + $0x5d0] sm:$0xff] }
 0x1fe   :  { %v1660_v57 = vadd.f32 %v1659_v31, %v1172_v23 }
 0x200   :  { %v2044_v17 = vmax.f32 %v1660_v57, 0.0  ;;  %v686_v39 = vpop.f32.mrf.mxu0 }
 0x201   :  { %v1174_v42 = vpop.f32.mrf.mxu1  ;;  %v687_v52 = vadd.f32 %v3412_v20, %v686_v39  ;;  %1458 = vmatmul.f32.gmra.mxu3 %v432_v35  ;;  %v438_v39 = vld [vmem:[%s4958_s0 + $0xd40] sm:$0xff] }
 0x202   :  { %2201 = vst [vmem:[%s4960_s3 + $0x158] sm:$0xff] %v2044_v17  ;;  %1709 = vmatmul.f32.gmra.mxu2 %v196_v37 }
 0x203   :  { %v1175_v59 = vadd.f32 %v1174_v42, %v687_v52  ;;  %733 = vmatmul.f32.gmra.mxu0 %v194_v41  ;;  %v202_v42 = vld [vmem:[%s4958_s0 + $0x5e0] sm:$0xff] }
 0x204   :  { %1221 = vmatmul.f32.gmra.mxu1 %v195_v44  ;;  %v1411_v62 = vpop.f32.mrf.mxu3 }
 0x205   :  { %v1662_v63 = vpop.f32.mrf.mxu2  ;;  %v3679_v0 = vadd.f32 %v1411_v62, %v924_v55  ;;  %v201_v55 = vld [vmem:[%s4958_s0 + $0x5d8] sm:$0xff]  ;;  %v930_v62 = vadd.f32 %v3412_v20, %v2996_v16  ;;  %v203_v16 = vld [vmem:[%s4958_s0 + $0x5e8] sm:$0xff] }
 0x206   :  { %v1663_v8 = vadd.f32 %v1662_v63, %v1175_v59 }
 0x208   :  { %v2045_v29 = vmax.f32 %v1663_v8, 0.0  ;;  %v689_v12 = vpop.f32.mrf.mxu0 }
 0x209   :  { %v1177_v14 = vpop.f32.mrf.mxu1  ;;  %v690_v23 = vadd.f32 %v3412_v20, %v689_v12  ;;  %1461 = vmatmul.f32.gmra.mxu3 %v435_v11  ;;  %v441_v12 = vld [vmem:[%s4958_s0 + $0xd58] sm:$0xff] }
 0x20a   :  { %2202 = vst [vmem:[%s4960_s3 + $0x160] sm:$0xff] %v2045_v29  ;;  %1712 = vmatmul.f32.gmra.mxu2 %v199_v3 }
 0x20b   :  { %v1178_v31 = vadd.f32 %v1177_v14, %v690_v23  ;;  %736 = vmatmul.f32.gmra.mxu0 %v197_v54  ;;  %v205_v14 = vld [vmem:[%s4958_s0 + $0x5f8] sm:$0xff] }
 0x20c   :  { %1224 = vmatmul.f32.gmra.mxu1 %v198_v15  ;;  %v1414_v57 = vpop.f32.mrf.mxu3 }
 0x20d   :  { %v1665_v35 = vpop.f32.mrf.mxu2  ;;  %v3699_v37 = vadd.f32 %v1414_v57, %v927_v27  ;;  %v204_v27 = vld [vmem:[%s4958_s0 + $0x5f0] sm:$0xff]  ;;  %v933_v57 = vadd.f32 %v3412_v20, %v3014_v30  ;;  %v206_v30 = vld [vmem:[%s4958_s0 + $0x600] sm:$0xff] }
 0x20e   :  { %v1666_v17 = vadd.f32 %v1665_v35, %v1178_v31 }
 0x210   :  { %v2046_v41 = vmax.f32 %v1666_v17, 0.0  ;;  %v692_v44 = vpop.f32.mrf.mxu0 }
 0x211   :  { %v1180_v52 = vpop.f32.mrf.mxu1  ;;  %v693_v59 = vadd.f32 %v3412_v20, %v692_v44  ;;  %1464 = vmatmul.f32.gmra.mxu3 %v438_v39  ;;  %v444_v44 = vld [vmem:[%s4958_s0 + $0xd70] sm:$0xff] }
 0x212   :  { %2203 = vst [vmem:[%s4960_s3 + $0x168] sm:$0xff] %v2046_v41  ;;  %1715 = vmatmul.f32.gmra.mxu2 %v202_v42 }
 0x213   :  { %v1181_v63 = vadd.f32 %v1180_v52, %v693_v59  ;;  %739 = vmatmul.f32.gmra.mxu0 %v200_v5  ;;  %v208_v52 = vld [vmem:[%s4958_s0 + $0x610] sm:$0xff] }
 0x214   :  { %1227 = vmatmul.f32.gmra.mxu1 %v201_v55  ;;  %v1417_v8 = vpop.f32.mrf.mxu3 }
 0x215   :  { %v1668_v11 = vpop.f32.mrf.mxu2  ;;  %v3719_v3 = vadd.f32 %v1417_v8, %v930_v62  ;;  %v207_v62 = vld [vmem:[%s4958_s0 + $0x608] sm:$0xff]  ;;  %v936_v8 = vadd.f32 %v3412_v20, %v3032_v43  ;;  %v209_v43 = vld [vmem:[%s4958_s0 + $0x618] sm:$0xff] }
 0x216   :  { %v1669_v29 = vadd.f32 %v1668_v11, %v1181_v63 }
 0x218   :  { %v2047_v54 = vmax.f32 %v1669_v29, 0.0  ;;  %v695_v15 = vpop.f32.mrf.mxu0 }
 0x219   :  { %v1183_v23 = vpop.f32.mrf.mxu1  ;;  %v696_v31 = vadd.f32 %v3412_v20, %v695_v15  ;;  %1467 = vmatmul.f32.gmra.mxu3 %v441_v12  ;;  %v447_v15 = vld [vmem:[%s4958_s0 + $0xd88] sm:$0xff] }
 0x21a   :  { %2204 = vst [vmem:[%s4960_s3 + $0x170] sm:$0xff] %v2047_v54  ;;  %1718 = vmatmul.f32.gmra.mxu2 %v205_v14 }
 0x21b   :  { %v1184_v35 = vadd.f32 %v1183_v23, %v696_v31  ;;  %742 = vmatmul.f32.gmra.mxu0 %v203_v16  ;;  %v211_v23 = vld [vmem:[%s4958_s0 + $0x628] sm:$0xff] }
 0x21c   :  { %1230 = vmatmul.f32.gmra.mxu1 %v204_v27  ;;  %v1420_v17 = vpop.f32.mrf.mxu3 }
 0x21d   :  { %v1671_v39 = vpop.f32.mrf.mxu2  ;;  %v3739_v42 = vadd.f32 %v1420_v17, %v933_v57  ;;  %v210_v57 = vld [vmem:[%s4958_s0 + $0x620] sm:$0xff]  ;;  %v939_v17 = vadd.f32 %v3412_v20, %v3050_v58  ;;  %v212_v58 = vld [vmem:[%s4958_s0 + $0x630] sm:$0xff] }
 0x21e   :  { %v1672_v41 = vadd.f32 %v1671_v39, %v1184_v35 }
 0x220   :  { %v2048_v5 = vmax.f32 %v1672_v41, 0.0  ;;  %v698_v55 = vpop.f32.mrf.mxu0 }
 0x221   :  { %v1186_v59 = vpop.f32.mrf.mxu1  ;;  %v699_v63 = vadd.f32 %v3412_v20, %v698_v55  ;;  %1470 = vmatmul.f32.gmra.mxu3 %v444_v44  ;;  %v450_v55 = vld [vmem:[%s4958_s0 + $0xda0] sm:$0xff] }
 0x222   :  { %2205 = vst [vmem:[%s4960_s3 + $0x178] sm:$0xff] %v2048_v5  ;;  %1721 = vmatmul.f32.gmra.mxu2 %v208_v52 }
 0x223   :  { %v1187_v11 = vadd.f32 %v1186_v59, %v699_v63  ;;  %745 = vmatmul.f32.gmra.mxu0 %v206_v30  ;;  %v214_v59 = vld [vmem:[%s4958_s0 + $0x640] sm:$0xff] }
 0x224   :  { %1233 = vmatmul.f32.gmra.mxu1 %v207_v62  ;;  %v1423_v29 = vpop.f32.mrf.mxu3 }
 0x225   :  { %v1674_v12 = vpop.f32.mrf.mxu2  ;;  %v3759_v14 = vadd.f32 %v1423_v29, %v936_v8  ;;  %v213_v8 = vld [vmem:[%s4958_s0 + $0x638] sm:$0xff]  ;;  %v942_v29 = vadd.f32 %v3412_v20, %v3068_v1  ;;  %v215_v1 = vld [vmem:[%s4958_s0 + $0x648] sm:$0xff] }
 0x226   :  { %v1675_v54 = vadd.f32 %v1674_v12, %v1187_v11 }
 0x228   :  { %v2049_v16 = vmax.f32 %v1675_v54, 0.0  ;;  %v701_v27 = vpop.f32.mrf.mxu0 }
 0x229   :  { %v1189_v31 = vpop.f32.mrf.mxu1  ;;  %v702_v35 = vadd.f32 %v3412_v20, %v701_v27  ;;  %1473 = vmatmul.f32.gmra.mxu3 %v447_v15  ;;  %v453_v27 = vld [vmem:[%s4958_s0 + $0xdb8] sm:$0xff] }
 0x22a   :  { %2206 = vst [vmem:[%s4960_s3 + $0x180] sm:$0xff] %v2049_v16  ;;  %1724 = vmatmul.f32.gmra.mxu2 %v211_v23 }
 0x22b   :  { %v1190_v39 = vadd.f32 %v1189_v31, %v702_v35  ;;  %748 = vmatmul.f32.gmra.mxu0 %v209_v43  ;;  %v217_v31 = vld [vmem:[%s4958_s0 + $0x658] sm:$0xff] }
 0x22c   :  { %1236 = vmatmul.f32.gmra.mxu1 %v210_v57  ;;  %v1426_v41 = vpop.f32.mrf.mxu3 }
 0x22d   :  { %v1677_v44 = vpop.f32.mrf.mxu2  ;;  %v3779_v52 = vadd.f32 %v1426_v41, %v939_v17  ;;  %v216_v17 = vld [vmem:[%s4958_s0 + $0x650] sm:$0xff]  ;;  %v945_v41 = vadd.f32 %v3412_v20, %v3086_v22  ;;  %v218_v22 = vld [vmem:[%s4958_s0 + $0x660] sm:$0xff] }
 0x22e   :  { %v1678_v5 = vadd.f32 %v1677_v44, %v1190_v39 }
 0x230   :  { %v2050_v30 = vmax.f32 %v1678_v5, 0.0  ;;  %v704_v62 = vpop.f32.mrf.mxu0 }
 0x231   :  { %v1192_v63 = vpop.f32.mrf.mxu1  ;;  %v705_v11 = vadd.f32 %v3412_v20, %v704_v62  ;;  %1476 = vmatmul.f32.gmra.mxu3 %v450_v55  ;;  %v456_v62 = vld [vmem:[%s4958_s0 + $0xdd0] sm:$0xff] }
 0x232   :  { %2207 = vst [vmem:[%s4960_s3 + $0x188] sm:$0xff] %v2050_v30  ;;  %1727 = vmatmul.f32.gmra.mxu2 %v214_v59 }
 0x233   :  { %v1193_v12 = vadd.f32 %v1192_v63, %v705_v11  ;;  %751 = vmatmul.f32.gmra.mxu0 %v212_v58  ;;  %v220_v63 = vld [vmem:[%s4958_s0 + $0x670] sm:$0xff] }
 0x234   :  { %1239 = vmatmul.f32.gmra.mxu1 %v213_v8  ;;  %v1429_v54 = vpop.f32.mrf.mxu3 }
 0x235   :  { %v1680_v15 = vpop.f32.mrf.mxu2  ;;  %v3799_v23 = vadd.f32 %v1429_v54, %v942_v29  ;;  %v219_v29 = vld [vmem:[%s4958_s0 + $0x668] sm:$0xff]  ;;  %v948_v54 = vadd.f32 %v3412_v20, %v3104_v36  ;;  %v221_v36 = vld [vmem:[%s4958_s0 + $0x678] sm:$0xff] }
 0x236   :  { %v1681_v16 = vadd.f32 %v1680_v15, %v1193_v12 }
 0x238   :  { %v2051_v43 = vmax.f32 %v1681_v16, 0.0  ;;  %v707_v57 = vpop.f32.mrf.mxu0 }
 0x239   :  { %v1195_v35 = vpop.f32.mrf.mxu1  ;;  %v708_v39 = vadd.f32 %v3412_v20, %v707_v57  ;;  %1479 = vmatmul.f32.gmra.mxu3 %v453_v27  ;;  %v459_v57 = vld [vmem:[%s4958_s0 + $0xde8] sm:$0xff] }
 0x23a   :  { %2208 = vst [vmem:[%s4960_s3 + $0x190] sm:$0xff] %v2051_v43  ;;  %1730 = vmatmul.f32.gmra.mxu2 %v217_v31 }
 0x23b   :  { %v1196_v44 = vadd.f32 %v1195_v35, %v708_v39  ;;  %754 = vmatmul.f32.gmra.mxu0 %v215_v1  ;;  %v223_v35 = vld [vmem:[%s4958_s0 + $0x688] sm:$0xff] }
 0x23c   :  { %1242 = vmatmul.f32.gmra.mxu1 %v216_v17  ;;  %v1432_v5 = vpop.f32.mrf.mxu3 }
 0x23d   :  { %v1683_v55 = vpop.f32.mrf.mxu2  ;;  %v3819_v59 = vadd.f32 %v1432_v5, %v945_v41  ;;  %v222_v41 = vld [vmem:[%s4958_s0 + $0x680] sm:$0xff]  ;;  %v951_v5 = vadd.f32 %v3412_v20, %v3122_v51  ;;  %v224_v51 = vld [vmem:[%s4958_s0 + $0x690] sm:$0xff] }
 0x23e   :  { %v1684_v30 = vadd.f32 %v1683_v55, %v1196_v44 }
 0x240   :  { %v2052_v58 = vmax.f32 %v1684_v30, 0.0  ;;  %v710_v8 = vpop.f32.mrf.mxu0 }
 0x241   :  { %v1198_v11 = vpop.f32.mrf.mxu1  ;;  %v711_v12 = vadd.f32 %v3412_v20, %v710_v8  ;;  %1482 = vmatmul.f32.gmra.mxu3 %v456_v62  ;;  %v462_v8 = vld [vmem:[%s4958_s0 + $0xe00] sm:$0xff] }
 0x242   :  { %2209 = vst [vmem:[%s4960_s3 + $0x198] sm:$0xff] %v2052_v58  ;;  %1733 = vmatmul.f32.gmra.mxu2 %v220_v63 }
 0x243   :  { %v1199_v15 = vadd.f32 %v1198_v11, %v711_v12  ;;  %757 = vmatmul.f32.gmra.mxu0 %v218_v22  ;;  %v226_v11 = vld [vmem:[%s4958_s0 + $0x6a0] sm:$0xff] }
 0x244   :  { %1245 = vmatmul.f32.gmra.mxu1 %v219_v29  ;;  %v1435_v16 = vpop.f32.mrf.mxu3 }
 0x245   :  { %v1686_v27 = vpop.f32.mrf.mxu2  ;;  %v3839_v31 = vadd.f32 %v1435_v16, %v948_v54  ;;  %v225_v54 = vld [vmem:[%s4958_s0 + $0x698] sm:$0xff]  ;;  %v954_v16 = vadd.f32 %v3412_v20, %v3140_v4  ;;  %v227_v4 = vld [vmem:[%s4958_s0 + $0x6a8] sm:$0xff] }
 0x246   :  { %v1687_v43 = vadd.f32 %v1686_v27, %v1199_v15 }
 0x248   :  { %v2053_v1 = vmax.f32 %v1687_v43, 0.0  ;;  %v713_v17 = vpop.f32.mrf.mxu0 }
 0x249   :  { %v1201_v39 = vpop.f32.mrf.mxu1  ;;  %v714_v44 = vadd.f32 %v3412_v20, %v713_v17  ;;  %1485 = vmatmul.f32.gmra.mxu3 %v459_v57  ;;  %v465_v17 = vld [vmem:[%s4958_s0 + $0xe18] sm:$0xff] }
 0x24a   :  { %2210 = vst [vmem:[%s4960_s3 + $0x1a0] sm:$0xff] %v2053_v1  ;;  %1736 = vmatmul.f32.gmra.mxu2 %v223_v35 }
 0x24b   :  { %v1202_v55 = vadd.f32 %v1201_v39, %v714_v44  ;;  %760 = vmatmul.f32.gmra.mxu0 %v221_v36  ;;  %v229_v39 = vld [vmem:[%s4958_s0 + $0x6b8] sm:$0xff] }
 0x24c   :  { %1248 = vmatmul.f32.gmra.mxu1 %v222_v41  ;;  %v1438_v30 = vpop.f32.mrf.mxu3 }
 0x24d   :  { %v1689_v62 = vpop.f32.mrf.mxu2  ;;  %v3859_v63 = vadd.f32 %v1438_v30, %v951_v5  ;;  %v228_v5 = vld [vmem:[%s4958_s0 + $0x6b0] sm:$0xff]  ;;  %v957_v30 = vadd.f32 %v3412_v20, %v3158_v19  ;;  %v230_v19 = vld [vmem:[%s4958_s0 + $0x6c0] sm:$0xff] }
 0x24e   :  { %v1690_v58 = vadd.f32 %v1689_v62, %v1202_v55 }
 0x250   :  { %v2054_v22 = vmax.f32 %v1690_v58, 0.0  ;;  %v716_v29 = vpop.f32.mrf.mxu0 }
 0x251   :  { %v1204_v12 = vpop.f32.mrf.mxu1  ;;  %v717_v15 = vadd.f32 %v3412_v20, %v716_v29  ;;  %1488 = vmatmul.f32.gmra.mxu3 %v462_v8  ;;  %v468_v29 = vld [vmem:[%s4958_s0 + $0xe30] sm:$0xff] }
 0x252   :  { %2211 = vst [vmem:[%s4960_s3 + $0x1a8] sm:$0xff] %v2054_v22  ;;  %1739 = vmatmul.f32.gmra.mxu2 %v226_v11 }
 0x253   :  { %v1205_v27 = vadd.f32 %v1204_v12, %v717_v15  ;;  %763 = vmatmul.f32.gmra.mxu0 %v224_v51  ;;  %v232_v12 = vld [vmem:[%s4958_s0 + $0x6d0] sm:$0xff] }
 0x254   :  { %1251 = vmatmul.f32.gmra.mxu1 %v225_v54  ;;  %v1441_v43 = vpop.f32.mrf.mxu3 }
 0x255   :  { %v1692_v57 = vpop.f32.mrf.mxu2  ;;  %v3879_v35 = vadd.f32 %v1441_v43, %v954_v16  ;;  %v231_v16 = vld [vmem:[%s4958_s0 + $0x6c8] sm:$0xff]  ;;  %v960_v43 = vadd.f32 %v3412_v20, %v3176_v34  ;;  %v233_v34 = vld [vmem:[%s4958_s0 + $0x6d8] sm:$0xff] }
 0x256   :  { %v1693_v1 = vadd.f32 %v1692_v57, %v1205_v27 }
 0x258   :  { %v2055_v36 = vmax.f32 %v1693_v1, 0.0  ;;  %v719_v41 = vpop.f32.mrf.mxu0 }
 0x259   :  { %v1207_v44 = vpop.f32.mrf.mxu1  ;;  %v720_v55 = vadd.f32 %v3412_v20, %v719_v41  ;;  %1491 = vmatmul.f32.gmra.mxu3 %v465_v17  ;;  %v471_v41 = vld [vmem:[%s4958_s0 + $0xe48] sm:$0xff] }
 0x25a   :  { %2212 = vst [vmem:[%s4960_s3 + $0x1b0] sm:$0xff] %v2055_v36  ;;  %1742 = vmatmul.f32.gmra.mxu2 %v229_v39 }
 0x25b   :  { %v1208_v62 = vadd.f32 %v1207_v44, %v720_v55  ;;  %766 = vmatmul.f32.gmra.mxu0 %v227_v4  ;;  %v235_v44 = vld [vmem:[%s4958_s0 + $0x6e8] sm:$0xff] }
 0x25c   :  { %1254 = vmatmul.f32.gmra.mxu1 %v228_v5  ;;  %v1444_v58 = vpop.f32.mrf.mxu3 }
 0x25d   :  { %v1695_v8 = vpop.f32.mrf.mxu2  ;;  %v3899_v11 = vadd.f32 %v1444_v58, %v957_v30  ;;  %v234_v30 = vld [vmem:[%s4958_s0 + $0x6e0] sm:$0xff]  ;;  %v963_v58 = vadd.f32 %v3412_v20, %v3194_v50  ;;  %v236_v50 = vld [vmem:[%s4958_s0 + $0x6f0] sm:$0xff] }
 0x25e   :  { %v1696_v22 = vadd.f32 %v1695_v8, %v1208_v62 }
 0x260   :  { %v2056_v51 = vmax.f32 %v1696_v22, 0.0  ;;  %v722_v54 = vpop.f32.mrf.mxu0 }
 0x261   :  { %v1210_v15 = vpop.f32.mrf.mxu1  ;;  %v723_v27 = vadd.f32 %v3412_v20, %v722_v54  ;;  %1494 = vmatmul.f32.gmra.mxu3 %v468_v29  ;;  %v474_v54 = vld [vmem:[%s4958_s0 + $0xe60] sm:$0xff] }
 0x262   :  { %2213 = vst [vmem:[%s4960_s3 + $0x1b8] sm:$0xff] %v2056_v51  ;;  %1745 = vmatmul.f32.gmra.mxu2 %v232_v12 }
 0x263   :  { %v1211_v57 = vadd.f32 %v1210_v15, %v723_v27  ;;  %769 = vmatmul.f32.gmra.mxu0 %v230_v19  ;;  %v238_v15 = vld [vmem:[%s4958_s0 + $0x700] sm:$0xff] }
 0x264   :  { %1257 = vmatmul.f32.gmra.mxu1 %v231_v16  ;;  %v1447_v1 = vpop.f32.mrf.mxu3 }
 0x265   :  { %v1698_v17 = vpop.f32.mrf.mxu2  ;;  %v3919_v39 = vadd.f32 %v1447_v1, %v960_v43  ;;  %v3959_v43 = vld [vmem:[%s4959_s2] ss:$0 sm:$0xff] }
 0x266   :  { %v1699_v36 = vadd.f32 %v1698_v17, %v1211_v57  ;;  %v966_v1 = vadd.f32 %v3959_v43, %v3212_v7  ;;  %v239_v7 = vld [vmem:[%s4958_s0 + $0x708] sm:$0xff] }
 0x268   :  { %v2057_v4 = vmax.f32 %v1699_v36, 0.0  ;;  %v725_v5 = vpop.f32.mrf.mxu0 }
 0x269   :  { %v1213_v55 = vpop.f32.mrf.mxu1  ;;  %v726_v62 = vadd.f32 %v3412_v20, %v725_v5  ;;  %1497 = vmatmul.f32.gmra.mxu3 %v471_v41  ;;  %v237_v20 = vld [vmem:[%s4958_s0 + $0x6f8] sm:$0xff] }
 0x26a   :  { %2214 = vst [vmem:[%s4960_s3 + $0x1c0] sm:$0xff] %v2057_v4  ;;  %1748 = vmatmul.f32.gmra.mxu2 %v235_v44  ;;  %v477_v5 = vld [vmem:[%s4958_s0 + $0xe78] sm:$0xff] }
 0x26b   :  { %v1214_v8 = vadd.f32 %v1213_v55, %v726_v62  ;;  %772 = vmatmul.f32.gmra.mxu0 %v233_v34  ;;  %v241_v55 = vld [vmem:[%s4958_s0 + $0x718] sm:$0xff] }
 0x26c   :  { %1260 = vmatmul.f32.gmra.mxu1 %v234_v30  ;;  %v1450_v22 = vpop.f32.mrf.mxu3 }
 0x26d   :  { %v1701_v29 = vpop.f32.mrf.mxu2  ;;  %v3939_v12 = vadd.f32 %v1450_v22, %v963_v58  ;;  %v240_v58 = vld [vmem:[%s4958_s0 + $0x710] sm:$0xff]  ;;  %v969_v22 = vadd.f32 %v3959_v43, %v3230_v21  ;;  %v242_v21 = vld [vmem:[%s4958_s0 + $0x720] sm:$0xff] }
 0x26e   :  { %v1702_v51 = vadd.f32 %v1701_v29, %v1214_v8 }
 0x270   :  { %v2058_v19 = vmax.f32 %v1702_v51, 0.0  ;;  %v728_v16 = vpop.f32.mrf.mxu0 }
 0x271   :  { %v1216_v27 = vpop.f32.mrf.mxu1  ;;  %v729_v57 = vadd.f32 %v3959_v43, %v728_v16  ;;  %1500 = vmatmul.f32.gmra.mxu3 %v474_v54  ;;  %v480_v16 = vld [vmem:[%s4958_s0 + $0xe90] sm:$0xff] }
 0x272   :  { %2215 = vst [vmem:[%s4960_s3 + $0x1c8] sm:$0xff] %v2058_v19  ;;  %1751 = vmatmul.f32.gmra.mxu2 %v238_v15 }
 0x273   :  { %v1217_v17 = vadd.f32 %v1216_v27, %v729_v57  ;;  %775 = vmatmul.f32.gmra.mxu0 %v236_v50  ;;  %v244_v27 = vld [vmem:[%s4958_s0 + $0x730] sm:$0xff] }
 0x274   :  { %1263 = vmatmul.f32.gmra.mxu1 %v237_v20  ;;  %v1453_v36 = vpop.f32.mrf.mxu3 }
 0x275   :  { %v1704_v41 = vpop.f32.mrf.mxu2  ;;  %v3964_v44 = vadd.f32 %v1453_v36, %v966_v1  ;;  %v243_v1 = vld [vmem:[%s4958_s0 + $0x728] sm:$0xff]  ;;  %v972_v36 = vadd.f32 %v3959_v43, %v3248_v38  ;;  %v245_v38 = vld [vmem:[%s4958_s0 + $0x738] sm:$0xff] }
 0x276   :  { %v1705_v4 = vadd.f32 %v1704_v41, %v1217_v17 }
 0x278   :  { %v2059_v34 = vmax.f32 %v1705_v4, 0.0  ;;  %v731_v30 = vpop.f32.mrf.mxu0 }
 0x279   :  { %v1219_v62 = vpop.f32.mrf.mxu1  ;;  %v732_v8 = vadd.f32 %v3959_v43, %v731_v30  ;;  %1503 = vmatmul.f32.gmra.mxu3 %v477_v5  ;;  %v483_v30 = vld [vmem:[%s4958_s0 + $0xea8] sm:$0xff] }
 0x27a   :  { %2216 = vst [vmem:[%s4960_s3 + $0x1d0] sm:$0xff] %v2059_v34  ;;  %1754 = vmatmul.f32.gmra.mxu2 %v241_v55 }
 0x27b   :  { %v1220_v29 = vadd.f32 %v1219_v62, %v732_v8  ;;  %778 = vmatmul.f32.gmra.mxu0 %v239_v7  ;;  %v247_v62 = vld [vmem:[%s4958_s0 + $0x748] sm:$0xff] }
 0x27c   :  { %1266 = vmatmul.f32.gmra.mxu1 %v240_v58  ;;  %v1456_v51 = vpop.f32.mrf.mxu3 }
 0x27d   :  { %v1707_v54 = vpop.f32.mrf.mxu2  ;;  %v3984_v15 = vadd.f32 %v1456_v51, %v969_v22  ;;  %v246_v22 = vld [vmem:[%s4958_s0 + $0x740] sm:$0xff]  ;;  %v975_v51 = vadd.f32 %v3959_v43, %v3266_v56  ;;  %v248_v56 = vld [vmem:[%s4958_s0 + $0x750] sm:$0xff] }
 0x27e   :  { %v1708_v19 = vadd.f32 %v1707_v54, %v1220_v29 }
 0x280   :  { %v2060_v50 = vmax.f32 %v1708_v19, 0.0  ;;  %v734_v20 = vpop.f32.mrf.mxu0 }
 0x281   :  { %v1222_v57 = vpop.f32.mrf.mxu1  ;;  %v735_v17 = vadd.f32 %v3959_v43, %v734_v20  ;;  %1506 = vmatmul.f32.gmra.mxu3 %v480_v16  ;;  %v250_v20 = vld [vmem:[%s4958_s0 + $0x760] sm:$0xff] }
 0x282   :  { %2217 = vst [vmem:[%s4960_s3 + $0x1d8] sm:$0xff] %v2060_v50  ;;  %1757 = vmatmul.f32.gmra.mxu2 %v244_v27 }
 0x283   :  { %v1223_v41 = vadd.f32 %v1222_v57, %v735_v17  ;;  %781 = vmatmul.f32.gmra.mxu0 %v242_v21  ;;  %v370_v57 = vld [vmem:[%s4958_s0 + $0xb20] sm:$0xff] }
 0x284   :  { %1269 = vmatmul.f32.gmra.mxu1 %v243_v1  ;;  %v1459_v4 = vpop.f32.mrf.mxu3 }
 0x285   :  { %v1710_v5 = vpop.f32.mrf.mxu2  ;;  %v4004_v55 = vadd.f32 %v1459_v4, %v972_v36  ;;  %v249_v36 = vld [vmem:[%s4958_s0 + $0x758] sm:$0xff]  ;;  %v978_v4 = vadd.f32 %v3959_v43, %v3284_v10  ;;  %v251_v10 = vld [vmem:[%s4958_s0 + $0x768] sm:$0xff] }
 0x286   :  { %v1711_v34 = vadd.f32 %v1710_v5, %v1223_v41 }
 0x288   :  { %v2061_v7 = vmax.f32 %v1711_v34, 0.0  ;;  %v737_v58 = vpop.f32.mrf.mxu0 }
 0x289   :  { %v1225_v8 = vpop.f32.mrf.mxu1  ;;  %v738_v29 = vadd.f32 %v3959_v43, %v737_v58  ;;  %1509 = vmatmul.f32.gmra.mxu3 %v483_v30  ;;  %v253_v58 = vld [vmem:[%s4958_s0 + $0x778] sm:$0xff] }
 0x28a   :  { %2218 = vst [vmem:[%s4960_s3 + $0x1e0] sm:$0xff] %v2061_v7  ;;  %1760 = vmatmul.f32.gmra.mxu2 %v247_v62 }
 0x28b   :  { %v1226_v54 = vadd.f32 %v1225_v8, %v738_v29  ;;  %784 = vmatmul.f32.gmra.mxu0 %v245_v38  ;;  %v373_v8 = vld [vmem:[%s4958_s0 + $0xb38] sm:$0xff] }
 0x28c   :  { %1272 = vmatmul.f32.gmra.mxu1 %v246_v22  ;;  %v1462_v19 = vpop.f32.mrf.mxu3 }
 0x28d   :  { %v1713_v16 = vpop.f32.mrf.mxu2  ;;  %v4024_v27 = vadd.f32 %v1462_v19, %v975_v51  ;;  %v252_v51 = vld [vmem:[%s4958_s0 + $0x770] sm:$0xff]  ;;  %v981_v19 = vadd.f32 %v3959_v43, %v3302_v28  ;;  %v254_v28 = vld [vmem:[%s4958_s0 + $0x780] sm:$0xff] }
 0x28e   :  { %v1714_v50 = vadd.f32 %v1713_v16, %v1226_v54 }
 0x290   :  { %v2062_v21 = vmax.f32 %v1714_v50, 0.0  ;;  %v740_v1 = vpop.f32.mrf.mxu0 }
 0x291   :  { %v1228_v17 = vpop.f32.mrf.mxu1  ;;  %v741_v41 = vadd.f32 %v3959_v43, %v740_v1  ;;  %1883 = vmatmul.f32.vlgmr.msra.gmra.mxu3 %v370_v57  ;;  %v256_v1 = vld [vmem:[%s4958_s0 + $0x790] sm:$0xff] }
 0x292   :  { %2219 = vst [vmem:[%s4960_s3 + $0x1e8] sm:$0xff] %v2062_v21  ;;  %1763 = vmatmul.f32.gmra.mxu2 %v250_v20 }
 0x293   :  { %v1229_v5 = vadd.f32 %v1228_v17, %v741_v41  ;;  %787 = vmatmul.f32.gmra.mxu0 %v248_v56  ;;  %v376_v17 = vld [vmem:[%s4958_s0 + $0xb50] sm:$0xff] }
 0x294   :  { %1275 = vmatmul.f32.gmra.mxu1 %v249_v36  ;;  %v1465_v34 = vpop.f32.mrf.mxu3 }
 0x295   :  { %v1716_v30 = vpop.f32.mrf.mxu2  ;;  %v4044_v62 = vadd.f32 %v1465_v34, %v978_v4  ;;  %v255_v4 = vld [vmem:[%s4958_s0 + $0x788] sm:$0xff]  ;;  %v984_v34 = vadd.f32 %v3959_v43, %v3320_v47  ;;  %v257_v47 = vld [vmem:[%s4958_s0 + $0x798] sm:$0xff] }
 0x296   :  { %v1717_v7 = vadd.f32 %v1716_v30, %v1229_v5 }
 0x298   :  { %v2063_v38 = vmax.f32 %v1717_v7, 0.0  ;;  %v743_v22 = vpop.f32.mrf.mxu0 }
 0x299   :  { %v1231_v29 = vpop.f32.mrf.mxu1  ;;  %v744_v54 = vadd.f32 %v3959_v43, %v743_v22  ;;  %1886 = vmatmul.f32.gmra.mxu3 %v373_v8  ;;  %v259_v22 = vld [vmem:[%s4958_s0 + $0x7a8] sm:$0xff] }
 0x29a   :  { %2220 = vst [vmem:[%s4960_s3 + $0x1f0] sm:$0xff] %v2063_v38  ;;  %1766 = vmatmul.f32.gmra.mxu2 %v253_v58 }
 0x29b   :  { %v1232_v16 = vadd.f32 %v1231_v29, %v744_v54  ;;  %790 = vmatmul.f32.gmra.mxu0 %v251_v10  ;;  %v379_v29 = vld [vmem:[%s4958_s0 + $0xb68] sm:$0xff] }
 0x29c   :  { %1278 = vmatmul.f32.gmra.mxu1 %v252_v51  ;;  %v1468_v50 = vpop.f32.mrf.mxu3 }
 0x29d   :  { %v1719_v20 = vpop.f32.mrf.mxu2  ;;  %v4064_v57 = vadd.f32 %v1468_v50, %v981_v19  ;;  %v258_v19 = vld [vmem:[%s4958_s0 + $0x7a0] sm:$0xff]  ;;  %v987_v50 = vadd.f32 %v3959_v43, %v3338_v9  ;;  %v260_v9 = vld [vmem:[%s4958_s0 + $0x7b0] sm:$0xff] }
 0x29e   :  { %v1720_v21 = vadd.f32 %v1719_v20, %v1232_v16 }
 0x2a0   :  { %v2064_v56 = vmax.f32 %v1720_v21, 0.0  ;;  %v746_v36 = vpop.f32.mrf.mxu0 }
 0x2a1   :  { %v1234_v41 = vpop.f32.mrf.mxu1  ;;  %v747_v5 = vadd.f32 %v3959_v43, %v746_v36  ;;  %1889 = vmatmul.f32.gmra.mxu3 %v376_v17  ;;  %v262_v36 = vld [vmem:[%s4958_s0 + $0x7c0] sm:$0xff] }
 0x2a2   :  { %2221 = vst [vmem:[%s4960_s3 + $0x1f8] sm:$0xff] %v2064_v56  ;;  %1769 = vmatmul.f32.gmra.mxu2 %v256_v1 }
 0x2a3   :  { %v1235_v30 = vadd.f32 %v1234_v41, %v747_v5  ;;  %793 = vmatmul.f32.gmra.mxu0 %v254_v28  ;;  %v382_v41 = vld [vmem:[%s4958_s0 + $0xb80] sm:$0xff] }
 0x2a4   :  { %1281 = vmatmul.f32.gmra.mxu1 %v255_v4  ;;  %v1471_v7 = vpop.f32.mrf.mxu3 }
 0x2a5   :  { %v1722_v58 = vpop.f32.mrf.mxu2  ;;  %v4084_v8 = vadd.f32 %v1471_v7, %v984_v34  ;;  %v261_v34 = vld [vmem:[%s4958_s0 + $0x7b8] sm:$0xff]  ;;  %v990_v7 = vadd.f32 %v3959_v43, %v3356_v25  ;;  %v263_v25 = vld [vmem:[%s4958_s0 + $0x7c8] sm:$0xff] }
 0x2a6   :  { %v1723_v38 = vadd.f32 %v1722_v58, %v1235_v30 }
 0x2a8   :  { %v2065_v10 = vmax.f32 %v1723_v38, 0.0  ;;  %v749_v51 = vpop.f32.mrf.mxu0 }
 0x2a9   :  { %v1237_v54 = vpop.f32.mrf.mxu1  ;;  %v750_v16 = vadd.f32 %v3959_v43, %v749_v51  ;;  %1892 = vmatmul.f32.gmra.mxu3 %v379_v29  ;;  %v265_v51 = vld [vmem:[%s4958_s0 + $0x7d8] sm:$0xff] }
 0x2aa   :  { %2222 = vst [vmem:[%s4960_s3 + $0x200] sm:$0xff] %v2065_v10  ;;  %1772 = vmatmul.f32.gmra.mxu2 %v259_v22 }
 0x2ab   :  { %v1238_v20 = vadd.f32 %v1237_v54, %v750_v16  ;;  %796 = vmatmul.f32.gmra.mxu0 %v257_v47  ;;  %v385_v54 = vld [vmem:[%s4958_s0 + $0xb98] sm:$0xff] }
 0x2ac   :  { %1284 = vmatmul.f32.gmra.mxu1 %v258_v19  ;;  %v1474_v21 = vpop.f32.mrf.mxu3 }
 0x2ad   :  { %v1725_v1 = vpop.f32.mrf.mxu2  ;;  %v4104_v17 = vadd.f32 %v1474_v21, %v987_v50  ;;  %v264_v50 = vld [vmem:[%s4958_s0 + $0x7d0] sm:$0xff]  ;;  %v993_v21 = vadd.f32 %v3959_v43, %v3374_v45  ;;  %v266_v45 = vld [vmem:[%s4958_s0 + $0x7e0] sm:$0xff] }
 0x2ae   :  { %v1726_v56 = vadd.f32 %v1725_v1, %v1238_v20 }
 0x2b0   :  { %v2066_v28 = vmax.f32 %v1726_v56, 0.0  ;;  %v752_v4 = vpop.f32.mrf.mxu0 }
 0x2b1   :  { %v1240_v5 = vpop.f32.mrf.mxu1  ;;  %v753_v30 = vadd.f32 %v3959_v43, %v752_v4  ;;  %1895 = vmatmul.f32.gmra.mxu3 %v382_v41  ;;  %v268_v4 = vld [vmem:[%s4958_s0 + $0x7f0] sm:$0xff] }
 0x2b2   :  { %2223 = vst [vmem:[%s4960_s3 + $0x208] sm:$0xff] %v2066_v28  ;;  %1775 = vmatmul.f32.gmra.mxu2 %v262_v36 }
 0x2b3   :  { %v1241_v58 = vadd.f32 %v1240_v5, %v753_v30  ;;  %799 = vmatmul.f32.gmra.mxu0 %v260_v9  ;;  %v388_v5 = vld [vmem:[%s4958_s0 + $0xbb0] sm:$0xff] }
 0x2b4   :  { %1287 = vmatmul.f32.gmra.mxu1 %v261_v34  ;;  %v1477_v38 = vpop.f32.mrf.mxu3 }
 0x2b5   :  { %v1728_v22 = vpop.f32.mrf.mxu2  ;;  %v4124_v29 = vadd.f32 %v1477_v38, %v990_v7  ;;  %v267_v7 = vld [vmem:[%s4958_s0 + $0x7e8] sm:$0xff]  ;;  %v996_v38 = vadd.f32 %v3959_v43, %v3392_v2  ;;  %v269_v2 = vld [vmem:[%s4958_s0 + $0x7f8] sm:$0xff] }
 0x2b6   :  { %v1729_v10 = vadd.f32 %v1728_v22, %v1241_v58 }
 0x2b8   :  { %v2067_v47 = vmax.f32 %v1729_v10, 0.0  ;;  %v755_v19 = vpop.f32.mrf.mxu0 }
 0x2b9   :  { %v1243_v16 = vpop.f32.mrf.mxu1  ;;  %v756_v20 = vadd.f32 %v3959_v43, %v755_v19  ;;  %1898 = vmatmul.f32.gmra.mxu3 %v385_v54  ;;  %v271_v19 = vld [vmem:[%s4958_s0 + $0x808] sm:$0xff] }
 0x2ba   :  { %2224 = vst [vmem:[%s4960_s3 + $0x210] sm:$0xff] %v2067_v47  ;;  %1778 = vmatmul.f32.gmra.mxu2 %v265_v51 }
 0x2bb   :  { %v1244_v1 = vadd.f32 %v1243_v16, %v756_v20  ;;  %802 = vmatmul.f32.gmra.mxu0 %v263_v25  ;;  %v391_v16 = vld [vmem:[%s4958_s0 + $0xbc8] sm:$0xff] }
 0x2bc   :  { %1290 = vmatmul.f32.gmra.mxu1 %v264_v50  ;;  %v1480_v56 = vpop.f32.mrf.mxu3 }
 0x2bd   :  { %v1731_v36 = vpop.f32.mrf.mxu2  ;;  %v4144_v41 = vadd.f32 %v1480_v56, %v993_v21  ;;  %v270_v21 = vld [vmem:[%s4958_s0 + $0x800] sm:$0xff]  ;;  %v999_v56 = vadd.f32 %v3959_v43, %v3415_v26  ;;  %v272_v26 = vld [vmem:[%s4958_s0 + $0x810] sm:$0xff] }
 0x2be   :  { %v1732_v28 = vadd.f32 %v1731_v36, %v1244_v1 }
 0x2c0   :  { %v2068_v9 = vmax.f32 %v1732_v28, 0.0  ;;  %v758_v34 = vpop.f32.mrf.mxu0 }
 0x2c1   :  { %v1246_v30 = vpop.f32.mrf.mxu1  ;;  %v759_v58 = vadd.f32 %v3959_v43, %v758_v34  ;;  %1901 = vmatmul.f32.gmra.mxu3 %v388_v5  ;;  %v274_v34 = vld [vmem:[%s4958_s0 + $0x820] sm:$0xff] }
 0x2c2   :  { %2225 = vst [vmem:[%s4960_s3 + $0x218] sm:$0xff] %v2068_v9  ;;  %1781 = vmatmul.f32.gmra.mxu2 %v268_v4 }
 0x2c3   :  { %v1247_v22 = vadd.f32 %v1246_v30, %v759_v58  ;;  %805 = vmatmul.f32.gmra.mxu0 %v266_v45  ;;  %v394_v30 = vld [vmem:[%s4958_s0 + $0xbe0] sm:$0xff] }
 0x2c4   :  { %1293 = vmatmul.f32.gmra.mxu1 %v267_v7  ;;  %v1483_v10 = vpop.f32.mrf.mxu3 }
 0x2c5   :  { %v1734_v51 = vpop.f32.mrf.mxu2  ;;  %v4164_v54 = vadd.f32 %v1483_v10, %v996_v38  ;;  %v273_v38 = vld [vmem:[%s4958_s0 + $0x818] sm:$0xff]  ;;  %v1002_v10 = vadd.f32 %v3959_v43, %v3433_v49  ;;  %v275_v49 = vld [vmem:[%s4958_s0 + $0x828] sm:$0xff] }
 0x2c6   :  { %v1735_v47 = vadd.f32 %v1734_v51, %v1247_v22 }
 0x2c8   :  { %v2069_v25 = vmax.f32 %v1735_v47, 0.0  ;;  %v761_v50 = vpop.f32.mrf.mxu0 }
 0x2c9   :  { %v1249_v20 = vpop.f32.mrf.mxu1  ;;  %v762_v1 = vadd.f32 %v3959_v43, %v761_v50  ;;  %1904 = vmatmul.f32.gmra.mxu3 %v391_v16  ;;  %v277_v50 = vld [vmem:[%s4958_s0 + $0x838] sm:$0xff] }
 0x2ca   :  { %2226 = vst [vmem:[%s4960_s3 + $0x220] sm:$0xff] %v2069_v25  ;;  %1784 = vmatmul.f32.gmra.mxu2 %v271_v19 }
 0x2cb   :  { %v1250_v36 = vadd.f32 %v1249_v20, %v762_v1  ;;  %808 = vmatmul.f32.gmra.mxu0 %v269_v2  ;;  %v397_v20 = vld [vmem:[%s4958_s0 + $0xbf8] sm:$0xff] }
 0x2cc   :  { %1296 = vmatmul.f32.gmra.mxu1 %v270_v21  ;;  %v1486_v28 = vpop.f32.mrf.mxu3 }
 0x2cd   :  { %v1737_v4 = vpop.f32.mrf.mxu2  ;;  %v4184_v5 = vadd.f32 %v1486_v28, %v999_v56  ;;  %v276_v56 = vld [vmem:[%s4958_s0 + $0x830] sm:$0xff]  ;;  %v1005_v28 = vadd.f32 %v3959_v43, %v3451_v6  ;;  %v278_v6 = vld [vmem:[%s4958_s0 + $0x840] sm:$0xff] }
 0x2ce   :  { %v1738_v9 = vadd.f32 %v1737_v4, %v1250_v36 }
 0x2d0   :  { %v2070_v45 = vmax.f32 %v1738_v9, 0.0  ;;  %v764_v7 = vpop.f32.mrf.mxu0 }
 0x2d1   :  { %v1252_v58 = vpop.f32.mrf.mxu1  ;;  %v765_v22 = vadd.f32 %v3959_v43, %v764_v7  ;;  %1907 = vmatmul.f32.gmra.mxu3 %v394_v30  ;;  %v280_v7 = vld [vmem:[%s4958_s0 + $0x850] sm:$0xff] }
 0x2d2   :  { %2227 = vst [vmem:[%s4960_s3 + $0x228] sm:$0xff] %v2070_v45  ;;  %1787 = vmatmul.f32.gmra.mxu2 %v274_v34 }
 0x2d3   :  { %v1253_v51 = vadd.f32 %v1252_v58, %v765_v22  ;;  %811 = vmatmul.f32.gmra.mxu0 %v272_v26  ;;  %v400_v58 = vld [vmem:[%s4958_s0 + $0xc10] sm:$0xff] }
 0x2d4   :  { %1299 = vmatmul.f32.gmra.mxu1 %v273_v38  ;;  %v1489_v47 = vpop.f32.mrf.mxu3 }
 0x2d5   :  { %v1740_v19 = vpop.f32.mrf.mxu2  ;;  %v4204_v16 = vadd.f32 %v1489_v47, %v1002_v10  ;;  %v279_v10 = vld [vmem:[%s4958_s0 + $0x848] sm:$0xff]  ;;  %v1008_v47 = vadd.f32 %v3959_v43, %v3469_v33  ;;  %v281_v33 = vld [vmem:[%s4958_s0 + $0x858] sm:$0xff] }
 0x2d6   :  { %v1741_v25 = vadd.f32 %v1740_v19, %v1253_v51 }
 0x2d8   :  { %v2071_v2 = vmax.f32 %v1741_v25, 0.0  ;;  %v767_v21 = vpop.f32.mrf.mxu0 }
 0x2d9   :  { %v1255_v1 = vpop.f32.mrf.mxu1  ;;  %v768_v36 = vadd.f32 %v3959_v43, %v767_v21  ;;  %1910 = vmatmul.f32.gmra.mxu3 %v397_v20  ;;  %v283_v21 = vld [vmem:[%s4958_s0 + $0x868] sm:$0xff] }
 0x2da   :  { %2228 = vst [vmem:[%s4960_s3 + $0x230] sm:$0xff] %v2071_v2  ;;  %1790 = vmatmul.f32.gmra.mxu2 %v277_v50 }
 0x2db   :  { %v1256_v4 = vadd.f32 %v1255_v1, %v768_v36  ;;  %814 = vmatmul.f32.gmra.mxu0 %v275_v49  ;;  %v403_v1 = vld [vmem:[%s4958_s0 + $0xc28] sm:$0xff] }
 0x2dc   :  { %1302 = vmatmul.f32.gmra.mxu1 %v276_v56  ;;  %v1492_v9 = vpop.f32.mrf.mxu3 }
 0x2dd   :  { %v1743_v34 = vpop.f32.mrf.mxu2  ;;  %v4224_v30 = vadd.f32 %v1492_v9, %v1005_v28  ;;  %v282_v28 = vld [vmem:[%s4958_s0 + $0x860] sm:$0xff]  ;;  %v1011_v9 = vadd.f32 %v3959_v43, %v3487_v60  ;;  %v284_v60 = vld [vmem:[%s4958_s0 + $0x870] sm:$0xff] }
 0x2de   :  { %v1744_v45 = vadd.f32 %v1743_v34, %v1256_v4 }
 0x2e0   :  { %v2072_v26 = vmax.f32 %v1744_v45, 0.0  ;;  %v770_v38 = vpop.f32.mrf.mxu0 }
 0x2e1   :  { %v1258_v22 = vpop.f32.mrf.mxu1  ;;  %v771_v51 = vadd.f32 %v3959_v43, %v770_v38  ;;  %1913 = vmatmul.f32.gmra.mxu3 %v400_v58  ;;  %v286_v38 = vld [vmem:[%s4958_s0 + $0x880] sm:$0xff] }
 0x2e2   :  { %2229 = vst [vmem:[%s4960_s3 + $0x238] sm:$0xff] %v2072_v26  ;;  %1793 = vmatmul.f32.gmra.mxu2 %v280_v7 }
 0x2e3   :  { %v1259_v19 = vadd.f32 %v1258_v22, %v771_v51  ;;  %817 = vmatmul.f32.gmra.mxu0 %v278_v6  ;;  %v406_v22 = vld [vmem:[%s4958_s0 + $0xc40] sm:$0xff] }
 0x2e4   :  { %1305 = vmatmul.f32.gmra.mxu1 %v279_v10  ;;  %v1495_v25 = vpop.f32.mrf.mxu3 }
 0x2e5   :  { %v1746_v50 = vpop.f32.mrf.mxu2  ;;  %v4244_v20 = vadd.f32 %v1495_v25, %v1008_v47  ;;  %v285_v47 = vld [vmem:[%s4958_s0 + $0x878] sm:$0xff]  ;;  %v1014_v25 = vadd.f32 %v3959_v43, %v3505_v18  ;;  %v287_v18 = vld [vmem:[%s4958_s0 + $0x888] sm:$0xff] }
 0x2e6   :  { %v1747_v2 = vadd.f32 %v1746_v50, %v1259_v19 }
 0x2e8   :  { %v2073_v49 = vmax.f32 %v1747_v2, 0.0  ;;  %v773_v56 = vpop.f32.mrf.mxu0 }
 0x2e9   :  { %v1261_v36 = vpop.f32.mrf.mxu1  ;;  %v774_v4 = vadd.f32 %v3959_v43, %v773_v56  ;;  %1916 = vmatmul.f32.gmra.mxu3 %v403_v1  ;;  %v289_v56 = vld [vmem:[%s4958_s0 + $0x898] sm:$0xff] }
 0x2ea   :  { %2230 = vst [vmem:[%s4960_s3 + $0x240] sm:$0xff] %v2073_v49  ;;  %1796 = vmatmul.f32.gmra.mxu2 %v283_v21 }
 0x2eb   :  { %v1262_v34 = vadd.f32 %v1261_v36, %v774_v4  ;;  %820 = vmatmul.f32.gmra.mxu0 %v281_v33  ;;  %v409_v36 = vld [vmem:[%s4958_s0 + $0xc58] sm:$0xff] }
 0x2ec   :  { %1308 = vmatmul.f32.gmra.mxu1 %v282_v28  ;;  %v1498_v45 = vpop.f32.mrf.mxu3 }
 0x2ed   :  { %v1749_v7 = vpop.f32.mrf.mxu2  ;;  %v4264_v58 = vadd.f32 %v1498_v45, %v1011_v9  ;;  %v288_v9 = vld [vmem:[%s4958_s0 + $0x890] sm:$0xff]  ;;  %v1017_v45 = vadd.f32 %v3959_v43, %v3523_v46  ;;  %v290_v46 = vld [vmem:[%s4958_s0 + $0x8a0] sm:$0xff] }
 0x2ee   :  { %v1750_v26 = vadd.f32 %v1749_v7, %v1262_v34 }
 0x2f0   :  { %v2074_v6 = vmax.f32 %v1750_v26, 0.0  ;;  %v776_v10 = vpop.f32.mrf.mxu0 }
 0x2f1   :  { %v1264_v51 = vpop.f32.mrf.mxu1  ;;  %v777_v19 = vadd.f32 %v3959_v43, %v776_v10  ;;  %1919 = vmatmul.f32.gmra.mxu3 %v406_v22  ;;  %v292_v10 = vld [vmem:[%s4958_s0 + $0x8b0] sm:$0xff] }
 0x2f2   :  { %2231 = vst [vmem:[%s4960_s3 + $0x248] sm:$0xff] %v2074_v6  ;;  %1799 = vmatmul.f32.gmra.mxu2 %v286_v38 }
 0x2f3   :  { %v1265_v50 = vadd.f32 %v1264_v51, %v777_v19  ;;  %823 = vmatmul.f32.gmra.mxu0 %v284_v60  ;;  %v412_v51 = vld [vmem:[%s4958_s0 + $0xc70] sm:$0xff] }
 0x2f4   :  { %1311 = vmatmul.f32.gmra.mxu1 %v285_v47  ;;  %v1501_v2 = vpop.f32.mrf.mxu3 }
 0x2f5   :  { %v1752_v21 = vpop.f32.mrf.mxu2  ;;  %v4284_v1 = vadd.f32 %v1501_v2, %v1014_v25  ;;  %v291_v25 = vld [vmem:[%s4958_s0 + $0x8a8] sm:$0xff]  ;;  %v1020_v2 = vadd.f32 %v3959_v43, %v3541_v13  ;;  %v293_v13 = vld [vmem:[%s4958_s0 + $0x8b8] sm:$0xff] }
 0x2f6   :  { %v1753_v49 = vadd.f32 %v1752_v21, %v1265_v50 }
 0x2f8   :  { %v2075_v33 = vmax.f32 %v1753_v49, 0.0  ;;  %v779_v28 = vpop.f32.mrf.mxu0 }
 0x2f9   :  { %v1267_v4 = vpop.f32.mrf.mxu1  ;;  %v780_v34 = vadd.f32 %v3959_v43, %v779_v28  ;;  %1922 = vmatmul.f32.gmra.mxu3 %v409_v36  ;;  %v295_v28 = vld [vmem:[%s4958_s0 + $0x8c8] sm:$0xff] }
 0x2fa   :  { %2232 = vst [vmem:[%s4960_s3 + $0x250] sm:$0xff] %v2075_v33  ;;  %1802 = vmatmul.f32.gmra.mxu2 %v289_v56 }
 0x2fb   :  { %v1268_v7 = vadd.f32 %v1267_v4, %v780_v34  ;;  %826 = vmatmul.f32.gmra.mxu0 %v287_v18  ;;  %v415_v4 = vld [vmem:[%s4958_s0 + $0xc88] sm:$0xff] }
 0x2fc   :  { %1314 = vmatmul.f32.gmra.mxu1 %v288_v9  ;;  %v1504_v26 = vpop.f32.mrf.mxu3 }
 0x2fd   :  { %v1755_v38 = vpop.f32.mrf.mxu2  ;;  %v4304_v22 = vadd.f32 %v1504_v26, %v1017_v45  ;;  %v294_v45 = vld [vmem:[%s4958_s0 + $0x8c0] sm:$0xff]  ;;  %v1023_v26 = vadd.f32 %v3959_v43, %v3559_v40  ;;  %v296_v40 = vld [vmem:[%s4958_s0 + $0x8d0] sm:$0xff] }
 0x2fe   :  { %v1756_v6 = vadd.f32 %v1755_v38, %v1268_v7 }
 0x300   :  { %v2076_v60 = vmax.f32 %v1756_v6, 0.0  ;;  %v782_v47 = vpop.f32.mrf.mxu0 }
 0x301   :  { %v1270_v19 = vpop.f32.mrf.mxu1  ;;  %v783_v50 = vadd.f32 %v3959_v43, %v782_v47  ;;  %1925 = vmatmul.f32.gmra.mxu3 %v412_v51  ;;  %v298_v47 = vld [vmem:[%s4958_s0 + $0x8e0] sm:$0xff] }
 0x302   :  { %2233 = vst [vmem:[%s4960_s3 + $0x258] sm:$0xff] %v2076_v60  ;;  %1805 = vmatmul.f32.gmra.mxu2 %v292_v10 }
 0x303   :  { %v1271_v21 = vadd.f32 %v1270_v19, %v783_v50  ;;  %829 = vmatmul.f32.gmra.mxu0 %v290_v46  ;;  %v418_v19 = vld [vmem:[%s4958_s0 + $0xca0] sm:$0xff] }
 0x304   :  { %1317 = vmatmul.f32.gmra.mxu1 %v291_v25  ;;  %v1507_v49 = vpop.f32.mrf.mxu3 }
 0x305   :  { %v1758_v56 = vpop.f32.mrf.mxu2  ;;  %v4324_v36 = vadd.f32 %v1507_v49, %v1020_v2  ;;  %v297_v2 = vld [vmem:[%s4958_s0 + $0x8d8] sm:$0xff] }
 0x306   :  { %v1759_v33 = vadd.f32 %v1758_v56, %v1271_v21 }
 0x308   :  { %v2077_v18 = vmax.f32 %v1759_v33, 0.0  ;;  %v785_v9 = vpop.f32.mrf.mxu0 }
 0x309   :  { %v1273_v34 = vpop.f32.mrf.mxu1  ;;  %v786_v7 = vadd.f32 %v3959_v43, %v785_v9  ;;  %1928 = vmatmul.f32.gmra.mxu3 %v415_v4  ;;  %v421_v9 = vld [vmem:[%s4958_s0 + $0xcb8] sm:$0xff] }
 0x30a   :  { %2234 = vst [vmem:[%s4960_s3 + $0x260] sm:$0xff] %v2077_v18  ;;  %1808 = vmatmul.f32.gmra.mxu2 %v295_v28  ;;  %v301_v18 = vld [vmem:[%s4958_s0 + $0x8f8] sm:$0xff] }
 0x30b   :  { %v1274_v38 = vadd.f32 %v1273_v34, %v786_v7  ;;  %832 = vmatmul.f32.gmra.mxu0 %v293_v13 }
 0x30c   :  { %1320 = vmatmul.f32.gmra.mxu1 %v294_v45  ;;  %v1510_v6 = vpop.f32.mrf.mxu3 }
 0x30d   :  { %v1761_v10 = vpop.f32.mrf.mxu2  ;;  %v4344_v51 = vadd.f32 %v1510_v6, %v1023_v26  ;;  %v299_v26 = vld [vmem:[%s4958_s0 + $0x8e8] sm:$0xff] }
 0x30e   :  { %v1762_v60 = vadd.f32 %v1761_v10, %v1274_v38 }
 0x310   :  { %v2078_v46 = vmax.f32 %v1762_v60, 0.0  ;;  %v788_v25 = vpop.f32.mrf.mxu0 }
 0x311   :  { %v1276_v50 = vpop.f32.mrf.mxu1  ;;  %v789_v21 = vadd.f32 %v3959_v43, %v788_v25  ;;  %1931 = vmatmul.f32.gmra.mxu3 %v418_v19  ;;  %v424_v25 = vld [vmem:[%s4958_s0 + $0xcd0] sm:$0xff] }
 0x312   :  { %2235 = vst [vmem:[%s4960_s3 + $0x268] sm:$0xff] %v2078_v46  ;;  %1811 = vmatmul.f32.gmra.mxu2 %v298_v47  ;;  %v304_v46 = vld [vmem:[%s4958_s0 + $0x910] sm:$0xff] }
 0x313   :  { %v1277_v49 = vadd.f32 %v1276_v50, %v789_v21  ;;  %835 = vmatmul.f32.gmra.mxu0 %v296_v40 }
 0x314   :  { %1323 = vmatmul.f32.gmra.mxu1 %v297_v2  ;;  %v1884_v33 = vpop.f32.mrf.mxu3 }
 0x315   :  { %v1764_v56 = vpop.f32.mrf.mxu2  ;;  %v1885_v4 = vadd.f32 %v1884_v33, %v3579_v48  ;;  %v300_v48 = vld [vmem:[%s4958_s0 + $0x8f0] sm:$0xff] }
 0x316   :  { %v1765_v28 = vadd.f32 %v1764_v56, %v1277_v49  ;;  %v302_v49 = vld [vmem:[%s4958_s0 + $0x900] sm:$0xff] }
 0x317   :  { %v2119_v13 = vmax.f32 %v1885_v4, 0.0 }
 0x318   :  { %v2079_v34 = vmax.f32 %v1765_v28, 0.0  ;;  %v791_v45 = vpop.f32.mrf.mxu0 }
 0x319   :  { %v1279_v7 = vpop.f32.mrf.mxu1  ;;  %v792_v38 = vadd.f32 %v3959_v43, %v791_v45  ;;  %1934 = vmatmul.f32.gmra.mxu3 %v421_v9  ;;  %2276 = vst [vmem:[%s4960_s3 + $0x3b0] sm:$0xff] %v2119_v13  ;;  %v427_v13 = vld [vmem:[%s4958_s0 + $0xce8] sm:$0xff] }
 0x31a   :  { %2236 = vst [vmem:[%s4960_s3 + $0x270] sm:$0xff] %v2079_v34  ;;  %1814 = vmatmul.f32.gmra.mxu2 %v301_v18  ;;  %v307_v34 = vld [vmem:[%s4958_s0 + $0x928] sm:$0xff] }
 0x31b   :  { %v1280_v6 = vadd.f32 %v1279_v7, %v792_v38  ;;  %838 = vmatmul.f32.gmra.mxu0 %v299_v26  ;;  %v305_v38 = vld [vmem:[%s4958_s0 + $0x918] sm:$0xff] }
 0x31c   :  { %1326 = vmatmul.f32.gmra.mxu1 %v300_v48  ;;  %v1887_v60 = vpop.f32.mrf.mxu3 }
 0x31d   :  { %v1767_v10 = vpop.f32.mrf.mxu2  ;;  %v1888_v19 = vadd.f32 %v1887_v60, %v3599_v53  ;;  %v303_v53 = vld [vmem:[%s4958_s0 + $0x908] sm:$0xff] }
 0x31e   :  { %v1768_v47 = vadd.f32 %v1767_v10, %v1280_v6 }
 0x31f   :  { %v2120_v40 = vmax.f32 %v1888_v19, 0.0 }
 0x320   :  { %v2080_v50 = vmax.f32 %v1768_v47, 0.0  ;;  %v794_v2 = vpop.f32.mrf.mxu0 }
 0x321   :  { %v1282_v21 = vpop.f32.mrf.mxu1  ;;  %v795_v56 = vadd.f32 %v3959_v43, %v794_v2  ;;  %1937 = vmatmul.f32.gmra.mxu3 %v424_v25  ;;  %2277 = vst [vmem:[%s4960_s3 + $0x3b8] sm:$0xff] %v2120_v40  ;;  %v310_v25 = vld [vmem:[%s4958_s0 + $0x940] sm:$0xff] }
 0x322   :  { %2237 = vst [vmem:[%s4960_s3 + $0x278] sm:$0xff] %v2080_v50  ;;  %1817 = vmatmul.f32.gmra.mxu2 %v304_v46  ;;  %v430_v50 = vld [vmem:[%s4958_s0 + $0xd00] sm:$0xff] }
 0x323   :  { %v1283_v33 = vadd.f32 %v1282_v21, %v795_v56  ;;  %841 = vmatmul.f32.gmra.mxu0 %v302_v49 }
 0x324   :  { %1329 = vmatmul.f32.gmra.mxu1 %v303_v53  ;;  %v1890_v4 = vpop.f32.mrf.mxu3  ;;  %v308_v53 = vld [vmem:[%s4958_s0 + $0x930] sm:$0xff] }
 0x325   :  { %v1770_v28 = vpop.f32.mrf.mxu2  ;;  %v1891_v9 = vadd.f32 %v1890_v4, %v3619_v24  ;;  %v306_v24 = vld [vmem:[%s4958_s0 + $0x920] sm:$0xff] }
 0x326   :  { %v1771_v18 = vadd.f32 %v1770_v28, %v1283_v33 }
 0x327   :  { %v2121_v7 = vmax.f32 %v1891_v9, 0.0 }
 0x328   :  { %v2081_v45 = vmax.f32 %v1771_v18, 0.0  ;;  %v797_v26 = vpop.f32.mrf.mxu0 }
 0x329   :  { %v1285_v48 = vpop.f32.mrf.mxu1  ;;  %v798_v6 = vadd.f32 %v3959_v43, %v797_v26  ;;  %1940 = vmatmul.f32.gmra.mxu3 %v427_v13  ;;  %2278 = vst [vmem:[%s4960_s3 + $0x3c0] sm:$0xff] %v2121_v7  ;;  %v433_v13 = vld [vmem:[%s4958_s0 + $0xd18] sm:$0xff] }
 0x32a   :  { %2238 = vst [vmem:[%s4960_s3 + $0x280] sm:$0xff] %v2081_v45  ;;  %1820 = vmatmul.f32.gmra.mxu2 %v307_v34  ;;  %v313_v34 = vld [vmem:[%s4958_s0 + $0x958] sm:$0xff] }
 0x32b   :  { %v1286_v10 = vadd.f32 %v1285_v48, %v798_v6  ;;  %844 = vmatmul.f32.gmra.mxu0 %v305_v38  ;;  %v311_v38 = vld [vmem:[%s4958_s0 + $0x948] sm:$0xff] }
 0x32c   :  { %1332 = vmatmul.f32.gmra.mxu1 %v306_v24  ;;  %v1893_v47 = vpop.f32.mrf.mxu3 }
 0x32d   :  { %v1773_v60 = vpop.f32.mrf.mxu2  ;;  %v1894_v46 = vadd.f32 %v1893_v47, %v3639_v61  ;;  %v309_v61 = vld [vmem:[%s4958_s0 + $0x938] sm:$0xff] }
 0x32e   :  { %v1774_v19 = vadd.f32 %v1773_v60, %v1286_v10 }
 0x32f   :  { %v2122_v2 = vmax.f32 %v1894_v46, 0.0  ;;  %v316_v46 = vld [vmem:[%s4958_s0 + $0x970] sm:$0xff] }
 0x330   :  { %v2082_v40 = vmax.f32 %v1774_v19, 0.0  ;;  %v800_v21 = vpop.f32.mrf.mxu0 }
 0x331   :  { %v1288_v49 = vpop.f32.mrf.mxu1  ;;  %v801_v56 = vadd.f32 %v3959_v43, %v800_v21  ;;  %1943 = vmatmul.f32.gmra.mxu3 %v430_v50  ;;  %2279 = vst [vmem:[%s4960_s3 + $0x3c8] sm:$0xff] %v2122_v2 }
 0x332   :  { %2239 = vst [vmem:[%s4960_s3 + $0x288] sm:$0xff] %v2082_v40  ;;  %1823 = vmatmul.f32.gmra.mxu2 %v310_v25  ;;  %v436_v25 = vld [vmem:[%s4958_s0 + $0xd30] sm:$0xff] }
 0x333   :  { %v1289_v33 = vadd.f32 %v1288_v49, %v801_v56  ;;  %847 = vmatmul.f32.gmra.mxu0 %v308_v53  ;;  %v314_v49 = vld [vmem:[%s4958_s0 + $0x960] sm:$0xff] }
 0x334   :  { %1335 = vmatmul.f32.gmra.mxu1 %v309_v61  ;;  %v1896_v4 = vpop.f32.mrf.mxu3 }
 0x335   :  { %v1776_v28 = vpop.f32.mrf.mxu2  ;;  %v1897_v9 = vadd.f32 %v1896_v4, %v3659_v32  ;;  %v312_v32 = vld [vmem:[%s4958_s0 + $0x950] sm:$0xff] }
 0x336   :  { %v1777_v18 = vadd.f32 %v1776_v28, %v1289_v33 }
 0x337   :  { %v2123_v7 = vmax.f32 %v1897_v9, 0.0 }
 0x338   :  { %v2083_v45 = vmax.f32 %v1777_v18, 0.0  ;;  %v803_v26 = vpop.f32.mrf.mxu0  ;;  %v319_v18 = vld [vmem:[%s4958_s0 + $0x988] sm:$0xff] }
 0x339   :  { %v1291_v48 = vpop.f32.mrf.mxu1  ;;  %v804_v24 = vadd.f32 %v3959_v43, %v803_v26  ;;  %1946 = vmatmul.f32.gmra.mxu3 %v433_v13  ;;  %2280 = vst [vmem:[%s4960_s3 + $0x3d0] sm:$0xff] %v2123_v7  ;;  %v317_v7 = vld [vmem:[%s4958_s0 + $0x978] sm:$0xff]  ;;  %v4501_v26 = vld [vmem:[%s4959_s2] ss:$0 sm:$0xff] }
 0x33a   :  { %2240 = vst [vmem:[%s4960_s3 + $0x290] sm:$0xff] %v2083_v45  ;;  %1826 = vmatmul.f32.gmra.mxu2 %v313_v34 }
 0x33b   :  { %v1292_v6 = vadd.f32 %v1291_v48, %v804_v24  ;;  %850 = vmatmul.f32.gmra.mxu0 %v311_v38 }
 0x33c   :  { %1338 = vmatmul.f32.gmra.mxu1 %v312_v32  ;;  %v1899_v60 = vpop.f32.mrf.mxu3 }
 0x33d   :  { %v1779_v10 = vpop.f32.mrf.mxu2  ;;  %v1900_v19 = vadd.f32 %v1899_v60, %v3679_v0  ;;  %v315_v0 = vld [vmem:[%s4958_s0 + $0x968] sm:$0xff]  ;;  %v322_v60 = vld [vmem:[%s4958_s0 + $0x9a0] sm:$0xff] }
 0x33e   :  { %v1780_v47 = vadd.f32 %v1779_v10, %v1292_v6 }
 0x33f   :  { %v2124_v40 = vmax.f32 %v1900_v19, 0.0 }
 0x340   :  { %v2084_v50 = vmax.f32 %v1780_v47, 0.0  ;;  %v806_v2 = vpop.f32.mrf.mxu0  ;;  %v442_v47 = vld [vmem:[%s4958_s0 + $0xd60] sm:$0xff] }
 0x341   :  { %v1294_v21 = vpop.f32.mrf.mxu1  ;;  %v807_v53 = vadd.f32 %v3959_v43, %v806_v2  ;;  %1949 = vmatmul.f32.gmra.mxu3 %v436_v25  ;;  %2281 = vst [vmem:[%s4960_s3 + $0x3d8] sm:$0xff] %v2124_v40  ;;  %v439_v43 = vld [vmem:[%s4958_s0 + $0xd48] sm:$0xff]  ;;  %v320_v40 = vld [vmem:[%s4958_s0 + $0x990] sm:$0xff] }
 0x342   :  { %2241 = vst [vmem:[%s4960_s3 + $0x298] sm:$0xff] %v2084_v50  ;;  %1829 = vmatmul.f32.gmra.mxu2 %v316_v46 }
 0x343   :  { %v1295_v61 = vadd.f32 %v1294_v21, %v807_v53  ;;  %853 = vmatmul.f32.gmra.mxu0 %v314_v49 }
 0x344   :  { %1341 = vmatmul.f32.gmra.mxu1 %v315_v0  ;;  %v1902_v33 = vpop.f32.mrf.mxu3 }
 0x345   :  { %v1782_v56 = vpop.f32.mrf.mxu2  ;;  %v1903_v4 = vadd.f32 %v1902_v33, %v3699_v37  ;;  %v318_v37 = vld [vmem:[%s4958_s0 + $0x980] sm:$0xff]  ;;  %v445_v33 = vld [vmem:[%s4958_s0 + $0xd78] sm:$0xff] }
 0x346   :  { %v1783_v28 = vadd.f32 %v1782_v56, %v1295_v61  ;;  %v325_v56 = vld [vmem:[%s4958_s0 + $0x9b8] sm:$0xff] }
 0x347   :  { %v2125_v34 = vmax.f32 %v1903_v4, 0.0 }
 0x348   :  { %v2085_v9 = vmax.f32 %v1783_v28, 0.0  ;;  %v809_v13 = vpop.f32.mrf.mxu0 }
 0x349   :  { %v1297_v45 = vpop.f32.mrf.mxu1  ;;  %v810_v48 = vadd.f32 %v4501_v26, %v809_v13  ;;  %1952 = vmatmul.f32.gmra.mxu3 %v439_v43  ;;  %2282 = vst [vmem:[%s4960_s3 + $0x3e0] sm:$0xff] %v2125_v34 }
 0x34a   :  { %2242 = vst [vmem:[%s4960_s3 + $0x2a0] sm:$0xff] %v2085_v9  ;;  %1832 = vmatmul.f32.gmra.mxu2 %v319_v18  ;;  %v323_v9 = vld [vmem:[%s4958_s0 + $0x9a8] sm:$0xff] }
 0x34b   :  { %v1298_v38 = vadd.f32 %v1297_v45, %v810_v48  ;;  %856 = vmatmul.f32.gmra.mxu0 %v317_v7 }
 0x34c   :  { %1344 = vmatmul.f32.gmra.mxu1 %v318_v37  ;;  %v1905_v24 = vpop.f32.mrf.mxu3 }
 0x34d   :  { %v1785_v32 = vpop.f32.mrf.mxu2  ;;  %v1906_v10 = vadd.f32 %v1905_v24, %v3719_v3  ;;  %v321_v3 = vld [vmem:[%s4958_s0 + $0x998] sm:$0xff] }
 0x34e   :  { %v1786_v6 = vadd.f32 %v1785_v32, %v1298_v38  ;;  %v328_v38 = vld [vmem:[%s4958_s0 + $0x9d0] sm:$0xff] }
 0x34f   :  { %v2126_v46 = vmax.f32 %v1906_v10, 0.0  ;;  %v448_v32 = vld [vmem:[%s4958_s0 + $0xd90] sm:$0xff] }
 0x350   :  { %v2086_v19 = vmax.f32 %v1786_v6, 0.0  ;;  %v812_v25 = vpop.f32.mrf.mxu0 }
 0x351   :  { %v1300_v50 = vpop.f32.mrf.mxu1  ;;  %v813_v2 = vadd.f32 %v4501_v26, %v812_v25  ;;  %1955 = vmatmul.f32.gmra.mxu3 %v442_v47  ;;  %2283 = vst [vmem:[%s4960_s3 + $0x3e8] sm:$0xff] %v2126_v46  ;;  %v326_v47 = vld [vmem:[%s4958_s0 + $0x9c0] sm:$0xff] }
 0x352   :  { %2243 = vst [vmem:[%s4960_s3 + $0x2a8] sm:$0xff] %v2086_v19  ;;  %1835 = vmatmul.f32.gmra.mxu2 %v322_v60 }
 0x353   :  { %v1301_v21 = vadd.f32 %v1300_v50, %v813_v2  ;;  %859 = vmatmul.f32.gmra.mxu0 %v320_v40  ;;  %v331_v2 = vld [vmem:[%s4958_s0 + $0x9e8] sm:$0xff] }
 0x354   :  { %1347 = vmatmul.f32.gmra.mxu1 %v321_v3  ;;  %v1908_v0 = vpop.f32.mrf.mxu3 }
 0x355   :  { %v1788_v49 = vpop.f32.mrf.mxu2  ;;  %v1909_v61 = vadd.f32 %v1908_v0, %v3739_v42  ;;  %v324_v42 = vld [vmem:[%s4958_s0 + $0x9b0] sm:$0xff] }
 0x356   :  { %v1789_v53 = vadd.f32 %v1788_v49, %v1301_v21  ;;  %v451_v21 = vld [vmem:[%s4958_s0 + $0xda8] sm:$0xff] }
 0x357   :  { %v2127_v4 = vmax.f32 %v1909_v61, 0.0 }
 0x358   :  { %v2087_v28 = vmax.f32 %v1789_v53, 0.0  ;;  %v815_v18 = vpop.f32.mrf.mxu0 }
 0x359   :  { %v1303_v43 = vpop.f32.mrf.mxu1  ;;  %v816_v34 = vadd.f32 %v4501_v26, %v815_v18  ;;  %1958 = vmatmul.f32.gmra.mxu3 %v445_v33  ;;  %2284 = vst [vmem:[%s4960_s3 + $0x3f0] sm:$0xff] %v2127_v4 }
 0x35a   :  { %2244 = vst [vmem:[%s4960_s3 + $0x2b0] sm:$0xff] %v2087_v28  ;;  %1838 = vmatmul.f32.gmra.mxu2 %v325_v56  ;;  %v329_v56 = vld [vmem:[%s4958_s0 + $0x9d8] sm:$0xff] }
 0x35b   :  { %v1304_v13 = vadd.f32 %v1303_v43, %v816_v34  ;;  %862 = vmatmul.f32.gmra.mxu0 %v323_v9  ;;  %v454_v34 = vld [vmem:[%s4958_s0 + $0xdc0] sm:$0xff] }
 0x35c   :  { %1350 = vmatmul.f32.gmra.mxu1 %v324_v42  ;;  %v1911_v7 = vpop.f32.mrf.mxu3  ;;  %v334_v42 = vld [vmem:[%s4958_s0 + $0xa00] sm:$0xff] }
 0x35d   :  { %v1791_v45 = vpop.f32.mrf.mxu2  ;;  %v1912_v48 = vadd.f32 %v1911_v7, %v3759_v14  ;;  %v327_v14 = vld [vmem:[%s4958_s0 + $0x9c8] sm:$0xff] }
 0x35e   :  { %v1792_v37 = vadd.f32 %v1791_v45, %v1304_v13 }
 0x35f   :  { %v2128_v6 = vmax.f32 %v1912_v48, 0.0  ;;  %v332_v48 = vld [vmem:[%s4958_s0 + $0x9f0] sm:$0xff] }
 0x360   :  { %v2088_v24 = vmax.f32 %v1792_v37, 0.0  ;;  %v818_v10 = vpop.f32.mrf.mxu0 }
 0x361   :  { %v1306_v60 = vpop.f32.mrf.mxu1  ;;  %v819_v19 = vadd.f32 %v4501_v26, %v818_v10  ;;  %1961 = vmatmul.f32.gmra.mxu3 %v448_v32  ;;  %2285 = vst [vmem:[%s4960_s3 + $0x3f8] sm:$0xff] %v2128_v6 }
 0x362   :  { %2245 = vst [vmem:[%s4960_s3 + $0x2b8] sm:$0xff] %v2088_v24  ;;  %1841 = vmatmul.f32.gmra.mxu2 %v328_v38 }
 0x363   :  { %v1307_v46 = vadd.f32 %v1306_v60, %v819_v19  ;;  %865 = vmatmul.f32.gmra.mxu0 %v326_v47  ;;  %v337_v47 = vld [vmem:[%s4958_s0 + $0xa18] sm:$0xff] }
 0x364   :  { %1353 = vmatmul.f32.gmra.mxu1 %v327_v14  ;;  %v1914_v50 = vpop.f32.mrf.mxu3  ;;  %v457_v14 = vld [vmem:[%s4958_s0 + $0xdd8] sm:$0xff] }
 0x365   :  { %v1794_v25 = vpop.f32.mrf.mxu2  ;;  %v1915_v3 = vadd.f32 %v1914_v50, %v3779_v52  ;;  %v330_v52 = vld [vmem:[%s4958_s0 + $0x9e0] sm:$0xff] }
 0x366   :  { %v1795_v40 = vadd.f32 %v1794_v25, %v1307_v46 }
 0x367   :  { %v2129_v0 = vmax.f32 %v1915_v3, 0.0 }
 0x368   :  { %v2089_v49 = vmax.f32 %v1795_v40, 0.0  ;;  %v821_v53 = vpop.f32.mrf.mxu0  ;;  %v335_v40 = vld [vmem:[%s4958_s0 + $0xa08] sm:$0xff] }
 0x369   :  { %v1309_v61 = vpop.f32.mrf.mxu1  ;;  %v822_v33 = vadd.f32 %v4501_v26, %v821_v53  ;;  %1964 = vmatmul.f32.gmra.mxu3 %v451_v21  ;;  %2286 = vst [vmem:[%s4960_s3 + $0x400] sm:$0xff] %v2129_v0 }
 0x36a   :  { %2246 = vst [vmem:[%s4960_s3 + $0x2c0] sm:$0xff] %v2089_v49  ;;  %1844 = vmatmul.f32.gmra.mxu2 %v331_v2 }
 0x36b   :  { %v1310_v28 = vadd.f32 %v1309_v61, %v822_v33  ;;  %868 = vmatmul.f32.gmra.mxu0 %v329_v56  ;;  %v340_v61 = vld [vmem:[%s4958_s0 + $0xa30] sm:$0xff] }
 0x36c   :  { %1356 = vmatmul.f32.gmra.mxu1 %v330_v52  ;;  %v1917_v18 = vpop.f32.mrf.mxu3  ;;  %v460_v56 = vld [vmem:[%s4958_s0 + $0xdf0] sm:$0xff] }
 0x36d   :  { %v1797_v4 = vpop.f32.mrf.mxu2  ;;  %v1918_v9 = vadd.f32 %v1917_v18, %v3799_v23  ;;  %v333_v23 = vld [vmem:[%s4958_s0 + $0x9f8] sm:$0xff]  ;;  %v338_v18 = vld [vmem:[%s4958_s0 + $0xa20] sm:$0xff] }
 0x36e   :  { %v1798_v43 = vadd.f32 %v1797_v4, %v1310_v28 }
 0x36f   :  { %v2130_v45 = vmax.f32 %v1918_v9, 0.0 }
 0x370   :  { %v2090_v13 = vmax.f32 %v1798_v43, 0.0  ;;  %v824_v7 = vpop.f32.mrf.mxu0 }
 0x371   :  { %v1312_v37 = vpop.f32.mrf.mxu1  ;;  %v825_v38 = vadd.f32 %v4501_v26, %v824_v7  ;;  %1967 = vmatmul.f32.gmra.mxu3 %v454_v34  ;;  %2287 = vst [vmem:[%s4960_s3 + $0x408] sm:$0xff] %v2130_v45  ;;  %v343_v7 = vld [vmem:[%s4958_s0 + $0xa48] sm:$0xff] }
 0x372   :  { %2247 = vst [vmem:[%s4960_s3 + $0x2c8] sm:$0xff] %v2090_v13  ;;  %1847 = vmatmul.f32.gmra.mxu2 %v334_v42 }
 0x373   :  { %v1313_v32 = vadd.f32 %v1312_v37, %v825_v38  ;;  %871 = vmatmul.f32.gmra.mxu0 %v332_v48  ;;  %v463_v37 = vld [vmem:[%s4958_s0 + $0xe08] sm:$0xff] }
 0x374   :  { %1359 = vmatmul.f32.gmra.mxu1 %v333_v23  ;;  %v1920_v6 = vpop.f32.mrf.mxu3 }
 0x375   :  { %v1800_v24 = vpop.f32.mrf.mxu2  ;;  %v1921_v60 = vadd.f32 %v1920_v6, %v3819_v59  ;;  %v336_v59 = vld [vmem:[%s4958_s0 + $0xa10] sm:$0xff] }
 0x376   :  { %v1801_v10 = vadd.f32 %v1800_v24, %v1313_v32  ;;  %v341_v24 = vld [vmem:[%s4958_s0 + $0xa38] sm:$0xff] }
 0x377   :  { %v2131_v46 = vmax.f32 %v1921_v60, 0.0 }
 0x378   :  { %v2091_v19 = vmax.f32 %v1801_v10, 0.0  ;;  %v827_v25 = vpop.f32.mrf.mxu0 }
 0x379   :  { %v1315_v50 = vpop.f32.mrf.mxu1  ;;  %v828_v3 = vadd.f32 %v4501_v26, %v827_v25  ;;  %1970 = vmatmul.f32.gmra.mxu3 %v457_v14  ;;  %2288 = vst [vmem:[%s4960_s3 + $0x410] sm:$0xff] %v2131_v46  ;;  %v346_v46 = vld [vmem:[%s4958_s0 + $0xa60] sm:$0xff] }
 0x37a   :  { %2248 = vst [vmem:[%s4960_s3 + $0x2d0] sm:$0xff] %v2091_v19  ;;  %1850 = vmatmul.f32.gmra.mxu2 %v337_v47  ;;  %v466_v25 = vld [vmem:[%s4958_s0 + $0xe20] sm:$0xff] }
 0x37b   :  { %v1316_v2 = vadd.f32 %v1315_v50, %v828_v3  ;;  %874 = vmatmul.f32.gmra.mxu0 %v335_v40 }
 0x37c   :  { %1362 = vmatmul.f32.gmra.mxu1 %v336_v59  ;;  %v1923_v49 = vpop.f32.mrf.mxu3 }
 0x37d   :  { %v1803_v21 = vpop.f32.mrf.mxu2  ;;  %v1924_v53 = vadd.f32 %v1923_v49, %v3839_v31  ;;  %v339_v31 = vld [vmem:[%s4958_s0 + $0xa28] sm:$0xff] }
 0x37e   :  { %v1804_v0 = vadd.f32 %v1803_v21, %v1316_v2  ;;  %v344_v2 = vld [vmem:[%s4958_s0 + $0xa50] sm:$0xff] }
 0x37f   :  { %v2132_v33 = vmax.f32 %v1924_v53, 0.0 }
 0x380   :  { %v2092_v52 = vmax.f32 %v1804_v0, 0.0  ;;  %v830_v28 = vpop.f32.mrf.mxu0 }
 0x381   :  { %v1318_v4 = vpop.f32.mrf.mxu1  ;;  %v831_v43 = vadd.f32 %v4501_v26, %v830_v28  ;;  %1973 = vmatmul.f32.gmra.mxu3 %v460_v56  ;;  %2289 = vst [vmem:[%s4960_s3 + $0x418] sm:$0xff] %v2132_v33  ;;  %v469_v33 = vld [vmem:[%s4958_s0 + $0xe38] sm:$0xff] }
 0x382   :  { %2249 = vst [vmem:[%s4960_s3 + $0x2d8] sm:$0xff] %v2092_v52  ;;  %1853 = vmatmul.f32.gmra.mxu2 %v340_v61  ;;  %v349_v52 = vld [vmem:[%s4958_s0 + $0xa78] sm:$0xff] }
 0x383   :  { %v1319_v9 = vadd.f32 %v1318_v4, %v831_v43  ;;  %877 = vmatmul.f32.gmra.mxu0 %v338_v18  ;;  %v347_v43 = vld [vmem:[%s4958_s0 + $0xa68] sm:$0xff] }
 0x384   :  { %1365 = vmatmul.f32.gmra.mxu1 %v339_v31  ;;  %v1926_v34 = vpop.f32.mrf.mxu3 }
 0x385   :  { %v1806_v42 = vpop.f32.mrf.mxu2  ;;  %v1927_v45 = vadd.f32 %v1926_v34, %v3859_v63  ;;  %v342_v63 = vld [vmem:[%s4958_s0 + $0xa40] sm:$0xff] }
 0x386   :  { %v1807_v13 = vadd.f32 %v1806_v42, %v1319_v9 }
 0x387   :  { %v2133_v23 = vmax.f32 %v1927_v45, 0.0 }
 0x388   :  { %v2093_v48 = vmax.f32 %v1807_v13, 0.0  ;;  %v833_v38 = vpop.f32.mrf.mxu0 }
 0x389   :  { %v1321_v32 = vpop.f32.mrf.mxu1  ;;  %v834_v6 = vadd.f32 %v4501_v26, %v833_v38  ;;  %1976 = vmatmul.f32.gmra.mxu3 %v463_v37  ;;  %2290 = vst [vmem:[%s4960_s3 + $0x420] sm:$0xff] %v2133_v23  ;;  %v352_v37 = vld [vmem:[%s4958_s0 + $0xa90] sm:$0xff] }
 0x38a   :  { %2250 = vst [vmem:[%s4960_s3 + $0x2e0] sm:$0xff] %v2093_v48  ;;  %1856 = vmatmul.f32.gmra.mxu2 %v343_v7  ;;  %v472_v48 = vld [vmem:[%s4958_s0 + $0xe50] sm:$0xff] }
 0x38b   :  { %v1322_v10 = vadd.f32 %v1321_v32, %v834_v6  ;;  %880 = vmatmul.f32.gmra.mxu0 %v341_v24 }
 0x38c   :  { %1368 = vmatmul.f32.gmra.mxu1 %v342_v63  ;;  %v1929_v47 = vpop.f32.mrf.mxu3  ;;  %v350_v63 = vld [vmem:[%s4958_s0 + $0xa80] sm:$0xff] }
 0x38d   :  { %v1809_v60 = vpop.f32.mrf.mxu2  ;;  %v1930_v19 = vadd.f32 %v1929_v47, %v3879_v35  ;;  %v345_v35 = vld [vmem:[%s4958_s0 + $0xa58] sm:$0xff] }
 0x38e   :  { %v1810_v14 = vadd.f32 %v1809_v60, %v1322_v10 }
 0x38f   :  { %v2134_v40 = vmax.f32 %v1930_v19, 0.0 }
 0x390   :  { %v2094_v50 = vmax.f32 %v1810_v14, 0.0  ;;  %v836_v59 = vpop.f32.mrf.mxu0 }
 0x391   :  { %v1324_v3 = vpop.f32.mrf.mxu1  ;;  %v837_v21 = vadd.f32 %v4501_v26, %v836_v59  ;;  %1979 = vmatmul.f32.gmra.mxu3 %v466_v25  ;;  %2291 = vst [vmem:[%s4960_s3 + $0x428] sm:$0xff] %v2134_v40  ;;  %v475_v25 = vld [vmem:[%s4958_s0 + $0xe68] sm:$0xff] }
 0x392   :  { %2251 = vst [vmem:[%s4960_s3 + $0x2e8] sm:$0xff] %v2094_v50  ;;  %1859 = vmatmul.f32.gmra.mxu2 %v346_v46  ;;  %v355_v46 = vld [vmem:[%s4958_s0 + $0xaa8] sm:$0xff] }
 0x393   :  { %v1325_v49 = vadd.f32 %v1324_v3, %v837_v21  ;;  %883 = vmatmul.f32.gmra.mxu0 %v344_v2  ;;  %v353_v2 = vld [vmem:[%s4958_s0 + $0xa98] sm:$0xff] }
 0x394   :  { %1371 = vmatmul.f32.gmra.mxu1 %v345_v35  ;;  %v1932_v53 = vpop.f32.mrf.mxu3 }
 0x395   :  { %v1812_v0 = vpop.f32.mrf.mxu2  ;;  %v1933_v56 = vadd.f32 %v1932_v53, %v3899_v11  ;;  %v348_v11 = vld [vmem:[%s4958_s0 + $0xa70] sm:$0xff] }
 0x396   :  { %v1813_v61 = vadd.f32 %v1812_v0, %v1325_v49 }
 0x397   :  { %v2135_v4 = vmax.f32 %v1933_v56, 0.0  ;;  %v358_v56 = vld [vmem:[%s4958_s0 + $0xac0] sm:$0xff] }
 0x398   :  { %v2095_v28 = vmax.f32 %v1813_v61, 0.0  ;;  %v839_v18 = vpop.f32.mrf.mxu0 }
 0x399   :  { %v1327_v31 = vpop.f32.mrf.mxu1  ;;  %v840_v9 = vadd.f32 %v4501_v26, %v839_v18  ;;  %1982 = vmatmul.f32.gmra.mxu3 %v469_v33  ;;  %2292 = vst [vmem:[%s4960_s3 + $0x430] sm:$0xff] %v2135_v4 }
 0x39a   :  { %2252 = vst [vmem:[%s4960_s3 + $0x2f0] sm:$0xff] %v2095_v28  ;;  %1862 = vmatmul.f32.gmra.mxu2 %v349_v52  ;;  %v478_v52 = vld [vmem:[%s4958_s0 + $0xe80] sm:$0xff] }
 0x39b   :  { %v1328_v42 = vadd.f32 %v1327_v31, %v840_v9  ;;  %886 = vmatmul.f32.gmra.mxu0 %v347_v43  ;;  %v356_v31 = vld [vmem:[%s4958_s0 + $0xab0] sm:$0xff] }
 0x39c   :  { %1374 = vmatmul.f32.gmra.mxu1 %v348_v11  ;;  %v1935_v13 = vpop.f32.mrf.mxu3 }
 0x39d   :  { %v1815_v34 = vpop.f32.mrf.mxu2  ;;  %v1936_v7 = vadd.f32 %v1935_v13, %v3919_v39  ;;  %v351_v39 = vld [vmem:[%s4958_s0 + $0xa88] sm:$0xff] }
 0x39e   :  { %v1816_v45 = vadd.f32 %v1815_v34, %v1328_v42 }
 0x39f   :  { %v2136_v38 = vmax.f32 %v1936_v7, 0.0  ;;  %v481_v7 = vld [vmem:[%s4958_s0 + $0xe98] sm:$0xff] }
 0x3a0   :  { %v2096_v23 = vmax.f32 %v1816_v45, 0.0  ;;  %v842_v32 = vpop.f32.mrf.mxu0  ;;  %v361_v45 = vld [vmem:[%s4958_s0 + $0xad8] sm:$0xff] }
 0x3a1   :  { %v1330_v24 = vpop.f32.mrf.mxu1  ;;  %v843_v6 = vadd.f32 %v4501_v26, %v842_v32  ;;  %1985 = vmatmul.f32.gmra.mxu3 %v472_v48  ;;  %2293 = vst [vmem:[%s4960_s3 + $0x438] sm:$0xff] %v2136_v38  ;;  %v359_v32 = vld [vmem:[%s4958_s0 + $0xac8] sm:$0xff] }
 0x3a2   :  { %2253 = vst [vmem:[%s4960_s3 + $0x2f8] sm:$0xff] %v2096_v23  ;;  %1865 = vmatmul.f32.gmra.mxu2 %v352_v37 }
 0x3a3   :  { %v1331_v10 = vadd.f32 %v1330_v24, %v843_v6  ;;  %889 = vmatmul.f32.gmra.mxu0 %v350_v63 }
 0x3a4   :  { %1377 = vmatmul.f32.gmra.mxu1 %v351_v39  ;;  %v1938_v47 = vpop.f32.mrf.mxu3 }
 0x3a5   :  { %v1818_v60 = vpop.f32.mrf.mxu2  ;;  %v1939_v19 = vadd.f32 %v1938_v47, %v3939_v12  ;;  %v354_v12 = vld [vmem:[%s4958_s0 + $0xaa0] sm:$0xff]  ;;  %v364_v47 = vld [vmem:[%s4958_s0 + $0xaf0] sm:$0xff] }
 0x3a6   :  { %v1819_v14 = vadd.f32 %v1818_v60, %v1331_v10 }
 0x3a7   :  { %v2137_v40 = vmax.f32 %v1939_v19, 0.0 }
 0x3a8   :  { %v2097_v50 = vmax.f32 %v1819_v14, 0.0  ;;  %v845_v59 = vpop.f32.mrf.mxu0  ;;  %v484_v14 = vld [vmem:[%s4958_s0 + $0xeb0] sm:$0xff] }
 0x3a9   :  { %v1333_v3 = vpop.f32.mrf.mxu1  ;;  %v846_v35 = vadd.f32 %v4501_v26, %v845_v59  ;;  %1988 = vmatmul.f32.gmra.mxu3 %v475_v25  ;;  %2294 = vst [vmem:[%s4960_s3 + $0x440] sm:$0xff] %v2137_v40  ;;  %v362_v40 = vld [vmem:[%s4958_s0 + $0xae0] sm:$0xff] }
 0x3aa   :  { %2254 = vst [vmem:[%s4960_s3 + $0x300] sm:$0xff] %v2097_v50  ;;  %1868 = vmatmul.f32.gmra.mxu2 %v355_v46 }
 0x3ab   :  { %v1334_v21 = vadd.f32 %v1333_v3, %v846_v35  ;;  %892 = vmatmul.f32.gmra.mxu0 %v353_v2 }
 0x3ac   :  { %1380 = vmatmul.f32.gmra.mxu1 %v354_v12  ;;  %v1941_v0 = vpop.f32.mrf.mxu3 }
 0x3ad   :  { %v1821_v49 = vpop.f32.mrf.mxu2  ;;  %v1942_v61 = vadd.f32 %v1941_v0, %v3964_v44  ;;  %v357_v44 = vld [vmem:[%s4958_s0 + $0xab8] sm:$0xff] }
 0x3ae   :  { %v1822_v53 = vadd.f32 %v1821_v49, %v1334_v21  ;;  %v367_v49 = vld [vmem:[%s4958_s0 + $0xb08] sm:$0xff] }
 0x3af   :  { %v2138_v28 = vmax.f32 %v1942_v61, 0.0 }
 0x3b0   :  { %v2098_v33 = vmax.f32 %v1822_v53, 0.0  ;;  %v848_v4 = vpop.f32.mrf.mxu0 }
 0x3b1   :  { %v1336_v18 = vpop.f32.mrf.mxu1  ;;  %v849_v43 = vadd.f32 %v4501_v26, %v848_v4  ;;  %1991 = vmatmul.f32.gmra.mxu3 %v478_v52  ;;  %2295 = vst [vmem:[%s4960_s3 + $0x448] sm:$0xff] %v2138_v28  ;;  %v365_v52 = vld [vmem:[%s4958_s0 + $0xaf8] sm:$0xff] }
 0x3b2   :  { %2255 = vst [vmem:[%s4960_s3 + $0x308] sm:$0xff] %v2098_v33  ;;  %1871 = vmatmul.f32.gmra.mxu2 %v358_v56  ;;  %v366_v33 = vld [vmem:[%s4958_s0 + $0xb00] sm:$0xff] }
 0x3b3   :  { %v1337_v11 = vadd.f32 %v1336_v18, %v849_v43  ;;  %895 = vmatmul.f32.gmra.mxu0 %v356_v31 }
 0x3b4   :  { %1383 = vmatmul.f32.gmra.mxu1 %v357_v44  ;;  %v1944_v42 = vpop.f32.mrf.mxu3 }
 0x3b5   :  { %v1824_v9 = vpop.f32.mrf.mxu2  ;;  %v1945_v13 = vadd.f32 %v1944_v42, %v3984_v15  ;;  %v360_v15 = vld [vmem:[%s4958_s0 + $0xad0] sm:$0xff] }
 0x3b6   :  { %v1825_v34 = vadd.f32 %v1824_v9, %v1337_v11 }
 0x3b7   :  { %v2139_v48 = vmax.f32 %v1945_v13, 0.0 }
 0x3b8   :  { %v2099_v37 = vmax.f32 %v1825_v34, 0.0  ;;  %v851_v23 = vpop.f32.mrf.mxu0 }
 0x3b9   :  { %v1339_v38 = vpop.f32.mrf.mxu1  ;;  %v852_v24 = vadd.f32 %v4501_v26, %v851_v23  ;;  %1994 = vmatmul.f32.gmra.mxu3 %v481_v7  ;;  %2296 = vst [vmem:[%s4960_s3 + $0x450] sm:$0xff] %v2139_v48 }
 0x3ba   :  { %2256 = vst [vmem:[%s4960_s3 + $0x310] sm:$0xff] %v2099_v37  ;;  %1874 = vmatmul.f32.gmra.mxu2 %v361_v45 }
 0x3bb   :  { %v1340_v63 = vadd.f32 %v1339_v38, %v852_v24  ;;  %898 = vmatmul.f32.gmra.mxu0 %v359_v32 }
 0x3bc   :  { %1386 = vmatmul.f32.gmra.mxu1 %v360_v15  ;;  %v1947_v6 = vpop.f32.mrf.mxu3 }
 0x3bd   :  { %v1827_v39 = vpop.f32.mrf.mxu2  ;;  %v1948_v60 = vadd.f32 %v1947_v6, %v4004_v55  ;;  %v363_v55 = vld [vmem:[%s4958_s0 + $0xae8] sm:$0xff] }
 0x3be   :  { %v1828_v10 = vadd.f32 %v1827_v39, %v1340_v63 }
 0x3bf   :  { %v2140_v46 = vmax.f32 %v1948_v60, 0.0 }
 0x3c0   :  { %v2100_v19 = vmax.f32 %v1828_v10, 0.0  ;;  %v854_v25 = vpop.f32.mrf.mxu0 }
 0x3c1   :  { %v1342_v50 = vpop.f32.mrf.mxu1  ;;  %v855_v59 = vadd.f32 %v4501_v26, %v854_v25  ;;  %1997 = vmatmul.f32.gmra.mxu3 %v484_v14  ;;  %2297 = vst [vmem:[%s4960_s3 + $0x458] sm:$0xff] %v2140_v46 }
 0x3c2   :  { %2257 = vst [vmem:[%s4960_s3 + $0x318] sm:$0xff] %v2100_v19  ;;  %1877 = vmatmul.f32.gmra.mxu2 %v364_v47 }
 0x3c3   :  { %v1343_v3 = vadd.f32 %v1342_v50, %v855_v59  ;;  %901 = vmatmul.f32.gmra.mxu0 %v362_v40 }
 0x3c4   :  { %1389 = vmatmul.f32.gmra.mxu1 %v363_v55  ;;  %v1950_v12 = vpop.f32.mrf.mxu3 }
 0x3c5   :  { %v1830_v2 = vpop.f32.mrf.mxu2  ;;  %v1951_v21 = vadd.f32 %v1950_v12, %v4024_v27 }
 0x3c6   :  { %v1831_v35 = vadd.f32 %v1830_v2, %v1343_v3 }
 0x3c7   :  { %v2141_v53 = vmax.f32 %v1951_v21, 0.0 }
 0x3c8   :  { %v2101_v0 = vmax.f32 %v1831_v35, 0.0  ;;  %v857_v61 = vpop.f32.mrf.mxu0 }
 0x3c9   :  { %v1345_v56 = vpop.f32.mrf.mxu1  ;;  %v858_v27 = vadd.f32 %v4501_v26, %v857_v61  ;;  %2298 = vst [vmem:[%s4960_s3 + $0x460] sm:$0xff] %v2141_v53 }
 0x3ca   :  { %2258 = vst [vmem:[%s4960_s3 + $0x320] sm:$0xff] %v2101_v0  ;;  %1880 = vmatmul.f32.gmra.mxu2 %v367_v49 }
 0x3cb   :  { %v1346_v28 = vadd.f32 %v1345_v56, %v858_v27  ;;  %904 = vmatmul.f32.gmra.mxu0 %v365_v52 }
 0x3cc   :  { %1392 = vmatmul.f32.gmra.mxu1 %v366_v33  ;;  %v1953_v18 = vpop.f32.mrf.mxu3 }
 0x3cd   :  { %v1833_v4 = vpop.f32.mrf.mxu2  ;;  %v1954_v44 = vadd.f32 %v1953_v18, %v4044_v62 }
 0x3ce   :  { %v1834_v31 = vadd.f32 %v1833_v4, %v1346_v28 }
 0x3cf   :  { %v2142_v11 = vmax.f32 %v1954_v44, 0.0 }
 0x3d0   :  { %v2102_v43 = vmax.f32 %v1834_v31, 0.0  ;;  %v860_v9 = vpop.f32.mrf.mxu0 }
 0x3d1   :  { %v1348_v42 = vpop.f32.mrf.mxu1  ;;  %v861_v34 = vadd.f32 %v4501_v26, %v860_v9  ;;  %2299 = vst [vmem:[%s4960_s3 + $0x468] sm:$0xff] %v2142_v11 }
 0x3d2   :  { %2259 = vst [vmem:[%s4960_s3 + $0x328] sm:$0xff] %v2102_v43 }
 0x3d3   :  { %v1349_v13 = vadd.f32 %v1348_v42, %v861_v34 }
 0x3d4   :  { %v1956_v7 = vpop.f32.mrf.mxu3 }
 0x3d5   :  { %v1836_v45 = vpop.f32.mrf.mxu2  ;;  %v1957_v62 = vadd.f32 %v1956_v7, %v4064_v57 }
 0x3d6   :  { %v1837_v37 = vadd.f32 %v1836_v45, %v1349_v13 }
 0x3d7   :  { %v2143_v23 = vmax.f32 %v1957_v62, 0.0 }
 0x3d8   :  { %v2103_v48 = vmax.f32 %v1837_v37, 0.0  ;;  %v863_v38 = vpop.f32.mrf.mxu0 }
 0x3d9   :  { %v1351_v32 = vpop.f32.mrf.mxu1  ;;  %v864_v15 = vadd.f32 %v4501_v26, %v863_v38  ;;  %2300 = vst [vmem:[%s4960_s3 + $0x470] sm:$0xff] %v2143_v23 }
 0x3da   :  { %2260 = vst [vmem:[%s4960_s3 + $0x330] sm:$0xff] %v2103_v48 }
 0x3db   :  { %v1352_v24 = vadd.f32 %v1351_v32, %v864_v15 }
 0x3dc   :  { %v1959_v39 = vpop.f32.mrf.mxu3 }
 0x3dd   :  { %v1839_v63 = vpop.f32.mrf.mxu2  ;;  %v1960_v57 = vadd.f32 %v1959_v39, %v4084_v8 }
 0x3de   :  { %v1840_v6 = vadd.f32 %v1839_v63, %v1352_v24 }
 0x3df   :  { %v2144_v60 = vmax.f32 %v1960_v57, 0.0 }
 0x3e0   :  { %v2104_v10 = vmax.f32 %v1840_v6, 0.0  ;;  %v866_v47 = vpop.f32.mrf.mxu0 }
 0x3e1   :  { %v1354_v14 = vpop.f32.mrf.mxu1  ;;  %v867_v19 = vadd.f32 %v4501_v26, %v866_v47  ;;  %2301 = vst [vmem:[%s4960_s3 + $0x478] sm:$0xff] %v2144_v60 }
 0x3e2   :  { %2261 = vst [vmem:[%s4960_s3 + $0x338] sm:$0xff] %v2104_v10 }
 0x3e3   :  { %v1355_v46 = vadd.f32 %v1354_v14, %v867_v19 }
 0x3e4   :  { %v1962_v50 = vpop.f32.mrf.mxu3 }
 0x3e5   :  { %v1842_v25 = vpop.f32.mrf.mxu2  ;;  %v1963_v8 = vadd.f32 %v1962_v50, %v4104_v17 }
 0x3e6   :  { %v1843_v40 = vadd.f32 %v1842_v25, %v1355_v46 }
 0x3e7   :  { %v2145_v59 = vmax.f32 %v1963_v8, 0.0 }
 0x3e8   :  { %v2105_v55 = vmax.f32 %v1843_v40, 0.0  ;;  %v869_v3 = vpop.f32.mrf.mxu0 }
 0x3e9   :  { %v1357_v2 = vpop.f32.mrf.mxu1  ;;  %v870_v12 = vadd.f32 %v4501_v26, %v869_v3  ;;  %2302 = vst [vmem:[%s4960_s3 + $0x480] sm:$0xff] %v2145_v59 }
 0x3ea   :  { %2262 = vst [vmem:[%s4960_s3 + $0x340] sm:$0xff] %v2105_v55 }
 0x3eb   :  { %v1358_v35 = vadd.f32 %v1357_v2, %v870_v12 }
 0x3ec   :  { %v1965_v49 = vpop.f32.mrf.mxu3 }
 0x3ed   :  { %v1845_v21 = vpop.f32.mrf.mxu2  ;;  %v1966_v17 = vadd.f32 %v1965_v49, %v4124_v29 }
 0x3ee   :  { %v1846_v0 = vadd.f32 %v1845_v21, %v1358_v35 }
 0x3ef   :  { %v2146_v61 = vmax.f32 %v1966_v17, 0.0 }
 0x3f0   :  { %v2106_v53 = vmax.f32 %v1846_v0, 0.0  ;;  %v872_v56 = vpop.f32.mrf.mxu0 }
 0x3f1   :  { %v1360_v52 = vpop.f32.mrf.mxu1  ;;  %v873_v33 = vadd.f32 %v4501_v26, %v872_v56  ;;  %2303 = vst [vmem:[%s4960_s3 + $0x488] sm:$0xff] %v2146_v61 }
 0x3f2   :  { %2263 = vst [vmem:[%s4960_s3 + $0x348] sm:$0xff] %v2106_v53 }
 0x3f3   :  { %v1361_v27 = vadd.f32 %v1360_v52, %v873_v33 }
 0x3f4   :  { %v1968_v4 = vpop.f32.mrf.mxu3 }
 0x3f5   :  { %v1848_v28 = vpop.f32.mrf.mxu2  ;;  %v1969_v29 = vadd.f32 %v1968_v4, %v4144_v41 }
 0x3f6   :  { %v1849_v18 = vadd.f32 %v1848_v28, %v1361_v27 }
 0x3f7   :  { %v2147_v44 = vmax.f32 %v1969_v29, 0.0 }
 0x3f8   :  { %v2107_v31 = vmax.f32 %v1849_v18, 0.0  ;;  %v875_v43 = vpop.f32.mrf.mxu0 }
 0x3f9   :  { %v1363_v11 = vpop.f32.mrf.mxu1  ;;  %v876_v9 = vadd.f32 %v4501_v26, %v875_v43  ;;  %2304 = vst [vmem:[%s4960_s3 + $0x490] sm:$0xff] %v2147_v44 }
 0x3fa   :  { %2264 = vst [vmem:[%s4960_s3 + $0x350] sm:$0xff] %v2107_v31 }
 0x3fb   :  { %v1364_v42 = vadd.f32 %v1363_v11, %v876_v9 }
 0x3fc   :  { %v1971_v13 = vpop.f32.mrf.mxu3 }
 0x3fd   :  { %v1851_v34 = vpop.f32.mrf.mxu2  ;;  %v1972_v41 = vadd.f32 %v1971_v13, %v4164_v54 }
 0x3fe   :  { %v1852_v45 = vadd.f32 %v1851_v34, %v1364_v42 }
 0x3ff   :  { %v2148_v37 = vmax.f32 %v1972_v41, 0.0 }
 0x400   :  { %v2108_v7 = vmax.f32 %v1852_v45, 0.0  ;;  %v878_v62 = vpop.f32.mrf.mxu0 }
 0x401   :  { %v1366_v48 = vpop.f32.mrf.mxu1  ;;  %v879_v23 = vadd.f32 %v4501_v26, %v878_v62  ;;  %2305 = vst [vmem:[%s4960_s3 + $0x498] sm:$0xff] %v2148_v37 }
 0x402   :  { %2265 = vst [vmem:[%s4960_s3 + $0x358] sm:$0xff] %v2108_v7 }
 0x403   :  { %v1367_v38 = vadd.f32 %v1366_v48, %v879_v23 }
 0x404   :  { %v1974_v15 = vpop.f32.mrf.mxu3 }
 0x405   :  { %v1854_v32 = vpop.f32.mrf.mxu2  ;;  %v1975_v54 = vadd.f32 %v1974_v15, %v4184_v5 }
 0x406   :  { %v1855_v24 = vadd.f32 %v1854_v32, %v1367_v38 }
 0x407   :  { %v2149_v39 = vmax.f32 %v1975_v54, 0.0 }
 0x408   :  { %v2109_v63 = vmax.f32 %v1855_v24, 0.0  ;;  %v881_v6 = vpop.f32.mrf.mxu0 }
 0x409   :  { %v1369_v57 = vpop.f32.mrf.mxu1  ;;  %v882_v10 = vadd.f32 %v4501_v26, %v881_v6  ;;  %2306 = vst [vmem:[%s4960_s3 + $0x4a0] sm:$0xff] %v2149_v39 }
 0x40a   :  { %2266 = vst [vmem:[%s4960_s3 + $0x360] sm:$0xff] %v2109_v63 }
 0x40b   :  { %v1370_v60 = vadd.f32 %v1369_v57, %v882_v10 }
 0x40c   :  { %v1977_v14 = vpop.f32.mrf.mxu3 }
 0x40d   :  { %v1857_v47 = vpop.f32.mrf.mxu2  ;;  %v1978_v5 = vadd.f32 %v1977_v14, %v4204_v16 }
 0x40e   :  { %v1858_v19 = vadd.f32 %v1857_v47, %v1370_v60 }
 0x40f   :  { %v2150_v25 = vmax.f32 %v1978_v5, 0.0 }
 0x410   :  { %v2110_v46 = vmax.f32 %v1858_v19, 0.0  ;;  %v884_v50 = vpop.f32.mrf.mxu0 }
 0x411   :  { %v1372_v40 = vpop.f32.mrf.mxu1  ;;  %v885_v8 = vadd.f32 %v4501_v26, %v884_v50  ;;  %2307 = vst [vmem:[%s4960_s3 + $0x4a8] sm:$0xff] %v2150_v25 }
 0x412   :  { %2267 = vst [vmem:[%s4960_s3 + $0x368] sm:$0xff] %v2110_v46 }
 0x413   :  { %v1373_v55 = vadd.f32 %v1372_v40, %v885_v8 }
 0x414   :  { %v1980_v3 = vpop.f32.mrf.mxu3 }
 0x415   :  { %v1860_v59 = vpop.f32.mrf.mxu2  ;;  %v1981_v16 = vadd.f32 %v1980_v3, %v4224_v30 }
 0x416   :  { %v1861_v2 = vadd.f32 %v1860_v59, %v1373_v55 }
 0x417   :  { %v2151_v35 = vmax.f32 %v1981_v16, 0.0 }
 0x418   :  { %v2111_v12 = vmax.f32 %v1861_v2, 0.0  ;;  %v887_v21 = vpop.f32.mrf.mxu0 }
 0x419   :  { %v1375_v49 = vpop.f32.mrf.mxu1  ;;  %v888_v0 = vadd.f32 %v4501_v26, %v887_v21  ;;  %2308 = vst [vmem:[%s4960_s3 + $0x4b0] sm:$0xff] %v2151_v35 }
 0x41a   :  { %2268 = vst [vmem:[%s4960_s3 + $0x370] sm:$0xff] %v2111_v12 }
 0x41b   :  { %v1376_v17 = vadd.f32 %v1375_v49, %v888_v0 }
 0x41c   :  { %v1983_v61 = vpop.f32.mrf.mxu3 }
 0x41d   :  { %v1863_v53 = vpop.f32.mrf.mxu2  ;;  %v1984_v30 = vadd.f32 %v1983_v61, %v4244_v20 }
 0x41e   :  { %v1864_v56 = vadd.f32 %v1863_v53, %v1376_v17 }
 0x41f   :  { %v2152_v33 = vmax.f32 %v1984_v30, 0.0 }
 0x420   :  { %v2112_v52 = vmax.f32 %v1864_v56, 0.0  ;;  %v890_v27 = vpop.f32.mrf.mxu0 }
 0x421   :  { %v1378_v28 = vpop.f32.mrf.mxu1  ;;  %v891_v4 = vadd.f32 %v4501_v26, %v890_v27  ;;  %2309 = vst [vmem:[%s4960_s3 + $0x4b8] sm:$0xff] %v2152_v33 }
 0x422   :  { %2269 = vst [vmem:[%s4960_s3 + $0x378] sm:$0xff] %v2112_v52 }
 0x423   :  { %v1379_v18 = vadd.f32 %v1378_v28, %v891_v4 }
 0x424   :  { %v1986_v31 = vpop.f32.mrf.mxu3 }
 0x425   :  { %v1866_v29 = vpop.f32.mrf.mxu2  ;;  %v1987_v20 = vadd.f32 %v1986_v31, %v4264_v58 }
 0x426   :  { %v1867_v44 = vadd.f32 %v1866_v29, %v1379_v18 }
 0x427   :  { %v2153_v11 = vmax.f32 %v1987_v20, 0.0 }
 0x428   :  { %v2113_v43 = vmax.f32 %v1867_v44, 0.0  ;;  %v893_v9 = vpop.f32.mrf.mxu0 }
 0x429   :  { %v1381_v42 = vpop.f32.mrf.mxu1  ;;  %v894_v34 = vadd.f32 %v4501_v26, %v893_v9  ;;  %2310 = vst [vmem:[%s4960_s3 + $0x4c0] sm:$0xff] %v2153_v11 }
 0x42a   :  { %2270 = vst [vmem:[%s4960_s3 + $0x380] sm:$0xff] %v2113_v43 }
 0x42b   :  { %v1382_v13 = vadd.f32 %v1381_v42, %v894_v34 }
 0x42c   :  { %v1989_v41 = vpop.f32.mrf.mxu3 }
 0x42d   :  { %v1869_v45 = vpop.f32.mrf.mxu2  ;;  %v1990_v58 = vadd.f32 %v1989_v41, %v4284_v1 }
 0x42e   :  { %v1870_v7 = vadd.f32 %v1869_v45, %v1382_v13 }
 0x42f   :  { %v2154_v62 = vmax.f32 %v1990_v58, 0.0 }
 0x430   :  { %v2114_v37 = vmax.f32 %v1870_v7, 0.0  ;;  %v896_v48 = vpop.f32.mrf.mxu0 }
 0x431   :  { %v1384_v23 = vpop.f32.mrf.mxu1  ;;  %v897_v38 = vadd.f32 %v4501_v26, %v896_v48  ;;  %2311 = vst [vmem:[%s4960_s3 + $0x4c8] sm:$0xff] %v2154_v62 }
 0x432   :  { %2271 = vst [vmem:[%s4960_s3 + $0x388] sm:$0xff] %v2114_v37 }
 0x433   :  { %v1385_v32 = vadd.f32 %v1384_v23, %v897_v38 }
 0x434   :  { %v1992_v24 = vpop.f32.mrf.mxu3 }
 0x435   :  { %v1872_v15 = vpop.f32.mrf.mxu2  ;;  %v1993_v1 = vadd.f32 %v1992_v24, %v4304_v22 }
 0x436   :  { %v1873_v54 = vadd.f32 %v1872_v15, %v1385_v32 }
 0x437   :  { %v2155_v39 = vmax.f32 %v1993_v1, 0.0 }
 0x438   :  { %v2115_v63 = vmax.f32 %v1873_v54, 0.0  ;;  %v899_v6 = vpop.f32.mrf.mxu0 }
 0x439   :  { %v1387_v57 = vpop.f32.mrf.mxu1  ;;  %v900_v10 = vadd.f32 %v4501_v26, %v899_v6  ;;  %2312 = vst [vmem:[%s4960_s3 + $0x4d0] sm:$0xff] %v2155_v39 }
 0x43a   :  { %2272 = vst [vmem:[%s4960_s3 + $0x390] sm:$0xff] %v2115_v63 }
 0x43b   :  { %v1388_v60 = vadd.f32 %v1387_v57, %v900_v10 }
 0x43c   :  { %v1995_v14 = vpop.f32.mrf.mxu3 }
 0x43d   :  { %v1875_v47 = vpop.f32.mrf.mxu2  ;;  %v1996_v22 = vadd.f32 %v1995_v14, %v4324_v36 }
 0x43e   :  { %v1876_v19 = vadd.f32 %v1875_v47, %v1388_v60 }
 0x43f   :  { %v2156_v46 = vmax.f32 %v1996_v22, 0.0 }
 0x440   :  { %v2116_v5 = vmax.f32 %v1876_v19, 0.0  ;;  %v902_v25 = vpop.f32.mrf.mxu0 }
 0x441   :  { %v1390_v50 = vpop.f32.mrf.mxu1  ;;  %v903_v40 = vadd.f32 %v4501_v26, %v902_v25  ;;  %2313 = vst [vmem:[%s4960_s3 + $0x4d8] sm:$0xff] %v2156_v46  ;;  %v2371_v26 = vld [vmem:[%s4959_s2] ss:$0 sm:$0xff] }
 0x442   :  { %2273 = vst [vmem:[%s4960_s3 + $0x398] sm:$0xff] %v2116_v5 }
 0x443   :  { %v1391_v8 = vadd.f32 %v1390_v50, %v903_v40 }
 0x444   :  { %v1998_v59 = vpop.f32.mrf.mxu3 }
 0x445   :  { %v1878_v55 = vpop.f32.mrf.mxu2  ;;  %v1999_v36 = vadd.f32 %v1998_v59, %v4344_v51 }
 0x446   :  { %v1879_v3 = vadd.f32 %v1878_v55, %v1391_v8 }
 0x447   :  { %v2157_v16 = vmax.f32 %v1999_v36, 0.0 }
 0x448   :  { %v2117_v2 = vmax.f32 %v1879_v3, 0.0  ;;  %v905_v12 = vpop.f32.mrf.mxu0 }
 0x449   :  { %v1393_v35 = vpop.f32.mrf.mxu1  ;;  %v906_v21 = vadd.f32 %v2371_v26, %v905_v12  ;;  %2314 = vst [vmem:[%s4960_s3 + $0x4e0] sm:$0xff] %v2157_v16 }
 0x44a   :  { %2274 = vst [vmem:[%s4960_s3 + $0x3a0] sm:$0xff] %v2117_v2 }
 0x44b   :  { %v1394_v49 = vadd.f32 %v1393_v35, %v906_v21 }
 0x44d   :  { %v1881_v0 = vpop.f32.mrf.mxu2 }
 0x44e   :  { %v1882_v51 = vadd.f32 %v1881_v0, %v1394_v49 }
 0x450   :  { %v2118_v17 = vmax.f32 %v1882_v51, 0.0 }
 0x452   :  { %2275 = vst [vmem:[%s4960_s3 + $0x3a8] sm:$0xff] %v2118_v17 }

// kernel: stdnet_forward.5
= control target key start
LH: loop header
LB: loop body
LE: loop exit
PB: predicated region body
PF: predicated region fallthrough
CT: control target
= control target key end

     0   :  { %s3503_s18 = smov 0   ;;  %s4211_s0 = inlined_call_operand.vmem [shape: f32[8,13440], index: 0, kind: input, shape index: {}]   ;;  %s4212_s1 = inlined_call_operand.vmem [shape: bf16[13440,256], index: 1, kind: input, shape index: {}]   ;;  %s4213_s2 = inlined_call_operand.vmem [shape: f32[1,256], index: 2, kind: input, shape index: {}]   ;;  %s4214_s3 = inlined_call_operand.vmem [shape: f32[256,128], index: 3, kind: input, shape index: {}]   ;;  %s4215_s4 = inlined_call_operand.vmem [shape: f32[1,128], index: 4, kind: input, shape index: {}]   ;;  %s4216_s5 = inlined_call_operand.vmem [shape: f32[8,128], index: 5, kind: output, shape index: {}]  }
   0x1 LB: > { %s3509_s19 = sadd.s32 4294967295, %s3470_s18   ;;  %p2245_p0 = scmp.ge.s32.totalorder %s3470_s18, 1  ;;  %s3470_s18 = sphi %s3503_s18, %s15_s18  }
   0x2   : > { %p195_p1 = scmp.lt.s32.totalorder %s3470_s18, 8 }
   0x4   : > { %p196_p2 = pnand %p2245_p0, %p195_p1 }
   0x5   : > { %s224_s20 = smul.u32 (!%p196_p2), 15, %s3509_s19  ;;  %p2249_p5 = scmp.ne.s32.totalorder (!%p196_p2), %s3509_s19, 0 }
   0x6   : > { %199 = sbr.rel (%p196_p2) target bundleno = 578 (0x242), region = 40 }
   0x7   : > { %s230_s21 = smul.u32 (!%p196_p2), 240, %s3509_s19  ;;  %p225_p3 = scmp.lt.s32.totalorder (!%p196_p2), %s224_s20, 104 }
   0x9   : > { %p231_p4 = scmp.lt.s32.totalorder (!%p196_p2), %s230_s21, 1679 }
   0xb   : > { %s4218_s20 = smov (!%p225_p3, %s224_s20), 104  ;;  %s4220_s21 = smov (!%p231_p4, %s230_s21), 1679 }
   0xc   : > { %s2246_s22 = sshll.u32 %s4218_s20, 3  ;;  %s3213_s26 = sshll.u32 %s4220_s21, 3 }
   0xd   : > { %s3518_s25 = scalar_lea.vmem %s4211_s0, %s2246_s22  ;;  %s3523_s29 = scalar_lea.vmem %s4212_s1, %s3213_s26 }
   0xe   : > { %240 = sbr.rel (%p2249_p5) target bundleno = 22 (0x16), region = 44 }
  0x13   : > { %v3472_v0 = vmov 0.0  }
  0x14   : > { %241 = vst [vmem:[#allocation2] sm:$0xff] %v3472_v0 }
  0x15   : > { %242 = vst [vmem:[#allocation2 + $0x8] sm:$0xff] %v3472_v0 }
  0x16 PF: > { %v2308_v1 = vld [vmem:[%s3523_s29 + $0x70] sm:$0xf]  ;;  %v3229_v2 = vld [vmem:[%s3523_s29 + $0x74] sm:$0xf0]  ;;  %v2300_v12 = vld [vmem:[%s3523_s29 + $0x60] sm:$0xf] }
  0x17   : > { %v2372_v3 = vld [vmem:[%s3523_s29 + $0xf0] sm:$0xf]  ;;  %v2309_v4 = vor.u32 %v3229_v2, %v2308_v1  ;;  %v3245_v5 = vld [vmem:[%s3523_s29 + $0xf4] sm:$0xf0]  ;;  %v3227_v14 = vld [vmem:[%s3523_s29 + $0x64] sm:$0xf0] }
  0x18   : > { %v2436_v6 = vld [vmem:[%s3523_s29 + $0x170] sm:$0xf]  ;;  %v3261_v7 = vld [vmem:[%s3523_s29 + $0x174] sm:$0xf0]  ;;  %v2373_v8 = vor.u32 %v3245_v5, %v2372_v3  ;;  %v2364_v15 = vld [vmem:[%s3523_s29 + $0xe0] sm:$0xf]  ;;  %v2301_v17 = vor.u32 %v3227_v14, %v2300_v12 }
  0x19   : > { %v2437_v9 = vor.u32 %v3261_v7, %v2436_v6  ;;  %v2500_v10 = vld [vmem:[%s3523_s29 + $0x1f0] sm:$0xf]  ;;  %v3277_v11 = vld [vmem:[%s3523_s29 + $0x1f4] sm:$0xf0]  ;;  %1715 = vmatpush.bf16.msra.mxu0 %v2309_v4  ;;  %v3243_v16 = vld [vmem:[%s3523_s29 + $0xe4] sm:$0xf0] }
  0x1a   : > { %v2501_v13 = vor.u32 %v3277_v11, %v2500_v10  ;;  %1728 = vmatpush.bf16.msra.mxu1 %v2373_v8  ;;  %v2365_v18 = vor.u32 %v3243_v16, %v2364_v15  ;;  %v2428_v19 = vld [vmem:[%s3523_s29 + $0x160] sm:$0xf]  ;;  %v3259_v20 = vld [vmem:[%s3523_s29 + $0x164] sm:$0xf0]  ;;  %v2292_v24 = vld [vmem:[%s3523_s29 + $0x50] sm:$0xf] }
  0x1b   : > { %1741 = vmatpush.bf16.msra.mxu2 %v2437_v9  ;;  %v2492_v21 = vld [vmem:[%s3523_s29 + $0x1e0] sm:$0xf]  ;;  %v2429_v22 = vor.u32 %v3259_v20, %v2428_v19  ;;  %v3275_v23 = vld [vmem:[%s3523_s29 + $0x1e4] sm:$0xf0]  ;;  %v3225_v25 = vld [vmem:[%s3523_s29 + $0x54] sm:$0xf0] }
  0x1c   : > { %1754 = vmatpush.bf16.msra.mxu3 %v2501_v13  ;;  %v2493_v26 = vor.u32 %v3275_v23, %v2492_v21  ;;  %v2356_v27 = vld [vmem:[%s3523_s29 + $0xd0] sm:$0xf]  ;;  %v3241_v28 = vld [vmem:[%s3523_s29 + $0xd4] sm:$0xf0]  ;;  %v2293_v30 = vor.u32 %v3225_v25, %v2292_v24  ;;  %v2284_v36 = vld [vmem:[%s3523_s29 + $0x40] sm:$0xf] }
  0x1d   : > { %v2420_v29 = vld [vmem:[%s3523_s29 + $0x150] sm:$0xf]  ;;  %1716 = vmatpush.bf16.msra.mxu0 %v2301_v17  ;;  %v3257_v31 = vld [vmem:[%s3523_s29 + $0x154] sm:$0xf0]  ;;  %v2357_v34 = vor.u32 %v3241_v28, %v2356_v27  ;;  %v3223_v37 = vld [vmem:[%s3523_s29 + $0x44] sm:$0xf0] }
  0x1e   : > { %v2484_v32 = vld [vmem:[%s3523_s29 + $0x1d0] sm:$0xf]  ;;  %v3273_v33 = vld [vmem:[%s3523_s29 + $0x1d4] sm:$0xf0]  ;;  %1729 = vmatpush.bf16.msra.mxu1 %v2365_v18  ;;  %v2421_v35 = vor.u32 %v3257_v31, %v2420_v29  ;;  %v2348_v38 = vld [vmem:[%s3523_s29 + $0xc0] sm:$0xf]  ;;  %v2285_v45 = vor.u32 %v3223_v37, %v2284_v36 }
  0x1f   : > { %1742 = vmatpush.bf16.msra.mxu2 %v2429_v22  ;;  %v2485_v39 = vor.u32 %v3273_v33, %v2484_v32  ;;  %v3239_v40 = vld [vmem:[%s3523_s29 + $0xc4] sm:$0xf0]  ;;  %v2412_v41 = vld [vmem:[%s3523_s29 + $0x140] sm:$0xf]  ;;  %v2276_v48 = vld [vmem:[%s3523_s29 + $0x30] sm:$0xf] }
  0x20   : > { %1755 = vmatpush.bf16.msra.mxu3 %v2493_v26  ;;  %v3255_v42 = vld [vmem:[%s3523_s29 + $0x144] sm:$0xf0]  ;;  %v2476_v43 = vld [vmem:[%s3523_s29 + $0x1c0] sm:$0xf]  ;;  %v2349_v46 = vor.u32 %v3239_v40, %v2348_v38  ;;  %v3221_v49 = vld [vmem:[%s3523_s29 + $0x34] sm:$0xf0] }
  0x21   : > { %v3271_v44 = vld [vmem:[%s3523_s29 + $0x1c4] sm:$0xf0]  ;;  %1717 = vmatpush.bf16.msra.mxu0 %v2293_v30  ;;  %v2413_v47 = vor.u32 %v3255_v42, %v2412_v41  ;;  %v2340_v50 = vld [vmem:[%s3523_s29 + $0xb0] sm:$0xf]  ;;  %v3237_v52 = vld [vmem:[%s3523_s29 + $0xb4] sm:$0xf0]  ;;  %v2277_v57 = vor.u32 %v3221_v49, %v2276_v48 }
  0x22   : > { %1730 = vmatpush.bf16.msra.mxu1 %v2357_v34  ;;  %v2477_v51 = vor.u32 %v3271_v44, %v2476_v43  ;;  %v2404_v53 = vld [vmem:[%s3523_s29 + $0x130] sm:$0xf]  ;;  %v3253_v54 = vld [vmem:[%s3523_s29 + $0x134] sm:$0xf0]  ;;  %v2341_v58 = vor.u32 %v3237_v52, %v2340_v50  ;;  %v2268_v60 = vld [vmem:[%s3523_s29 + $0x20] sm:$0xf] }
  0x23   : > { %1743 = vmatpush.bf16.msra.mxu2 %v2421_v35  ;;  %v2468_v55 = vld [vmem:[%s3523_s29 + $0x1b0] sm:$0xf]  ;;  %v3269_v56 = vld [vmem:[%s3523_s29 + $0x1b4] sm:$0xf0]  ;;  %v2405_v59 = vor.u32 %v3253_v54, %v2404_v53  ;;  %v3219_v61 = vld [vmem:[%s3523_s29 + $0x24] sm:$0xf0] }
  0x24   : > { %1756 = vmatpush.bf16.msra.mxu3 %v2485_v39  ;;  %v2332_v62 = vld [vmem:[%s3523_s29 + $0xa0] sm:$0xf]  ;;  %v2469_v63 = vor.u32 %v3269_v56, %v2468_v55  ;;  %v3235_v0 = vld [vmem:[%s3523_s29 + $0xa4] sm:$0xf0]  ;;  %v2269_v5 = vor.u32 %v3219_v61, %v2268_v60  ;;  %v2260_v8 = vld [vmem:[%s3523_s29 + $0x10] sm:$0xf] }
  0x25   : > { %1718 = vmatpush.bf16.msra.mxu0 %v2285_v45  ;;  %v2396_v1 = vld [vmem:[%s3523_s29 + $0x120] sm:$0xf]  ;;  %v3251_v2 = vld [vmem:[%s3523_s29 + $0x124] sm:$0xf0]  ;;  %v2333_v6 = vor.u32 %v3235_v0, %v2332_v62  ;;  %v3217_v9 = vld [vmem:[%s3523_s29 + $0x14] sm:$0xf0] }
  0x26   : > { %1731 = vmatpush.bf16.msra.mxu1 %v2349_v46  ;;  %v2460_v3 = vld [vmem:[%s3523_s29 + $0x1a0] sm:$0xf]  ;;  %v3267_v4 = vld [vmem:[%s3523_s29 + $0x1a4] sm:$0xf0]  ;;  %v2397_v7 = vor.u32 %v3251_v2, %v2396_v1  ;;  %v2324_v10 = vld [vmem:[%s3523_s29 + $0x90] sm:$0xf]  ;;  %v2261_v17 = vor.u32 %v3217_v9, %v2260_v8 }
  0x27   : > { %1744 = vmatpush.bf16.msra.mxu2 %v2413_v47  ;;  %v2461_v11 = vor.u32 %v3267_v4, %v2460_v3  ;;  %v3233_v12 = vld [vmem:[%s3523_s29 + $0x94] sm:$0xf0]  ;;  %v2388_v13 = vld [vmem:[%s3523_s29 + $0x110] sm:$0xf]  ;;  %v2252_v18 = vld [vmem:[%s3523_s29] sm:$0xf] }
  0x28   : > { %1757 = vmatpush.bf16.msra.mxu3 %v2477_v51  ;;  %v3249_v14 = vld [vmem:[%s3523_s29 + $0x114] sm:$0xf0]  ;;  %v2452_v15 = vld [vmem:[%s3523_s29 + $0x190] sm:$0xf]  ;;  %v3215_v19 = vld [vmem:[%s3523_s29 + $0x4] sm:$0xf0]  ;;  %v2325_v20 = vor.u32 %v3233_v12, %v2324_v10 }
  0x29   : > { %1719 = vmatpush.bf16.msra.mxu0 %v2277_v57  ;;  %v3265_v16 = vld [vmem:[%s3523_s29 + $0x194] sm:$0xf0]  ;;  %v2389_v21 = vor.u32 %v3249_v14, %v2388_v13  ;;  %v2316_v22 = vld [vmem:[%s3523_s29 + $0x80] sm:$0xf]  ;;  %v3231_v23 = vld [vmem:[%s3523_s29 + $0x84] sm:$0xf0]  ;;  %v2253_v32 = vor.u32 %v3215_v19, %v2252_v18 }
  0x2a   : > { %1732 = vmatpush.bf16.msra.mxu1 %v2341_v58  ;;  %v2380_v24 = vld [vmem:[%s3523_s29 + $0x100] sm:$0xf]  ;;  %v2453_v25 = vor.u32 %v3265_v16, %v2452_v15  ;;  %v3247_v26 = vld [vmem:[%s3523_s29 + $0x104] sm:$0xf0]  ;;  %v2564_v27 = vld [vmem:[%s3523_s29 + $0x270] sm:$0xf]  ;;  %v2317_v36 = vor.u32 %v3231_v23, %v2316_v22 }
  0x2b   : > { %1745 = vmatpush.bf16.msra.mxu2 %v2405_v59  ;;  %v3293_v28 = vld [vmem:[%s3523_s29 + $0x274] sm:$0xf0]  ;;  %v2628_v29 = vld [vmem:[%s3523_s29 + $0x2f0] sm:$0xf]  ;;  %v2444_v34 = vld [vmem:[%s3523_s29 + $0x180] sm:$0xf]  ;;  %v2381_v37 = vor.u32 %v3247_v26, %v2380_v24 }
  0x2c   : > { %1758 = vmatpush.bf16.msra.mxu3 %v2469_v63  ;;  %v3309_v30 = vld [vmem:[%s3523_s29 + $0x2f4] sm:$0xf0]  ;;  %v2692_v31 = vld [vmem:[%s3523_s29 + $0x370] sm:$0xf]  ;;  %v3263_v35 = vld [vmem:[%s3523_s29 + $0x184] sm:$0xf0]  ;;  %v2565_v40 = vor.u32 %v3293_v28, %v2564_v27 }
  0x2d   : > { %1720 = vmatpush.bf16.msra.mxu0 %v2269_v5  ;;  %v3325_v33 = vld [vmem:[%s3523_s29 + $0x374] sm:$0xf0]  ;;  %v2756_v38 = vld [vmem:[%s3523_s29 + $0x3f0] sm:$0xf]  ;;  %v2629_v41 = vor.u32 %v3309_v30, %v2628_v29  ;;  %v2556_v42 = vld [vmem:[%s3523_s29 + $0x260] sm:$0xf]  ;;  %v2445_v44 = vor.u32 %v3263_v35, %v2444_v34 }
  0x2e   : > { %1733 = vmatpush.bf16.msra.mxu1 %v2333_v6  ;;  %v3341_v39 = vld [vmem:[%s3523_s29 + $0x3f4] sm:$0xf0]  ;;  %v2693_v43 = vor.u32 %v3325_v33, %v2692_v31  ;;  %v3291_v45 = vld [vmem:[%s3523_s29 + $0x264] sm:$0xf0]  ;;  %v2620_v46 = vld [vmem:[%s3523_s29 + $0x2e0] sm:$0xf] }
  0x2f   : > { %1746 = vmatpush.bf16.msra.mxu2 %v2397_v7  ;;  %v3307_v47 = vld [vmem:[%s3523_s29 + $0x2e4] sm:$0xf0]  ;;  %v2757_v48 = vor.u32 %v3341_v39, %v2756_v38  ;;  %v2684_v49 = vld [vmem:[%s3523_s29 + $0x360] sm:$0xf]  ;;  %v2557_v53 = vor.u32 %v3291_v45, %v2556_v42  ;;  %v2548_v55 = vld [vmem:[%s3523_s29 + $0x250] sm:$0xf] }
  0x30   : > { %1759 = vmatpush.bf16.msra.mxu3 %v2461_v11  ;;  %v3323_v50 = vld [vmem:[%s3523_s29 + $0x364] sm:$0xf0]  ;;  %v2748_v51 = vld [vmem:[%s3523_s29 + $0x3e0] sm:$0xf]  ;;  %v2621_v54 = vor.u32 %v3307_v47, %v2620_v46  ;;  %v3289_v56 = vld [vmem:[%s3523_s29 + $0x254] sm:$0xf0] }
  0x31   : > { %1721 = vmatpush.bf16.msra.mxu0 %v2261_v17  ;;  %v3339_v52 = vld [vmem:[%s3523_s29 + $0x3e4] sm:$0xf0]  ;;  %v2612_v57 = vld [vmem:[%s3523_s29 + $0x2d0] sm:$0xf]  ;;  %v2685_v58 = vor.u32 %v3323_v50, %v2684_v49  ;;  %v3305_v59 = vld [vmem:[%s3523_s29 + $0x2d4] sm:$0xf0]  ;;  %v2549_v7 = vor.u32 %v3289_v56, %v2548_v55 }
  0x32   : > { %1734 = vmatpush.bf16.msra.mxu1 %v2325_v20  ;;  %v2676_v60 = vld [vmem:[%s3523_s29 + $0x350] sm:$0xf]  ;;  %v2749_v62 = vor.u32 %v3339_v52, %v2748_v51  ;;  %v3321_v63 = vld [vmem:[%s3523_s29 + $0x354] sm:$0xf0]  ;;  %v245_v1 = vld [vmem:[%s3518_s25] sm:$0xff]  ;;  %v2613_v8 = vor.u32 %v3305_v59, %v2612_v57  ;;  %p3210_p6 = scmp.ne.s32.totalorder %s3509_s19, 6 }
  0x33   : > { %1747 = vmatpush.bf16.msra.mxu2 %v2389_v21  ;;  %v247_v61 = vld [vmem:[%s3518_s25 + $0x10] sm:$0xff]  ;;  %v248_v2 = vld [vmem:[%s3518_s25 + $0x18] sm:$0xff]  ;;  %v3619_v5 = vpack.c.bf16 %v245_v1, %v245_v1  ;;  %v2540_v9 = vld [vmem:[%s3523_s29 + $0x240] sm:$0xf]  ;;  %v2677_v11 = vor.u32 %v3321_v63, %v2676_v60 }
  0x34   : > { %1760 = vmatpush.bf16.msra.mxu3 %v2453_v25  ;;  %v3613_v0 = vpack.c.bf16 %v247_v61, %v247_v61  ;;  %v2740_v3 = vld [vmem:[%s3523_s29 + $0x3d0] sm:$0xf]  ;;  %v3337_v4 = vld [vmem:[%s3523_s29 + $0x3d4] sm:$0xf0]  ;;  %v3621_v6 = vpack.c.bf16 %v248_v2, %v248_v2  ;;  %v246_v10 = vld [vmem:[%s3518_s25 + $0x8] sm:$0xff] }
  0x35   : > { %1722 = vmatpush.bf16.msra.mxu0 %v2253_v32  ;;  %v3287_v12 = vld [vmem:[%s3523_s29 + $0x244] sm:$0xf0]  ;;  %v2604_v13 = vld [vmem:[%s3523_s29 + $0x2c0] sm:$0xf]  ;;  %v3629_v15 = vpack.c.bf16 %v246_v10, %v246_v10  ;;  %v2741_v16 = vor.u32 %v3337_v4, %v2740_v3  ;;  %v2532_v23 = vld [vmem:[%s3523_s29 + $0x230] sm:$0xf] }
  0x36   : > { %1735 = vmatpush.bf16.msra.mxu1 %v2317_v36  ;;  %v3303_v14 = vld [vmem:[%s3523_s29 + $0x2c4] sm:$0xf0]  ;;  %v2668_v17 = vld [vmem:[%s3523_s29 + $0x340] sm:$0xf]  ;;  %v2541_v21 = vor.u32 %v3287_v12, %v2540_v9  ;;  %v3285_v25 = vld [vmem:[%s3523_s29 + $0x234] sm:$0xf0] }
  0x37   : > { %1748 = vmatpush.bf16.msra.mxu2 %v2381_v37  ;;  %v3319_v18 = vld [vmem:[%s3523_s29 + $0x344] sm:$0xf0]  ;;  %v2732_v19 = vld [vmem:[%s3523_s29 + $0x3c0] sm:$0xf]  ;;  %v2605_v22 = vor.u32 %v3303_v14, %v2604_v13  ;;  %v2596_v26 = vld [vmem:[%s3523_s29 + $0x2b0] sm:$0xf]  ;;  %v2533_v33 = vor.u32 %v3285_v25, %v2532_v23 }
  0x38   : > { %1761 = vmatpush.bf16.msra.mxu3 %v2445_v44  ;;  %1723 = vmatmul.bf16.vlgmr.msra.gmra.mxu0 %v3619_v5  ;;  %v3335_v20 = vld [vmem:[%s3523_s29 + $0x3c4] sm:$0xf0]  ;;  %v2669_v24 = vor.u32 %v3319_v18, %v2668_v17  ;;  %v3301_v27 = vld [vmem:[%s3523_s29 + $0x2b4] sm:$0xf0]  ;;  %v2660_v29 = vld [vmem:[%s3523_s29 + $0x330] sm:$0xf] }
  0x39   : > { %1767 = vmatpush.bf16.msrb.mxu0 %v2565_v40  ;;  %1736 = vmatmul.bf16.vlgmr.msra.gmra.mxu1 %v3629_v15  ;;  %v2733_v28 = vor.u32 %v3335_v20, %v2732_v19  ;;  %v3317_v30 = vld [vmem:[%s3523_s29 + $0x334] sm:$0xf0]  ;;  %v2724_v31 = vld [vmem:[%s3523_s29 + $0x3b0] sm:$0xf]  ;;  %v2597_v34 = vor.u32 %v3301_v27, %v2596_v26  ;;  %v2524_v35 = vld [vmem:[%s3523_s29 + $0x220] sm:$0xf] }
  0x3a   : > { %1780 = vmatpush.bf16.msrb.mxu1 %v2629_v41  ;;  %1749 = vmatmul.bf16.vlgmr.msra.gmra.mxu2 %v3613_v0  ;;  %v3333_v32 = vld [vmem:[%s3523_s29 + $0x3b4] sm:$0xf0]  ;;  %v2661_v36 = vor.u32 %v3317_v30, %v2660_v29  ;;  %v3283_v37 = vld [vmem:[%s3523_s29 + $0x224] sm:$0xf0]  ;;  %v2588_v38 = vld [vmem:[%s3523_s29 + $0x2a0] sm:$0xf] }
  0x3b   : > { %1793 = vmatpush.bf16.msrb.mxu2 %v2693_v43  ;;  %1762 = vmatmul.bf16.vlgmr.msra.gmra.mxu3 %v3621_v6  ;;  %v3299_v39 = vld [vmem:[%s3523_s29 + $0x2a4] sm:$0xf0]  ;;  %v2725_v40 = vor.u32 %v3333_v32, %v2724_v31  ;;  %v2652_v41 = vld [vmem:[%s3523_s29 + $0x320] sm:$0xf]  ;;  %v2525_v45 = vor.u32 %v3283_v37, %v2524_v35  ;;  %v2516_v47 = vld [vmem:[%s3523_s29 + $0x210] sm:$0xf] }
  0x3c   : > { %1806 = vmatpush.bf16.msrb.mxu3 %v2757_v48  ;;  %v3315_v42 = vld [vmem:[%s3523_s29 + $0x324] sm:$0xf0]  ;;  %v2716_v43 = vld [vmem:[%s3523_s29 + $0x3a0] sm:$0xf]  ;;  %v2589_v46 = vor.u32 %v3299_v39, %v2588_v38  ;;  %v3281_v49 = vld [vmem:[%s3523_s29 + $0x214] sm:$0xf0] }
  0x3d   : > { %1768 = vmatpush.bf16.msrb.mxu0 %v2557_v53  ;;  %v3331_v44 = vld [vmem:[%s3523_s29 + $0x3a4] sm:$0xf0]  ;;  %v2653_v48 = vor.u32 %v3315_v42, %v2652_v41  ;;  %v2580_v50 = vld [vmem:[%s3523_s29 + $0x290] sm:$0xf]  ;;  %v3297_v51 = vld [vmem:[%s3523_s29 + $0x294] sm:$0xf0] }
  0x3e   : > { %1781 = vmatpush.bf16.msrb.mxu1 %v2621_v54  ;;  %v2717_v52 = vor.u32 %v3331_v44, %v2716_v43  ;;  %v2644_v53 = vld [vmem:[%s3523_s29 + $0x310] sm:$0xf]  ;;  %v3313_v54 = vld [vmem:[%s3523_s29 + $0x314] sm:$0xf0]  ;;  %v2508_v57 = vld [vmem:[%s3523_s29 + $0x200] sm:$0xf]  ;;  %v2581_v59 = vor.u32 %v3297_v51, %v2580_v50 }
  0x3f   : > { %1794 = vmatpush.bf16.msrb.mxu2 %v2685_v58  ;;  %v2708_v55 = vld [vmem:[%s3523_s29 + $0x390] sm:$0xf]  ;;  %v3329_v56 = vld [vmem:[%s3523_s29 + $0x394] sm:$0xf0]  ;;  %v2517_v58 = vor.u32 %v3281_v49, %v2516_v47  ;;  %v3279_v60 = vld [vmem:[%s3523_s29 + $0x204] sm:$0xf0]  ;;  %v2645_v63 = vor.u32 %v3313_v54, %v2644_v53 }
  0x40   : > { %1807 = vmatpush.bf16.msrb.mxu3 %v2749_v62  ;;  %v2572_v61 = vld [vmem:[%s3523_s29 + $0x280] sm:$0xf]  ;;  %v3295_v62 = vld [vmem:[%s3523_s29 + $0x284] sm:$0xf0]  ;;  %v2820_v3 = vld [vmem:[%s3523_s29 + $0x470] sm:$0xf]  ;;  %v2709_v4 = vor.u32 %v3329_v56, %v2708_v55  ;;  %v2509_v13 = vor.u32 %v3279_v60, %v2508_v57 }
  0x41   : > { %1769 = vmatpush.bf16.msrb.mxu0 %v2549_v7  ;;  %v2636_v1 = vld [vmem:[%s3523_s29 + $0x300] sm:$0xf]  ;;  %v3311_v2 = vld [vmem:[%s3523_s29 + $0x304] sm:$0xf0]  ;;  %v3357_v7 = vld [vmem:[%s3523_s29 + $0x474] sm:$0xf0]  ;;  %v2573_v14 = vor.u32 %v3295_v62, %v2572_v61 }
  0x42   : > { %1782 = vmatpush.bf16.msrb.mxu1 %v2613_v8  ;;  %v2884_v8 = vld [vmem:[%s3523_s29 + $0x4f0] sm:$0xf]  ;;  %v3373_v9 = vld [vmem:[%s3523_s29 + $0x4f4] sm:$0xf0]  ;;  %v2700_v12 = vld [vmem:[%s3523_s29 + $0x380] sm:$0xf]  ;;  %v2637_v19 = vor.u32 %v3311_v2, %v2636_v1  ;;  %v2821_v20 = vor.u32 %v3357_v7, %v2820_v3 }
  0x43   : > { %1795 = vmatpush.bf16.msrb.mxu2 %v2677_v11  ;;  %v2948_v10 = vld [vmem:[%s3523_s29 + $0x570] sm:$0xf]  ;;  %v3389_v11 = vld [vmem:[%s3523_s29 + $0x574] sm:$0xf0]  ;;  %v249_v18 = vld [vmem:[%s3518_s25 + $0x20] sm:$0xff] }
  0x44   : > { %1808 = vmatpush.bf16.msrb.mxu3 %v2741_v16  ;;  %v3327_v16 = vld [vmem:[%s3523_s29 + $0x384] sm:$0xf0]  ;;  %v3012_v17 = vld [vmem:[%s3523_s29 + $0x5f0] sm:$0xf]  ;;  %v2812_v23 = vld [vmem:[%s3523_s29 + $0x460] sm:$0xf]  ;;  %v2949_v25 = vor.u32 %v3389_v11, %v2948_v10 }
  0x45   : > { %1770 = vmatpush.bf16.msrb.mxu0 %v2541_v21  ;;  %v3405_v21 = vld [vmem:[%s3523_s29 + $0x5f4] sm:$0xf0]  ;;  %v3355_v26 = vld [vmem:[%s3523_s29 + $0x464] sm:$0xf0]  ;;  %v2876_v27 = vld [vmem:[%s3523_s29 + $0x4e0] sm:$0xf]  ;;  %v2701_v29 = vor.u32 %v3327_v16, %v2700_v12 }
  0x46   : > { %1783 = vmatpush.bf16.msrb.mxu1 %v2605_v22  ;;  %v251_v22 = vld [vmem:[%s3518_s25 + $0x30] sm:$0xff]  ;;  %v3371_v30 = vld [vmem:[%s3523_s29 + $0x4e4] sm:$0xf0]  ;;  %v2940_v31 = vld [vmem:[%s3523_s29 + $0x560] sm:$0xf]  ;;  %v2813_v37 = vor.u32 %v3355_v26, %v2812_v23 }
  0x47   : > { %1796 = vmatpush.bf16.msrb.mxu2 %v2669_v24  ;;  %v2885_v24 = vor.u32 %v3373_v9, %v2884_v8  ;;  %v3387_v32 = vld [vmem:[%s3523_s29 + $0x564] sm:$0xf0]  ;;  %v3689_v35 = vpack.c.bf16 %v251_v22, %v251_v22  ;;  %v3004_v38 = vld [vmem:[%s3523_s29 + $0x5e0] sm:$0xf]  ;;  %v2877_v41 = vor.u32 %v3371_v30, %v2876_v27  ;;  %v2804_v43 = vld [vmem:[%s3523_s29 + $0x450] sm:$0xf] }
  0x48   : > { %1809 = vmatpush.bf16.msrb.mxu3 %v2733_v28  ;;  %v250_v28 = vld [vmem:[%s3518_s25 + $0x28] sm:$0xff]  ;;  %v2941_v42 = vor.u32 %v3387_v32, %v2940_v31  ;;  %v3353_v44 = vld [vmem:[%s3523_s29 + $0x454] sm:$0xf0]  ;;  %v2796_v56 = vld [vmem:[%s3523_s29 + $0x440] sm:$0xf] }
  0x49   : > { %1771 = vmatpush.bf16.msrb.mxu0 %v2533_v33  ;;  %v3687_v33 = vpack.c.bf16 %v249_v18, %v249_v18  ;;  %v3403_v39 = vld [vmem:[%s3523_s29 + $0x5e4] sm:$0xf0]  ;;  %v3369_v47 = vld [vmem:[%s3523_s29 + $0x4d4] sm:$0xf0]  ;;  %v2805_v51 = vor.u32 %v3353_v44, %v2804_v43  ;;  %v2924_v60 = vld [vmem:[%s3523_s29 + $0x540] sm:$0xf] }
  0x4a   : > { %1784 = vmatpush.bf16.msrb.mxu1 %v2597_v34  ;;  %v3013_v34 = vor.u32 %v3405_v21, %v3012_v17  ;;  %v3385_v49 = vld [vmem:[%s3523_s29 + $0x554] sm:$0xf0]  ;;  %v3005_v50 = vor.u32 %v3403_v39, %v3004_v38  ;;  %v3351_v57 = vld [vmem:[%s3523_s29 + $0x444] sm:$0xf0]  ;;  %v2988_v1 = vld [vmem:[%s3523_s29 + $0x5c0] sm:$0xf] }
  0x4b   : > { %1797 = vmatpush.bf16.msrb.mxu2 %v2661_v36  ;;  %v252_v36 = vld [vmem:[%s3518_s25 + $0x38] sm:$0xff]  ;;  %v3383_v61 = vld [vmem:[%s3523_s29 + $0x544] sm:$0xf0]  ;;  %v2788_v7 = vld [vmem:[%s3523_s29 + $0x430] sm:$0xf] }
  0x4c   : > { %1810 = vmatpush.bf16.msrb.mxu3 %v2725_v40  ;;  %v3694_v40 = vpack.c.bf16 %v250_v28, %v250_v28  ;;  %v3401_v53 = vld [vmem:[%s3523_s29 + $0x5d4] sm:$0xf0]  ;;  %v3399_v2 = vld [vmem:[%s3523_s29 + $0x5c4] sm:$0xf0]  ;;  %v2852_v9 = vld [vmem:[%s3523_s29 + $0x4b0] sm:$0xf] }
  0x4d   : > { %1772 = vmatpush.bf16.msrb.mxu0 %v2525_v45  ;;  %v2868_v45 = vld [vmem:[%s3523_s29 + $0x4d0] sm:$0xf]  ;;  %v3349_v8 = vld [vmem:[%s3523_s29 + $0x434] sm:$0xf0]  ;;  %v3347_v21 = vld [vmem:[%s3523_s29 + $0x424] sm:$0xf0] }
  0x4e   : > { %1785 = vmatpush.bf16.msrb.mxu1 %v2589_v46  ;;  %v3700_v46 = vpack.c.bf16 %v252_v36, %v252_v36  ;;  %v2869_v54 = vor.u32 %v3369_v47, %v2868_v45  ;;  %v3365_v10 = vld [vmem:[%s3523_s29 + $0x4b4] sm:$0xf0]  ;;  %v2916_v11 = vld [vmem:[%s3523_s29 + $0x530] sm:$0xf]  ;;  %v2844_v22 = vld [vmem:[%s3523_s29 + $0x4a0] sm:$0xf] }
  0x4f   : > { %1798 = vmatpush.bf16.msrb.mxu2 %v2653_v48  ;;  %v2932_v48 = vld [vmem:[%s3523_s29 + $0x550] sm:$0xf]  ;;  %v3381_v12 = vld [vmem:[%s3523_s29 + $0x534] sm:$0xf0]  ;;  %v2853_v18 = vor.u32 %v3365_v10, %v2852_v9  ;;  %v3363_v23 = vld [vmem:[%s3523_s29 + $0x4a4] sm:$0xf0] }
  0x50   : > { %1811 = vmatpush.bf16.msrb.mxu3 %v2717_v52  ;;  %v2996_v52 = vld [vmem:[%s3523_s29 + $0x5d0] sm:$0xf]  ;;  %v2933_v55 = vor.u32 %v3385_v49, %v2932_v48  ;;  %v3397_v17 = vld [vmem:[%s3523_s29 + $0x5b4] sm:$0xf0]  ;;  %v2972_v28 = vld [vmem:[%s3523_s29 + $0x5a0] sm:$0xf]  ;;  %v2845_v30 = vor.u32 %v3363_v23, %v2844_v22 }
  0x51   : > { %1773 = vmatpush.bf16.msrb.mxu0 %v2517_v58  ;;  %v2860_v58 = vld [vmem:[%s3523_s29 + $0x4c0] sm:$0xf]  ;;  %v2997_v62 = vor.u32 %v3401_v53, %v2996_v52  ;;  %v2980_v16 = vld [vmem:[%s3523_s29 + $0x5b0] sm:$0xf]  ;;  %v3377_v39 = vld [vmem:[%s3523_s29 + $0x514] sm:$0xf0] }
  0x52   : > { %1786 = vmatpush.bf16.msrb.mxu1 %v2581_v59  ;;  %v3367_v59 = vld [vmem:[%s3523_s29 + $0x4c4] sm:$0xf0]  ;;  %v2981_v26 = vor.u32 %v3397_v17, %v2980_v16  ;;  %v2772_v32 = vld [vmem:[%s3523_s29 + $0x410] sm:$0xf]  ;;  %v3393_v44 = vld [vmem:[%s3523_s29 + $0x594] sm:$0xf0] }
  0x53   : > { %1799 = vmatpush.bf16.msrb.mxu2 %v2645_v63  ;;  %v2797_v63 = vor.u32 %v3351_v57, %v2796_v56  ;;  %v2861_v3 = vor.u32 %v3367_v59, %v2860_v58  ;;  %v2836_v36 = vld [vmem:[%s3523_s29 + $0x490] sm:$0xf]  ;;  %v2764_v45 = vld [vmem:[%s3523_s29 + $0x400] sm:$0xf]  ;;  %v3343_v47 = vld [vmem:[%s3523_s29 + $0x404] sm:$0xf0] }
  0x54   : > { %1812 = vmatpush.bf16.msrb.mxu3 %v2709_v4  ;;  %v2925_v4 = vor.u32 %v3383_v61, %v2924_v60  ;;  %v2900_v38 = vld [vmem:[%s3523_s29 + $0x510] sm:$0xf]  ;;  %v2892_v52 = vld [vmem:[%s3523_s29 + $0x500] sm:$0xf]  ;;  %v3375_v53 = vld [vmem:[%s3523_s29 + $0x504] sm:$0xf0]  ;;  %v2765_v60 = vor.u32 %v3343_v47, %v2764_v45 }
  0x55   : > { %1774 = vmatpush.bf16.msrb.mxu0 %v2509_v13  ;;  %v2989_v13 = vor.u32 %v3399_v2, %v2988_v1  ;;  %v2901_v49 = vor.u32 %v3377_v39, %v2900_v38  ;;  %v3140_v57 = vld [vmem:[%s3523_s29 + $0x6f0] sm:$0xf]  ;;  %v3437_v58 = vld [vmem:[%s3523_s29 + $0x6f4] sm:$0xf0]  ;;  %v2893_v2 = vor.u32 %v3375_v53, %v2892_v52  ;;  %v2310_v10 = vld [vmem:[%s3523_s29 + $0x78] sm:$0xf0] }
  0x56   : > { %1787 = vmatpush.bf16.msrb.mxu1 %v2573_v14  ;;  %v2789_v14 = vor.u32 %v3349_v8, %v2788_v7  ;;  %v3204_v59 = vld [vmem:[%s3523_s29 + $0x770] sm:$0xf]  ;;  %v3453_v61 = vld [vmem:[%s3523_s29 + $0x774] sm:$0xf0]  ;;  %v3228_v7 = vld [vmem:[%s3523_s29 + $0x74] sm:$0xf]  ;;  %v3141_v9 = vor.u32 %v3437_v58, %v3140_v57 }
  0x57   : > { %1800 = vmatpush.bf16.msrb.mxu2 %v2637_v19  ;;  %v2917_v19 = vor.u32 %v3381_v12, %v2916_v11  ;;  %v254_v11 = vld [vmem:[%s3518_s25 + $0x48] sm:$0xff]  ;;  %v256_v12 = vld [vmem:[%s3518_s25 + $0x58] sm:$0xff]  ;;  %v3068_v16 = vld [vmem:[%s3523_s29 + $0x660] sm:$0xf] }
  0x58   : > { %1813 = vmatpush.bf16.msrb.mxu3 %v2701_v29  ;;  %1775 = vmatmul.bf16.vlgmr.msrb.gmra.mxu0 %v3687_v33  ;;  %v3395_v29 = vld [vmem:[%s3523_s29 + $0x5a4] sm:$0xf0]  ;;  %v3196_v22 = vld [vmem:[%s3523_s29 + $0x760] sm:$0xf]  ;;  %v3188_v38 = vld [vmem:[%s3523_s29 + $0x750] sm:$0xf] }
  0x59   : > { %1819 = vmatpush.bf16.msra.mxu0 %v2821_v20  ;;  %1788 = vmatmul.bf16.vlgmr.msrb.gmra.mxu1 %v3694_v40  ;;  %v2780_v20 = vld [vmem:[%s3523_s29 + $0x420] sm:$0xf]  ;;  %v3419_v17 = vld [vmem:[%s3523_s29 + $0x664] sm:$0xf0]  ;;  %v3449_v39 = vld [vmem:[%s3523_s29 + $0x754] sm:$0xf0] }
  0x5a   : > { %1832 = vmatpush.bf16.msra.mxu1 %v2885_v24  ;;  %1801 = vmatmul.bf16.vlgmr.msrb.gmra.mxu2 %v3689_v35  ;;  %v2908_v24 = vld [vmem:[%s3523_s29 + $0x520] sm:$0xf]  ;;  %v2781_v27 = vor.u32 %v3347_v21, %v2780_v20  ;;  %v3435_v21 = vld [vmem:[%s3523_s29 + $0x6e4] sm:$0xf0]  ;;  %v3189_v47 = vor.u32 %v3449_v39, %v3188_v38  ;;  %v2286_v57 = vld [vmem:[%s3523_s29 + $0x48] sm:$0xf0] }
  0x5b   : > { %1845 = vmatpush.bf16.msra.mxu2 %v2949_v25  ;;  %1814 = vmatmul.bf16.vlgmr.msrb.gmra.mxu3 %v3700_v46  ;;  %v3379_v25 = vld [vmem:[%s3523_s29 + $0x524] sm:$0xf0]  ;;  %v3180_v52 = vld [vmem:[%s3523_s29 + $0x740] sm:$0xf]  ;;  %v2262_v39 = vld [vmem:[%s3523_s29 + $0x18] sm:$0xf0] }
  0x5c   : > { %1858 = vmatpush.bf16.msra.mxu3 %v3013_v34  ;;  %v2909_v31 = vor.u32 %v3379_v25, %v2908_v24  ;;  %v3345_v34 = vld [vmem:[%s3523_s29 + $0x414] sm:$0xf0]  ;;  %v3451_v23 = vld [vmem:[%s3523_s29 + $0x764] sm:$0xf0]  ;;  %v2313_v24 = vor.u32 %v3228_v7, %v2310_v10  ;;  %v3772_v25 = vpack.c.bf16 %v254_v11, %v254_v11  ;;  %v3220_v7 = vld [vmem:[%s3523_s29 + $0x34] sm:$0xf] }
  0x5d   : > { %1820 = vmatpush.bf16.msra.mxu0 %v2813_v37  ;;  %v3361_v37 = vld [vmem:[%s3523_s29 + $0x494] sm:$0xf0]  ;;  %v2773_v43 = vor.u32 %v3345_v34, %v2772_v32  ;;  %v3060_v32 = vld [vmem:[%s3523_s29 + $0x650] sm:$0xf]  ;;  %v3447_v53 = vld [vmem:[%s3523_s29 + $0x744] sm:$0xf0] }
  0x5e   : > { %1833 = vmatpush.bf16.msra.mxu1 %v2877_v41  ;;  %v2973_v41 = vor.u32 %v3395_v29, %v2972_v28  ;;  %v2837_v48 = vor.u32 %v3361_v37, %v2836_v36  ;;  %v3226_v28 = vld [vmem:[%s3523_s29 + $0x64] sm:$0xf]  ;;  %v2302_v29 = vld [vmem:[%s3523_s29 + $0x68] sm:$0xf0]  ;;  %v3417_v34 = vld [vmem:[%s3523_s29 + $0x654] sm:$0xf0] }
  0x5f   : > { %1846 = vmatpush.bf16.msra.mxu2 %v2941_v42  ;;  %v2964_v42 = vld [vmem:[%s3523_s29 + $0x590] sm:$0xf]  ;;  %v3433_v37 = vld [vmem:[%s3523_s29 + $0x6d4] sm:$0xf0]  ;;  %v3036_v11 = vld [vmem:[%s3523_s29 + $0x620] sm:$0xf] }
  0x60   : > { %1859 = vmatpush.bf16.msra.mxu3 %v3005_v50  ;;  %v2828_v50 = vld [vmem:[%s3523_s29 + $0x480] sm:$0xf]  ;;  %v2965_v56 = vor.u32 %v3393_v44, %v2964_v42  ;;  %v3124_v36 = vld [vmem:[%s3523_s29 + $0x6d0] sm:$0xf]  ;;  %v3061_v42 = vor.u32 %v3417_v34, %v3060_v32  ;;  %v2294_v44 = vld [vmem:[%s3523_s29 + $0x58] sm:$0xf0] }
  0x61   : > { %1821 = vmatpush.bf16.msra.mxu0 %v2805_v51  ;;  %v3359_v51 = vld [vmem:[%s3523_s29 + $0x484] sm:$0xf0]  ;;  %v3125_v45 = vor.u32 %v3433_v37, %v3124_v36  ;;  %v3156_v32 = vld [vmem:[%s3523_s29 + $0x710] sm:$0xf]  ;;  %v3441_v34 = vld [vmem:[%s3523_s29 + $0x714] sm:$0xf0] }
  0x62   : > { %1834 = vmatpush.bf16.msra.mxu1 %v2869_v54  ;;  %v3076_v54 = vld [vmem:[%s3523_s29 + $0x670] sm:$0xf]  ;;  %v2829_v1 = vor.u32 %v3359_v51, %v2828_v50  ;;  %v3116_v50 = vld [vmem:[%s3523_s29 + $0x6c0] sm:$0xf]  ;;  %v3431_v51 = vld [vmem:[%s3523_s29 + $0x6c4] sm:$0xf0] }
  0x63   : > { %1847 = vmatpush.bf16.msra.mxu2 %v2933_v55  ;;  %v3421_v55 = vld [vmem:[%s3523_s29 + $0x674] sm:$0xf0]  ;;  %v3117_v58 = vor.u32 %v3431_v51, %v3116_v50  ;;  %v3216_v37 = vld [vmem:[%s3523_s29 + $0x14] sm:$0xf]  ;;  %v2374_v51 = vld [vmem:[%s3523_s29 + $0xf8] sm:$0xf0] }
  0x64   : > { %1860 = vmatpush.bf16.msra.mxu3 %v2997_v62  ;;  %v2956_v62 = vld [vmem:[%s3523_s29 + $0x580] sm:$0xf]  ;;  %v3077_v8 = vor.u32 %v3421_v55, %v3076_v54  ;;  %v3244_v50 = vld [vmem:[%s3523_s29 + $0xf4] sm:$0xf] }
  0x65   : > { %1822 = vmatpush.bf16.msra.mxu0 %v2797_v63  ;;  %v3391_v63 = vld [vmem:[%s3523_s29 + $0x584] sm:$0xf0] }
  0x66   : > { %1835 = vmatpush.bf16.msra.mxu1 %v2861_v3  ;;  %v253_v3 = vld [vmem:[%s3518_s25 + $0x40] sm:$0xff] }
  0x67   : > { %1848 = vmatpush.bf16.msra.mxu2 %v2925_v4  ;;  %v255_v4 = vld [vmem:[%s3518_s25 + $0x50] sm:$0xff] }
  0x68   : > { %1861 = vmatpush.bf16.msra.mxu3 %v2989_v13  ;;  %v3205_v13 = vor.u32 %v3453_v61, %v3204_v59  ;;  %v3767_v20 = vpack.c.bf16 %v255_v4, %v255_v4  ;;  %v3181_v59 = vor.u32 %v3447_v53, %v3180_v52  ;;  %v3413_v61 = vld [vmem:[%s3523_s29 + $0x634] sm:$0xf0]  ;;  %v2265_v52 = vor.u32 %v3216_v37, %v2262_v39  ;;  %v3260_v53 = vld [vmem:[%s3523_s29 + $0x174] sm:$0xf]  ;;  %v2486_v37 = vld [vmem:[%s3523_s29 + $0x1d8] sm:$0xf0] }
  0x69   : > { %1823 = vmatpush.bf16.msra.mxu0 %v2789_v14  ;;  %v2957_v14 = vor.u32 %v3391_v63, %v2956_v62  ;;  %v3108_v62 = vld [vmem:[%s3523_s29 + $0x6b0] sm:$0xf]  ;;  %v3429_v63 = vld [vmem:[%s3523_s29 + $0x6b4] sm:$0xf0] }
  0x6a   : > { %1836 = vmatpush.bf16.msra.mxu1 %v2853_v18  ;;  %v3132_v18 = vld [vmem:[%s3523_s29 + $0x6e0] sm:$0xf] }
  0x6b   : > { %1849 = vmatpush.bf16.msra.mxu2 %v2917_v19  ;;  %v3765_v19 = vpack.c.bf16 %v253_v3, %v253_v3 }
  0x6c   : > { %1862 = vmatpush.bf16.msra.mxu3 %v2981_v26  ;;  %v3774_v26 = vpack.c.bf16 %v256_v12, %v256_v12  ;;  %v3411_v12 = vld [vmem:[%s3523_s29 + $0x624] sm:$0xf0] }
  0x6d   : > { %1824 = vmatpush.bf16.msra.mxu0 %v2781_v27  ;;  %v3069_v27 = vor.u32 %v3419_v17, %v3068_v16  ;;  %v3164_v16 = vld [vmem:[%s3523_s29 + $0x720] sm:$0xf]  ;;  %v3443_v17 = vld [vmem:[%s3523_s29 + $0x724] sm:$0xf0] }
  0x6e   : > { %1837 = vmatpush.bf16.msra.mxu1 %v2845_v30  ;;  %v3133_v30 = vor.u32 %v3435_v21, %v3132_v18  ;;  %v3037_v21 = vor.u32 %v3411_v12, %v3036_v11  ;;  %v2366_v11 = vld [vmem:[%s3523_s29 + $0xe8] sm:$0xf0]  ;;  %v3258_v12 = vld [vmem:[%s3523_s29 + $0x164] sm:$0xf] }
  0x6f   : > { %1850 = vmatpush.bf16.msra.mxu2 %v2909_v31  ;;  %v3197_v31 = vor.u32 %v3451_v23, %v3196_v22  ;;  %v3218_v22 = vld [vmem:[%s3523_s29 + $0x24] sm:$0xf]  ;;  %v2270_v23 = vld [vmem:[%s3523_s29 + $0x28] sm:$0xf0] }
  0x70   : > { %1863 = vmatpush.bf16.msra.mxu3 %v2973_v41  ;;  %v2305_v41 = vor.u32 %v3226_v28, %v2302_v29  ;;  %v3028_v28 = vld [vmem:[%s3523_s29 + $0x610] sm:$0xf]  ;;  %v3409_v29 = vld [vmem:[%s3523_s29 + $0x614] sm:$0xf0]  ;;  %v2273_v36 = vor.u32 %v3218_v22, %v2270_v23 }
  0x71   : > { %1825 = vmatpush.bf16.msra.mxu0 %v2773_v43  ;;  %v3224_v43 = vld [vmem:[%s3523_s29 + $0x54] sm:$0xf]  ;;  %v3029_v38 = vor.u32 %v3409_v29, %v3028_v28  ;;  %v2558_v28 = vld [vmem:[%s3523_s29 + $0x268] sm:$0xf0] }
  0x72   : > { %1838 = vmatpush.bf16.msra.mxu1 %v2837_v48  ;;  %v3052_v48 = vld [vmem:[%s3523_s29 + $0x640] sm:$0xf]  ;;  %v2297_v54 = vor.u32 %v3224_v43, %v2294_v44  ;;  %v3157_v44 = vor.u32 %v3441_v34, %v3156_v32  ;;  %v3240_v29 = vld [vmem:[%s3523_s29 + $0xd4] sm:$0xf]  ;;  %v2422_v34 = vld [vmem:[%s3523_s29 + $0x158] sm:$0xf0] }
  0x73   : > { %1851 = vmatpush.bf16.msra.mxu2 %v2901_v49  ;;  %v3415_v49 = vld [vmem:[%s3523_s29 + $0x644] sm:$0xf0]  ;;  %v3256_v32 = vld [vmem:[%s3523_s29 + $0x154] sm:$0xf] }
  0x74   : > { %1864 = vmatpush.bf16.msra.mxu3 %v2965_v56  ;;  %v3053_v55 = vor.u32 %v3415_v49, %v3052_v48  ;;  %v3222_v56 = vld [vmem:[%s3523_s29 + $0x44] sm:$0xf]  ;;  %v3148_v48 = vld [vmem:[%s3523_s29 + $0x700] sm:$0xf]  ;;  %v3439_v49 = vld [vmem:[%s3523_s29 + $0x704] sm:$0xf0] }
  0x75   : > { %1826 = vmatpush.bf16.msra.mxu0 %v2765_v60  ;;  %v3044_v60 = vld [vmem:[%s3523_s29 + $0x630] sm:$0xf]  ;;  %v2289_v3 = vor.u32 %v3222_v56, %v2286_v57  ;;  %v2502_v57 = vld [vmem:[%s3523_s29 + $0x1f8] sm:$0xf0] }
  0x76   : > { %1839 = vmatpush.bf16.msra.mxu1 %v2829_v1  ;;  %v3172_v1 = vld [vmem:[%s3523_s29 + $0x730] sm:$0xf]  ;;  %v3045_v4 = vor.u32 %v3413_v61, %v3044_v60  ;;  %v3149_v61 = vor.u32 %v3439_v49, %v3148_v48  ;;  %v3254_v48 = vld [vmem:[%s3523_s29 + $0x144] sm:$0xf]  ;;  %v2414_v49 = vld [vmem:[%s3523_s29 + $0x148] sm:$0xf0] }
  0x77   : > { %1852 = vmatpush.bf16.msra.mxu2 %v2893_v2  ;;  %v3445_v2 = vld [vmem:[%s3523_s29 + $0x734] sm:$0xf0] }
  0x78   : > { %1865 = vmatpush.bf16.msra.mxu3 %v2957_v14  ;;  %1827 = vmatmul.bf16.vlgmr.msra.gmra.mxu0 %v3765_v19  ;;  %v3173_v10 = vor.u32 %v3445_v2, %v3172_v1  ;;  %v3427_v14 = vld [vmem:[%s3523_s29 + $0x6a4] sm:$0xf0]  ;;  %v3292_v1 = vld [vmem:[%s3523_s29 + $0x274] sm:$0xf]  ;;  %v2377_v2 = vor.u32 %v3244_v50, %v2374_v51  ;;  %v3270_v50 = vld [vmem:[%s3523_s29 + $0x1c4] sm:$0xf] }
  0x79   : > { %1871 = vmatpush.bf16.msrb.mxu0 %v3077_v8  ;;  %1840 = vmatmul.bf16.vlgmr.msra.gmra.mxu1 %v3772_v25  ;;  %v2278_v8 = vld [vmem:[%s3523_s29 + $0x38] sm:$0xf0]  ;;  %v2478_v51 = vld [vmem:[%s3523_s29 + $0x1c8] sm:$0xf0] }
  0x7a   : > { %1884 = vmatpush.bf16.msrb.mxu1 %v3141_v9  ;;  %1853 = vmatmul.bf16.vlgmr.msra.gmra.mxu2 %v3767_v20  ;;  %v3109_v9 = vor.u32 %v3429_v63, %v3108_v62  ;;  %v2281_v18 = vor.u32 %v3220_v7, %v2278_v8  ;;  %v257_v62 = vld [vmem:[%s3518_s25 + $0x60] sm:$0xff]  ;;  %v259_v63 = vld [vmem:[%s3518_s25 + $0x70] sm:$0xff]  ;;  %v258_v7 = vld [vmem:[%s3518_s25 + $0x68] sm:$0xff] }
  0x7b   : > { %1897 = vmatpush.bf16.msrb.mxu2 %v3205_v13  ;;  %1866 = vmatmul.bf16.vlgmr.msra.gmra.mxu3 %v3774_v26  ;;  %v3100_v13 = vld [vmem:[%s3523_s29 + $0x6a0] sm:$0xf]  ;;  %v3242_v8 = vld [vmem:[%s3523_s29 + $0xe4] sm:$0xf]  ;;  %v3851_v22 = vpack.c.bf16 %v258_v7, %v258_v7 }
  0x7c   : > { %1910 = vmatpush.bf16.msrb.mxu3 %v2313_v24  ;;  %v3101_v24 = vor.u32 %v3427_v14, %v3100_v13  ;;  %v2430_v13 = vld [vmem:[%s3523_s29 + $0x168] sm:$0xf0]  ;;  %v3845_v14 = vpack.c.bf16 %v257_v62, %v257_v62  ;;  %v2369_v23 = vor.u32 %v3242_v8, %v2366_v11  ;;  %v2470_v62 = vld [vmem:[%s3523_s29 + $0x1b8] sm:$0xf0]  ;;  %v3234_v7 = vld [vmem:[%s3523_s29 + $0xa4] sm:$0xf] }
  0x7d   : > { %1872 = vmatpush.bf16.msrb.mxu0 %v3069_v27  ;;  %v3165_v27 = vor.u32 %v3443_v17, %v3164_v16  ;;  %v3847_v16 = vpack.c.bf16 %v259_v63, %v259_v63  ;;  %v3274_v17 = vld [vmem:[%s3523_s29 + $0x1e4] sm:$0xf]  ;;  %v2398_v11 = vld [vmem:[%s3523_s29 + $0x128] sm:$0xf0] }
  0x7e   : > { %1885 = vmatpush.bf16.msrb.mxu1 %v3133_v30  ;;  %v3092_v30 = vld [vmem:[%s3523_s29 + $0x690] sm:$0xf] }
  0x7f   : > { %1898 = vmatpush.bf16.msrb.mxu2 %v3197_v31  ;;  %v3425_v31 = vld [vmem:[%s3523_s29 + $0x694] sm:$0xf0] }
  0x80   : > { %1911 = vmatpush.bf16.msrb.mxu3 %v2305_v41  ;;  %v3020_v41 = vld [vmem:[%s3523_s29 + $0x600] sm:$0xf]  ;;  %v3093_v43 = vor.u32 %v3425_v31, %v3092_v30  ;;  %v2358_v31 = vld [vmem:[%s3523_s29 + $0xd8] sm:$0xf0] }
  0x81   : > { %1873 = vmatpush.bf16.msrb.mxu0 %v3061_v42  ;;  %v3407_v42 = vld [vmem:[%s3523_s29 + $0x604] sm:$0xf0]  ;;  %v2361_v39 = vor.u32 %v3240_v29, %v2358_v31  ;;  %v2326_v29 = vld [vmem:[%s3523_s29 + $0x98] sm:$0xf0] }
  0x82   : > { %1886 = vmatpush.bf16.msrb.mxu1 %v3125_v45  ;;  %v3084_v45 = vld [vmem:[%s3523_s29 + $0x680] sm:$0xf]  ;;  %v3021_v56 = vor.u32 %v3407_v42, %v3020_v41  ;;  %v2425_v41 = vor.u32 %v3256_v32, %v2422_v34  ;;  %v3288_v42 = vld [vmem:[%s3523_s29 + $0x254] sm:$0xf]  ;;  %v2390_v31 = vld [vmem:[%s3523_s29 + $0x118] sm:$0xf0] }
  0x83   : > { %1899 = vmatpush.bf16.msrb.mxu2 %v3189_v47  ;;  %v3423_v47 = vld [vmem:[%s3523_s29 + $0x684] sm:$0xf0]  ;;  %v3264_v32 = vld [vmem:[%s3523_s29 + $0x194] sm:$0xf]  ;;  %v2454_v34 = vld [vmem:[%s3523_s29 + $0x198] sm:$0xf0] }
  0x84   : > { %1912 = vmatpush.bf16.msrb.mxu3 %v2297_v54  ;;  %v2438_v54 = vld [vmem:[%s3523_s29 + $0x178] sm:$0xf0]  ;;  %v3085_v60 = vor.u32 %v3423_v47, %v3084_v45  ;;  %v2350_v47 = vld [vmem:[%s3523_s29 + $0xc8] sm:$0xf0] }
  0x85   : > { %1874 = vmatpush.bf16.msrb.mxu0 %v3053_v55  ;;  %v3276_v55 = vld [vmem:[%s3523_s29 + $0x1f4] sm:$0xf] }
  0x86   : > { %1887 = vmatpush.bf16.msrb.mxu1 %v3117_v58  ;;  %v3214_v58 = vld [vmem:[%s3523_s29 + $0x4] sm:$0xf] }
  0x87   : > { %1900 = vmatpush.bf16.msrb.mxu2 %v3181_v59  ;;  %v2254_v59 = vld [vmem:[%s3523_s29 + $0x8] sm:$0xf0] }
  0x88   : > { %1913 = vmatpush.bf16.msrb.mxu3 %v2289_v3  ;;  %v2441_v3 = vor.u32 %v3260_v53, %v2438_v54  ;;  %v2417_v54 = vor.u32 %v3254_v48, %v2414_v49  ;;  %v3262_v48 = vld [vmem:[%s3523_s29 + $0x184] sm:$0xf]  ;;  %v2446_v49 = vld [vmem:[%s3523_s29 + $0x188] sm:$0xf0] }
  0x89   : > { %1875 = vmatpush.bf16.msrb.mxu0 %v3045_v4  ;;  %v2566_v4 = vld [vmem:[%s3523_s29 + $0x278] sm:$0xf0] }
  0x8a   : > { %1888 = vmatpush.bf16.msrb.mxu1 %v3109_v9  ;;  %v2505_v9 = vor.u32 %v3276_v55, %v2502_v57  ;;  %v3286_v55 = vld [vmem:[%s3523_s29 + $0x244] sm:$0xf]  ;;  %v3236_v57 = vld [vmem:[%s3523_s29 + $0xb4] sm:$0xf] }
  0x8b   : > { %1901 = vmatpush.bf16.msrb.mxu2 %v3173_v10  ;;  %v2257_v10 = vor.u32 %v3214_v58, %v2254_v59  ;;  %v2481_v58 = vor.u32 %v3270_v50, %v2478_v51  ;;  %v3252_v59 = vld [vmem:[%s3523_s29 + $0x134] sm:$0xf]  ;;  %v2630_v51 = vld [vmem:[%s3523_s29 + $0x2f8] sm:$0xf0] }
  0x8c   : > { %1914 = vmatpush.bf16.msrb.mxu3 %v2281_v18  ;;  %v2494_v18 = vld [vmem:[%s3523_s29 + $0x1e8] sm:$0xf0]  ;;  %v3308_v50 = vld [vmem:[%s3523_s29 + $0x2f4] sm:$0xf] }
  0x8d   : > { %1876 = vmatpush.bf16.msrb.mxu0 %v3037_v21  ;;  %v2569_v21 = vor.u32 %v3292_v1, %v2566_v4  ;;  %v2497_v30 = vor.u32 %v3274_v17, %v2494_v18  ;;  %v2534_v4 = vld [vmem:[%s3523_s29 + $0x238] sm:$0xf0] }
  0x8e   : > { %1889 = vmatpush.bf16.msrb.mxu1 %v3101_v24  ;;  %v2433_v24 = vor.u32 %v3258_v12, %v2430_v13  ;;  %v3266_v12 = vld [vmem:[%s3523_s29 + $0x1a4] sm:$0xf]  ;;  %v2462_v13 = vld [vmem:[%s3523_s29 + $0x1a8] sm:$0xf0] }
  0x8f   : > { %1902 = vmatpush.bf16.msrb.mxu2 %v3165_v27  ;;  %v3290_v27 = vld [vmem:[%s3523_s29 + $0x264] sm:$0xf] }
  0x90   : > { %1915 = vmatpush.bf16.msrb.mxu3 %v2273_v36  ;;  %v3272_v36 = vld [vmem:[%s3523_s29 + $0x1d4] sm:$0xf] }
  0x91   : > { %1877 = vmatpush.bf16.msrb.mxu0 %v3029_v38  ;;  %v2561_v38 = vor.u32 %v3290_v27, %v2558_v28  ;;  %v2489_v45 = vor.u32 %v3272_v36, %v2486_v37  ;;  %v3232_v27 = vld [vmem:[%s3523_s29 + $0x94] sm:$0xf]  ;;  %v2465_v28 = vor.u32 %v3266_v12, %v2462_v13 }
  0x92   : > { %1890 = vmatpush.bf16.msrb.mxu1 %v3093_v43  ;;  %v2550_v43 = vld [vmem:[%s3523_s29 + $0x258] sm:$0xf0]  ;;  %v3280_v37 = vld [vmem:[%s3523_s29 + $0x214] sm:$0xf] }
  0x93   : > { %1903 = vmatpush.bf16.msrb.mxu2 %v3157_v44  ;;  %v3238_v44 = vld [vmem:[%s3523_s29 + $0xc4] sm:$0xf] }
  0x94   : > { %1916 = vmatpush.bf16.msrb.mxu3 %v2265_v52  ;;  %v2553_v52 = vor.u32 %v3288_v42, %v2550_v43  ;;  %v2353_v53 = vor.u32 %v3238_v44, %v2350_v47  ;;  %v3230_v42 = vld [vmem:[%s3523_s29 + $0x84] sm:$0xf]  ;;  %v2318_v43 = vld [vmem:[%s3523_s29 + $0x88] sm:$0xf0] }
  0x95   : > { %1878 = vmatpush.bf16.msrb.mxu0 %v3021_v56  ;;  %v2542_v56 = vld [vmem:[%s3523_s29 + $0x248] sm:$0xf0]  ;;  %v3246_v44 = vld [vmem:[%s3523_s29 + $0x104] sm:$0xf] }
  0x96   : > { %1891 = vmatpush.bf16.msrb.mxu1 %v3085_v60  ;;  %v2406_v60 = vld [vmem:[%s3523_s29 + $0x138] sm:$0xf0]  ;;  %v2545_v63 = vor.u32 %v3286_v55, %v2542_v56  ;;  %v2382_v47 = vld [vmem:[%s3523_s29 + $0x108] sm:$0xf0]  ;;  %v3340_v55 = vld [vmem:[%s3523_s29 + $0x3f4] sm:$0xf] }
  0x97   : > { %1904 = vmatpush.bf16.msrb.mxu2 %v3149_v61  ;;  %v3268_v61 = vld [vmem:[%s3523_s29 + $0x1b4] sm:$0xf]  ;;  %v2758_v56 = vld [vmem:[%s3523_s29 + $0x3f8] sm:$0xf0] }
  0x98   : > { %1917 = vmatpush.bf16.msrb.mxu3 %v2257_v10  ;;  %1879 = vmatmul.bf16.vlgmr.msrb.gmra.mxu0 %v3845_v14  ;;  %v2473_v8 = vor.u32 %v3268_v61, %v2470_v62  ;;  %v3250_v10 = vld [vmem:[%s3523_s29 + $0x124] sm:$0xf]  ;;  %v2633_v61 = vor.u32 %v3308_v50, %v2630_v51  ;;  %v3356_v62 = vld [vmem:[%s3523_s29 + $0x474] sm:$0xf] }
  0x99   : > { %1923 = vmatpush.bf16.msra.mxu0 %v2377_v2  ;;  %1892 = vmatmul.bf16.vlgmr.msrb.gmra.mxu1 %v3851_v22  ;;  %v2409_v2 = vor.u32 %v3252_v59, %v2406_v60  ;;  %v2510_v59 = vld [vmem:[%s3523_s29 + $0x208] sm:$0xf0]  ;;  %v2449_v60 = vor.u32 %v3262_v48, %v2446_v49  ;;  %v3300_v51 = vld [vmem:[%s3523_s29 + $0x2b4] sm:$0xf] }
  0x9a   : > { %1936 = vmatpush.bf16.msra.mxu1 %v2441_v3  ;;  %1905 = vmatmul.bf16.vlgmr.msrb.gmra.mxu2 %v3847_v16  ;;  %v3284_v3 = vld [vmem:[%s3523_s29 + $0x234] sm:$0xf]  ;;  %v2798_v48 = vld [vmem:[%s3523_s29 + $0x448] sm:$0xf0] }
  0x9b   : > { %1949 = vmatpush.bf16.msra.mxu2 %v2505_v9  ;;  %1918 = vmatmul.bf16.vlgmr.msrb.gmra.mxu3 %v3619_v5  ;;  %v2342_v5 = vld [vmem:[%s3523_s29 + $0xb8] sm:$0xf0]  ;;  %v2334_v9 = vld [vmem:[%s3523_s29 + $0xa8] sm:$0xf0]  ;;  %v2537_v17 = vor.u32 %v3284_v3, %v2534_v4  ;;  %v3306_v3 = vld [vmem:[%s3523_s29 + $0x2e4] sm:$0xf] }
  0x9c   : > { %1962 = vmatpush.bf16.msra.mxu3 %v2569_v21  ;;  %v2345_v1 = vor.u32 %v3236_v57, %v2342_v5  ;;  %v2337_v18 = vor.u32 %v3234_v7, %v2334_v9  ;;  %v2401_v21 = vor.u32 %v3250_v10, %v2398_v11  ;;  %v2321_v57 = vor.u32 %v3230_v42, %v2318_v43  ;;  %v3278_v5 = vld [vmem:[%s3523_s29 + $0x204] sm:$0xf]  ;;  %v2622_v4 = vld [vmem:[%s3523_s29 + $0x2e8] sm:$0xf0] }
  0x9d   : > { %1924 = vmatpush.bf16.msra.mxu0 %v2369_v23  ;;  %v3282_v23 = vld [vmem:[%s3523_s29 + $0x224] sm:$0xf]  ;;  %v2686_v9 = vld [vmem:[%s3523_s29 + $0x368] sm:$0xf0]  ;;  %v2625_v13 = vor.u32 %v3306_v3, %v2622_v4 }
  0x9e   : > { %1937 = vmatpush.bf16.msra.mxu1 %v2433_v24  ;;  %v2526_v24 = vld [vmem:[%s3523_s29 + $0x228] sm:$0xf0]  ;;  %v3322_v7 = vld [vmem:[%s3523_s29 + $0x364] sm:$0xf] }
  0x9f   : > { %1950 = vmatpush.bf16.msra.mxu2 %v2497_v30  ;;  %v3248_v30 = vld [vmem:[%s3523_s29 + $0x114] sm:$0xf]  ;;  %v2529_v36 = vor.u32 %v3282_v23, %v2526_v24  ;;  %v3338_v10 = vld [vmem:[%s3523_s29 + $0x3e4] sm:$0xf]  ;;  %v2750_v11 = vld [vmem:[%s3523_s29 + $0x3e8] sm:$0xf0] }
  0xa0   : > { %1963 = vmatpush.bf16.msra.mxu3 %v2561_v38  ;;  %v2518_v38 = vld [vmem:[%s3523_s29 + $0x218] sm:$0xf0]  ;;  %v2753_v23 = vor.u32 %v3338_v10, %v2750_v11  ;;  %v3304_v24 = vld [vmem:[%s3523_s29 + $0x2d4] sm:$0xf]  ;;  %v3318_v42 = vld [vmem:[%s3523_s29 + $0x344] sm:$0xf] }
  0xa1   : > { %1925 = vmatpush.bf16.msra.mxu0 %v2361_v39  ;;  %v2329_v39 = vor.u32 %v3232_v27, %v2326_v29  ;;  %v2614_v27 = vld [vmem:[%s3523_s29 + $0x2d8] sm:$0xf0]  ;;  %v2670_v43 = vld [vmem:[%s3523_s29 + $0x348] sm:$0xf0]  ;;  %v3330_v3 = vld [vmem:[%s3523_s29 + $0x3a4] sm:$0xf] }
  0xa2   : > { %1938 = vmatpush.bf16.msra.mxu1 %v2425_v41  ;;  %v2393_v41 = vor.u32 %v3248_v30, %v2390_v31  ;;  %v2678_v29 = vld [vmem:[%s3523_s29 + $0x358] sm:$0xf0]  ;;  %v3336_v30 = vld [vmem:[%s3523_s29 + $0x3d4] sm:$0xf]  ;;  %v2673_v49 = vor.u32 %v3318_v42, %v2670_v43  ;;  %v2718_v4 = vld [vmem:[%s3523_s29 + $0x3a8] sm:$0xf0] }
  0xa3   : > { %1951 = vmatpush.bf16.msra.mxu2 %v2489_v45  ;;  %v2457_v45 = vor.u32 %v3264_v32, %v2454_v34  ;;  %v2742_v31 = vld [vmem:[%s3523_s29 + $0x3d8] sm:$0xf0]  ;;  %v2617_v34 = vor.u32 %v3304_v24, %v2614_v27  ;;  %v3346_v11 = vld [vmem:[%s3523_s29 + $0x424] sm:$0xf]  ;;  %v3328_v27 = vld [vmem:[%s3523_s29 + $0x394] sm:$0xf] }
  0xa4   : > { %1964 = vmatpush.bf16.msra.mxu3 %v2553_v52  ;;  %v3324_v52 = vld [vmem:[%s3523_s29 + $0x374] sm:$0xf]  ;;  %v2646_v24 = vld [vmem:[%s3523_s29 + $0x318] sm:$0xf0]  ;;  %v3310_v42 = vld [vmem:[%s3523_s29 + $0x304] sm:$0xf] }
  0xa5   : > { %1926 = vmatpush.bf16.msra.mxu0 %v2353_v53  ;;  %v2521_v53 = vor.u32 %v3280_v37, %v2518_v38  ;;  %v2806_v37 = vld [vmem:[%s3523_s29 + $0x458] sm:$0xf0]  ;;  %v2638_v43 = vld [vmem:[%s3523_s29 + $0x308] sm:$0xf0] }
  0xa6   : > { %1939 = vmatpush.bf16.msra.mxu1 %v2417_v54  ;;  %v2694_v54 = vld [vmem:[%s3523_s29 + $0x378] sm:$0xf0] }
  0xa7   : > { %1952 = vmatpush.bf16.msra.mxu2 %v2481_v58  ;;  %v2385_v58 = vor.u32 %v3246_v44, %v2382_v47  ;;  %v2734_v44 = vld [vmem:[%s3523_s29 + $0x3c8] sm:$0xf0]  ;;  %v3350_v47 = vld [vmem:[%s3523_s29 + $0x444] sm:$0xf] }
  0xa8   : > { %1965 = vmatpush.bf16.msra.mxu3 %v2545_v63  ;;  %v2822_v63 = vld [vmem:[%s3523_s29 + $0x478] sm:$0xf0] }
  0xa9   : > { %1927 = vmatpush.bf16.msra.mxu0 %v2345_v1  ;;  %v2697_v1 = vor.u32 %v3324_v52, %v2694_v54  ;;  %v2825_v12 = vor.u32 %v3356_v62, %v2822_v63  ;;  %v2598_v52 = vld [vmem:[%s3523_s29 + $0x2b8] sm:$0xf0]  ;;  %v3298_v62 = vld [vmem:[%s3523_s29 + $0x2a4] sm:$0xf]  ;;  %v2590_v63 = vld [vmem:[%s3523_s29 + $0x2a8] sm:$0xf0] }
  0xaa   : > { %1940 = vmatpush.bf16.msra.mxu1 %v2409_v2  ;;  %v2761_v2 = vor.u32 %v3340_v55, %v2758_v56  ;;  %v2662_v54 = vld [vmem:[%s3523_s29 + $0x338] sm:$0xf0]  ;;  %v2801_v56 = vor.u32 %v3350_v47, %v2798_v48  ;;  %v2593_v10 = vor.u32 %v3298_v62, %v2590_v63  ;;  %v2878_v63 = vld [vmem:[%s3523_s29 + $0x4e8] sm:$0xf0] }
  0xab   : > { %1953 = vmatpush.bf16.msra.mxu2 %v2473_v8  ;;  %v2513_v8 = vor.u32 %v3278_v5, %v2510_v59  ;;  %v2726_v55 = vld [vmem:[%s3523_s29 + $0x3b8] sm:$0xf0] }
  0xac   : > { %1966 = vmatpush.bf16.msra.mxu3 %v2537_v17  ;;  %v3354_v17 = vld [vmem:[%s3523_s29 + $0x464] sm:$0xf]  ;;  %v2790_v5 = vld [vmem:[%s3523_s29 + $0x438] sm:$0xf0] }
  0xad   : > { %1928 = vmatpush.bf16.msra.mxu0 %v2337_v18  ;;  %v2814_v18 = vld [vmem:[%s3523_s29 + $0x468] sm:$0xf0] }
  0xae   : > { %1941 = vmatpush.bf16.msra.mxu1 %v2401_v21  ;;  %v2689_v21 = vor.u32 %v3322_v7, %v2686_v9  ;;  %v2817_v32 = vor.u32 %v3354_v17, %v2814_v18  ;;  %v2721_v17 = vor.u32 %v3330_v3, %v2718_v4  ;;  %v3296_v18 = vld [vmem:[%s3523_s29 + $0x294] sm:$0xf] }
  0xaf   : > { %1954 = vmatpush.bf16.msra.mxu2 %v2465_v28  ;;  %v3320_v28 = vld [vmem:[%s3523_s29 + $0x354] sm:$0xf] }
  0xb0   : > { %1967 = vmatpush.bf16.msra.mxu3 %v2529_v36  ;;  %v3352_v36 = vld [vmem:[%s3523_s29 + $0x454] sm:$0xf]  ;;  %v2681_v38 = vor.u32 %v3320_v28, %v2678_v29  ;;  %v2710_v28 = vld [vmem:[%s3523_s29 + $0x398] sm:$0xf0] }
  0xb1   : > { %1929 = vmatpush.bf16.msra.mxu0 %v2329_v39  ;;  %v2745_v39 = vor.u32 %v3336_v30, %v2742_v31  ;;  %v3344_v30 = vld [vmem:[%s3523_s29 + $0x414] sm:$0xf] }
  0xb2   : > { %1942 = vmatpush.bf16.msra.mxu1 %v2393_v41  ;;  %v2606_v41 = vld [vmem:[%s3523_s29 + $0x2c8] sm:$0xf0] }
  0xb3   : > { %1955 = vmatpush.bf16.msra.mxu2 %v2457_v45 }
  0xb4   : > { %1968 = vmatpush.bf16.msra.mxu3 %v2521_v53  ;;  %v3316_v53 = vld [vmem:[%s3523_s29 + $0x334] sm:$0xf] }
  0xb5   : > { %1930 = vmatpush.bf16.msra.mxu0 %v2321_v57  ;;  %v2601_v57 = vor.u32 %v3300_v51, %v2598_v52  ;;  %v1724_v59 = vpop.f32.mrf.mxu0  ;;  %v3404_v51 = vld [vmem:[%s3523_s29 + $0x5f4] sm:$0xf] }
  0xb6   : > { %1943 = vmatpush.bf16.msra.mxu1 %v2385_v58  ;;  %v3348_v58 = vld [vmem:[%s3523_s29 + $0x434] sm:$0xf]  ;;  %v1737_v7 = vpop.f32.mrf.mxu1 }
  0xb7   : > { %1956 = vmatpush.bf16.msra.mxu2 %v2449_v60  ;;  %v2665_v60 = vor.u32 %v3316_v53, %v2662_v54  ;;  %v3957_v9 = vadd.f32 %v1737_v7, %v1724_v59  ;;  %v3014_v53 = vld [vmem:[%s3523_s29 + $0x5f8] sm:$0xf0]  ;;  %v3342_v54 = vld [vmem:[%s3523_s29 + $0x404] sm:$0xf] }
  0xb8   : > { %1969 = vmatpush.bf16.msra.mxu3 %v2513_v8  ;;  %1931 = vmatmul.bf16.vlgmr.msra.gmra.mxu0 %v3629_v15  ;;  %v3302_v15 = vld [vmem:[%s3523_s29 + $0x2c4] sm:$0xf]  ;;  %v2793_v8 = vor.u32 %v3348_v58, %v2790_v5  ;;  %v3078_v58 = vld [vmem:[%s3523_s29 + $0x678] sm:$0xf0] }
  0xb9   : > { %1975 = vmatpush.bf16.msrb.mxu0 %v2633_v61  ;;  %1944 = vmatmul.bf16.vlgmr.msra.gmra.mxu1 %v3613_v0  ;;  %v2809_v0 = vor.u32 %v3352_v36, %v2806_v37  ;;  %v2609_v45 = vor.u32 %v3302_v15, %v2606_v41  ;;  %v3294_v36 = vld [vmem:[%s3523_s29 + $0x284] sm:$0xf]  ;;  %v2574_v37 = vld [vmem:[%s3523_s29 + $0x288] sm:$0xf0]  ;;  %v2713_v41 = vor.u32 %v3328_v27, %v2710_v28  ;;  %v2934_v27 = vld [vmem:[%s3523_s29 + $0x558] sm:$0xf0] }
  0xba   : > { %1988 = vmatpush.bf16.msrb.mxu1 %v2697_v1  ;;  %1957 = vmatmul.bf16.vlgmr.msra.gmra.mxu2 %v3621_v6  ;;  %v3334_v6 = vld [vmem:[%s3523_s29 + $0x3c4] sm:$0xf]  ;;  %v2577_v52 = vor.u32 %v3294_v36, %v2574_v37 }
  0xbb   : > { %2001 = vmatpush.bf16.msrb.mxu2 %v2761_v2  ;;  %1970 = vmatmul.bf16.vlgmr.msra.gmra.mxu3 %v3687_v33  ;;  %v2737_v50 = vor.u32 %v3334_v6, %v2734_v44  ;;  %v3332_v33 = vld [vmem:[%s3523_s29 + $0x3b4] sm:$0xf]  ;;  %v3314_v1 = vld [vmem:[%s3523_s29 + $0x324] sm:$0xf]  ;;  %v2654_v2 = vld [vmem:[%s3523_s29 + $0x328] sm:$0xf0] }
  0xbc   : > { %2014 = vmatpush.bf16.msrb.mxu3 %v2825_v12  ;;  %v2729_v61 = vor.u32 %v3332_v33, %v2726_v55  ;;  %v2782_v12 = vld [vmem:[%s3523_s29 + $0x428] sm:$0xf0]  ;;  %v3326_v6 = vld [vmem:[%s3523_s29 + $0x384] sm:$0xf]  ;;  %v2641_v55 = vor.u32 %v3310_v42, %v2638_v43 }
  0xbd   : > { %1976 = vmatpush.bf16.msrb.mxu0 %v2625_v13  ;;  %v2657_v13 = vor.u32 %v3314_v1, %v2654_v2  ;;  %v2785_v29 = vor.u32 %v3346_v11, %v2782_v12  ;;  %v3968_v31 = vpop.f32.mrf.mxu2  ;;  %v2702_v44 = vld [vmem:[%s3523_s29 + $0x388] sm:$0xf0]  ;;  %v3386_v1 = vld [vmem:[%s3523_s29 + $0x564] sm:$0xf] }
  0xbe   : > { %1989 = vmatpush.bf16.msrb.mxu1 %v2689_v21  ;;  %v2582_v21 = vld [vmem:[%s3523_s29 + $0x298] sm:$0xf0]  ;;  %v1739_v47 = vpop.f32.mrf.mxu1  ;;  %v2766_v33 = vld [vmem:[%s3523_s29 + $0x408] sm:$0xf0]  ;;  %v3402_v7 = vld [vmem:[%s3523_s29 + $0x5e4] sm:$0xf] }
  0xbf   : > { %2002 = vmatpush.bf16.msrb.mxu2 %v2753_v23  ;;  %v3312_v23 = vld [vmem:[%s3523_s29 + $0x314] sm:$0xf]  ;;  %v2769_v62 = vor.u32 %v3342_v54, %v2766_v33  ;;  %v2942_v2 = vld [vmem:[%s3523_s29 + $0x568] sm:$0xf0]  ;;  %v3418_v11 = vld [vmem:[%s3523_s29 + $0x664] sm:$0xf] }
  0xc0   : > { %2015 = vmatpush.bf16.msrb.mxu3 %v2817_v32  ;;  %v2585_v32 = vor.u32 %v3296_v18, %v2582_v21  ;;  %v2649_v15 = vor.u32 %v3312_v23, %v2646_v24  ;;  %v3070_v12 = vld [vmem:[%s3523_s29 + $0x668] sm:$0xf0]  ;;  %v3368_v18 = vld [vmem:[%s3523_s29 + $0x4d4] sm:$0xf]  ;;  %v2870_v23 = vld [vmem:[%s3523_s29 + $0x4d8] sm:$0xf0] }
  0xc1   : > { %1977 = vmatpush.bf16.msrb.mxu0 %v2617_v34  ;;  %v2774_v34 = vld [vmem:[%s3523_s29 + $0x418] sm:$0xf0]  ;;  %v3384_v24 = vld [vmem:[%s3523_s29 + $0x554] sm:$0xf]  ;;  %v3073_v28 = vor.u32 %v3418_v11, %v3070_v12  ;;  %v2873_v36 = vor.u32 %v3368_v18, %v2870_v23  ;;  %v3366_v37 = vld [vmem:[%s3523_s29 + $0x4c4] sm:$0xf] }
  0xc2   : > { %1990 = vmatpush.bf16.msrb.mxu1 %v2681_v38  ;;  %v3973_v38 = vpop.f32.mrf.mxu3  ;;  %v2777_v48 = vor.u32 %v3344_v30, %v2774_v34  ;;  %v2998_v30 = vld [vmem:[%s3523_s29 + $0x5d8] sm:$0xf0]  ;;  %v3398_v42 = vld [vmem:[%s3523_s29 + $0x5c4] sm:$0xf]  ;;  %v2990_v43 = vld [vmem:[%s3523_s29 + $0x5c8] sm:$0xf0] }
  0xc3   : > { %2003 = vmatpush.bf16.msrb.mxu2 %v2745_v39  ;;  %v1726_v39 = vpop.f32.mrf.mxu0  ;;  %v3062_v34 = vld [vmem:[%s3523_s29 + $0x658] sm:$0xf0]  ;;  %v3364_v47 = vld [vmem:[%s3523_s29 + $0x4b4] sm:$0xf] }
  0xc4   : > { %2016 = vmatpush.bf16.msrb.mxu3 %v2809_v0  ;;  %v3372_v0 = vld [vmem:[%s3523_s29 + $0x4f4] sm:$0xf]  ;;  %v2982_v54 = vld [vmem:[%s3523_s29 + $0x5b8] sm:$0xf0] }
  0xc5   : > { %1978 = vmatpush.bf16.msrb.mxu0 %v2609_v45  ;;  %v2886_v45 = vld [vmem:[%s3523_s29 + $0x4f8] sm:$0xf0]  ;;  %v1752_v3 = vpop.f32.mrf.mxu2  ;;  %v3360_v11 = vld [vmem:[%s3523_s29 + $0x494] sm:$0xf] }
  0xc6   : > { %1991 = vmatpush.bf16.msrb.mxu1 %v2673_v49  ;;  %v3388_v49 = vld [vmem:[%s3523_s29 + $0x574] sm:$0xf]  ;;  %v2889_v5 = vor.u32 %v3372_v0, %v2886_v45 }
  0xc7   : > { %2004 = vmatpush.bf16.msrb.mxu2 %v2737_v50  ;;  %v2950_v50 = vld [vmem:[%s3523_s29 + $0x578] sm:$0xf0]  ;;  %v3376_v18 = vld [vmem:[%s3523_s29 + $0x514] sm:$0xf] }
  0xc8   : > { %2017 = vmatpush.bf16.msrb.mxu3 %v2801_v56  ;;  %v2705_v56 = vor.u32 %v3326_v6, %v2702_v44  ;;  %v2953_v59 = vor.u32 %v3388_v49, %v2950_v50  ;;  %v3414_v6 = vld [vmem:[%s3523_s29 + $0x644] sm:$0xf]  ;;  %v3054_v44 = vld [vmem:[%s3523_s29 + $0x648] sm:$0xf0]  ;;  %v2854_v49 = vld [vmem:[%s3523_s29 + $0x4b8] sm:$0xf0] }
  0xc9   : > { %1979 = vmatpush.bf16.msrb.mxu0 %v2601_v57  ;;  %v3420_v57 = vld [vmem:[%s3523_s29 + $0x674] sm:$0xf] }
  0xca   : > { %1992 = vmatpush.bf16.msrb.mxu1 %v2665_v60  ;;  %v3370_v60 = vld [vmem:[%s3523_s29 + $0x4e4] sm:$0xf]  ;;  %v3081_v4 = vor.u32 %v3420_v57, %v3078_v58  ;;  %v3380_v50 = vld [vmem:[%s3523_s29 + $0x534] sm:$0xf]  ;;  %v2857_v57 = vor.u32 %v3364_v47, %v2854_v49  ;;  %v3022_v47 = vld [vmem:[%s3523_s29 + $0x608] sm:$0xf0] }
  0xcb   : > { %2005 = vmatpush.bf16.msrb.mxu2 %v2729_v61  ;;  %v3017_v61 = vor.u32 %v3404_v51, %v3014_v53  ;;  %v2918_v51 = vld [vmem:[%s3523_s29 + $0x538] sm:$0xf0]  ;;  %v3396_v53 = vld [vmem:[%s3523_s29 + $0x5b4] sm:$0xf] }
  0xcc   : > { %2018 = vmatpush.bf16.msrb.mxu3 %v2793_v8  ;;  %v3006_v8 = vld [vmem:[%s3523_s29 + $0x5e8] sm:$0xf0]  ;;  %v2921_v58 = vor.u32 %v3380_v50, %v2918_v51 }
  0xcd   : > { %1980 = vmatpush.bf16.msrb.mxu0 %v2593_v10  ;;  %v1765_v10 = vpop.f32.mrf.mxu3  ;;  %v3009_v21 = vor.u32 %v3402_v7, %v3006_v8  ;;  %v3038_v7 = vld [vmem:[%s3523_s29 + $0x628] sm:$0xf0] }
  0xce   : > { %1993 = vmatpush.bf16.msrb.mxu1 %v2657_v13  ;;  %v2881_v13 = vor.u32 %v3370_v60, %v2878_v63  ;;  %v2846_v60 = vld [vmem:[%s3523_s29 + $0x4a8] sm:$0xf0] }
  0xcf   : > { %2006 = vmatpush.bf16.msrb.mxu2 %v2721_v17  ;;  %v2945_v17 = vor.u32 %v3386_v1, %v2942_v2  ;;  %v3394_v1 = vld [vmem:[%s3523_s29 + $0x5a4] sm:$0xf]  ;;  %v2974_v2 = vld [vmem:[%s3523_s29 + $0x5a8] sm:$0xf0] }
  0xd0   : > { %2019 = vmatpush.bf16.msrb.mxu3 %v2785_v29  ;;  %v3400_v29 = vld [vmem:[%s3523_s29 + $0x5d4] sm:$0xf] }
  0xd1   : > { %1981 = vmatpush.bf16.msrb.mxu0 %v2585_v32  ;;  %v3416_v32 = vld [vmem:[%s3523_s29 + $0x654] sm:$0xf]  ;;  %v3001_v39 = vor.u32 %v3400_v29, %v2998_v30 }
  0xd2   : > { %1994 = vmatpush.bf16.msrb.mxu1 %v2649_v15  ;;  %v2862_v15 = vld [vmem:[%s3523_s29 + $0x4c8] sm:$0xf0]  ;;  %v3408_v30 = vld [vmem:[%s3523_s29 + $0x614] sm:$0xf] }
  0xd3   : > { %2007 = vmatpush.bf16.msrb.mxu2 %v2713_v41  ;;  %v3065_v41 = vor.u32 %v3416_v32, %v3062_v34  ;;  %v3030_v32 = vld [vmem:[%s3523_s29 + $0x618] sm:$0xf0] }
  0xd4   : > { %2020 = vmatpush.bf16.msrb.mxu3 %v2777_v48  ;;  %v2993_v48 = vor.u32 %v3398_v42, %v2990_v43  ;;  %v3033_v42 = vor.u32 %v3408_v30, %v3030_v32  ;;  %v3436_v43 = vld [vmem:[%s3523_s29 + $0x6f4] sm:$0xf]  ;;  %v3442_v30 = vld [vmem:[%s3523_s29 + $0x724] sm:$0xf]  ;;  %v3166_v32 = vld [vmem:[%s3523_s29 + $0x728] sm:$0xf0] }
  0xd5   : > { %1982 = vmatpush.bf16.msrb.mxu0 %v2577_v52  ;;  %v4017_v45 = vpop.f32.mrf.mxu0  ;;  %v3057_v52 = vor.u32 %v3414_v6, %v3054_v44  ;;  %v3142_v6 = vld [vmem:[%s3523_s29 + $0x6f8] sm:$0xf0]  ;;  %v3452_v44 = vld [vmem:[%s3523_s29 + $0x774] sm:$0xf] }
  0xd6   : > { %1995 = vmatpush.bf16.msrb.mxu1 %v2641_v55  ;;  %v4025_v33 = vpop.f32.mrf.mxu1  ;;  %v3412_v55 = vld [vmem:[%s3523_s29 + $0x634] sm:$0xf] }
  0xd7   : > { %2008 = vmatpush.bf16.msrb.mxu2 %v2705_v56  ;;  %v3046_v56 = vld [vmem:[%s3523_s29 + $0x638] sm:$0xf0] }
  0xd8   : > { %2021 = vmatpush.bf16.msrb.mxu3 %v2769_v62  ;;  %1983 = vmatmul.bf16.vlgmr.msrb.gmra.mxu0 %v3694_v40  ;;  %v3382_v40 = vld [vmem:[%s3523_s29 + $0x544] sm:$0xf]  ;;  %v2910_v62 = vld [vmem:[%s3523_s29 + $0x528] sm:$0xf0]  ;;  %v3049_v63 = vor.u32 %v3412_v55, %v3046_v56 }
  0xd9   : > { %2027 = vmatpush.bf16.msra.mxu0 %v2889_v5  ;;  %1996 = vmatmul.bf16.vlgmr.msrb.gmra.mxu1 %v3689_v35  ;;  %v2926_v35 = vld [vmem:[%s3523_s29 + $0x548] sm:$0xf0]  ;;  %v3362_v5 = vld [vmem:[%s3523_s29 + $0x4a4] sm:$0xf] }
  0xda   : > { %2040 = vmatpush.bf16.msra.mxu1 %v2953_v59  ;;  %2009 = vmatmul.bf16.vlgmr.msrb.gmra.mxu2 %v3700_v46  ;;  %v2937_v46 = vor.u32 %v3384_v24, %v2934_v27  ;;  %v2929_v0 = vor.u32 %v3382_v40, %v2926_v35  ;;  %v2985_v59 = vor.u32 %v3396_v53, %v2982_v54  ;;  %v3392_v27 = vld [vmem:[%s3523_s29 + $0x594] sm:$0xf]  ;;  %v2894_v40 = vld [vmem:[%s3523_s29 + $0x508] sm:$0xf0]  ;;  %v3390_v35 = vld [vmem:[%s3523_s29 + $0x584] sm:$0xf] }
  0xdb   : > { %2053 = vmatpush.bf16.msra.mxu2 %v3017_v61  ;;  %2022 = vmatmul.bf16.vlgmr.msrb.gmra.mxu3 %v3765_v19  ;;  %v2865_v19 = vor.u32 %v3366_v37, %v2862_v15  ;;  %v3378_v61 = vld [vmem:[%s3523_s29 + $0x524] sm:$0xf]  ;;  %v2849_v8 = vor.u32 %v3362_v5, %v2846_v60  ;;  %v2830_v37 = vld [vmem:[%s3523_s29 + $0x488] sm:$0xf0] }
  0xdc   : > { %2066 = vmatpush.bf16.msra.mxu3 %v3081_v4  ;;  %v3410_v4 = vld [vmem:[%s3523_s29 + $0x624] sm:$0xf]  ;;  %v2913_v10 = vor.u32 %v3378_v61, %v2910_v62  ;;  %v3134_v56 = vld [vmem:[%s3523_s29 + $0x6e8] sm:$0xf0]  ;;  %v3432_v61 = vld [vmem:[%s3523_s29 + $0x6d4] sm:$0xf] }
  0xdd   : > { %2028 = vmatpush.bf16.msra.mxu0 %v2881_v13  ;;  %v4035_v3 = vpop.f32.mrf.mxu2  ;;  %v1778_v12 = vpop.f32.mrf.mxu0  ;;  %v2977_v13 = vor.u32 %v3394_v1, %v2974_v2  ;;  %v3041_v24 = vor.u32 %v3410_v4, %v3038_v7  ;;  %v3434_v55 = vld [vmem:[%s3523_s29 + $0x6e4] sm:$0xf]  ;;  %v3198_v5 = vld [vmem:[%s3523_s29 + $0x768] sm:$0xf0]  ;;  %v3126_v62 = vld [vmem:[%s3523_s29 + $0x6d8] sm:$0xf0] }
  0xde   : > { %2041 = vmatpush.bf16.msra.mxu1 %v2945_v17  ;;  %v2838_v17 = vld [vmem:[%s3523_s29 + $0x498] sm:$0xf0]  ;;  %v4043_v23 = vpop.f32.mrf.mxu3  ;;  %v1791_v29 = vpop.f32.mrf.mxu1  ;;  %v3129_v2 = vor.u32 %v3432_v61, %v3126_v62  ;;  %v3430_v7 = vld [vmem:[%s3523_s29 + $0x6c4] sm:$0xf]  ;;  %v3428_v12 = vld [vmem:[%s3523_s29 + $0x6b4] sm:$0xf] }
  0xdf   : > { %2054 = vmatpush.bf16.msra.mxu2 %v3009_v21  ;;  %v2902_v21 = vld [vmem:[%s3523_s29 + $0x518] sm:$0xf0]  ;;  %v2841_v34 = vor.u32 %v3360_v11, %v2838_v17 }
  0xe0   : > { %2067 = vmatpush.bf16.msra.mxu3 %v3073_v28  ;;  %v2966_v28 = vld [vmem:[%s3523_s29 + $0x598] sm:$0xf0] }
  0xe1   : > { %2029 = vmatpush.bf16.msra.mxu0 %v2873_v36  ;;  %v2905_v36 = vor.u32 %v3376_v18, %v2902_v21  ;;  %v2969_v15 = vor.u32 %v3392_v27, %v2966_v28  ;;  %v3190_v1 = vld [vmem:[%s3523_s29 + $0x758] sm:$0xf0]  ;;  %v3444_v21 = vld [vmem:[%s3523_s29 + $0x734] sm:$0xf]  ;;  %v3426_v27 = vld [vmem:[%s3523_s29 + $0x6a4] sm:$0xf] }
  0xe2   : > { %2042 = vmatpush.bf16.msra.mxu1 %v2937_v46  ;;  %v3358_v46 = vld [vmem:[%s3523_s29 + $0x484] sm:$0xf]  ;;  %v3102_v28 = vld [vmem:[%s3523_s29 + $0x6a8] sm:$0xf0] }
  0xe3   : > { %2055 = vmatpush.bf16.msra.mxu2 %v3001_v39  ;;  %v3374_v39 = vld [vmem:[%s3523_s29 + $0x504] sm:$0xf]  ;;  %v2833_v49 = vor.u32 %v3358_v46, %v2830_v37  ;;  %v3169_v46 = vor.u32 %v3442_v30, %v3166_v32  ;;  %v3424_v37 = vld [vmem:[%s3523_s29 + $0x694] sm:$0xf] }
  0xe4   : > { %2068 = vmatpush.bf16.msra.mxu3 %v3065_v41  ;;  %v2958_v41 = vld [vmem:[%s3523_s29 + $0x588] sm:$0xf0]  ;;  %v2897_v50 = vor.u32 %v3374_v39, %v2894_v40  ;;  %v3094_v39 = vld [vmem:[%s3523_s29 + $0x698] sm:$0xf0] }
  0xe5   : > { %2030 = vmatpush.bf16.msra.mxu0 %v2865_v19  ;;  %v3206_v19 = vld [vmem:[%s3523_s29 + $0x778] sm:$0xf0]  ;;  %v2961_v51 = vor.u32 %v3390_v35, %v2958_v41  ;;  %v3440_v35 = vld [vmem:[%s3523_s29 + $0x714] sm:$0xf] }
  0xe6   : > { %2043 = vmatpush.bf16.msra.mxu1 %v2929_v0  ;;  %v3406_v0 = vld [vmem:[%s3523_s29 + $0x604] sm:$0xf]  ;;  %v3209_v53 = vor.u32 %v3452_v44, %v3206_v19  ;;  %v3158_v41 = vld [vmem:[%s3523_s29 + $0x718] sm:$0xf0]  ;;  %v3086_v44 = vld [vmem:[%s3523_s29 + $0x688] sm:$0xf0] }
  0xe7   : > { %2056 = vmatpush.bf16.msra.mxu2 %v2993_v48  ;;  %v1804_v48 = vpop.f32.mrf.mxu2  ;;  %v3025_v54 = vor.u32 %v3406_v0, %v3022_v47  ;;  %v3438_v0 = vld [vmem:[%s3523_s29 + $0x704] sm:$0xf]  ;;  %v3150_v47 = vld [vmem:[%s3523_s29 + $0x708] sm:$0xf0] }
  0xe8   : > { %2069 = vmatpush.bf16.msra.mxu3 %v3057_v52  ;;  %v3145_v52 = vor.u32 %v3436_v43, %v3142_v6  ;;  %v3161_v43 = vor.u32 %v3440_v35, %v3158_v41  ;;  %v3422_v6 = vld [vmem:[%s3523_s29 + $0x684] sm:$0xf] }
  0xe9   : > { %2031 = vmatpush.bf16.msra.mxu0 %v2857_v57  ;;  %v1817_v57 = vpop.f32.mrf.mxu3 }
  0xea   : > { %2044 = vmatpush.bf16.msra.mxu1 %v2921_v58  ;;  %v3450_v58 = vld [vmem:[%s3523_s29 + $0x764] sm:$0xf] }
  0xeb   : > { %2057 = vmatpush.bf16.msra.mxu2 %v2985_v59  ;;  %v3137_v59 = vor.u32 %v3434_v55, %v3134_v56  ;;  %v3201_v60 = vor.u32 %v3450_v58, %v3198_v5  ;;  %v243_v5 = vld [vmem:[#allocation2] sm:$0xff] }
  0xec   : > { %2070 = vmatpush.bf16.msra.mxu3 %v3049_v63  ;;  %v3448_v63 = vld [vmem:[%s3523_s29 + $0x754] sm:$0xf] }
  0xed   : > { %2032 = vmatpush.bf16.msra.mxu0 %v2849_v8  ;;  %v3193_v4 = vor.u32 %v3448_v63, %v3190_v1  ;;  %v3118_v8 = vld [vmem:[%s3523_s29 + $0x6c8] sm:$0xf0] }
  0xee   : > { %2045 = vmatpush.bf16.msra.mxu1 %v2913_v10  ;;  %v3182_v10 = vld [vmem:[%s3523_s29 + $0x748] sm:$0xf0] }
  0xef   : > { %2058 = vmatpush.bf16.msra.mxu2 %v2977_v13  ;;  %v3110_v13 = vld [vmem:[%s3523_s29 + $0x6b8] sm:$0xf0] }
  0xf0   : > { %2071 = vmatpush.bf16.msra.mxu3 %v3041_v24  ;;  %v3174_v24 = vld [vmem:[%s3523_s29 + $0x738] sm:$0xf0] }
  0xf1   : > { %2033 = vmatpush.bf16.msra.mxu0 %v2841_v34 }
  0xf2   : > { %2046 = vmatpush.bf16.msra.mxu1 %v2905_v36 }
  0xf3   : > { %2059 = vmatpush.bf16.msra.mxu2 %v2969_v15 }
  0xf4   : > { %2072 = vmatpush.bf16.msra.mxu3 %v3033_v42  ;;  %v3097_v42 = vor.u32 %v3424_v37, %v3094_v39 }
  0xf5   : > { %2034 = vmatpush.bf16.msra.mxu0 %v2833_v49  ;;  %v3089_v49 = vor.u32 %v3422_v6, %v3086_v44 }
  0xf6   : > { %2047 = vmatpush.bf16.msra.mxu1 %v2897_v50  ;;  %v1841_v18 = vpop.f32.mrf.mxu1  ;;  %v3153_v50 = vor.u32 %v3438_v0, %v3150_v47 }
  0xf7   : > { %2060 = vmatpush.bf16.msra.mxu2 %v2961_v51 }
  0xf8   : > { %2073 = vmatpush.bf16.msra.mxu3 %v3025_v54  ;;  %2035 = vmatmul.bf16.vlgmr.msra.gmra.mxu0 %v3772_v25  ;;  %v1751_v25 = vadd.f32 %v3968_v31, %v3957_v9  ;;  %v3113_v9 = vor.u32 %v3428_v12, %v3110_v13  ;;  %v3177_v31 = vor.u32 %v3444_v21, %v3174_v24 }
  0xf9   : > { %2079 = vmatpush.bf16.msrb.mxu0 %v3145_v52  ;;  %2048 = vmatmul.bf16.vlgmr.msra.gmra.mxu1 %v3767_v20  ;;  %v3446_v20 = vld [vmem:[%s3523_s29 + $0x744] sm:$0xf] }
  0xfa   : > { %2092 = vmatpush.bf16.msrb.mxu1 %v3209_v53  ;;  %2061 = vmatmul.bf16.vlgmr.msra.gmra.mxu2 %v3774_v26  ;;  %v3121_v26 = vor.u32 %v3430_v7, %v3118_v8  ;;  %v3185_v11 = vor.u32 %v3446_v20, %v3182_v10  ;;  %v1764_v17 = vadd.f32 %v3973_v38, %v1751_v25 }
  0xfb   : > { %2074 = vmatmul.bf16.vlgmr.msra.gmra.mxu3 %v3845_v14  ;;  %v1828_v14 = vpop.f32.mrf.mxu0  ;;  %v3105_v38 = vor.u32 %v3426_v27, %v3102_v28 }
  0xfc   : > { %v1777_v29 = vadd.f32 %v4017_v45, %v1764_v17 }
  0xfd   : > { %2080 = vmatpush.bf16.msrb.mxu0 %v3137_v59  ;;  %v1854_v34 = vpop.f32.mrf.mxu2 }
  0xfe   : > { %2093 = vmatpush.bf16.msrb.mxu1 %v3201_v60  ;;  %v1867_v36 = vpop.f32.mrf.mxu3  ;;  %v1790_v40 = vadd.f32 %v4025_v33, %v1777_v29  ;;  %v1843_v45 = vpop.f32.mrf.mxu1 }
 0x100   : > { %v1803_v19 = vadd.f32 %v4035_v3, %v1790_v40 }
 0x101   : > { %2081 = vmatpush.bf16.msrb.mxu0 %v3129_v2 }
 0x102   : > { %2094 = vmatpush.bf16.msrb.mxu1 %v3193_v4  ;;  %v1816_v33 = vadd.f32 %v4043_v23, %v1803_v19  ;;  %v244_v19 = vld [vmem:[#allocation2 + $0x8] sm:$0xff] }
 0x103   : > { %v1830_v15 = vpop.f32.mrf.mxu0 }
 0x104   : > { %v1829_v52 = vadd.f32 %v1828_v14, %v1816_v33 }
 0x105   : > { %2082 = vmatpush.bf16.msrb.mxu0 %v3121_v26  ;;  %v1856_v48 = vpop.f32.mrf.mxu2 }
 0x106   : > { %2095 = vmatpush.bf16.msrb.mxu1 %v3185_v11  ;;  %v1869_v51 = vpop.f32.mrf.mxu3  ;;  %v1842_v53 = vadd.f32 %v1841_v18, %v1829_v52 }
 0x108   : > { %v1855_v54 = vadd.f32 %v1854_v34, %v1842_v53 }
 0x109   : > { %2083 = vmatpush.bf16.msrb.mxu0 %v3113_v9 }
 0x10a   : > { %2096 = vmatpush.bf16.msrb.mxu1 %v3177_v31  ;;  %v1868_v3 = vadd.f32 %v1867_v36, %v1855_v54 }
 0x10d   : > { %2084 = vmatpush.bf16.msrb.mxu0 %v3105_v38 }
 0x10e   : > { %2097 = vmatpush.bf16.msrb.mxu1 %v3169_v46 }
 0x111   : > { %2085 = vmatpush.bf16.msrb.mxu0 %v3097_v42 }
 0x112   : > { %2098 = vmatpush.bf16.msrb.mxu1 %v3161_v43 }
 0x115   : > { %2086 = vmatpush.bf16.msrb.mxu0 %v3089_v49  ;;  %v1880_v55 = vpop.f32.mrf.mxu0 }
 0x116   : > { %2099 = vmatpush.bf16.msrb.mxu1 %v3153_v50  ;;  %v1881_v56 = vadd.f32 %v1880_v55, %v1868_v3  ;;  %v1893_v57 = vpop.f32.mrf.mxu1 }
 0x118   : > { %2087 = vmatmul.bf16.vlgmr.msrb.gmra.mxu0 %v3851_v22  ;;  %v1894_v58 = vadd.f32 %v1893_v57, %v1881_v56 }
 0x119   : > { %2100 = vmatmul.bf16.vlgmr.msrb.gmra.mxu1 %v3847_v16 }
 0x11d   : > { %v1906_v59 = vpop.f32.mrf.mxu2  ;;  %v1882_v61 = vpop.f32.mrf.mxu0 }
 0x11e   : > { %v1907_v60 = vadd.f32 %v1906_v59, %v1894_v58  ;;  %v1895_v23 = vpop.f32.mrf.mxu1  ;;  %v1919_v63 = vpop.f32.mrf.mxu3 }
 0x120   : > { %v2105_v62 = vadd.f32 %v1907_v60, %v243_v5 }
 0x122   : > { %2107 = vst [vmem:[#allocation2] sm:$0xff] %v2105_v62 }
 0x125   : > { %v1908_v1 = vpop.f32.mrf.mxu2 }
 0x126   : > { %v1921_v2 = vpop.f32.mrf.mxu3 }
 0x135   : > { %v1932_v22 = vpop.f32.mrf.mxu0 }
 0x136   : > { %v1933_v4 = vadd.f32 %v1932_v22, %v1919_v63  ;;  %v1945_v7 = vpop.f32.mrf.mxu1 }
 0x138   : > { %v1946_v16 = vadd.f32 %v1945_v7, %v1933_v4 }
 0x13d   : > { %v1958_v8 = vpop.f32.mrf.mxu2  ;;  %v1934_v25 = vpop.f32.mrf.mxu0 }
 0x13e   : > { %v1971_v20 = vpop.f32.mrf.mxu3  ;;  %v1947_v10 = vpop.f32.mrf.mxu1  ;;  %v1959_v31 = vadd.f32 %v1958_v8, %v1946_v16 }
 0x140   : > { %v1972_v27 = vadd.f32 %v1971_v20, %v1959_v31 }
 0x145   : > { %v1960_v26 = vpop.f32.mrf.mxu2 }
 0x146   : > { %v1973_v14 = vpop.f32.mrf.mxu3 }
 0x155   : > { %v1984_v11 = vpop.f32.mrf.mxu0 }
 0x156   : > { %v1997_v12 = vpop.f32.mrf.mxu1  ;;  %v1985_v30 = vadd.f32 %v1984_v11, %v1972_v27 }
 0x158   : > { %v1998_v34 = vadd.f32 %v1997_v12, %v1985_v30 }
 0x15d   : > { %v2010_v13 = vpop.f32.mrf.mxu2  ;;  %v1986_v18 = vpop.f32.mrf.mxu0 }
 0x15e   : > { %v2023_v17 = vpop.f32.mrf.mxu3  ;;  %v1999_v21 = vpop.f32.mrf.mxu1  ;;  %v2011_v37 = vadd.f32 %v2010_v13, %v1998_v34 }
 0x160   : > { %v2024_v15 = vadd.f32 %v2023_v17, %v2011_v37 }
 0x165   : > { %v2012_v24 = vpop.f32.mrf.mxu2 }
 0x166   : > { %v2025_v9 = vpop.f32.mrf.mxu3 }
 0x175   : > { %v2036_v28 = vpop.f32.mrf.mxu0 }
 0x176   : > { %v2049_v29 = vpop.f32.mrf.mxu1  ;;  %v2037_v35 = vadd.f32 %v2036_v28, %v2024_v15 }
 0x178   : > { %v2050_v41 = vadd.f32 %v2049_v29, %v2037_v35 }
 0x17d   : > { %v2062_v32 = vpop.f32.mrf.mxu2  ;;  %v2038_v36 = vpop.f32.mrf.mxu0 }
 0x17e   : > { %v2075_v38 = vpop.f32.mrf.mxu3  ;;  %v2051_v46 = vpop.f32.mrf.mxu1  ;;  %v2063_v45 = vadd.f32 %v2062_v32, %v2050_v41 }
 0x180   : > { %v2076_v42 = vadd.f32 %v2075_v38, %v2063_v45 }
 0x185   : > { %v2064_v39 = vpop.f32.mrf.mxu2 }
 0x186   : > { %v2077_v40 = vpop.f32.mrf.mxu3 }
 0x195   : > { %v2088_v43 = vpop.f32.mrf.mxu0 }
 0x196   : > { %v2089_v6 = vadd.f32 %v2088_v43, %v2076_v42  ;;  %v2101_v44 = vpop.f32.mrf.mxu1 }
 0x198   : > { %v2102_v0 = vadd.f32 %v2101_v44, %v2089_v6 }
 0x19a   : > { %v2106_v47 = vadd.f32 %v2102_v0, %v244_v19  ;;  %2112 = sbr.rel (%p3210_p6) target bundleno = 578 (0x242), region = 48 }
 0x19c   : > { %2108 = vst [vmem:[#allocation2 + $0x8] sm:$0xff] %v2106_v47 }
 0x19d   : > { %v2090_v48 = vpop.f32.mrf.mxu0 }
 0x19e   : > { %v2103_v49 = vpop.f32.mrf.mxu1 }
 0x19f   : > { %v2140_v50 = vld [vmem:[%s4214_s3 + $0x78] sm:$0xff]  ;;  %v2139_v51 = vld [vmem:[%s4214_s3 + $0x70] sm:$0xff]  ;;  %v2138_v53 = vld [vmem:[%s4214_s3 + $0x68] sm:$0xff] }
 0x1a0   : > { %v2156_v33 = vld [vmem:[%s4214_s3 + $0xf8] sm:$0xff]  ;;  %2161 = vmatpush.msra.mxu0 %v2140_v50  ;;  %v2155_v52 = vld [vmem:[%s4214_s3 + $0xf0] sm:$0xff]  ;;  %v2154_v54 = vld [vmem:[%s4214_s3 + $0xe8] sm:$0xff] }
 0x1a1   : > { %2181 = vmatpush.msra.mxu1 %v2156_v33  ;;  %v2137_v3 = vld [vmem:[%s4214_s3 + $0x60] sm:$0xff]  ;;  %v2136_v56 = vld [vmem:[%s4214_s3 + $0x58] sm:$0xff]  ;;  %v2135_v58 = vld [vmem:[%s4214_s3 + $0x50] sm:$0xff] }
 0x1a2   : > { %2162 = vmatpush.msra.mxu0 %v2139_v51  ;;  %v2153_v55 = vld [vmem:[%s4214_s3 + $0xe0] sm:$0xff]  ;;  %v2152_v57 = vld [vmem:[%s4214_s3 + $0xd8] sm:$0xff]  ;;  %v2151_v5 = vld [vmem:[%s4214_s3 + $0xd0] sm:$0xff] }
 0x1a3   : > { %2182 = vmatpush.msra.mxu1 %v2155_v52  ;;  %v2134_v59 = vld [vmem:[%s4214_s3 + $0x48] sm:$0xff]  ;;  %v2133_v61 = vld [vmem:[%s4214_s3 + $0x40] sm:$0xff]  ;;  %v2132_v23 = vld [vmem:[%s4214_s3 + $0x38] sm:$0xff] }
 0x1a4   : > { %2163 = vmatpush.msra.mxu0 %v2138_v53  ;;  %v2150_v60 = vld [vmem:[%s4214_s3 + $0xc8] sm:$0xff]  ;;  %v2149_v62 = vld [vmem:[%s4214_s3 + $0xc0] sm:$0xff]  ;;  %v2148_v63 = vld [vmem:[%s4214_s3 + $0xb8] sm:$0xff] }
 0x1a5   : > { %2183 = vmatpush.msra.mxu1 %v2154_v54  ;;  %v2131_v1 = vld [vmem:[%s4214_s3 + $0x30] sm:$0xff]  ;;  %v2115_v22 = vld [vmem:[%s4213_s2] sm:$0x3]  ;;  %v2130_v4 = vld [vmem:[%s4214_s3 + $0x28] sm:$0xff] }
 0x1a6   : > { %2164 = vmatpush.msra.mxu0 %v2137_v3  ;;  %v2147_v2 = vld [vmem:[%s4214_s3 + $0xb0] sm:$0xff]  ;;  %v2146_v7 = vld [vmem:[%s4214_s3 + $0xa8] sm:$0xff]  ;;  %v2129_v16 = vld [vmem:[%s4214_s3 + $0x20] sm:$0xff]  ;;  %v2117_v25 = vperm.slane %v2115_v22, 0  ;;  %v2118_v20 = vperm.slane %v2115_v22, 1 }
 0x1a7   : > { %2184 = vmatpush.msra.mxu1 %v2153_v55  ;;  %v2145_v8 = vld [vmem:[%s4214_s3 + $0xa0] sm:$0xff]  ;;  %v2114_v26 = vld [vmem:[#allocation2 + $0x8] sm:$0xff]  ;;  %v2128_v14 = vld [vmem:[%s4214_s3 + $0x18] sm:$0xff] }
 0x1a8   : > { %2165 = vmatpush.msra.mxu0 %v2136_v56  ;;  %v2113_v10 = vld [vmem:[#allocation2] sm:$0xff]  ;;  %v2144_v11 = vld [vmem:[%s4214_s3 + $0x98] sm:$0xff]  ;;  %v2127_v12 = vld [vmem:[%s4214_s3 + $0x10] sm:$0xff]  ;;  %v2122_v18 = vadd.f32 %v2118_v20, %v2114_v26 }
 0x1a9   : > { %2185 = vmatpush.msra.mxu1 %v2152_v57  ;;  %v2143_v13 = vld [vmem:[%s4214_s3 + $0x90] sm:$0xff]  ;;  %v2121_v17 = vadd.f32 %v2117_v25, %v2113_v10  ;;  %v2126_v21 = vld [vmem:[%s4214_s3 + $0x8] sm:$0xff]  ;;  %v2125_v9 = vld [vmem:[%s4214_s3] sm:$0xff] }
 0x1aa   : > { %2166 = vmatpush.msra.mxu0 %v2135_v58  ;;  %v2142_v24 = vld [vmem:[%s4214_s3 + $0x88] sm:$0xff]  ;;  %v2141_v27 = vld [vmem:[%s4214_s3 + $0x80] sm:$0xff]  ;;  %v2124_v28 = vmax.f32 %v2122_v18, 0.0 }
 0x1ab   : > { %2186 = vmatpush.msra.mxu1 %v2151_v5  ;;  %v2123_v31 = vmax.f32 %v2121_v17, 0.0  ;;  %v3463_v29 = vld [vmem:[%s4215_s4] ss:$0 sm:$0xff] }
 0x1ac   : > { %2167 = vmatpush.msra.mxu0 %v2134_v59 }
 0x1ad   : > { %2187 = vmatpush.msra.mxu1 %v2150_v60 }
 0x1ae   : > { %2168 = vmatpush.msra.mxu0 %v2133_v61 }
 0x1af   : > { %2188 = vmatpush.msra.mxu1 %v2149_v62 }
 0x1b0   : > { %2169 = vmatpush.msra.mxu0 %v2132_v23 }
 0x1b1   : > { %2189 = vmatpush.msra.mxu1 %v2148_v63 }
 0x1b2   : > { %2170 = vmatpush.msra.mxu0 %v2131_v1 }
 0x1b3   : > { %2190 = vmatpush.msra.mxu1 %v2147_v2 }
 0x1b4   : > { %2171 = vmatpush.msra.mxu0 %v2130_v4 }
 0x1b5   : > { %2191 = vmatpush.msra.mxu1 %v2146_v7 }
 0x1b6   : > { %2172 = vmatpush.msra.mxu0 %v2129_v16 }
 0x1b7   : > { %2192 = vmatpush.msra.mxu1 %v2145_v8 }
 0x1b8   : > { %2173 = vmatpush.msra.mxu0 %v2128_v14 }
 0x1b9   : > { %2193 = vmatpush.msra.mxu1 %v2144_v11 }
 0x1ba   : > { %2174 = vmatpush.msra.mxu0 %v2127_v12 }
 0x1bb   : > { %2194 = vmatpush.msra.mxu1 %v2143_v13 }
 0x1bc   : > { %2175 = vmatpush.msra.mxu0 %v2126_v21 }
 0x1bd   : > { %2195 = vmatpush.msra.mxu1 %v2142_v24 }
 0x1be   : > { %2176 = vmatpush.msra.mxu0 %v2125_v9 }
 0x1bf   : > { %2196 = vmatpush.msra.mxu1 %v2141_v27  ;;  %2177 = vmatmul.f32.vlgmr.msra.gmra.mxu0 %v2123_v31 }
 0x1c0   : > { %2197 = vmatmul.f32.vlgmr.msra.gmra.mxu1 %v2124_v28 }
 0x23c   : > { %v2178_v30 = vpop.f32.mrf.mxu0 }
 0x23d   : > { %v2198_v32 = vpop.f32.mrf.mxu1  ;;  %v2179_v34 = vadd.f32 %v3463_v29, %v2178_v30 }
 0x23f   : > { %v2199_v38 = vadd.f32 %v2198_v32, %v2179_v34 }
 0x241   : > { %2201 = vst [vmem:[%s4216_s5] sm:$0xff] %v2199_v38 }
 0x242 PF: > { %s15_s18 = sadd.s32 1, %s3470_s18  }
 0x243   : > { %p12_p7 = scmp.ge.s32.totalorder %s15_s18, 9  }
 0x245   :  { %14 = sbr.rel (!%p12_p7) target bundleno = 1 (0x1), region = 77 }

</bundles_post_ra>
